<compile_context>
chip_gen: v7x
topology: tpu7x:2x2x1
jax: 0.10.0
libtpu: 0.0.40
codegen_flags: <defaults>
</compile_context>

<pallas_src>
import functools

import jax
import jax.numpy as jnp
from jax.experimental import pallas as pl
from jax.experimental.pallas import tpu as pltpu

LEAKY_SLOPE = 0.2  # TODO(synk): LeakyReLU slope of the original ImageDiscriminatorBody unknown.


# ----------------------------------------------------------------------------
# In-kernel helpers (operate on traced VMEM values; all shapes static).
# ----------------------------------------------------------------------------
def _leaky(x, alpha):
    return jnp.where(x >= 0.0, x, jnp.float32(alpha) * x)


# ----------------------------------------------------------------------------
# Fused whole-network kernel
# ----------------------------------------------------------------------------
def _disc_kernel(x_ref, bias_ref, *rest, alpha, has_residual, image_size):
    """rest = [per-layer param refs ..., head_ref, o_ref].

    Per-layer refs (has_residual=True):  e_in, down_w, sel, e_out, res1_w, res2_w
    Per-layer refs (has_residual=False): e_in, down_w, sel
    """
    *param_refs, head_ref, o_ref = rest
    per = 6 if has_residual else 3
    n_layers = len(param_refs) // per

    act = x_ref[0]                                  # (H*W, Cin) bf16
    size = image_size
    brow = 0

    def bias(row, c):
        return bias_ref[row:row + 1, 0:c]           # (1, c) f32, broadcasts over rows

    def conv(act2d, s, k, e_ref, w_ref):
        """'same'-padded (pad=1) stride-1 conv as one folded-K MXU dot.

        act2d : (s*s, cin) bf16 activation (row-major spatial)
        e_ref : ((s+2)^2, s*s) bf16 0/1 zero-pad matrix
        w_ref : (k*k*cin, cout) bf16 folded weights (tap-major, then cin)
        returns (so*so, cout) f32 with so = s + 2 - k + 1.
        """
        cin = act2d.shape[-1]
        sp = s + 2
        xp = jnp.dot(e_ref[...], act2d,
                     preferred_element_type=jnp.float32).astype(jnp.bfloat16)
        xp = xp.reshape(sp, sp, cin)                 # zero-padded image
        so = sp - k + 1
        taps = [xp[di:di + so, dj:dj + so, :]
                for di in range(k) for dj in range(k)]
        patches = jnp.concatenate(taps, axis=-1).reshape(so * so, k * k * cin)
        return jnp.dot(patches, w_ref[...],
                       preferred_element_type=jnp.float32)

    for li in range(n_layers):
        refs = param_refs[per * li: per * (li + 1)]
        e_in, dw, sel = refs[0], refs[1], refs[2]
        cout = dw.shape[1]
        half = size // 2

        # ---- 4x4 / stride-2 / pad-1 downsample conv (+bias, LeakyReLU) -----
        z = conv(act, size, 4, e_in, dw)                        # ((size-1)^2, cout)
        if sel.shape[0] != z.shape[0]:                          # stride-2 pick (MXU select)
            z = jnp.dot(sel[...], z.astype(jnp.bfloat16),
                        preferred_element_type=jnp.float32)     # (half^2, cout)
        z = _leaky(z + bias(brow, cout), alpha)
        brow += 1
        act = z.astype(jnp.bfloat16)                            # (half^2, cout) bf16

        if has_residual:
            e_out, r1w, r2w = refs[3], refs[4], refs[5]
            # ---- residual block: conv3x3 -> LReLU -> conv3x3 -> + skip -----
            r = conv(act, half, 3, e_out, r1w)
            r = _leaky(r + bias(brow, cout), alpha)
            brow += 1
            r = r.astype(jnp.bfloat16)

            y = conv(r, half, 3, e_out, r2w)
            y = y + bias(brow, cout)
            brow += 1
            y = y + act.astype(jnp.float32)                     # skip connection
            # TODO(synk): no activation after the skip add (unknown in original body).
            act = y.astype(jnp.bfloat16)

        size = half

    # ---- joined reality + pose 1x1-conv heads (bias=False, lane-padded) ----
    out = jnp.dot(act, head_ref[...], preferred_element_type=jnp.float32)
    o_ref[...] = out.reshape((1,) + out.shape)


# ----------------------------------------------------------------------------
# Host-side parameter construction (deterministic)
# ----------------------------------------------------------------------------
def _he_conv(key, k, cin, cout):
    """Folded (k*k*cin, cout) He-init conv weight, bf16 (MXU operand)."""
    std = (2.0 / (cin * k * k)) ** 0.5
    w = jax.random.normal(key, (k * k * cin, cout), jnp.float32) * std
    return w.astype(jnp.bfloat16)


def _conv_bias(key, k, cin, cout):
    bound = 1.0 / float(cin * k * k) ** 0.5
    return jax.random.uniform(key, (cout,), jnp.float32, -bound, bound)


def _pad_matrix(h, w, pad):
    """0/1 matrix E so (E @ x2d).reshape(h+2p, w+2p, c) is x zero-padded by `pad`."""
    hp, wp = h + 2 * pad, w + 2 * pad
    src = jnp.arange(h * w)
    dst = (src // w + pad) * wp + (src % w + pad)
    e = jnp.zeros((hp * wp, h * w), jnp.float32).at[dst, src].set(1.0)
    return e.astype(jnp.bfloat16)


def _subsample_matrix(ho, wo, hz, wz):
    """0/1 matrix S so (S @ z2d)[i*wo+j] = z2d[(2i)*wz + 2j]  (stride-2 pick)."""
    rows = jnp.arange(ho * wo)
    cols = 2 * (rows // wo) * wz + 2 * (rows % wo)
    s = jnp.zeros((ho * wo, hz * wz), jnp.float32).at[rows, cols].set(1.0)
    return s.astype(jnp.bfloat16)


def _head_weights(key, in_dim, pose_size):
    """Joined reality (1) + pose (pose_size) 1x1-conv weights, lane-padded to 128."""
    assert 1 + pose_size <= 128
    k1, k2 = jax.random.split(key)
    std = (2.0 / in_dim) ** 0.5
    w_real = jax.random.normal(k1, (in_dim, 1), jnp.float32) * std
    w_pose = jax.random.normal(k2, (in_dim, pose_size), jnp.float32) * std
    w = jnp.concatenate([w_real, w_pose], axis=1)
    return jnp.pad(w, ((0, 0), (0, 128 - w.shape[1]))).astype(jnp.bfloat16)


def init_params(key, *, image_size, pose_size, initial_dim, max_dim,
                insert_residual_blocks=True):
    assert image_size >= 2 and (image_size & (image_size - 1)) == 0, \
        "image_size must be a power of two"
    keys = iter(jax.random.split(key, 256))
    layers, biases = [], []
    in_ch, dim, size = 8, initial_dim, image_size
    while size > 1:
        half = size // 2
        layer = {
            "e_in": _pad_matrix(size, size, 1),
            "down": _he_conv(next(keys), 4, in_ch, dim),
            "sel": _subsample_matrix(half, half, size - 1, size - 1),
        }
        biases.append(_conv_bias(next(keys), 4, in_ch, dim))
        if insert_residual_blocks:
            layer["e_out"] = _pad_matrix(half, half, 1)
            layer["res1"] = _he_conv(next(keys), 3, dim, dim)
            layer["res2"] = _he_conv(next(keys), 3, dim, dim)
            biases.append(_conv_bias(next(keys), 3, dim, dim))
            biases.append(_conv_bias(next(keys), 3, dim, dim))
        layers.append(layer)
        in_ch = dim
        dim = min(dim * 2, max_dim)
        size = half
    max_c = max(b.shape[0] for b in biases)
    bw = ((max_c + 127) // 128) * 128
    bias_mat = jnp.stack([jnp.pad(b, (0, bw - b.shape[0])) for b in biases])
    head = _head_weights(next(keys), in_ch, pose_size)
    return {"layers": layers, "biases": bias_mat, "head": head}


# ----------------------------------------------------------------------------
# Forward pass (mirrors SimplifiedPumarolaDiscriminatorJoined.forward)
# ----------------------------------------------------------------------------
def _full_spec(a):
    return pl.BlockSpec(a.shape, lambda i, nd=a.ndim: (0,) * nd)


def discriminator_forward(params, input_image, output_image, *, pose_size,
                          insert_residual_blocks=True):
    x = jnp.concatenate([input_image, output_image], axis=1)     # (N, 8, H, W)
    n, _, h, w = x.shape
    assert h == w, "square images expected"
    x = jnp.transpose(x, (0, 2, 3, 1)).astype(jnp.bfloat16)      # NHWC, bf16 activations
    c = x.shape[-1]
    x = x.reshape(n, h * w, c)                                   # (N, H*W, 8)

    names = (("e_in", "down", "sel", "e_out", "res1", "res2")
             if insert_residual_blocks else ("e_in", "down", "sel"))
    flat, specs = [params["biases"]], [_full_spec(params["biases"])]
    for layer in params["layers"]:
        for nm in names:
            flat.append(layer[nm])
            specs.append(_full_spec(layer[nm]))
    flat.append(params["head"])
    specs.append(_full_spec(params["head"]))

    head_cols = params["head"].shape[1]
    out = pl.pallas_call(
        functools.partial(_disc_kernel, alpha=LEAKY_SLOPE,
                          has_residual=insert_residual_blocks, image_size=h),
        out_shape=jax.ShapeDtypeStruct((n, 1, head_cols), jnp.float32),
        grid=(n,),
        in_specs=[pl.BlockSpec((1, h * w, c), lambda i: (i, 0, 0))] + specs,
        out_specs=pl.BlockSpec((1, 1, head_cols), lambda i: (i, 0, 0)),
        compiler_params=pltpu.CompilerParams(
            dimension_semantics=("parallel",),
            vmem_limit_bytes=32 * 1024 * 1024),
    )(x, *flat)

    out = out[:, 0, :]                                           # (N, 128)
    reality = jnp.squeeze(out[:, 0])                             # mirrors torch .squeeze()
    pose = jnp.squeeze(out[:, 1:1 + pose_size])
    return reality, pose


# ----------------------------------------------------------------------------
# Demo
# ----------------------------------------------------------------------------
if __name__ == "__main__":
    IMAGE_SIZE = 16
    POSE_SIZE = 4
    INITIAL_DIM = 16
    MAX_DIM = 64
    BATCH = 2

    root = jax.random.PRNGKey(0)
    k_params, k_in, k_out = jax.random.split(root, 3)

    params = init_params(k_params, image_size=IMAGE_SIZE, pose_size=POSE_SIZE,
                         initial_dim=INITIAL_DIM, max_dim=MAX_DIM,
                         insert_residual_blocks=True)
    input_image = jax.random.normal(k_in, (BATCH, 4, IMAGE_SIZE, IMAGE_SIZE),
                                    jnp.float32)
    output_image = jax.random.normal(k_out, (BATCH, 4, IMAGE_SIZE, IMAGE_SIZE),
                                     jnp.float32)

    fwd = jax.jit(functools.partial(discriminator_forward, pose_size=POSE_SIZE,
                                    insert_residual_blocks=True))
    reality, pose = fwd(params, input_image, output_image)
    jax.block_until_ready((reality, pose))

    assert reality.shape == (BATCH,), reality.shape
    assert pose.shape == (BATCH, POSE_SIZE), pose.shape
    assert bool(jnp.all(jnp.isfinite(reality)))
    assert bool(jnp.all(jnp.isfinite(pose)))
    print("KERNEL_OK")
</pallas_src>

<mosaic_0001>
module attributes {stable_mosaic.version = 11 : i64} {
  func.func @_disc_kernel(%arg0: i32, %arg1: memref<1x256x8xbf16, #tpu.memory_space<vmem>>, %arg2: memref<12x128xf32, #tpu.memory_space<vmem>>, %arg3: memref<324x256xbf16, #tpu.memory_space<vmem>>, %arg4: memref<128x16xbf16, #tpu.memory_space<vmem>>, %arg5: memref<64x225xbf16, #tpu.memory_space<vmem>>, %arg6: memref<100x64xbf16, #tpu.memory_space<vmem>>, %arg7: memref<144x16xbf16, #tpu.memory_space<vmem>>, %arg8: memref<144x16xbf16, #tpu.memory_space<vmem>>, %arg9: memref<100x64xbf16, #tpu.memory_space<vmem>>, %arg10: memref<256x32xbf16, #tpu.memory_space<vmem>>, %arg11: memref<16x49xbf16, #tpu.memory_space<vmem>>, %arg12: memref<36x16xbf16, #tpu.memory_space<vmem>>, %arg13: memref<288x32xbf16, #tpu.memory_space<vmem>>, %arg14: memref<288x32xbf16, #tpu.memory_space<vmem>>, %arg15: memref<36x16xbf16, #tpu.memory_space<vmem>>, %arg16: memref<512x64xbf16, #tpu.memory_space<vmem>>, %arg17: memref<4x9xbf16, #tpu.memory_space<vmem>>, %arg18: memref<16x4xbf16, #tpu.memory_space<vmem>>, %arg19: memref<576x64xbf16, #tpu.memory_space<vmem>>, %arg20: memref<576x64xbf16, #tpu.memory_space<vmem>>, %arg21: memref<16x4xbf16, #tpu.memory_space<vmem>>, %arg22: memref<1024x64xbf16, #tpu.memory_space<vmem>>, %arg23: memref<1x1xbf16, #tpu.memory_space<vmem>>, %arg24: memref<9x1xbf16, #tpu.memory_space<vmem>>, %arg25: memref<576x64xbf16, #tpu.memory_space<vmem>>, %arg26: memref<576x64xbf16, #tpu.memory_space<vmem>>, %arg27: memref<64x128xbf16, #tpu.memory_space<vmem>>, %arg28: memref<1x1x128xf32, #tpu.memory_space<vmem>>) attributes {dimension_semantics = [#tpu.dimension_semantics<parallel>], iteration_bounds = array<i64: 2>, scalar_prefetch = 0 : i64, scratch_operands = 0 : i64, tpu.core_type = #tpu.core_type<tc>, window_params = [{transform_indices = @transform_0, window_bounds = array<i64: 1, 256, 8>}, {pipeline_mode = #tpu.pipeline_mode<synchronous>, transform_indices = @transform_1, window_bounds = array<i64: 12, 128>}, {pipeline_mode = #tpu.pipeline_mode<synchronous>, transform_indices = @transform_2, window_bounds = array<i64: 324, 256>}, {pipeline_mode = #tpu.pipeline_mode<synchronous>, transform_indices = @transform_3, window_bounds = array<i64: 128, 16>}, {pipeline_mode = #tpu.pipeline_mode<synchronous>, transform_indices = @transform_4, window_bounds = array<i64: 64, 225>}, {pipeline_mode = #tpu.pipeline_mode<synchronous>, transform_indices = @transform_5, window_bounds = array<i64: 100, 64>}, {pipeline_mode = #tpu.pipeline_mode<synchronous>, transform_indices = @transform_6, window_bounds = array<i64: 144, 16>}, {pipeline_mode = #tpu.pipeline_mode<synchronous>, transform_indices = @transform_7, window_bounds = array<i64: 144, 16>}, {pipeline_mode = #tpu.pipeline_mode<synchronous>, transform_indices = @transform_8, window_bounds = array<i64: 100, 64>}, {pipeline_mode = #tpu.pipeline_mode<synchronous>, transform_indices = @transform_9, window_bounds = array<i64: 256, 32>}, {pipeline_mode = #tpu.pipeline_mode<synchronous>, transform_indices = @transform_10, window_bounds = array<i64: 16, 49>}, {pipeline_mode = #tpu.pipeline_mode<synchronous>, transform_indices = @transform_11, window_bounds = array<i64: 36, 16>}, {pipeline_mode = #tpu.pipeline_mode<synchronous>, transform_indices = @transform_12, window_bounds = array<i64: 288, 32>}, {pipeline_mode = #tpu.pipeline_mode<synchronous>, transform_indices = @transform_13, window_bounds = array<i64: 288, 32>}, {pipeline_mode = #tpu.pipeline_mode<synchronous>, transform_indices = @transform_14, window_bounds = array<i64: 36, 16>}, {pipeline_mode = #tpu.pipeline_mode<synchronous>, transform_indices = @transform_15, window_bounds = array<i64: 512, 64>}, {pipeline_mode = #tpu.pipeline_mode<synchronous>, transform_indices = @transform_16, window_bounds = array<i64: 4, 9>}, {pipeline_mode = #tpu.pipeline_mode<synchronous>, transform_indices = @transform_17, window_bounds = array<i64: 16, 4>}, {pipeline_mode = #tpu.pipeline_mode<synchronous>, transform_indices = @transform_18, window_bounds = array<i64: 576, 64>}, {pipeline_mode = #tpu.pipeline_mode<synchronous>, transform_indices = @transform_19, window_bounds = array<i64: 576, 64>}, {pipeline_mode = #tpu.pipeline_mode<synchronous>, transform_indices = @transform_20, window_bounds = array<i64: 16, 4>}, {pipeline_mode = #tpu.pipeline_mode<synchronous>, transform_indices = @transform_21, window_bounds = array<i64: 1024, 64>}, {pipeline_mode = #tpu.pipeline_mode<synchronous>, transform_indices = @transform_22, window_bounds = array<i64: 1, 1>}, {pipeline_mode = #tpu.pipeline_mode<synchronous>, transform_indices = @transform_23, window_bounds = array<i64: 9, 1>}, {pipeline_mode = #tpu.pipeline_mode<synchronous>, transform_indices = @transform_24, window_bounds = array<i64: 576, 64>}, {pipeline_mode = #tpu.pipeline_mode<synchronous>, transform_indices = @transform_25, window_bounds = array<i64: 576, 64>}, {pipeline_mode = #tpu.pipeline_mode<synchronous>, transform_indices = @transform_26, window_bounds = array<i64: 64, 128>}, {transform_indices = @transform_27, window_bounds = array<i64: 1, 1, 128>}]} {
    %c0 = arith.constant 0 : index
    %c0_0 = arith.constant 0 : index
    %c0_1 = arith.constant 0 : index
    %0 = vector.load %arg1[%c0, %c0_0, %c0_1] : memref<1x256x8xbf16, #tpu.memory_space<vmem>>, vector<1x256x8xbf16>
    %1 = vector.shape_cast %0 : vector<1x256x8xbf16> to vector<256x8xbf16>
    %c0_2 = arith.constant 0 : index
    %c0_3 = arith.constant 0 : index
    %2 = vector.load %arg3[%c0_2, %c0_3] : memref<324x256xbf16, #tpu.memory_space<vmem>>, vector<324x256xbf16>
    %cst = arith.constant dense<0.000000e+00> : vector<324x8xf32>
    %3 = tpu.matmul %2, %1, %cst {dimension_numbers = #tpu.dot_dimension_numbers<[1], [0], [0], [1], [0, 0, 1, 1], [], []>} : vector<324x256xbf16>, vector<256x8xbf16>, vector<324x8xf32> -> vector<324x8xf32>
    %4 = arith.truncf %3 : vector<324x8xf32> to vector<324x8xbf16>
    %5 = vector.shape_cast %4 : vector<324x8xbf16> to vector<18x18x8xbf16>
    %6 = vector.extract_strided_slice %5 {offsets = [0, 0, 0], sizes = [15, 15, 8], strides = [1, 1, 1]} : vector<18x18x8xbf16> to vector<15x15x8xbf16>
    %7 = vector.extract_strided_slice %5 {offsets = [0, 1, 0], sizes = [15, 15, 8], strides = [1, 1, 1]} : vector<18x18x8xbf16> to vector<15x15x8xbf16>
    %8 = vector.extract_strided_slice %5 {offsets = [0, 2, 0], sizes = [15, 15, 8], strides = [1, 1, 1]} : vector<18x18x8xbf16> to vector<15x15x8xbf16>
    %9 = vector.extract_strided_slice %5 {offsets = [0, 3, 0], sizes = [15, 15, 8], strides = [1, 1, 1]} : vector<18x18x8xbf16> to vector<15x15x8xbf16>
    %10 = vector.extract_strided_slice %5 {offsets = [1, 0, 0], sizes = [15, 15, 8], strides = [1, 1, 1]} : vector<18x18x8xbf16> to vector<15x15x8xbf16>
    %11 = vector.extract_strided_slice %5 {offsets = [1, 1, 0], sizes = [15, 15, 8], strides = [1, 1, 1]} : vector<18x18x8xbf16> to vector<15x15x8xbf16>
    %12 = vector.extract_strided_slice %5 {offsets = [1, 2, 0], sizes = [15, 15, 8], strides = [1, 1, 1]} : vector<18x18x8xbf16> to vector<15x15x8xbf16>
    %13 = vector.extract_strided_slice %5 {offsets = [1, 3, 0], sizes = [15, 15, 8], strides = [1, 1, 1]} : vector<18x18x8xbf16> to vector<15x15x8xbf16>
    %14 = vector.extract_strided_slice %5 {offsets = [2, 0, 0], sizes = [15, 15, 8], strides = [1, 1, 1]} : vector<18x18x8xbf16> to vector<15x15x8xbf16>
    %15 = vector.extract_strided_slice %5 {offsets = [2, 1, 0], sizes = [15, 15, 8], strides = [1, 1, 1]} : vector<18x18x8xbf16> to vector<15x15x8xbf16>
    %16 = vector.extract_strided_slice %5 {offsets = [2, 2, 0], sizes = [15, 15, 8], strides = [1, 1, 1]} : vector<18x18x8xbf16> to vector<15x15x8xbf16>
    %17 = vector.extract_strided_slice %5 {offsets = [2, 3, 0], sizes = [15, 15, 8], strides = [1, 1, 1]} : vector<18x18x8xbf16> to vector<15x15x8xbf16>
    %18 = vector.extract_strided_slice %5 {offsets = [3, 0, 0], sizes = [15, 15, 8], strides = [1, 1, 1]} : vector<18x18x8xbf16> to vector<15x15x8xbf16>
    %19 = vector.extract_strided_slice %5 {offsets = [3, 1, 0], sizes = [15, 15, 8], strides = [1, 1, 1]} : vector<18x18x8xbf16> to vector<15x15x8xbf16>
    %20 = vector.extract_strided_slice %5 {offsets = [3, 2, 0], sizes = [15, 15, 8], strides = [1, 1, 1]} : vector<18x18x8xbf16> to vector<15x15x8xbf16>
    %21 = vector.extract_strided_slice %5 {offsets = [3, 3, 0], sizes = [15, 15, 8], strides = [1, 1, 1]} : vector<18x18x8xbf16> to vector<15x15x8xbf16>
    %22 = tpu.concatenate %6, %7, %8, %9, %10, %11, %12, %13, %14, %15, %16, %17, %18, %19, %20, %21 in 2 : vector<15x15x8xbf16>, vector<15x15x8xbf16>, vector<15x15x8xbf16>, vector<15x15x8xbf16>, vector<15x15x8xbf16>, vector<15x15x8xbf16>, vector<15x15x8xbf16>, vector<15x15x8xbf16>, vector<15x15x8xbf16>, vector<15x15x8xbf16>, vector<15x15x8xbf16>, vector<15x15x8xbf16>, vector<15x15x8xbf16>, vector<15x15x8xbf16>, vector<15x15x8xbf16>, vector<15x15x8xbf16> -> vector<15x15x128xbf16>
    %23 = vector.shape_cast %22 : vector<15x15x128xbf16> to vector<225x128xbf16>
    %c0_4 = arith.constant 0 : index
    %c0_5 = arith.constant 0 : index
    %24 = vector.load %arg4[%c0_4, %c0_5] : memref<128x16xbf16, #tpu.memory_space<vmem>>, vector<128x16xbf16>
    %cst_6 = arith.constant dense<0.000000e+00> : vector<225x16xf32>
    %25 = tpu.matmul %23, %24, %cst_6 {dimension_numbers = #tpu.dot_dimension_numbers<[1], [0], [0], [1], [0, 0, 1, 1], [], []>} : vector<225x128xbf16>, vector<128x16xbf16>, vector<225x16xf32> -> vector<225x16xf32>
    %c0_7 = arith.constant 0 : index
    %c0_8 = arith.constant 0 : index
    %26 = vector.load %arg5[%c0_7, %c0_8] : memref<64x225xbf16, #tpu.memory_space<vmem>>, vector<64x225xbf16>
    %27 = arith.truncf %25 : vector<225x16xf32> to vector<225x16xbf16>
    %cst_9 = arith.constant dense<0.000000e+00> : vector<64x16xf32>
    %28 = tpu.matmul %26, %27, %cst_9 {dimension_numbers = #tpu.dot_dimension_numbers<[1], [0], [0], [1], [0, 0, 1, 1], [], []>} : vector<64x225xbf16>, vector<225x16xbf16>, vector<64x16xf32> -> vector<64x16xf32>
    %c0_10 = arith.constant 0 : index
    %c0_11 = arith.constant 0 : index
    %29 = vector.load %arg2[%c0_10, %c0_11] : memref<12x128xf32, #tpu.memory_space<vmem>>, vector<1x16xf32>
    %30 = vector.broadcast %29 : vector<1x16xf32> to vector<64x16xf32>
    %31 = arith.addf %28, %30 : vector<64x16xf32>
    %cst_12 = arith.constant 0.000000e+00 : f32
    %32 = vector.broadcast %cst_12 : f32 to vector<64x16xf32>
    %33 = arith.cmpf oge, %31, %32 : vector<64x16xf32>
    %cst_13 = arith.constant 2.000000e-01 : f32
    %34 = vector.broadcast %cst_13 : f32 to vector<64x16xf32>
    %35 = arith.mulf %34, %31 : vector<64x16xf32>
    %36 = arith.select %33, %31, %35 : vector<64x16xi1>, vector<64x16xf32>
    %37 = arith.truncf %36 : vector<64x16xf32> to vector<64x16xbf16>
    %c0_14 = arith.constant 0 : index
    %c0_15 = arith.constant 0 : index
    %38 = vector.load %arg6[%c0_14, %c0_15] : memref<100x64xbf16, #tpu.memory_space<vmem>>, vector<100x64xbf16>
    %cst_16 = arith.constant dense<0.000000e+00> : vector<100x16xf32>
    %39 = tpu.matmul %38, %37, %cst_16 {dimension_numbers = #tpu.dot_dimension_numbers<[1], [0], [0], [1], [0, 0, 1, 1], [], []>} : vector<100x64xbf16>, vector<64x16xbf16>, vector<100x16xf32> -> vector<100x16xf32>
    %40 = arith.truncf %39 : vector<100x16xf32> to vector<100x16xbf16>
    %41 = vector.shape_cast %40 : vector<100x16xbf16> to vector<10x10x16xbf16>
    %42 = vector.extract_strided_slice %41 {offsets = [0, 0, 0], sizes = [8, 8, 16], strides = [1, 1, 1]} : vector<10x10x16xbf16> to vector<8x8x16xbf16>
    %43 = vector.extract_strided_slice %41 {offsets = [0, 1, 0], sizes = [8, 8, 16], strides = [1, 1, 1]} : vector<10x10x16xbf16> to vector<8x8x16xbf16>
    %44 = vector.extract_strided_slice %41 {offsets = [0, 2, 0], sizes = [8, 8, 16], strides = [1, 1, 1]} : vector<10x10x16xbf16> to vector<8x8x16xbf16>
    %45 = vector.extract_strided_slice %41 {offsets = [1, 0, 0], sizes = [8, 8, 16], strides = [1, 1, 1]} : vector<10x10x16xbf16> to vector<8x8x16xbf16>
    %46 = vector.extract_strided_slice %41 {offsets = [1, 1, 0], sizes = [8, 8, 16], strides = [1, 1, 1]} : vector<10x10x16xbf16> to vector<8x8x16xbf16>
    %47 = vector.extract_strided_slice %41 {offsets = [1, 2, 0], sizes = [8, 8, 16], strides = [1, 1, 1]} : vector<10x10x16xbf16> to vector<8x8x16xbf16>
    %48 = vector.extract_strided_slice %41 {offsets = [2, 0, 0], sizes = [8, 8, 16], strides = [1, 1, 1]} : vector<10x10x16xbf16> to vector<8x8x16xbf16>
    %49 = vector.extract_strided_slice %41 {offsets = [2, 1, 0], sizes = [8, 8, 16], strides = [1, 1, 1]} : vector<10x10x16xbf16> to vector<8x8x16xbf16>
    %50 = vector.extract_strided_slice %41 {offsets = [2, 2, 0], sizes = [8, 8, 16], strides = [1, 1, 1]} : vector<10x10x16xbf16> to vector<8x8x16xbf16>
    %51 = tpu.concatenate %42, %43, %44, %45, %46, %47, %48, %49, %50 in 2 : vector<8x8x16xbf16>, vector<8x8x16xbf16>, vector<8x8x16xbf16>, vector<8x8x16xbf16>, vector<8x8x16xbf16>, vector<8x8x16xbf16>, vector<8x8x16xbf16>, vector<8x8x16xbf16>, vector<8x8x16xbf16> -> vector<8x8x144xbf16>
    %52 = vector.shape_cast %51 : vector<8x8x144xbf16> to vector<64x144xbf16>
    %c0_17 = arith.constant 0 : index
    %c0_18 = arith.constant 0 : index
    %53 = vector.load %arg7[%c0_17, %c0_18] : memref<144x16xbf16, #tpu.memory_space<vmem>>, vector<144x16xbf16>
    %cst_19 = arith.constant dense<0.000000e+00> : vector<64x16xf32>
    %54 = tpu.matmul %52, %53, %cst_19 {dimension_numbers = #tpu.dot_dimension_numbers<[1], [0], [0], [1], [0, 0, 1, 1], [], []>} : vector<64x144xbf16>, vector<144x16xbf16>, vector<64x16xf32> -> vector<64x16xf32>
    %c1 = arith.constant 1 : index
    %c0_20 = arith.constant 0 : index
    %55 = vector.load %arg2[%c1, %c0_20] : memref<12x128xf32, #tpu.memory_space<vmem>>, vector<1x16xf32>
    %56 = vector.broadcast %55 : vector<1x16xf32> to vector<64x16xf32>
    %57 = arith.addf %54, %56 : vector<64x16xf32>
    %cst_21 = arith.constant 0.000000e+00 : f32
    %58 = vector.broadcast %cst_21 : f32 to vector<64x16xf32>
    %59 = arith.cmpf oge, %57, %58 : vector<64x16xf32>
    %cst_22 = arith.constant 2.000000e-01 : f32
    %60 = vector.broadcast %cst_22 : f32 to vector<64x16xf32>
    %61 = arith.mulf %60, %57 : vector<64x16xf32>
    %62 = arith.select %59, %57, %61 : vector<64x16xi1>, vector<64x16xf32>
    %63 = arith.truncf %62 : vector<64x16xf32> to vector<64x16xbf16>
    %c0_23 = arith.constant 0 : index
    %c0_24 = arith.constant 0 : index
    %64 = vector.load %arg6[%c0_23, %c0_24] : memref<100x64xbf16, #tpu.memory_space<vmem>>, vector<100x64xbf16>
    %cst_25 = arith.constant dense<0.000000e+00> : vector<100x16xf32>
    %65 = tpu.matmul %64, %63, %cst_25 {dimension_numbers = #tpu.dot_dimension_numbers<[1], [0], [0], [1], [0, 0, 1, 1], [], []>} : vector<100x64xbf16>, vector<64x16xbf16>, vector<100x16xf32> -> vector<100x16xf32>
    %66 = arith.truncf %65 : vector<100x16xf32> to vector<100x16xbf16>
    %67 = vector.shape_cast %66 : vector<100x16xbf16> to vector<10x10x16xbf16>
    %68 = vector.extract_strided_slice %67 {offsets = [0, 0, 0], sizes = [8, 8, 16], strides = [1, 1, 1]} : vector<10x10x16xbf16> to vector<8x8x16xbf16>
    %69 = vector.extract_strided_slice %67 {offsets = [0, 1, 0], sizes = [8, 8, 16], strides = [1, 1, 1]} : vector<10x10x16xbf16> to vector<8x8x16xbf16>
    %70 = vector.extract_strided_slice %67 {offsets = [0, 2, 0], sizes = [8, 8, 16], strides = [1, 1, 1]} : vector<10x10x16xbf16> to vector<8x8x16xbf16>
    %71 = vector.extract_strided_slice %67 {offsets = [1, 0, 0], sizes = [8, 8, 16], strides = [1, 1, 1]} : vector<10x10x16xbf16> to vector<8x8x16xbf16>
    %72 = vector.extract_strided_slice %67 {offsets = [1, 1, 0], sizes = [8, 8, 16], strides = [1, 1, 1]} : vector<10x10x16xbf16> to vector<8x8x16xbf16>
    %73 = vector.extract_strided_slice %67 {offsets = [1, 2, 0], sizes = [8, 8, 16], strides = [1, 1, 1]} : vector<10x10x16xbf16> to vector<8x8x16xbf16>
    %74 = vector.extract_strided_slice %67 {offsets = [2, 0, 0], sizes = [8, 8, 16], strides = [1, 1, 1]} : vector<10x10x16xbf16> to vector<8x8x16xbf16>
    %75 = vector.extract_strided_slice %67 {offsets = [2, 1, 0], sizes = [8, 8, 16], strides = [1, 1, 1]} : vector<10x10x16xbf16> to vector<8x8x16xbf16>
    %76 = vector.extract_strided_slice %67 {offsets = [2, 2, 0], sizes = [8, 8, 16], strides = [1, 1, 1]} : vector<10x10x16xbf16> to vector<8x8x16xbf16>
    %77 = tpu.concatenate %68, %69, %70, %71, %72, %73, %74, %75, %76 in 2 : vector<8x8x16xbf16>, vector<8x8x16xbf16>, vector<8x8x16xbf16>, vector<8x8x16xbf16>, vector<8x8x16xbf16>, vector<8x8x16xbf16>, vector<8x8x16xbf16>, vector<8x8x16xbf16>, vector<8x8x16xbf16> -> vector<8x8x144xbf16>
    %78 = vector.shape_cast %77 : vector<8x8x144xbf16> to vector<64x144xbf16>
    %c0_26 = arith.constant 0 : index
    %c0_27 = arith.constant 0 : index
    %79 = vector.load %arg8[%c0_26, %c0_27] : memref<144x16xbf16, #tpu.memory_space<vmem>>, vector<144x16xbf16>
    %cst_28 = arith.constant dense<0.000000e+00> : vector<64x16xf32>
    %80 = tpu.matmul %78, %79, %cst_28 {dimension_numbers = #tpu.dot_dimension_numbers<[1], [0], [0], [1], [0, 0, 1, 1], [], []>} : vector<64x144xbf16>, vector<144x16xbf16>, vector<64x16xf32> -> vector<64x16xf32>
    %c2 = arith.constant 2 : index
    %c0_29 = arith.constant 0 : index
    %81 = vector.load %arg2[%c2, %c0_29] : memref<12x128xf32, #tpu.memory_space<vmem>>, vector<1x16xf32>
    %82 = vector.broadcast %81 : vector<1x16xf32> to vector<64x16xf32>
    %83 = arith.addf %80, %82 : vector<64x16xf32>
    %84 = arith.extf %37 : vector<64x16xbf16> to vector<64x16xf32>
    %85 = arith.addf %83, %84 : vector<64x16xf32>
    %86 = arith.truncf %85 : vector<64x16xf32> to vector<64x16xbf16>
    %c0_30 = arith.constant 0 : index
    %c0_31 = arith.constant 0 : index
    %87 = vector.load %arg9[%c0_30, %c0_31] : memref<100x64xbf16, #tpu.memory_space<vmem>>, vector<100x64xbf16>
    %cst_32 = arith.constant dense<0.000000e+00> : vector<100x16xf32>
    %88 = tpu.matmul %87, %86, %cst_32 {dimension_numbers = #tpu.dot_dimension_numbers<[1], [0], [0], [1], [0, 0, 1, 1], [], []>} : vector<100x64xbf16>, vector<64x16xbf16>, vector<100x16xf32> -> vector<100x16xf32>
    %89 = arith.truncf %88 : vector<100x16xf32> to vector<100x16xbf16>
    %90 = vector.shape_cast %89 : vector<100x16xbf16> to vector<10x10x16xbf16>
    %91 = vector.extract_strided_slice %90 {offsets = [0, 0, 0], sizes = [7, 7, 16], strides = [1, 1, 1]} : vector<10x10x16xbf16> to vector<7x7x16xbf16>
    %92 = vector.extract_strided_slice %90 {offsets = [0, 1, 0], sizes = [7, 7, 16], strides = [1, 1, 1]} : vector<10x10x16xbf16> to vector<7x7x16xbf16>
    %93 = vector.extract_strided_slice %90 {offsets = [0, 2, 0], sizes = [7, 7, 16], strides = [1, 1, 1]} : vector<10x10x16xbf16> to vector<7x7x16xbf16>
    %94 = vector.extract_strided_slice %90 {offsets = [0, 3, 0], sizes = [7, 7, 16], strides = [1, 1, 1]} : vector<10x10x16xbf16> to vector<7x7x16xbf16>
    %95 = vector.extract_strided_slice %90 {offsets = [1, 0, 0], sizes = [7, 7, 16], strides = [1, 1, 1]} : vector<10x10x16xbf16> to vector<7x7x16xbf16>
    %96 = vector.extract_strided_slice %90 {offsets = [1, 1, 0], sizes = [7, 7, 16], strides = [1, 1, 1]} : vector<10x10x16xbf16> to vector<7x7x16xbf16>
    %97 = vector.extract_strided_slice %90 {offsets = [1, 2, 0], sizes = [7, 7, 16], strides = [1, 1, 1]} : vector<10x10x16xbf16> to vector<7x7x16xbf16>
    %98 = vector.extract_strided_slice %90 {offsets = [1, 3, 0], sizes = [7, 7, 16], strides = [1, 1, 1]} : vector<10x10x16xbf16> to vector<7x7x16xbf16>
    %99 = vector.extract_strided_slice %90 {offsets = [2, 0, 0], sizes = [7, 7, 16], strides = [1, 1, 1]} : vector<10x10x16xbf16> to vector<7x7x16xbf16>
    %100 = vector.extract_strided_slice %90 {offsets = [2, 1, 0], sizes = [7, 7, 16], strides = [1, 1, 1]} : vector<10x10x16xbf16> to vector<7x7x16xbf16>
    %101 = vector.extract_strided_slice %90 {offsets = [2, 2, 0], sizes = [7, 7, 16], strides = [1, 1, 1]} : vector<10x10x16xbf16> to vector<7x7x16xbf16>
    %102 = vector.extract_strided_slice %90 {offsets = [2, 3, 0], sizes = [7, 7, 16], strides = [1, 1, 1]} : vector<10x10x16xbf16> to vector<7x7x16xbf16>
    %103 = vector.extract_strided_slice %90 {offsets = [3, 0, 0], sizes = [7, 7, 16], strides = [1, 1, 1]} : vector<10x10x16xbf16> to vector<7x7x16xbf16>
    %104 = vector.extract_strided_slice %90 {offsets = [3, 1, 0], sizes = [7, 7, 16], strides = [1, 1, 1]} : vector<10x10x16xbf16> to vector<7x7x16xbf16>
    %105 = vector.extract_strided_slice %90 {offsets = [3, 2, 0], sizes = [7, 7, 16], strides = [1, 1, 1]} : vector<10x10x16xbf16> to vector<7x7x16xbf16>
    %106 = vector.extract_strided_slice %90 {offsets = [3, 3, 0], sizes = [7, 7, 16], strides = [1, 1, 1]} : vector<10x10x16xbf16> to vector<7x7x16xbf16>
    %107 = tpu.concatenate %91, %92, %93, %94, %95, %96, %97, %98, %99, %100, %101, %102, %103, %104, %105, %106 in 2 : vector<7x7x16xbf16>, vector<7x7x16xbf16>, vector<7x7x16xbf16>, vector<7x7x16xbf16>, vector<7x7x16xbf16>, vector<7x7x16xbf16>, vector<7x7x16xbf16>, vector<7x7x16xbf16>, vector<7x7x16xbf16>, vector<7x7x16xbf16>, vector<7x7x16xbf16>, vector<7x7x16xbf16>, vector<7x7x16xbf16>, vector<7x7x16xbf16>, vector<7x7x16xbf16>, vector<7x7x16xbf16> -> vector<7x7x256xbf16>
    %108 = vector.shape_cast %107 : vector<7x7x256xbf16> to vector<49x256xbf16>
    %c0_33 = arith.constant 0 : index
    %c0_34 = arith.constant 0 : index
    %109 = vector.load %arg10[%c0_33, %c0_34] : memref<256x32xbf16, #tpu.memory_space<vmem>>, vector<256x32xbf16>
    %cst_35 = arith.constant dense<0.000000e+00> : vector<49x32xf32>
    %110 = tpu.matmul %108, %109, %cst_35 {dimension_numbers = #tpu.dot_dimension_numbers<[1], [0], [0], [1], [0, 0, 1, 1], [], []>} : vector<49x256xbf16>, vector<256x32xbf16>, vector<49x32xf32> -> vector<49x32xf32>
    %c0_36 = arith.constant 0 : index
    %c0_37 = arith.constant 0 : index
    %111 = vector.load %arg11[%c0_36, %c0_37] : memref<16x49xbf16, #tpu.memory_space<vmem>>, vector<16x49xbf16>
    %112 = arith.truncf %110 : vector<49x32xf32> to vector<49x32xbf16>
    %cst_38 = arith.constant dense<0.000000e+00> : vector<16x32xf32>
    %113 = tpu.matmul %111, %112, %cst_38 {dimension_numbers = #tpu.dot_dimension_numbers<[1], [0], [0], [1], [0, 0, 1, 1], [], []>} : vector<16x49xbf16>, vector<49x32xbf16>, vector<16x32xf32> -> vector<16x32xf32>
    %c3 = arith.constant 3 : index
    %c0_39 = arith.constant 0 : index
    %114 = vector.load %arg2[%c3, %c0_39] : memref<12x128xf32, #tpu.memory_space<vmem>>, vector<1x32xf32>
    %115 = vector.broadcast %114 : vector<1x32xf32> to vector<16x32xf32>
    %116 = arith.addf %113, %115 : vector<16x32xf32>
    %cst_40 = arith.constant 0.000000e+00 : f32
    %117 = vector.broadcast %cst_40 : f32 to vector<16x32xf32>
    %118 = arith.cmpf oge, %116, %117 : vector<16x32xf32>
    %cst_41 = arith.constant 2.000000e-01 : f32
    %119 = vector.broadcast %cst_41 : f32 to vector<16x32xf32>
    %120 = arith.mulf %119, %116 : vector<16x32xf32>
    %121 = arith.select %118, %116, %120 : vector<16x32xi1>, vector<16x32xf32>
    %122 = arith.truncf %121 : vector<16x32xf32> to vector<16x32xbf16>
    %c0_42 = arith.constant 0 : index
    %c0_43 = arith.constant 0 : index
    %123 = vector.load %arg12[%c0_42, %c0_43] : memref<36x16xbf16, #tpu.memory_space<vmem>>, vector<36x16xbf16>
    %cst_44 = arith.constant dense<0.000000e+00> : vector<36x32xf32>
    %124 = tpu.matmul %123, %122, %cst_44 {dimension_numbers = #tpu.dot_dimension_numbers<[1], [0], [0], [1], [0, 0, 1, 1], [], []>} : vector<36x16xbf16>, vector<16x32xbf16>, vector<36x32xf32> -> vector<36x32xf32>
    %125 = arith.truncf %124 : vector<36x32xf32> to vector<36x32xbf16>
    %126 = vector.shape_cast %125 : vector<36x32xbf16> to vector<6x6x32xbf16>
    %127 = vector.extract_strided_slice %126 {offsets = [0, 0, 0], sizes = [4, 4, 32], strides = [1, 1, 1]} : vector<6x6x32xbf16> to vector<4x4x32xbf16>
    %128 = vector.extract_strided_slice %126 {offsets = [0, 1, 0], sizes = [4, 4, 32], strides = [1, 1, 1]} : vector<6x6x32xbf16> to vector<4x4x32xbf16>
    %129 = vector.extract_strided_slice %126 {offsets = [0, 2, 0], sizes = [4, 4, 32], strides = [1, 1, 1]} : vector<6x6x32xbf16> to vector<4x4x32xbf16>
    %130 = vector.extract_strided_slice %126 {offsets = [1, 0, 0], sizes = [4, 4, 32], strides = [1, 1, 1]} : vector<6x6x32xbf16> to vector<4x4x32xbf16>
    %131 = vector.extract_strided_slice %126 {offsets = [1, 1, 0], sizes = [4, 4, 32], strides = [1, 1, 1]} : vector<6x6x32xbf16> to vector<4x4x32xbf16>
    %132 = vector.extract_strided_slice %126 {offsets = [1, 2, 0], sizes = [4, 4, 32], strides = [1, 1, 1]} : vector<6x6x32xbf16> to vector<4x4x32xbf16>
    %133 = vector.extract_strided_slice %126 {offsets = [2, 0, 0], sizes = [4, 4, 32], strides = [1, 1, 1]} : vector<6x6x32xbf16> to vector<4x4x32xbf16>
    %134 = vector.extract_strided_slice %126 {offsets = [2, 1, 0], sizes = [4, 4, 32], strides = [1, 1, 1]} : vector<6x6x32xbf16> to vector<4x4x32xbf16>
    %135 = vector.extract_strided_slice %126 {offsets = [2, 2, 0], sizes = [4, 4, 32], strides = [1, 1, 1]} : vector<6x6x32xbf16> to vector<4x4x32xbf16>
    %136 = tpu.concatenate %127, %128, %129, %130, %131, %132, %133, %134, %135 in 2 : vector<4x4x32xbf16>, vector<4x4x32xbf16>, vector<4x4x32xbf16>, vector<4x4x32xbf16>, vector<4x4x32xbf16>, vector<4x4x32xbf16>, vector<4x4x32xbf16>, vector<4x4x32xbf16>, vector<4x4x32xbf16> -> vector<4x4x288xbf16>
    %137 = vector.shape_cast %136 : vector<4x4x288xbf16> to vector<16x288xbf16>
    %c0_45 = arith.constant 0 : index
    %c0_46 = arith.constant 0 : index
    %138 = vector.load %arg13[%c0_45, %c0_46] : memref<288x32xbf16, #tpu.memory_space<vmem>>, vector<288x32xbf16>
    %cst_47 = arith.constant dense<0.000000e+00> : vector<16x32xf32>
    %139 = tpu.matmul %137, %138, %cst_47 {dimension_numbers = #tpu.dot_dimension_numbers<[1], [0], [0], [1], [0, 0, 1, 1], [], []>} : vector<16x288xbf16>, vector<288x32xbf16>, vector<16x32xf32> -> vector<16x32xf32>
    %c4 = arith.constant 4 : index
    %c0_48 = arith.constant 0 : index
    %140 = vector.load %arg2[%c4, %c0_48] : memref<12x128xf32, #tpu.memory_space<vmem>>, vector<1x32xf32>
    %141 = vector.broadcast %140 : vector<1x32xf32> to vector<16x32xf32>
    %142 = arith.addf %139, %141 : vector<16x32xf32>
    %cst_49 = arith.constant 0.000000e+00 : f32
    %143 = vector.broadcast %cst_49 : f32 to vector<16x32xf32>
    %144 = arith.cmpf oge, %142, %143 : vector<16x32xf32>
    %cst_50 = arith.constant 2.000000e-01 : f32
    %145 = vector.broadcast %cst_50 : f32 to vector<16x32xf32>
    %146 = arith.mulf %145, %142 : vector<16x32xf32>
    %147 = arith.select %144, %142, %146 : vector<16x32xi1>, vector<16x32xf32>
    %148 = arith.truncf %147 : vector<16x32xf32> to vector<16x32xbf16>
    %c0_51 = arith.constant 0 : index
    %c0_52 = arith.constant 0 : index
    %149 = vector.load %arg12[%c0_51, %c0_52] : memref<36x16xbf16, #tpu.memory_space<vmem>>, vector<36x16xbf16>
    %cst_53 = arith.constant dense<0.000000e+00> : vector<36x32xf32>
    %150 = tpu.matmul %149, %148, %cst_53 {dimension_numbers = #tpu.dot_dimension_numbers<[1], [0], [0], [1], [0, 0, 1, 1], [], []>} : vector<36x16xbf16>, vector<16x32xbf16>, vector<36x32xf32> -> vector<36x32xf32>
    %151 = arith.truncf %150 : vector<36x32xf32> to vector<36x32xbf16>
    %152 = vector.shape_cast %151 : vector<36x32xbf16> to vector<6x6x32xbf16>
    %153 = vector.extract_strided_slice %152 {offsets = [0, 0, 0], sizes = [4, 4, 32], strides = [1, 1, 1]} : vector<6x6x32xbf16> to vector<4x4x32xbf16>
    %154 = vector.extract_strided_slice %152 {offsets = [0, 1, 0], sizes = [4, 4, 32], strides = [1, 1, 1]} : vector<6x6x32xbf16> to vector<4x4x32xbf16>
    %155 = vector.extract_strided_slice %152 {offsets = [0, 2, 0], sizes = [4, 4, 32], strides = [1, 1, 1]} : vector<6x6x32xbf16> to vector<4x4x32xbf16>
    %156 = vector.extract_strided_slice %152 {offsets = [1, 0, 0], sizes = [4, 4, 32], strides = [1, 1, 1]} : vector<6x6x32xbf16> to vector<4x4x32xbf16>
    %157 = vector.extract_strided_slice %152 {offsets = [1, 1, 0], sizes = [4, 4, 32], strides = [1, 1, 1]} : vector<6x6x32xbf16> to vector<4x4x32xbf16>
    %158 = vector.extract_strided_slice %152 {offsets = [1, 2, 0], sizes = [4, 4, 32], strides = [1, 1, 1]} : vector<6x6x32xbf16> to vector<4x4x32xbf16>
    %159 = vector.extract_strided_slice %152 {offsets = [2, 0, 0], sizes = [4, 4, 32], strides = [1, 1, 1]} : vector<6x6x32xbf16> to vector<4x4x32xbf16>
    %160 = vector.extract_strided_slice %152 {offsets = [2, 1, 0], sizes = [4, 4, 32], strides = [1, 1, 1]} : vector<6x6x32xbf16> to vector<4x4x32xbf16>
    %161 = vector.extract_strided_slice %152 {offsets = [2, 2, 0], sizes = [4, 4, 32], strides = [1, 1, 1]} : vector<6x6x32xbf16> to vector<4x4x32xbf16>
    %162 = tpu.concatenate %153, %154, %155, %156, %157, %158, %159, %160, %161 in 2 : vector<4x4x32xbf16>, vector<4x4x32xbf16>, vector<4x4x32xbf16>, vector<4x4x32xbf16>, vector<4x4x32xbf16>, vector<4x4x32xbf16>, vector<4x4x32xbf16>, vector<4x4x32xbf16>, vector<4x4x32xbf16> -> vector<4x4x288xbf16>
    %163 = vector.shape_cast %162 : vector<4x4x288xbf16> to vector<16x288xbf16>
    %c0_54 = arith.constant 0 : index
    %c0_55 = arith.constant 0 : index
    %164 = vector.load %arg14[%c0_54, %c0_55] : memref<288x32xbf16, #tpu.memory_space<vmem>>, vector<288x32xbf16>
    %cst_56 = arith.constant dense<0.000000e+00> : vector<16x32xf32>
    %165 = tpu.matmul %163, %164, %cst_56 {dimension_numbers = #tpu.dot_dimension_numbers<[1], [0], [0], [1], [0, 0, 1, 1], [], []>} : vector<16x288xbf16>, vector<288x32xbf16>, vector<16x32xf32> -> vector<16x32xf32>
    %c5 = arith.constant 5 : index
    %c0_57 = arith.constant 0 : index
    %166 = vector.load %arg2[%c5, %c0_57] : memref<12x128xf32, #tpu.memory_space<vmem>>, vector<1x32xf32>
    %167 = vector.broadcast %166 : vector<1x32xf32> to vector<16x32xf32>
    %168 = arith.addf %165, %167 : vector<16x32xf32>
    %169 = arith.extf %122 : vector<16x32xbf16> to vector<16x32xf32>
    %170 = arith.addf %168, %169 : vector<16x32xf32>
    %171 = arith.truncf %170 : vector<16x32xf32> to vector<16x32xbf16>
    %c0_58 = arith.constant 0 : index
    %c0_59 = arith.constant 0 : index
    %172 = vector.load %arg15[%c0_58, %c0_59] : memref<36x16xbf16, #tpu.memory_space<vmem>>, vector<36x16xbf16>
    %cst_60 = arith.constant dense<0.000000e+00> : vector<36x32xf32>
    %173 = tpu.matmul %172, %171, %cst_60 {dimension_numbers = #tpu.dot_dimension_numbers<[1], [0], [0], [1], [0, 0, 1, 1], [], []>} : vector<36x16xbf16>, vector<16x32xbf16>, vector<36x32xf32> -> vector<36x32xf32>
    %174 = arith.truncf %173 : vector<36x32xf32> to vector<36x32xbf16>
    %175 = vector.shape_cast %174 : vector<36x32xbf16> to vector<6x6x32xbf16>
    %176 = vector.extract_strided_slice %175 {offsets = [0, 0, 0], sizes = [3, 3, 32], strides = [1, 1, 1]} : vector<6x6x32xbf16> to vector<3x3x32xbf16>
    %177 = vector.extract_strided_slice %175 {offsets = [0, 1, 0], sizes = [3, 3, 32], strides = [1, 1, 1]} : vector<6x6x32xbf16> to vector<3x3x32xbf16>
    %178 = vector.extract_strided_slice %175 {offsets = [0, 2, 0], sizes = [3, 3, 32], strides = [1, 1, 1]} : vector<6x6x32xbf16> to vector<3x3x32xbf16>
    %179 = vector.extract_strided_slice %175 {offsets = [0, 3, 0], sizes = [3, 3, 32], strides = [1, 1, 1]} : vector<6x6x32xbf16> to vector<3x3x32xbf16>
    %180 = vector.extract_strided_slice %175 {offsets = [1, 0, 0], sizes = [3, 3, 32], strides = [1, 1, 1]} : vector<6x6x32xbf16> to vector<3x3x32xbf16>
    %181 = vector.extract_strided_slice %175 {offsets = [1, 1, 0], sizes = [3, 3, 32], strides = [1, 1, 1]} : vector<6x6x32xbf16> to vector<3x3x32xbf16>
    %182 = vector.extract_strided_slice %175 {offsets = [1, 2, 0], sizes = [3, 3, 32], strides = [1, 1, 1]} : vector<6x6x32xbf16> to vector<3x3x32xbf16>
    %183 = vector.extract_strided_slice %175 {offsets = [1, 3, 0], sizes = [3, 3, 32], strides = [1, 1, 1]} : vector<6x6x32xbf16> to vector<3x3x32xbf16>
    %184 = vector.extract_strided_slice %175 {offsets = [2, 0, 0], sizes = [3, 3, 32], strides = [1, 1, 1]} : vector<6x6x32xbf16> to vector<3x3x32xbf16>
    %185 = vector.extract_strided_slice %175 {offsets = [2, 1, 0], sizes = [3, 3, 32], strides = [1, 1, 1]} : vector<6x6x32xbf16> to vector<3x3x32xbf16>
    %186 = vector.extract_strided_slice %175 {offsets = [2, 2, 0], sizes = [3, 3, 32], strides = [1, 1, 1]} : vector<6x6x32xbf16> to vector<3x3x32xbf16>
    %187 = vector.extract_strided_slice %175 {offsets = [2, 3, 0], sizes = [3, 3, 32], strides = [1, 1, 1]} : vector<6x6x32xbf16> to vector<3x3x32xbf16>
    %188 = vector.extract_strided_slice %175 {offsets = [3, 0, 0], sizes = [3, 3, 32], strides = [1, 1, 1]} : vector<6x6x32xbf16> to vector<3x3x32xbf16>
    %189 = vector.extract_strided_slice %175 {offsets = [3, 1, 0], sizes = [3, 3, 32], strides = [1, 1, 1]} : vector<6x6x32xbf16> to vector<3x3x32xbf16>
    %190 = vector.extract_strided_slice %175 {offsets = [3, 2, 0], sizes = [3, 3, 32], strides = [1, 1, 1]} : vector<6x6x32xbf16> to vector<3x3x32xbf16>
    %191 = vector.extract_strided_slice %175 {offsets = [3, 3, 0], sizes = [3, 3, 32], strides = [1, 1, 1]} : vector<6x6x32xbf16> to vector<3x3x32xbf16>
    %192 = tpu.concatenate %176, %177, %178, %179, %180, %181, %182, %183, %184, %185, %186, %187, %188, %189, %190, %191 in 2 : vector<3x3x32xbf16>, vector<3x3x32xbf16>, vector<3x3x32xbf16>, vector<3x3x32xbf16>, vector<3x3x32xbf16>, vector<3x3x32xbf16>, vector<3x3x32xbf16>, vector<3x3x32xbf16>, vector<3x3x32xbf16>, vector<3x3x32xbf16>, vector<3x3x32xbf16>, vector<3x3x32xbf16>, vector<3x3x32xbf16>, vector<3x3x32xbf16>, vector<3x3x32xbf16>, vector<3x3x32xbf16> -> vector<3x3x512xbf16>
    %193 = vector.shape_cast %192 : vector<3x3x512xbf16> to vector<9x512xbf16>
    %c0_61 = arith.constant 0 : index
    %c0_62 = arith.constant 0 : index
    %194 = vector.load %arg16[%c0_61, %c0_62] : memref<512x64xbf16, #tpu.memory_space<vmem>>, vector<512x64xbf16>
    %cst_63 = arith.constant dense<0.000000e+00> : vector<9x64xf32>
    %195 = tpu.matmul %193, %194, %cst_63 {dimension_numbers = #tpu.dot_dimension_numbers<[1], [0], [0], [1], [0, 0, 1, 1], [], []>} : vector<9x512xbf16>, vector<512x64xbf16>, vector<9x64xf32> -> vector<9x64xf32>
    %c0_64 = arith.constant 0 : index
    %c0_65 = arith.constant 0 : index
    %196 = vector.load %arg17[%c0_64, %c0_65] : memref<4x9xbf16, #tpu.memory_space<vmem>>, vector<4x9xbf16>
    %197 = arith.truncf %195 : vector<9x64xf32> to vector<9x64xbf16>
    %cst_66 = arith.constant dense<0.000000e+00> : vector<4x64xf32>
    %198 = tpu.matmul %196, %197, %cst_66 {dimension_numbers = #tpu.dot_dimension_numbers<[1], [0], [0], [1], [0, 0, 1, 1], [], []>} : vector<4x9xbf16>, vector<9x64xbf16>, vector<4x64xf32> -> vector<4x64xf32>
    %c6 = arith.constant 6 : index
    %c0_67 = arith.constant 0 : index
    %199 = vector.load %arg2[%c6, %c0_67] : memref<12x128xf32, #tpu.memory_space<vmem>>, vector<1x64xf32>
    %200 = vector.broadcast %199 : vector<1x64xf32> to vector<4x64xf32>
    %201 = arith.addf %198, %200 : vector<4x64xf32>
    %cst_68 = arith.constant 0.000000e+00 : f32
    %202 = vector.broadcast %cst_68 : f32 to vector<4x64xf32>
    %203 = arith.cmpf oge, %201, %202 : vector<4x64xf32>
    %cst_69 = arith.constant 2.000000e-01 : f32
    %204 = vector.broadcast %cst_69 : f32 to vector<4x64xf32>
    %205 = arith.mulf %204, %201 : vector<4x64xf32>
    %206 = arith.select %203, %201, %205 : vector<4x64xi1>, vector<4x64xf32>
    %207 = arith.truncf %206 : vector<4x64xf32> to vector<4x64xbf16>
    %c0_70 = arith.constant 0 : index
    %c0_71 = arith.constant 0 : index
    %208 = vector.load %arg18[%c0_70, %c0_71] : memref<16x4xbf16, #tpu.memory_space<vmem>>, vector<16x4xbf16>
    %cst_72 = arith.constant dense<0.000000e+00> : vector<16x64xf32>
    %209 = tpu.matmul %208, %207, %cst_72 {dimension_numbers = #tpu.dot_dimension_numbers<[1], [0], [0], [1], [0, 0, 1, 1], [], []>} : vector<16x4xbf16>, vector<4x64xbf16>, vector<16x64xf32> -> vector<16x64xf32>
    %210 = arith.truncf %209 : vector<16x64xf32> to vector<16x64xbf16>
    %211 = vector.shape_cast %210 : vector<16x64xbf16> to vector<4x4x64xbf16>
    %212 = vector.extract_strided_slice %211 {offsets = [0, 0, 0], sizes = [2, 2, 64], strides = [1, 1, 1]} : vector<4x4x64xbf16> to vector<2x2x64xbf16>
    %213 = vector.extract_strided_slice %211 {offsets = [0, 1, 0], sizes = [2, 2, 64], strides = [1, 1, 1]} : vector<4x4x64xbf16> to vector<2x2x64xbf16>
    %214 = vector.extract_strided_slice %211 {offsets = [0, 2, 0], sizes = [2, 2, 64], strides = [1, 1, 1]} : vector<4x4x64xbf16> to vector<2x2x64xbf16>
    %215 = vector.extract_strided_slice %211 {offsets = [1, 0, 0], sizes = [2, 2, 64], strides = [1, 1, 1]} : vector<4x4x64xbf16> to vector<2x2x64xbf16>
    %216 = vector.extract_strided_slice %211 {offsets = [1, 1, 0], sizes = [2, 2, 64], strides = [1, 1, 1]} : vector<4x4x64xbf16> to vector<2x2x64xbf16>
    %217 = vector.extract_strided_slice %211 {offsets = [1, 2, 0], sizes = [2, 2, 64], strides = [1, 1, 1]} : vector<4x4x64xbf16> to vector<2x2x64xbf16>
    %218 = vector.extract_strided_slice %211 {offsets = [2, 0, 0], sizes = [2, 2, 64], strides = [1, 1, 1]} : vector<4x4x64xbf16> to vector<2x2x64xbf16>
    %219 = vector.extract_strided_slice %211 {offsets = [2, 1, 0], sizes = [2, 2, 64], strides = [1, 1, 1]} : vector<4x4x64xbf16> to vector<2x2x64xbf16>
    %220 = vector.extract_strided_slice %211 {offsets = [2, 2, 0], sizes = [2, 2, 64], strides = [1, 1, 1]} : vector<4x4x64xbf16> to vector<2x2x64xbf16>
    %221 = tpu.concatenate %212, %213, %214, %215, %216, %217, %218, %219, %220 in 2 : vector<2x2x64xbf16>, vector<2x2x64xbf16>, vector<2x2x64xbf16>, vector<2x2x64xbf16>, vector<2x2x64xbf16>, vector<2x2x64xbf16>, vector<2x2x64xbf16>, vector<2x2x64xbf16>, vector<2x2x64xbf16> -> vector<2x2x576xbf16>
    %222 = vector.shape_cast %221 : vector<2x2x576xbf16> to vector<4x576xbf16>
    %c0_73 = arith.constant 0 : index
    %c0_74 = arith.constant 0 : index
    %223 = vector.load %arg19[%c0_73, %c0_74] : memref<576x64xbf16, #tpu.memory_space<vmem>>, vector<576x64xbf16>
    %cst_75 = arith.constant dense<0.000000e+00> : vector<4x64xf32>
    %224 = tpu.matmul %222, %223, %cst_75 {dimension_numbers = #tpu.dot_dimension_numbers<[1], [0], [0], [1], [0, 0, 1, 1], [], []>} : vector<4x576xbf16>, vector<576x64xbf16>, vector<4x64xf32> -> vector<4x64xf32>
    %c7 = arith.constant 7 : index
    %c0_76 = arith.constant 0 : index
    %225 = vector.load %arg2[%c7, %c0_76] : memref<12x128xf32, #tpu.memory_space<vmem>>, vector<1x64xf32>
    %226 = vector.broadcast %225 : vector<1x64xf32> to vector<4x64xf32>
    %227 = arith.addf %224, %226 : vector<4x64xf32>
    %cst_77 = arith.constant 0.000000e+00 : f32
    %228 = vector.broadcast %cst_77 : f32 to vector<4x64xf32>
    %229 = arith.cmpf oge, %227, %228 : vector<4x64xf32>
    %cst_78 = arith.constant 2.000000e-01 : f32
    %230 = vector.broadcast %cst_78 : f32 to vector<4x64xf32>
    %231 = arith.mulf %230, %227 : vector<4x64xf32>
    %232 = arith.select %229, %227, %231 : vector<4x64xi1>, vector<4x64xf32>
    %233 = arith.truncf %232 : vector<4x64xf32> to vector<4x64xbf16>
    %c0_79 = arith.constant 0 : index
    %c0_80 = arith.constant 0 : index
    %234 = vector.load %arg18[%c0_79, %c0_80] : memref<16x4xbf16, #tpu.memory_space<vmem>>, vector<16x4xbf16>
    %cst_81 = arith.constant dense<0.000000e+00> : vector<16x64xf32>
    %235 = tpu.matmul %234, %233, %cst_81 {dimension_numbers = #tpu.dot_dimension_numbers<[1], [0], [0], [1], [0, 0, 1, 1], [], []>} : vector<16x4xbf16>, vector<4x64xbf16>, vector<16x64xf32> -> vector<16x64xf32>
    %236 = arith.truncf %235 : vector<16x64xf32> to vector<16x64xbf16>
    %237 = vector.shape_cast %236 : vector<16x64xbf16> to vector<4x4x64xbf16>
    %238 = vector.extract_strided_slice %237 {offsets = [0, 0, 0], sizes = [2, 2, 64], strides = [1, 1, 1]} : vector<4x4x64xbf16> to vector<2x2x64xbf16>
    %239 = vector.extract_strided_slice %237 {offsets = [0, 1, 0], sizes = [2, 2, 64], strides = [1, 1, 1]} : vector<4x4x64xbf16> to vector<2x2x64xbf16>
    %240 = vector.extract_strided_slice %237 {offsets = [0, 2, 0], sizes = [2, 2, 64], strides = [1, 1, 1]} : vector<4x4x64xbf16> to vector<2x2x64xbf16>
    %241 = vector.extract_strided_slice %237 {offsets = [1, 0, 0], sizes = [2, 2, 64], strides = [1, 1, 1]} : vector<4x4x64xbf16> to vector<2x2x64xbf16>
    %242 = vector.extract_strided_slice %237 {offsets = [1, 1, 0], sizes = [2, 2, 64], strides = [1, 1, 1]} : vector<4x4x64xbf16> to vector<2x2x64xbf16>
    %243 = vector.extract_strided_slice %237 {offsets = [1, 2, 0], sizes = [2, 2, 64], strides = [1, 1, 1]} : vector<4x4x64xbf16> to vector<2x2x64xbf16>
    %244 = vector.extract_strided_slice %237 {offsets = [2, 0, 0], sizes = [2, 2, 64], strides = [1, 1, 1]} : vector<4x4x64xbf16> to vector<2x2x64xbf16>
    %245 = vector.extract_strided_slice %237 {offsets = [2, 1, 0], sizes = [2, 2, 64], strides = [1, 1, 1]} : vector<4x4x64xbf16> to vector<2x2x64xbf16>
    %246 = vector.extract_strided_slice %237 {offsets = [2, 2, 0], sizes = [2, 2, 64], strides = [1, 1, 1]} : vector<4x4x64xbf16> to vector<2x2x64xbf16>
    %247 = tpu.concatenate %238, %239, %240, %241, %242, %243, %244, %245, %246 in 2 : vector<2x2x64xbf16>, vector<2x2x64xbf16>, vector<2x2x64xbf16>, vector<2x2x64xbf16>, vector<2x2x64xbf16>, vector<2x2x64xbf16>, vector<2x2x64xbf16>, vector<2x2x64xbf16>, vector<2x2x64xbf16> -> vector<2x2x576xbf16>
    %248 = vector.shape_cast %247 : vector<2x2x576xbf16> to vector<4x576xbf16>
    %c0_82 = arith.constant 0 : index
    %c0_83 = arith.constant 0 : index
    %249 = vector.load %arg20[%c0_82, %c0_83] : memref<576x64xbf16, #tpu.memory_space<vmem>>, vector<576x64xbf16>
    %cst_84 = arith.constant dense<0.000000e+00> : vector<4x64xf32>
    %250 = tpu.matmul %248, %249, %cst_84 {dimension_numbers = #tpu.dot_dimension_numbers<[1], [0], [0], [1], [0, 0, 1, 1], [], []>} : vector<4x576xbf16>, vector<576x64xbf16>, vector<4x64xf32> -> vector<4x64xf32>
    %c8 = arith.constant 8 : index
    %c0_85 = arith.constant 0 : index
    %251 = vector.load %arg2[%c8, %c0_85] : memref<12x128xf32, #tpu.memory_space<vmem>>, vector<1x64xf32>
    %252 = vector.broadcast %251 : vector<1x64xf32> to vector<4x64xf32>
    %253 = arith.addf %250, %252 : vector<4x64xf32>
    %254 = arith.extf %207 : vector<4x64xbf16> to vector<4x64xf32>
    %255 = arith.addf %253, %254 : vector<4x64xf32>
    %256 = arith.truncf %255 : vector<4x64xf32> to vector<4x64xbf16>
    %c0_86 = arith.constant 0 : index
    %c0_87 = arith.constant 0 : index
    %257 = vector.load %arg21[%c0_86, %c0_87] : memref<16x4xbf16, #tpu.memory_space<vmem>>, vector<16x4xbf16>
    %cst_88 = arith.constant dense<0.000000e+00> : vector<16x64xf32>
    %258 = tpu.matmul %257, %256, %cst_88 {dimension_numbers = #tpu.dot_dimension_numbers<[1], [0], [0], [1], [0, 0, 1, 1], [], []>} : vector<16x4xbf16>, vector<4x64xbf16>, vector<16x64xf32> -> vector<16x64xf32>
    %259 = arith.truncf %258 : vector<16x64xf32> to vector<16x64xbf16>
    %260 = vector.shape_cast %259 : vector<16x64xbf16> to vector<4x4x64xbf16>
    %261 = vector.extract_strided_slice %260 {offsets = [0, 0, 0], sizes = [1, 1, 64], strides = [1, 1, 1]} : vector<4x4x64xbf16> to vector<1x1x64xbf16>
    %262 = vector.extract_strided_slice %260 {offsets = [0, 1, 0], sizes = [1, 1, 64], strides = [1, 1, 1]} : vector<4x4x64xbf16> to vector<1x1x64xbf16>
    %263 = vector.extract_strided_slice %260 {offsets = [0, 2, 0], sizes = [1, 1, 64], strides = [1, 1, 1]} : vector<4x4x64xbf16> to vector<1x1x64xbf16>
    %264 = vector.extract_strided_slice %260 {offsets = [0, 3, 0], sizes = [1, 1, 64], strides = [1, 1, 1]} : vector<4x4x64xbf16> to vector<1x1x64xbf16>
    %265 = vector.extract_strided_slice %260 {offsets = [1, 0, 0], sizes = [1, 1, 64], strides = [1, 1, 1]} : vector<4x4x64xbf16> to vector<1x1x64xbf16>
    %266 = vector.extract_strided_slice %260 {offsets = [1, 1, 0], sizes = [1, 1, 64], strides = [1, 1, 1]} : vector<4x4x64xbf16> to vector<1x1x64xbf16>
    %267 = vector.extract_strided_slice %260 {offsets = [1, 2, 0], sizes = [1, 1, 64], strides = [1, 1, 1]} : vector<4x4x64xbf16> to vector<1x1x64xbf16>
    %268 = vector.extract_strided_slice %260 {offsets = [1, 3, 0], sizes = [1, 1, 64], strides = [1, 1, 1]} : vector<4x4x64xbf16> to vector<1x1x64xbf16>
    %269 = vector.extract_strided_slice %260 {offsets = [2, 0, 0], sizes = [1, 1, 64], strides = [1, 1, 1]} : vector<4x4x64xbf16> to vector<1x1x64xbf16>
    %270 = vector.extract_strided_slice %260 {offsets = [2, 1, 0], sizes = [1, 1, 64], strides = [1, 1, 1]} : vector<4x4x64xbf16> to vector<1x1x64xbf16>
    %271 = vector.extract_strided_slice %260 {offsets = [2, 2, 0], sizes = [1, 1, 64], strides = [1, 1, 1]} : vector<4x4x64xbf16> to vector<1x1x64xbf16>
    %272 = vector.extract_strided_slice %260 {offsets = [2, 3, 0], sizes = [1, 1, 64], strides = [1, 1, 1]} : vector<4x4x64xbf16> to vector<1x1x64xbf16>
    %273 = vector.extract_strided_slice %260 {offsets = [3, 0, 0], sizes = [1, 1, 64], strides = [1, 1, 1]} : vector<4x4x64xbf16> to vector<1x1x64xbf16>
    %274 = vector.extract_strided_slice %260 {offsets = [3, 1, 0], sizes = [1, 1, 64], strides = [1, 1, 1]} : vector<4x4x64xbf16> to vector<1x1x64xbf16>
    %275 = vector.extract_strided_slice %260 {offsets = [3, 2, 0], sizes = [1, 1, 64], strides = [1, 1, 1]} : vector<4x4x64xbf16> to vector<1x1x64xbf16>
    %276 = vector.extract_strided_slice %260 {offsets = [3, 3, 0], sizes = [1, 1, 64], strides = [1, 1, 1]} : vector<4x4x64xbf16> to vector<1x1x64xbf16>
    %277 = tpu.concatenate %261, %262, %263, %264, %265, %266, %267, %268, %269, %270, %271, %272, %273, %274, %275, %276 in 2 : vector<1x1x64xbf16>, vector<1x1x64xbf16>, vector<1x1x64xbf16>, vector<1x1x64xbf16>, vector<1x1x64xbf16>, vector<1x1x64xbf16>, vector<1x1x64xbf16>, vector<1x1x64xbf16>, vector<1x1x64xbf16>, vector<1x1x64xbf16>, vector<1x1x64xbf16>, vector<1x1x64xbf16>, vector<1x1x64xbf16>, vector<1x1x64xbf16>, vector<1x1x64xbf16>, vector<1x1x64xbf16> -> vector<1x1x1024xbf16>
    %278 = vector.shape_cast %277 : vector<1x1x1024xbf16> to vector<1x1024xbf16>
    %c0_89 = arith.constant 0 : index
    %c0_90 = arith.constant 0 : index
    %279 = vector.load %arg22[%c0_89, %c0_90] : memref<1024x64xbf16, #tpu.memory_space<vmem>>, vector<1024x64xbf16>
    %cst_91 = arith.constant dense<0.000000e+00> : vector<1x64xf32>
    %280 = tpu.matmul %278, %279, %cst_91 {dimension_numbers = #tpu.dot_dimension_numbers<[1], [0], [0], [1], [0, 0, 1, 1], [], []>} : vector<1x1024xbf16>, vector<1024x64xbf16>, vector<1x64xf32> -> vector<1x64xf32>
    %c9 = arith.constant 9 : index
    %c0_92 = arith.constant 0 : index
    %281 = vector.load %arg2[%c9, %c0_92] : memref<12x128xf32, #tpu.memory_space<vmem>>, vector<1x64xf32>
    %282 = arith.addf %280, %281 : vector<1x64xf32>
    %cst_93 = arith.constant 0.000000e+00 : f32
    %283 = vector.broadcast %cst_93 : f32 to vector<1x64xf32>
    %284 = arith.cmpf oge, %282, %283 : vector<1x64xf32>
    %cst_94 = arith.constant 2.000000e-01 : f32
    %285 = vector.broadcast %cst_94 : f32 to vector<1x64xf32>
    %286 = arith.mulf %285, %282 : vector<1x64xf32>
    %287 = arith.select %284, %282, %286 : vector<1x64xi1>, vector<1x64xf32>
    %288 = arith.truncf %287 : vector<1x64xf32> to vector<1x64xbf16>
    %c0_95 = arith.constant 0 : index
    %c0_96 = arith.constant 0 : index
    %289 = vector.load %arg24[%c0_95, %c0_96] : memref<9x1xbf16, #tpu.memory_space<vmem>>, vector<9x1xbf16>
    %cst_97 = arith.constant dense<0.000000e+00> : vector<9x64xf32>
    %290 = tpu.matmul %289, %288, %cst_97 {dimension_numbers = #tpu.dot_dimension_numbers<[1], [0], [0], [1], [0, 0, 1, 1], [], []>} : vector<9x1xbf16>, vector<1x64xbf16>, vector<9x64xf32> -> vector<9x64xf32>
    %291 = arith.truncf %290 : vector<9x64xf32> to vector<9x64xbf16>
    %292 = vector.shape_cast %291 : vector<9x64xbf16> to vector<3x3x64xbf16>
    %293 = vector.extract_strided_slice %292 {offsets = [0, 0, 0], sizes = [1, 1, 64], strides = [1, 1, 1]} : vector<3x3x64xbf16> to vector<1x1x64xbf16>
    %294 = vector.extract_strided_slice %292 {offsets = [0, 1, 0], sizes = [1, 1, 64], strides = [1, 1, 1]} : vector<3x3x64xbf16> to vector<1x1x64xbf16>
    %295 = vector.extract_strided_slice %292 {offsets = [0, 2, 0], sizes = [1, 1, 64], strides = [1, 1, 1]} : vector<3x3x64xbf16> to vector<1x1x64xbf16>
    %296 = vector.extract_strided_slice %292 {offsets = [1, 0, 0], sizes = [1, 1, 64], strides = [1, 1, 1]} : vector<3x3x64xbf16> to vector<1x1x64xbf16>
    %297 = vector.extract_strided_slice %292 {offsets = [1, 1, 0], sizes = [1, 1, 64], strides = [1, 1, 1]} : vector<3x3x64xbf16> to vector<1x1x64xbf16>
    %298 = vector.extract_strided_slice %292 {offsets = [1, 2, 0], sizes = [1, 1, 64], strides = [1, 1, 1]} : vector<3x3x64xbf16> to vector<1x1x64xbf16>
    %299 = vector.extract_strided_slice %292 {offsets = [2, 0, 0], sizes = [1, 1, 64], strides = [1, 1, 1]} : vector<3x3x64xbf16> to vector<1x1x64xbf16>
    %300 = vector.extract_strided_slice %292 {offsets = [2, 1, 0], sizes = [1, 1, 64], strides = [1, 1, 1]} : vector<3x3x64xbf16> to vector<1x1x64xbf16>
    %301 = vector.extract_strided_slice %292 {offsets = [2, 2, 0], sizes = [1, 1, 64], strides = [1, 1, 1]} : vector<3x3x64xbf16> to vector<1x1x64xbf16>
    %302 = tpu.concatenate %293, %294, %295, %296, %297, %298, %299, %300, %301 in 2 : vector<1x1x64xbf16>, vector<1x1x64xbf16>, vector<1x1x64xbf16>, vector<1x1x64xbf16>, vector<1x1x64xbf16>, vector<1x1x64xbf16>, vector<1x1x64xbf16>, vector<1x1x64xbf16>, vector<1x1x64xbf16> -> vector<1x1x576xbf16>
    %303 = vector.shape_cast %302 : vector<1x1x576xbf16> to vector<1x576xbf16>
    %c0_98 = arith.constant 0 : index
    %c0_99 = arith.constant 0 : index
    %304 = vector.load %arg25[%c0_98, %c0_99] : memref<576x64xbf16, #tpu.memory_space<vmem>>, vector<576x64xbf16>
    %cst_100 = arith.constant dense<0.000000e+00> : vector<1x64xf32>
    %305 = tpu.matmul %303, %304, %cst_100 {dimension_numbers = #tpu.dot_dimension_numbers<[1], [0], [0], [1], [0, 0, 1, 1], [], []>} : vector<1x576xbf16>, vector<576x64xbf16>, vector<1x64xf32> -> vector<1x64xf32>
    %c10 = arith.constant 10 : index
    %c0_101 = arith.constant 0 : index
    %306 = vector.load %arg2[%c10, %c0_101] : memref<12x128xf32, #tpu.memory_space<vmem>>, vector<1x64xf32>
    %307 = arith.addf %305, %306 : vector<1x64xf32>
    %cst_102 = arith.constant 0.000000e+00 : f32
    %308 = vector.broadcast %cst_102 : f32 to vector<1x64xf32>
    %309 = arith.cmpf oge, %307, %308 : vector<1x64xf32>
    %cst_103 = arith.constant 2.000000e-01 : f32
    %310 = vector.broadcast %cst_103 : f32 to vector<1x64xf32>
    %311 = arith.mulf %310, %307 : vector<1x64xf32>
    %312 = arith.select %309, %307, %311 : vector<1x64xi1>, vector<1x64xf32>
    %313 = arith.truncf %312 : vector<1x64xf32> to vector<1x64xbf16>
    %c0_104 = arith.constant 0 : index
    %c0_105 = arith.constant 0 : index
    %314 = vector.load %arg24[%c0_104, %c0_105] : memref<9x1xbf16, #tpu.memory_space<vmem>>, vector<9x1xbf16>
    %cst_106 = arith.constant dense<0.000000e+00> : vector<9x64xf32>
    %315 = tpu.matmul %314, %313, %cst_106 {dimension_numbers = #tpu.dot_dimension_numbers<[1], [0], [0], [1], [0, 0, 1, 1], [], []>} : vector<9x1xbf16>, vector<1x64xbf16>, vector<9x64xf32> -> vector<9x64xf32>
    %316 = arith.truncf %315 : vector<9x64xf32> to vector<9x64xbf16>
    %317 = vector.shape_cast %316 : vector<9x64xbf16> to vector<3x3x64xbf16>
    %318 = vector.extract_strided_slice %317 {offsets = [0, 0, 0], sizes = [1, 1, 64], strides = [1, 1, 1]} : vector<3x3x64xbf16> to vector<1x1x64xbf16>
    %319 = vector.extract_strided_slice %317 {offsets = [0, 1, 0], sizes = [1, 1, 64], strides = [1, 1, 1]} : vector<3x3x64xbf16> to vector<1x1x64xbf16>
    %320 = vector.extract_strided_slice %317 {offsets = [0, 2, 0], sizes = [1, 1, 64], strides = [1, 1, 1]} : vector<3x3x64xbf16> to vector<1x1x64xbf16>
    %321 = vector.extract_strided_slice %317 {offsets = [1, 0, 0], sizes = [1, 1, 64], strides = [1, 1, 1]} : vector<3x3x64xbf16> to vector<1x1x64xbf16>
    %322 = vector.extract_strided_slice %317 {offsets = [1, 1, 0], sizes = [1, 1, 64], strides = [1, 1, 1]} : vector<3x3x64xbf16> to vector<1x1x64xbf16>
    %323 = vector.extract_strided_slice %317 {offsets = [1, 2, 0], sizes = [1, 1, 64], strides = [1, 1, 1]} : vector<3x3x64xbf16> to vector<1x1x64xbf16>
    %324 = vector.extract_strided_slice %317 {offsets = [2, 0, 0], sizes = [1, 1, 64], strides = [1, 1, 1]} : vector<3x3x64xbf16> to vector<1x1x64xbf16>
    %325 = vector.extract_strided_slice %317 {offsets = [2, 1, 0], sizes = [1, 1, 64], strides = [1, 1, 1]} : vector<3x3x64xbf16> to vector<1x1x64xbf16>
    %326 = vector.extract_strided_slice %317 {offsets = [2, 2, 0], sizes = [1, 1, 64], strides = [1, 1, 1]} : vector<3x3x64xbf16> to vector<1x1x64xbf16>
    %327 = tpu.concatenate %318, %319, %320, %321, %322, %323, %324, %325, %326 in 2 : vector<1x1x64xbf16>, vector<1x1x64xbf16>, vector<1x1x64xbf16>, vector<1x1x64xbf16>, vector<1x1x64xbf16>, vector<1x1x64xbf16>, vector<1x1x64xbf16>, vector<1x1x64xbf16>, vector<1x1x64xbf16> -> vector<1x1x576xbf16>
    %328 = vector.shape_cast %327 : vector<1x1x576xbf16> to vector<1x576xbf16>
    %c0_107 = arith.constant 0 : index
    %c0_108 = arith.constant 0 : index
    %329 = vector.load %arg26[%c0_107, %c0_108] : memref<576x64xbf16, #tpu.memory_space<vmem>>, vector<576x64xbf16>
    %cst_109 = arith.constant dense<0.000000e+00> : vector<1x64xf32>
    %330 = tpu.matmul %328, %329, %cst_109 {dimension_numbers = #tpu.dot_dimension_numbers<[1], [0], [0], [1], [0, 0, 1, 1], [], []>} : vector<1x576xbf16>, vector<576x64xbf16>, vector<1x64xf32> -> vector<1x64xf32>
    %c11 = arith.constant 11 : index
    %c0_110 = arith.constant 0 : index
    %331 = vector.load %arg2[%c11, %c0_110] : memref<12x128xf32, #tpu.memory_space<vmem>>, vector<1x64xf32>
    %332 = arith.addf %330, %331 : vector<1x64xf32>
    %333 = arith.extf %288 : vector<1x64xbf16> to vector<1x64xf32>
    %334 = arith.addf %332, %333 : vector<1x64xf32>
    %335 = arith.truncf %334 : vector<1x64xf32> to vector<1x64xbf16>
    %c0_111 = arith.constant 0 : index
    %c0_112 = arith.constant 0 : index
    %336 = vector.load %arg27[%c0_111, %c0_112] : memref<64x128xbf16, #tpu.memory_space<vmem>>, vector<64x128xbf16>
    %cst_113 = arith.constant dense<0.000000e+00> : vector<1x128xf32>
    %337 = tpu.matmul %335, %336, %cst_113 {dimension_numbers = #tpu.dot_dimension_numbers<[1], [0], [0], [1], [0, 0, 1, 1], [], []>} : vector<1x64xbf16>, vector<64x128xbf16>, vector<1x128xf32> -> vector<1x128xf32>
    %338 = vector.shape_cast %337 : vector<1x128xf32> to vector<1x1x128xf32>
    %c0_114 = arith.constant 0 : index
    %c0_115 = arith.constant 0 : index
    %c0_116 = arith.constant 0 : index
    %339 = vector.load %arg28[%c0_114, %c0_115, %c0_116] : memref<1x1x128xf32, #tpu.memory_space<vmem>>, vector<1x1x128xf32>
    tpu.vector_store %arg28[%c0_114, %c0_115, %c0_116], %338 {strides = array<i32>} : memref<1x1x128xf32, #tpu.memory_space<vmem>>, vector<1x1x128xf32>,
    return
  }
  func.func @transform_0(%arg0: i32) -> (i32, i32, i32) {
    %c0_i32 = arith.constant 0 : i32
    %c0_i32_0 = arith.constant 0 : i32
    %c0_i32_1 = arith.constant 0 : i32
    return %arg0, %c0_i32, %c0_i32_0 : i32, i32, i32
  }
  func.func @transform_1(%arg0: i32) -> (i32, i32) {
    %c0_i32 = arith.constant 0 : i32
    %c0_i32_0 = arith.constant 0 : i32
    %c0_i32_1 = arith.constant 0 : i32
    return %c0_i32, %c0_i32_0 : i32, i32
  }
  func.func @transform_2(%arg0: i32) -> (i32, i32) {
    %c0_i32 = arith.constant 0 : i32
    %c0_i32_0 = arith.constant 0 : i32
    %c0_i32_1 = arith.constant 0 : i32
    return %c0_i32, %c0_i32_0 : i32, i32
  }
  func.func @transform_3(%arg0: i32) -> (i32, i32) {
    %c0_i32 = arith.constant 0 : i32
    %c0_i32_0 = arith.constant 0 : i32
    %c0_i32_1 = arith.constant 0 : i32
    return %c0_i32, %c0_i32_0 : i32, i32
  }
  func.func @transform_4(%arg0: i32) -> (i32, i32) {
    %c0_i32 = arith.constant 0 : i32
    %c0_i32_0 = arith.constant 0 : i32
    %c0_i32_1 = arith.constant 0 : i32
    return %c0_i32, %c0_i32_0 : i32, i32
  }
  func.func @transform_5(%arg0: i32) -> (i32, i32) {
    %c0_i32 = arith.constant 0 : i32
    %c0_i32_0 = arith.constant 0 : i32
    %c0_i32_1 = arith.constant 0 : i32
    return %c0_i32, %c0_i32_0 : i32, i32
  }
  func.func @transform_6(%arg0: i32) -> (i32, i32) {
    %c0_i32 = arith.constant 0 : i32
    %c0_i32_0 = arith.constant 0 : i32
    %c0_i32_1 = arith.constant 0 : i32
    return %c0_i32, %c0_i32_0 : i32, i32
  }
  func.func @transform_7(%arg0: i32) -> (i32, i32) {
    %c0_i32 = arith.constant 0 : i32
    %c0_i32_0 = arith.constant 0 : i32
    %c0_i32_1 = arith.constant 0 : i32
    return %c0_i32, %c0_i32_0 : i32, i32
  }
  func.func @transform_8(%arg0: i32) -> (i32, i32) {
    %c0_i32 = arith.constant 0 : i32
    %c0_i32_0 = arith.constant 0 : i32
    %c0_i32_1 = arith.constant 0 : i32
    return %c0_i32, %c0_i32_0 : i32, i32
  }
  func.func @transform_9(%arg0: i32) -> (i32, i32) {
    %c0_i32 = arith.constant 0 : i32
    %c0_i32_0 = arith.constant 0 : i32
    %c0_i32_1 = arith.constant 0 : i32
    return %c0_i32, %c0_i32_0 : i32, i32
  }
  func.func @transform_10(%arg0: i32) -> (i32, i32) {
    %c0_i32 = arith.constant 0 : i32
    %c0_i32_0 = arith.constant 0 : i32
    %c0_i32_1 = arith.constant 0 : i32
    return %c0_i32, %c0_i32_0 : i32, i32
  }
  func.func @transform_11(%arg0: i32) -> (i32, i32) {
    %c0_i32 = arith.constant 0 : i32
    %c0_i32_0 = arith.constant 0 : i32
    %c0_i32_1 = arith.constant 0 : i32
    return %c0_i32, %c0_i32_0 : i32, i32
  }
  func.func @transform_12(%arg0: i32) -> (i32, i32) {
    %c0_i32 = arith.constant 0 : i32
    %c0_i32_0 = arith.constant 0 : i32
    %c0_i32_1 = arith.constant 0 : i32
    return %c0_i32, %c0_i32_0 : i32, i32
  }
  func.func @transform_13(%arg0: i32) -> (i32, i32) {
    %c0_i32 = arith.constant 0 : i32
    %c0_i32_0 = arith.constant 0 : i32
    %c0_i32_1 = arith.constant 0 : i32
    return %c0_i32, %c0_i32_0 : i32, i32
  }
  func.func @transform_14(%arg0: i32) -> (i32, i32) {
    %c0_i32 = arith.constant 0 : i32
    %c0_i32_0 = arith.constant 0 : i32
    %c0_i32_1 = arith.constant 0 : i32
    return %c0_i32, %c0_i32_0 : i32, i32
  }
  func.func @transform_15(%arg0: i32) -> (i32, i32) {
    %c0_i32 = arith.constant 0 : i32
    %c0_i32_0 = arith.constant 0 : i32
    %c0_i32_1 = arith.constant 0 : i32
    return %c0_i32, %c0_i32_0 : i32, i32
  }
  func.func @transform_16(%arg0: i32) -> (i32, i32) {
    %c0_i32 = arith.constant 0 : i32
    %c0_i32_0 = arith.constant 0 : i32
    %c0_i32_1 = arith.constant 0 : i32
    return %c0_i32, %c0_i32_0 : i32, i32
  }
  func.func @transform_17(%arg0: i32) -> (i32, i32) {
    %c0_i32 = arith.constant 0 : i32
    %c0_i32_0 = arith.constant 0 : i32
    %c0_i32_1 = arith.constant 0 : i32
    return %c0_i32, %c0_i32_0 : i32, i32
  }
  func.func @transform_18(%arg0: i32) -> (i32, i32) {
    %c0_i32 = arith.constant 0 : i32
    %c0_i32_0 = arith.constant 0 : i32
    %c0_i32_1 = arith.constant 0 : i32
    return %c0_i32, %c0_i32_0 : i32, i32
  }
  func.func @transform_19(%arg0: i32) -> (i32, i32) {
    %c0_i32 = arith.constant 0 : i32
    %c0_i32_0 = arith.constant 0 : i32
    %c0_i32_1 = arith.constant 0 : i32
    return %c0_i32, %c0_i32_0 : i32, i32
  }
  func.func @transform_20(%arg0: i32) -> (i32, i32) {
    %c0_i32 = arith.constant 0 : i32
    %c0_i32_0 = arith.constant 0 : i32
    %c0_i32_1 = arith.constant 0 : i32
    return %c0_i32, %c0_i32_0 : i32, i32
  }
  func.func @transform_21(%arg0: i32) -> (i32, i32) {
    %c0_i32 = arith.constant 0 : i32
    %c0_i32_0 = arith.constant 0 : i32
    %c0_i32_1 = arith.constant 0 : i32
    return %c0_i32, %c0_i32_0 : i32, i32
  }
  func.func @transform_22(%arg0: i32) -> (i32, i32) {
    %c0_i32 = arith.constant 0 : i32
    %c0_i32_0 = arith.constant 0 : i32
    %c0_i32_1 = arith.constant 0 : i32
    return %c0_i32, %c0_i32_0 : i32, i32
  }
  func.func @transform_23(%arg0: i32) -> (i32, i32) {
    %c0_i32 = arith.constant 0 : i32
    %c0_i32_0 = arith.constant 0 : i32
    %c0_i32_1 = arith.constant 0 : i32
    return %c0_i32, %c0_i32_0 : i32, i32
  }
  func.func @transform_24(%arg0: i32) -> (i32, i32) {
    %c0_i32 = arith.constant 0 : i32
    %c0_i32_0 = arith.constant 0 : i32
    %c0_i32_1 = arith.constant 0 : i32
    return %c0_i32, %c0_i32_0 : i32, i32
  }
  func.func @transform_25(%arg0: i32) -> (i32, i32) {
    %c0_i32 = arith.constant 0 : i32
    %c0_i32_0 = arith.constant 0 : i32
    %c0_i32_1 = arith.constant 0 : i32
    return %c0_i32, %c0_i32_0 : i32, i32
  }
  func.func @transform_26(%arg0: i32) -> (i32, i32) {
    %c0_i32 = arith.constant 0 : i32
    %c0_i32_0 = arith.constant 0 : i32
    %c0_i32_1 = arith.constant 0 : i32
    return %c0_i32, %c0_i32_0 : i32, i32
  }
  func.func @transform_27(%arg0: i32) -> (i32, i32, i32) {
    %c0_i32 = arith.constant 0 : i32
    %c0_i32_0 = arith.constant 0 : i32
    %c0_i32_1 = arith.constant 0 : i32
    return %arg0, %c0_i32, %c0_i32_0 : i32, i32, i32
  }
}

</mosaic_0001>

<bundles_post_ra>
// kernel: discriminator_forward.1
= control target key start
LH: loop header
LB: loop body
LE: loop exit
PB: predicated region body
PF: predicated region fallthrough
CT: control target
= control target key end

     0   :  { %s27509_s0 = inlined_call_operand.vmem [shape: bf16[2,256,8], index: 0, kind: input, shape index: {}]   ;;  %s27510_s1 = inlined_call_operand.vmem [shape: f32[12,128], index: 1, kind: input, shape index: {}]   ;;  %s27511_s2 = inlined_call_operand.vmem [shape: bf16[324,256], index: 2, kind: input, shape index: {}]   ;;  %s27512_s3 = inlined_call_operand.vmem [shape: bf16[128,16], index: 3, kind: input, shape index: {}]   ;;  %s27513_s4 = inlined_call_operand.vmem [shape: bf16[64,225], index: 4, kind: input, shape index: {}]   ;;  %s27514_s5 = inlined_call_operand.vmem [shape: bf16[100,64], index: 5, kind: input, shape index: {}]   ;;  %s27515_s6 = inlined_call_operand.vmem [shape: bf16[144,16], index: 6, kind: input, shape index: {}]   ;;  %s27516_s7 = inlined_call_operand.vmem [shape: bf16[144,16], index: 7, kind: input, shape index: {}]   ;;  %s27517_s8 = inlined_call_operand.vmem [shape: bf16[100,64], index: 8, kind: input, shape index: {}]   ;;  %s27518_s9 = inlined_call_operand.vmem [shape: bf16[256,32], index: 9, kind: input, shape index: {}]   ;;  %s27519_s10 = inlined_call_operand.vmem [shape: bf16[16,49], index: 10, kind: input, shape index: {}]   ;;  %s27520_s11 = inlined_call_operand.vmem [shape: bf16[36,16], index: 11, kind: input, shape index: {}]   ;;  %s27521_s12 = inlined_call_operand.vmem [shape: bf16[288,32], index: 12, kind: input, shape index: {}]   ;;  %s27522_s13 = inlined_call_operand.vmem [shape: bf16[288,32], index: 13, kind: input, shape index: {}]   ;;  %s27523_s14 = inlined_call_operand.vmem [shape: bf16[36,16], index: 14, kind: input, shape index: {}]   ;;  %s27524_s15 = inlined_call_operand.vmem [shape: bf16[512,64], index: 15, kind: input, shape index: {}]   ;;  %s27525_s16 = inlined_call_operand.vmem [shape: bf16[4,9], index: 16, kind: input, shape index: {}]   ;;  %s27526_s17 = inlined_call_operand.vmem [shape: bf16[16,4], index: 17, kind: input, shape index: {}]   ;;  %s27527_s18 = inlined_call_operand.vmem [shape: bf16[576,64], index: 18, kind: input, shape index: {}]   ;;  %s27528_s19 = inlined_call_operand.vmem [shape: bf16[576,64], index: 19, kind: input, shape index: {}]   ;;  %s27529_s20 = inlined_call_operand.vmem [shape: bf16[16,4], index: 20, kind: input, shape index: {}]   ;;  %s27530_s21 = inlined_call_operand.vmem [shape: bf16[1024,64], index: 21, kind: input, shape index: {}]   ;;  %s27531_s22 = inlined_call_operand.<no memory space> [shape: bf16[1,1], index: 22, kind: input, shape index: {}]   ;;  %s27532_s23 = inlined_call_operand.vmem [shape: bf16[9,1], index: 23, kind: input, shape index: {}]   ;;  %s27533_s24 = inlined_call_operand.vmem [shape: bf16[576,64], index: 24, kind: input, shape index: {}]   ;;  %s27534_s25 = inlined_call_operand.vmem [shape: bf16[576,64], index: 25, kind: input, shape index: {}]   ;;  %s27535_s26 = inlined_call_operand.vmem [shape: bf16[64,128], index: 26, kind: input, shape index: {}]   ;;  %s27536_s27 = inlined_call_operand.vmem [shape: f32[2,1,128], index: 27, kind: output, shape index: {}]  }
   0x1   :  { %27602 = sst [smem:[#allocation16_spill]] %s27509_s0 }
   0x2   :  { %27603 = sst [smem:[#allocation17_spill]] %s27510_s1 }
   0x3   :  { %27604 = sst [smem:[#allocation18_spill]] %s27511_s2 }
   0x4   :  { %27605 = sst [smem:[#allocation19_spill]] %s27512_s3 }
   0x5   :  { %27606 = sst [smem:[#allocation20_spill]] %s27513_s4 }
   0x6   :  { %27607 = sst [smem:[#allocation21_spill]] %s27514_s5 }
   0x7   :  { %27608 = sst [smem:[#allocation22_spill]] %s27515_s6 }
   0x8   :  { %27609 = sst [smem:[#allocation23_spill]] %s27516_s7  ;;  %s21464_s7 = smov 0  }
   0x9   :  { %27610 = sst [smem:[#allocation24_spill]] %s27517_s8 }
   0xa   :  { %27611 = sst [smem:[#allocation25_spill]] %s27518_s9 }
   0xb   :  { %27612 = sst [smem:[#allocation26_spill]] %s27519_s10 }
   0xc   :  { %27613 = sst [smem:[#allocation27_spill]] %s27520_s11 }
   0xd   :  { %27614 = sst [smem:[#allocation28_spill]] %s27536_s27 }
   0xe LB: > { %27615 = sst [smem:[#allocation3_spill]] %s21301_s7  ;;  %s19258_s22 = sadd.s32 4294967295, %s21301_s7   ;;  %s21301_s7 = sphi %s21464_s7, %s39_s7  }
   0xf   : > { %p19262_p0 = scmp.ge.s32.totalorder %s21301_s7, 1  ;;  %p739_p1 = scmp.lt.s32.totalorder %s21301_s7, 3 }
  0x11   : > { %p740_p2 = pnand %p19262_p0, %p739_p1 }
  0x13   : > { %743 = sbr.rel (%p740_p2) target bundleno = 9024 (0x2340), region = 128 }
  0x1a   : > { %p809_p3 = scmp.lt.s32.totalorder %s19258_s22, 1  ;;  %v27578_v0 = vmov 0   ;;  %s27616_s30 = sld [smem:[#allocation18_spill]]  ;;  %v21304_v49 = vmov 1966171168   ;;  %v1440_v51 = vlaneseq  ;;  %vm21321_vm0 = vmmov 0  }
  0x1b   : > { %1194 = vmatprep.subr.bf16.mxu0 %v27578_v0  ;;  %s27618_s0 = sld [smem:[#allocation16_spill]]  ;;  %v1438_v50 = vunpack.c.l.s4 %v21304_v49  ;;  %s27571_s1 = smov 8   ;;  %vm4904_vm1 = vcmask 64512   ;;  %vm4935_vm2 = vcmask 130048   ;;  %vm4966_vm3 = vcmask 195584  }
  0x1c   : > { %s27674_s22 = smov (!%p809_p3, %s19258_s22), 1  ;;  %v21609_v53 = vshrl.u32 %v1440_v51, 7  ;;  %s27561_s6 = smov 16   ;;  %vm4997_vm4 = vcmask 261120   ;;  %vm5028_vm5 = vcmask 326656   ;;  %vm5059_vm6 = vcmask 392192  }
  0x1d   : > { %27617 = sst [smem:[#allocation4_spill]] %s27674_s22  ;;  %s19964_s9 = sshll.u32 %s27674_s22, 7  ;;  %v1439_v52 = vunpack.c.0.s8 %v1438_v50  ;;  %vm5090_vm7 = vcmask 457728   ;;  %vm5121_vm8 = vcmask 523264   ;;  %vm5152_vm9 = vcmask 588800  }
  0x1e   : > { %27619 = vst [vmem:[#allocation5_spill] sm:$0xff] %v21609_v53  ;;  %s27557_s8 = smov 24   ;;  %s27555_s5 = smov 48   ;;  %vm5183_vm10 = vcmask 654336   ;;  %vm5214_vm11 = vcmask 719872   ;;  %vm5245_vm12 = vcmask 785408  }
  0x1f   : > { %v21612_v56 = vsub.s32 %v1439_v52, %v21609_v53  ;;  %s27573_s28 = smov 40   ;;  %s27563_s29 = smov 80   ;;  %vm5276_vm13 = vcmask 850944   ;;  %vm5307_vm14 = vcmask 916480   ;;  %vm5338_vm15 = vcmask 982016  }
  0x20   : > { %v20870_v1 = vld [vmem:[%s27616_s30 + $0x4] ss:$8 sps:$4 sm:$0xff]   ;;  %v20868_v18 = vld [vmem:[%s27616_s30] ss:$8 sps:$4 sm:$0xff]   ;;  %v20871_v19 = vld [vmem:[%s27616_s30 + $0x14] ss:$8 sps:$4 sm:$0xff]  }
  0x21   : > { %1226 = vmatprep.mubr.bf16.mxu0 %v20870_v1  ;;  %s21482_s10 = scalar_lea.vmem %s27618_s0, %s19964_s9  ;;  %v20873_v20 = vld [vmem:[%s27616_s30 + $0x10] ss:$8 sps:$4 sm:$0xff]   ;;  %v20874_v21 = vld [vmem:[%s27616_s30 + $0x24] ss:$8 sps:$4 sm:$0xff]   ;;  %v20876_v22 = vld [vmem:[%s27616_s30 + $0x20] ss:$8 sps:$4 sm:$0xff]  }
  0x22   : > { %v20852_v2 = vld [vmem:[%s21482_s10] sm:$0xff]   ;;  %v20853_v3 = vld [vmem:[%s21482_s10 + $0x8] sm:$0xff]   ;;  %v20854_v4 = vld [vmem:[%s21482_s10 + $0x10] sm:$0xff]   ;;  %s27551_s9 = smov 32   ;;  %s27549_s0 = smov 56  }
  0x23   : > { %1195 = vmatpush1.bf16.msra.mxu0 %v20852_v2  ;;  %v20855_v5 = vld [vmem:[%s21482_s10 + $0x18] sm:$0xff]   ;;  %v20856_v6 = vld [vmem:[%s21482_s10 + $0x20] sm:$0xff]   ;;  %v20857_v7 = vld [vmem:[%s21482_s10 + $0x28] sm:$0xff]   ;;  %s27575_s11 = smov 72   ;;  %s27569_s2 = smov 88  }
  0x24   : > { %1196 = vmatprep.subr.bf16.mxu0 %v27578_v0  ;;  %v20858_v8 = vld [vmem:[%s21482_s10 + $0x30] sm:$0xff]   ;;  %v20859_v9 = vld [vmem:[%s21482_s10 + $0x38] sm:$0xff]   ;;  %v20860_v10 = vld [vmem:[%s21482_s10 + $0x40] sm:$0xff]   ;;  %s27567_s4 = smov 112   ;;  %s27565_s3 = smov 120  }
  0x25   : > { %v20861_v11 = vld [vmem:[%s21482_s10 + $0x48] sm:$0xff]   ;;  %v20862_v12 = vld [vmem:[%s21482_s10 + $0x50] sm:$0xff]   ;;  %v20863_v13 = vld [vmem:[%s21482_s10 + $0x58] sm:$0xff]   ;;  %s27645_s7 = smov 40   ;;  %s27661_s22 = sld [smem:[#allocation17_spill]] }
  0x26   : > { %v20864_v14 = vld [vmem:[%s21482_s10 + $0x60] sm:$0xff]   ;;  %v20865_v15 = vld [vmem:[%s21482_s10 + $0x68] sm:$0xff]   ;;  %v20866_v16 = vld [vmem:[%s21482_s10 + $0x70] sm:$0xff]  }
  0x27   : > { %1197 = vmatpush1.bf16.msra.mxu0 %v20853_v3  ;;  %v20867_v17 = vld [vmem:[%s21482_s10 + $0x78] sm:$0xff]   ;;  %v20880_v25 = vld [vmem:[%s27616_s30 + $0x44] ss:$8 sps:$4 sm:$0xff]   ;;  %v20882_v26 = vld [vmem:[%s27616_s30 + $0x40] ss:$8 sps:$4 sm:$0xff]   ;;  %s27547_s10 = smov 64  }
  0x28   : > { %1198 = vmatprep.subr.bf16.mxu0 %v27578_v0  ;;  %v20877_v23 = vld [vmem:[%s27616_s30 + $0x34] ss:$8 sps:$4 sm:$0xff]   ;;  %v20879_v24 = vld [vmem:[%s27616_s30 + $0x30] ss:$8 sps:$4 sm:$0xff]   ;;  %v20886_v29 = vld [vmem:[%s27616_s30 + $0x64] ss:$8 sps:$4 sm:$0xff]  }
  0x29   : > { %v20883_v27 = vld [vmem:[%s27616_s30 + $0x54] ss:$8 sps:$4 sm:$0xff]   ;;  %v20885_v28 = vld [vmem:[%s27616_s30 + $0x50] ss:$8 sps:$4 sm:$0xff]   ;;  %v20888_v30 = vld [vmem:[%s27616_s30 + $0x60] ss:$8 sps:$4 sm:$0xff]  }
  0x2a   : > { %v20889_v31 = vld [vmem:[%s27616_s30 + $0x74] ss:$8 sps:$4 sm:$0xff]   ;;  %v20891_v32 = vld [vmem:[%s27616_s30 + $0x70] ss:$8 sps:$4 sm:$0xff]   ;;  %v20892_v33 = vld [vmem:[%s27616_s30 + $0x84] ss:$8 sps:$4 sm:$0xff]  }
  0x2b   : > { %1199 = vmatpush1.bf16.msra.mxu0 %v20854_v4  ;;  %v20894_v34 = vld [vmem:[%s27616_s30 + $0x80] ss:$8 sps:$4 sm:$0xff]   ;;  %v20895_v35 = vld [vmem:[%s27616_s30 + $0x94] ss:$8 sps:$4 sm:$0xff]   ;;  %v20897_v36 = vld [vmem:[%s27616_s30 + $0x90] ss:$8 sps:$4 sm:$0xff]  }
  0x2c   : > { %1200 = vmatprep.subr.bf16.mxu0 %v27578_v0  ;;  %v20898_v37 = vld [vmem:[%s27616_s30 + $0xa4] ss:$8 sps:$4 sm:$0xff]   ;;  %v20900_v38 = vld [vmem:[%s27616_s30 + $0xa0] ss:$8 sps:$4 sm:$0xff]   ;;  %v20901_v39 = vld [vmem:[%s27616_s30 + $0xb4] ss:$8 sps:$4 sm:$0xff]  }
  0x2d   : > { %v20903_v40 = vld [vmem:[%s27616_s30 + $0xb0] ss:$8 sps:$4 sm:$0xff]   ;;  %v20904_v41 = vld [vmem:[%s27616_s30 + $0xc4] ss:$8 sps:$4 sm:$0xff]   ;;  %v20906_v42 = vld [vmem:[%s27616_s30 + $0xc0] ss:$8 sps:$4 sm:$0xff]  }
  0x2e   : > { %v20907_v43 = vld [vmem:[%s27616_s30 + $0xd4] ss:$8 sps:$4 sm:$0xff]   ;;  %v20909_v44 = vld [vmem:[%s27616_s30 + $0xd0] ss:$8 sps:$4 sm:$0xff]   ;;  %v20910_v45 = vld [vmem:[%s27616_s30 + $0xe4] ss:$8 sps:$4 sm:$0xff]  }
  0x2f   : > { %1201 = vmatpush1.bf16.msra.mxu0 %v20855_v5  ;;  %v20912_v46 = vld [vmem:[%s27616_s30 + $0xe0] ss:$8 sps:$4 sm:$0xff]   ;;  %v20913_v47 = vld [vmem:[%s27616_s30 + $0xf4] ss:$8 sps:$4 sm:$0xff]   ;;  %v20915_v48 = vld [vmem:[%s27616_s30 + $0xf0] ss:$8 sps:$4 sm:$0xff]  }
  0x30   : > { %1202 = vmatprep.subr.bf16.mxu0 %v27578_v0 }
  0x33   : > { %1203 = vmatpush1.bf16.msra.mxu0 %v20856_v6 }
  0x34   : > { %1204 = vmatprep.subr.bf16.mxu0 %v27578_v0 }
  0x37   : > { %1205 = vmatpush1.bf16.msra.mxu0 %v20857_v7 }
  0x38   : > { %1206 = vmatprep.subr.bf16.mxu0 %v27578_v0 }
  0x3b   : > { %1207 = vmatpush1.bf16.msra.mxu0 %v20858_v8 }
  0x3c   : > { %1208 = vmatprep.subr.bf16.mxu0 %v27578_v0 }
  0x3f   : > { %1209 = vmatpush1.bf16.msra.mxu0 %v20859_v9 }
  0x40   : > { %1210 = vmatprep.subr.bf16.mxu0 %v27578_v0 }
  0x43   : > { %1211 = vmatpush1.bf16.msra.mxu0 %v20860_v10 }
  0x44   : > { %1212 = vmatprep.subr.bf16.mxu0 %v27578_v0 }
  0x47   : > { %1213 = vmatpush1.bf16.msra.mxu0 %v20861_v11 }
  0x48   : > { %1214 = vmatprep.subr.bf16.mxu0 %v27578_v0 }
  0x4b   : > { %1215 = vmatpush1.bf16.msra.mxu0 %v20862_v12 }
  0x4c   : > { %1216 = vmatprep.subr.bf16.mxu0 %v27578_v0 }
  0x4f   : > { %1217 = vmatpush1.bf16.msra.mxu0 %v20863_v13 }
  0x50   : > { %1218 = vmatprep.subr.bf16.mxu0 %v27578_v0 }
  0x53   : > { %1219 = vmatpush1.bf16.msra.mxu0 %v20864_v14  ;;  %v20916_v14 = vld [vmem:[%s27616_s30 + $0x104] ss:$8 sps:$4 sm:$0xff]  }
  0x54   : > { %1220 = vmatprep.subr.bf16.mxu0 %v27578_v0 }
  0x57   : > { %1221 = vmatpush1.bf16.msra.mxu0 %v20865_v15  ;;  %v20918_v15 = vld [vmem:[%s27616_s30 + $0x100] ss:$8 sps:$4 sm:$0xff]  }
  0x58   : > { %1222 = vmatprep.subr.bf16.mxu0 %v27578_v0 }
  0x5b   : > { %1223 = vmatpush1.bf16.msra.mxu0 %v20866_v16 }
  0x5c   : > { %1224 = vmatprep.subr.bf16.mxu0 %v27578_v0 }
  0x5f   : > { %1225 = vmatpush1.bf16.msra.mxu0 %v20867_v17 }
  0x60   : > { %9106 = vmatprep.subr.bf16.mxu0 %v27578_v0 }
  0x62   : > { %1227 = vmatmul.mubr.bf16.vlgmr.msra.gmra.mrb[0].mxu0 %v20868_v18 }
  0x63   : > { %1234 = vmatprep.mubr.bf16.mxu0 %v20871_v19 }
  0x6a   : > { %1235 = vmatmul.mubr.bf16.gmra.mrb[4].mxu0 %v20873_v20 }
  0x6b   : > { %1242 = vmatprep.mubr.bf16.mxu0 %v20874_v21 }
  0x72   : > { %1243 = vmatmul.mubr.bf16.gmra.mrb[8].mxu0 %v20876_v22 }
  0x73   : > { %1250 = vmatprep.mubr.bf16.mxu0 %v20877_v23 }
  0x7a   : > { %1251 = vmatmul.mubr.bf16.gmra.mrb[12].mxu0 %v20879_v24 }
  0x7b   : > { %1258 = vmatprep.mubr.bf16.mxu0 %v20880_v25 }
  0x82   : > { %1259 = vmatmul.mubr.bf16.gmra.mrb[16].mxu0 %v20882_v26 }
  0x83   : > { %1266 = vmatprep.mubr.bf16.mxu0 %v20883_v27 }
  0x8a   : > { %1267 = vmatmul.mubr.bf16.gmra.mrb[20].mxu0 %v20885_v28 }
  0x8b   : > { %1274 = vmatprep.mubr.bf16.mxu0 %v20886_v29 }
  0x92   : > { %1275 = vmatmul.mubr.bf16.gmra.mrb[24].mxu0 %v20888_v30 }
  0x93   : > { %1282 = vmatprep.mubr.bf16.mxu0 %v20889_v31 }
  0x9a   : > { %1283 = vmatmul.mubr.bf16.gmra.mrb[28].mxu0 %v20891_v32 }
  0x9b   : > { %1290 = vmatprep.mubr.bf16.mxu0 %v20892_v33 }
  0xa2   : > { %1291 = vmatmul.mubr.bf16.gmra.mrb[32].mxu0 %v20894_v34 }
  0xa3   : > { %1298 = vmatprep.mubr.bf16.mxu0 %v20895_v35 }
  0xaa   : > { %1299 = vmatmul.mubr.bf16.gmra.mrb[36].mxu0 %v20897_v36 }
  0xab   : > { %1306 = vmatprep.mubr.bf16.mxu0 %v20898_v37 }
  0xb2   : > { %1307 = vmatmul.mubr.bf16.gmra.mrb[40].mxu0 %v20900_v38 }
  0xb3   : > { %1314 = vmatprep.mubr.bf16.mxu0 %v20901_v39 }
  0xba   : > { %1315 = vmatmul.mubr.bf16.gmra.mrb[44].mxu0 %v20903_v40 }
  0xbb   : > { %1322 = vmatprep.mubr.bf16.mxu0 %v20904_v41 }
  0xc2   : > { %1323 = vmatmul.mubr.bf16.gmra.mrb[48].mxu0 %v20906_v42 }
  0xc3   : > { %1330 = vmatprep.mubr.bf16.mxu0 %v20907_v43 }
  0xca   : > { %1331 = vmatmul.mubr.bf16.gmra.mrb[52].mxu0 %v20909_v44 }
  0xcb   : > { %1338 = vmatprep.mubr.bf16.mxu0 %v20910_v45 }
  0xd2   : > { %1339 = vmatmul.mubr.bf16.gmra.mrb[56].mxu0 %v20912_v46 }
  0xd3   : > { %1346 = vmatprep.mubr.bf16.mxu0 %v20913_v47 }
  0xda   : > { %1347 = vmatmul.mubr.bf16.gmra.mrb[60].mxu0 %v20915_v48 }
  0xdb   : > { %1354 = vmatprep.mubr.bf16.mxu0 %v20916_v14 }
  0xe2   : > { %1355 = vmatmul.mubr.bf16.gmra.mrb[64].mxu0 %v20918_v15 }
 0x135   : > { %v1228_v54 = vpop.f32.mrb[0].mxu0 }
 0x136   : > { %v1230_v55 = vpop.f32.mrb[1].mxu0 }
 0x137   : > { %v1231_v57 = vpop.f32.mrb[2].mxu0 }
 0x138   : > { %v1394_v58 = vpack.c.bf16 %v1231_v57, %v1228_v54  ;;  %v19323_v59 = vpack.c.bf16 %v1231_v57, %v1231_v57  ;;  %v1233_v60 = vpop.f32.mrb[3].mxu0 }
 0x13a   : > { %v1443_v61 = vrot.slane %v1394_v58, %v21612_v56  ;;  %v1450_v62 = vrot.slane %v19323_v59, %v21612_v56 }
 0x13c   : > { %v1451_v63 = vcombine.high %v1443_v61, %v1443_v61  ;;  %v1452_v1 = vcombine.high %v1450_v62, %v1450_v62  ;;  %v1459_v2 = vrot.slane %v1443_v61, %v21612_v56  ;;  %v1466_v4 = vrot.slane %v1450_v62, %v21612_v56 }
 0x13d   : > { %v1236_v3 = vpop.f32.mrb[4].mxu0 }
 0x13e   : > { %v1473_v5 = vrot.slane %v1451_v63, %v21612_v56  ;;  %v1480_v6 = vrot.slane %v1452_v1, %v21612_v56  ;;  %v1238_v7 = vpop.f32.mrb[5].mxu0  ;;  %v1481_v16 = vcombine.high %v1459_v2, %v1459_v2  ;;  %v1482_v24 = vcombine.high %v1466_v4, %v1466_v4 }
 0x13f   : > { %v1239_v8 = vpop.f32.mrb[6].mxu0 }
 0x140   : > { %v2438_v9 = vcombine.low %v1459_v2, %v1473_v5  ;;  %v19343_v10 = vcombine.high %v1459_v2, %v1473_v5  ;;  %v2440_v11 = vcombine.low %v1466_v4, %v1480_v6  ;;  %v19344_v12 = vcombine.high %v1466_v4, %v1480_v6  ;;  %v1241_v13 = vpop.f32.mrb[7].mxu0 }
 0x141   : > { %v1395_v17 = vpack.c.bf16 %v1239_v8, %v1236_v3  ;;  %v19324_v18 = vpack.c.bf16 %v1239_v8, %v1239_v8  ;;  %v1483_v19 = vcombine.high %v1473_v5, %v1473_v5  ;;  %v3308_v34 = vcombine.low %v1473_v5, %v1481_v16 }
 0x142   : > { %v2448_v20 = vrot.slane %v2438_v9, %v21612_v56  ;;  %v2455_v21 = vrot.slane %v19343_v10, %v21612_v56  ;;  %v2462_v22 = vrot.slane %v2440_v11, %v21612_v56  ;;  %v2469_v23 = vrot.slane %v19344_v12, %v21612_v56 }
 0x143   : > { %v1492_v25 = vrot.slane %v1395_v17, %v21612_v56  ;;  %v1499_v26 = vrot.slane %v19324_v18, %v21612_v56  ;;  %v3309_v27 = vcombine.low %v1483_v19, %v1466_v4  ;;  %v1484_v35 = vcombine.high %v1480_v6, %v1480_v6 }
 0x144   : > { %v2470_v28 = vcombine.low %v2448_v20, %v2455_v21  ;;  %v2471_v29 = vcombine.low %v2462_v22, %v2469_v23  ;;  %v3310_v43 = vcombine.low %v1480_v6, %v1482_v24  ;;  %v3318_v51 = vrot.slane %v3308_v34, %v21612_v56 }
 0x145   : > { %v1500_v30 = vcombine.high %v1492_v25, %v1492_v25  ;;  %v1501_v31 = vcombine.high %v1499_v26, %v1499_v26  ;;  %v1508_v32 = vrot.slane %v1492_v25, %v21612_v56  ;;  %v1244_v33 = vpop.f32.mrb[8].mxu0  ;;  %v21634_v36 = vrot.slane %v1499_v26, %v21612_v56 }
 0x146   : > { %v1246_v37 = vpop.f32.mrb[9].mxu0  ;;  %v2478_v38 = vrot.slane %v2470_v28, %v21612_v56  ;;  %v2485_v39 = vrot.slane %v2471_v29, %v21612_v56  ;;  %v3325_v52 = vrot.slane %v3309_v27, %v21612_v56  ;;  %v3332_v6 = vrot.slane %v3310_v43, %v21612_v56 }
 0x147   : > { %v1522_v40 = vrot.slane %v1500_v30, %v21612_v56  ;;  %v21640_v41 = vrot.slane %v1501_v31, %v21612_v56  ;;  %v1247_v42 = vpop.f32.mrb[10].mxu0  ;;  %v3311_v44 = vcombine.low %v1484_v35, %v1508_v32  ;;  %v1530_v49 = vcombine.high %v1508_v32, %v1508_v32 }
 0x148   : > { %v1396_v45 = vpack.c.bf16 %v1247_v42, %v1244_v33  ;;  %v19325_v46 = vpack.c.bf16 %v1247_v42, %v1247_v42  ;;  %v1249_v47 = vpop.f32.mrb[11].mxu0  ;;  %v21642_v48 = vcombine.low %v2478_v38, %v2485_v39  ;;  %v1531_v54 = vcombine.high %v21634_v36, %v21634_v36 }
 0x149   : > { %v1532_v50 = vcombine.high %v1522_v40, %v1522_v40  ;;  %v19359_v55 = vcombine.high %v1508_v32, %v1522_v40  ;;  %v1533_v60 = vcombine.high %v21640_v41, %v21640_v41  ;;  %v3339_v7 = vrot.slane %v3311_v44, %v21612_v56 }
 0x14a   : > { %v1541_v57 = vrot.slane %v1396_v45, %v21612_v56  ;;  %v1548_v58 = vrot.slane %v19325_v46, %v21612_v56  ;;  %v3174_v61 = vshrl.u32 %v21642_v48, 16  ;;  %v3176_v62 = vshll.u32 %v21642_v48, 16 }
 0x14b   : > { %v2488_v59 = vcombine.low %v1532_v50, %v21634_v36  ;;  %v3340_v8 = vcombine.low %v3318_v51, %v3325_v52  ;;  %v2487_v13 = vcombine.low %v1522_v40, %v1530_v49  ;;  %v3358_v14 = vcombine.low %v21634_v36, %v21640_v41 }
 0x14c   : > { %v1549_v63 = vcombine.high %v1541_v57, %v1541_v57  ;;  %v1550_v1 = vcombine.high %v1548_v58, %v1548_v58  ;;  %v21656_v2 = vrot.slane %v1541_v57, %v21612_v56  ;;  %v1564_v3 = vrot.slane %v1548_v58, %v21612_v56 }
 0x14d   : > { %v1252_v4 = vpop.f32.mrb[12].mxu0  ;;  %v3178_v5 = vrot.slane %v3176_v62, 1  ;;  %v3341_v17 = vcombine.low %v3332_v6, %v3339_v7  ;;  %v19360_v23 = vcombine.high %v21634_v36, %v21640_v41  ;;  %v21670_v24 = vrot.slane %v19359_v55, %v21612_v56 }
 0x14e   : > { %v1571_v9 = vrot.slane %v1549_v63, %v21612_v56  ;;  %v1578_v10 = vrot.slane %v1550_v1, %v21612_v56  ;;  %v2490_v11 = vcombine.low %v1533_v60, %v21656_v2  ;;  %v1254_v12 = vpop.f32.mrb[13].mxu0  ;;  %v1580_v18 = vcombine.high %v1564_v3, %v1564_v3 }
 0x14f   : > { %v1255_v15 = vpop.f32.mrb[14].mxu0  ;;  %v3179_v16 = vor.u32 %v3178_v5, %v3174_v61  ;;  %v2489_v26 = vcombine.low %v21640_v41, %v1531_v54  ;;  %v3348_v30 = vrot.slane %v3340_v8, %v21612_v56  ;;  %v3355_v39 = vrot.slane %v3341_v17, %v21612_v56 }
 0x150   : > { %v1581_v19 = vcombine.high %v1571_v9, %v1571_v9  ;;  %v19345_v20 = vcombine.high %v21656_v2, %v1571_v9  ;;  %v2537_v21 = vcombine.low %v1564_v3, %v1578_v10  ;;  %v1257_v22 = vpop.f32.mrb[15].mxu0  ;;  %v1397_v25 = vpack.c.bf16 %v1255_v15, %v1252_v4 }
 0x151   : > { %3278 = vrot.lane.b32.xlu0 %v3179_v16, %s27571_s1  ;;  %v2518_v31 = vrot.slane %v2490_v11, %v21612_v56  ;;  %v19346_v32 = vcombine.high %v1564_v3, %v1578_v10  ;;  %v3360_v33 = vcombine.low %v21656_v2, %v1571_v9  ;;  %v19326_v34 = vpack.c.bf16 %v1255_v15, %v1255_v15  ;;  %v20919_v9 = vld [vmem:[%s27616_s30 + $0x114] ss:$8 sps:$4 sm:$0xff]  }
 0x152   : > { %v21675_v27 = vrot.slane %v19345_v20, %v21612_v56  ;;  %v21678_v28 = vrot.slane %v2537_v21, %v21612_v56  ;;  %v21680_v29 = vcombine.low %v1581_v19, %v1564_v3  ;;  %v21687_v37 = vcombine.low %v1578_v10, %v1580_v18  ;;  %1362 = vmatprep.mubr.bf16.mxu0 %v20919_v9  ;;  %v20921_v19 = vld [vmem:[%s27616_s30 + $0x110] ss:$8 sps:$4 sm:$0xff]  }
 0x153   : > { %v1590_v38 = vrot.slane %v1397_v25, %v21612_v56  ;;  %v1597_v40 = vrot.slane %v19326_v34, %v21612_v56  ;;  %v2497_v43 = vrot.slane %v2487_v13, %v21612_v56  ;;  %v2504_v44 = vrot.slane %v2488_v59, %v21612_v56  ;;  %1363 = vmatmul.mubr.bf16.gmra.mrb[68].mxu0 %v20921_v19 }
 0x154   : > { %v2568_v35 = vcombine.low %v21675_v27, %v21678_v28  ;;  %v2511_v45 = vrot.slane %v2489_v26, %v21612_v56  ;;  %v1582_v46 = vcombine.high %v1578_v10, %v1578_v10  ;;  %v3356_v50 = vcombine.low %v3348_v30, %v3355_v39 }
 0x155   : > { %v1260_v42 = vpop.f32.mrb[16].mxu0  ;;  %v1598_v47 = vcombine.high %v1590_v38, %v1590_v38  ;;  %v1606_v49 = vrot.slane %v1590_v38, %v21612_v56  ;;  %v1599_v52 = vcombine.high %v1597_v40, %v1597_v40  ;;  %v21697_v54 = vrot.slane %v1597_v40, %v21612_v56 }
 0x156   : > { %v1262_v51 = vpop.f32.mrb[17].mxu0  ;;  %v2519_v57 = vcombine.low %v2497_v43, %v2504_v44  ;;  %v2520_v58 = vcombine.low %v2511_v45, %v2518_v31  ;;  %v21700_v60 = vrot.slane %v19346_v32, %v21612_v56  ;;  %4043 = vrot.lane.b32.xlu0 %v3356_v50, %s27561_s6  ;;  %v4076_v3 = vshll.u32 %v3356_v50, 16 }
 0x157   : > { %v1263_v55 = vpop.f32.mrb[18].mxu0  ;;  %v1620_v59 = vrot.slane %v1598_v47, %v21612_v56  ;;  %v1628_v61 = vcombine.high %v1606_v49, %v1606_v49  ;;  %v3408_v62 = vcombine.low %v1582_v46, %v1606_v49  ;;  %v21705_v1 = vrot.slane %v1599_v52, %v21612_v56 }
 0x158   : > { %v1265_v63 = vpop.f32.mrb[19].mxu0  ;;  %v1629_v2 = vcombine.high %v21697_v54, %v21697_v54  ;;  %v1398_v4 = vpack.c.bf16 %v1263_v55, %v1260_v42  ;;  %v3388_v5 = vrot.slane %v3360_v33, %v21612_v56  ;;  %v4074_v11 = vshrl.u32 %v3356_v50, 16 }
 0x159   : > { %v1630_v6 = vcombine.high %v1620_v59, %v1620_v59  ;;  %v2539_v7 = vcombine.low %v1606_v49, %v1620_v59  ;;  %v3409_v8 = vcombine.low %v1620_v59, %v1628_v61  ;;  %v4078_v12 = vrot.slane %v4076_v3, 1 }
 0x15a   : > { %v2586_v10 = vcombine.low %v21705_v1, %v1629_v2  ;;  %v3374_v13 = vrot.slane %v3358_v14, %v21612_v56  ;;  %v3430_v17 = vrot.slane %v3408_v62, %v21612_v56  ;;  %v3423_v20 = vrot.slane %v21687_v37, %v21612_v56 }
 0x15b   : > { %v21716_v15 = vrot.slane %v2539_v7, %v21612_v56  ;;  %v2585_v16 = vcombine.low %v1630_v6, %v21697_v54  ;;  %v3437_v18 = vrot.slane %v3409_v8, %v21612_v56  ;;  %v3455_v14 = vcombine.low %v21697_v54, %v21705_v1 }
 0x15c   : > { %v2602_v21 = vrot.slane %v2586_v10, %v21612_v56  ;;  %v4079_v22 = vor.u32 %v4078_v12, %v4074_v11  ;;  %v19327_v32 = vpack.c.bf16 %v1263_v55, %v1263_v55  ;;  %v1631_v34 = vcombine.high %v21705_v1, %v21705_v1 }
 0x15d   : > { %v21729_v25 = vpop.f32.mrb[20].mxu0  ;;  %v2569_v26 = vcombine.low %v21700_v60, %v21716_v15  ;;  %v2595_v30 = vrot.slane %v2585_v16, %v21612_v56  ;;  %v21734_v31 = vcombine.low %v3430_v17, %v3437_v18  ;;  %v1639_v38 = vrot.slane %v1398_v4, %v21612_v56 }
 0x15e   : > { %v1270_v33 = vpop.f32.mrb[21].mxu0  ;;  %4178 = vrot.lane.b32.xlu1 %v4079_v22, %s27557_s8  ;;  %v2527_v39 = vrot.slane %v2519_v57, %v21612_v56  ;;  %v2534_v40 = vrot.slane %v2520_v58, %v21612_v56  ;;  %v1646_v44 = vrot.slane %v19327_v32, %v21612_v56  ;;  %v3381_v45 = vrot.slane %v19360_v23, %v21612_v56 }
 0x15f   : > { %v1271_v42 = vpop.f32.mrb[22].mxu0  ;;  %v21742_v43 = vcombine.low %v2595_v30, %v2602_v21  ;;  %v3389_v46 = vcombine.low %v21670_v24, %v3374_v13  ;;  %v1647_v49 = vcombine.high %v1639_v38, %v1639_v38  ;;  %v1655_v50 = vrot.slane %v1639_v38, %v21612_v56 }
 0x160   : > { %v1273_v47 = vpop.f32.mrb[23].mxu0  ;;  %v21751_v51 = vcombine.low %v2527_v39, %v2534_v40  ;;  %v1399_v52 = vpack.c.bf16 %v1271_v42, %v21729_v25  ;;  %v19361_v55 = vcombine.high %v21697_v54, %v21705_v1  ;;  %v1648_v57 = vcombine.high %v1646_v44, %v1646_v44 }
 0x161   : > { %v1662_v58 = vrot.slane %v1646_v44, %v21612_v56  ;;  %v3390_v59 = vcombine.low %v3381_v45, %v3388_v5  ;;  %v1669_v36 = vrot.slane %v1647_v49, %v21612_v56  ;;  %v1677_v41 = vcombine.high %v1655_v50, %v1655_v50 }
 0x162   : > { %v2587_v23 = vcombine.low %v1631_v34, %v1655_v50  ;;  %4257 = vrot.lane.b32.xlu1 %v21751_v51, %s27551_s9  ;;  %v3397_v24 = vrot.slane %v3389_v46, %v21612_v56  ;;  %v1676_v61 = vrot.slane %v1648_v57, %v21612_v56  ;;  %v3183_v54 = vshll.u32 %v21751_v51, 16 }
 0x163   : > { %v1678_v62 = vcombine.high %v1662_v58, %v1662_v58  ;;  %v3404_v63 = vrot.slane %v3390_v59, %v21612_v56  ;;  %v3416_v1 = vrot.slane %v21680_v29, %v21612_v56  ;;  %v2588_v2 = vcombine.low %v1669_v36, %v1677_v41 }
 0x164   : > { %v3457_v3 = vcombine.low %v1655_v50, %v1669_v36  ;;  %v19362_v4 = vcombine.high %v1655_v50, %v1669_v36  ;;  %v2634_v6 = vcombine.low %v1662_v58, %v1676_v61  ;;  %v19347_v7 = vcombine.high %v1662_v58, %v1676_v61 }
 0x165   : > { %v21766_v5 = vpop.f32.mrb[24].mxu0  ;;  %v3405_v8 = vcombine.low %v3397_v24, %v3404_v63  ;;  %v3181_v9 = vshrl.u32 %v21751_v51, 16  ;;  %v2609_v11 = vrot.slane %v2587_v23, %v21612_v56  ;;  %v2616_v12 = vrot.slane %v2588_v2, %v21612_v56 }
 0x166   : > { %v1278_v10 = vpop.f32.mrb[25].mxu0  ;;  %v21771_v13 = vcombine.low %v1676_v61, %v1678_v62  ;;  %v3185_v16 = vrot.slane %v3183_v54, 1  ;;  %v21776_v29 = vrot.slane %v3455_v14, %v21612_v56  ;;  %v21779_v18 = vrot.slane %v19361_v55, %v21612_v56 }
 0x167   : > { %v21773_v17 = vpop.f32.mrb[26].mxu0  ;;  %v3479_v19 = vrot.slane %v3457_v3, %v21612_v56  ;;  %4045 = vrot.lane.b32.xlu0 %v3405_v8, %s27561_s6  ;;  %4373 = vrot.lane.b32.xlu1 %v3405_v8, %s27555_s5  ;;  %v21784_v22 = vcombine.low %v2609_v11, %v2616_v12  ;;  %v3486_v25 = vrot.slane %v19362_v4, %v21612_v56  ;;  %v4083_v32 = vshll.u32 %v3405_v8, 16 }
 0x168   : > { %v1281_v21 = vpop.f32.mrb[27].mxu0  ;;  %v3186_v30 = vor.u32 %v3185_v16, %v3181_v9  ;;  %v2644_v14 = vrot.slane %v2634_v6, %v21612_v56  ;;  %v2651_v33 = vrot.slane %v19347_v7, %v21612_v56  ;;  %v19328_v34 = vpack.c.bf16 %v1271_v42, %v1271_v42 }
 0x169   : > { %v1688_v38 = vrot.slane %v1399_v52, %v21612_v56  ;;  %v3514_v39 = vrot.slane %v21771_v13, %v21612_v56  ;;  %v4081_v40 = vshrl.u32 %v3405_v8, 16  ;;  %v4085_v44 = vrot.slane %v4083_v32, 1 }
 0x16a   : > { %v1680_v45 = vcombine.high %v1676_v61, %v1676_v61  ;;  %v1695_v46 = vrot.slane %v19328_v34, %v21612_v56  ;;  %v2576_v42 = vrot.slane %v2568_v35, %v21612_v56  ;;  %v2583_v52 = vrot.slane %v2569_v26, %v21612_v56 }
 0x16b   : > { %4294 = vrot.lane.b32.xlu0 %v3186_v30, %s27573_s28  ;;  %v1696_v47 = vcombine.high %v1688_v38, %v1688_v38  ;;  %v1704_v49 = vrot.slane %v1688_v38, %v21612_v56  ;;  %v4086_v50 = vor.u32 %v4085_v44, %v4081_v40  ;;  %v3438_v55 = vcombine.low %v3416_v1, %v3423_v20 }
 0x16c   : > { %v3453_v57 = vrot.slane %v21734_v31, %v21612_v56  ;;  %v3488_v59 = vcombine.low %v3479_v19, %v3486_v25  ;;  %v21811_v36 = vrot.slane %v1695_v46, %v21612_v56  ;;  %v1697_v60 = vcombine.high %v1695_v46, %v1695_v46 }
 0x16d   : > { %v21808_v58 = vpop.f32.mrb[28].mxu0  ;;  %v1718_v27 = vrot.slane %v1696_v47, %v21612_v56  ;;  %v1726_v28 = vcombine.high %v1704_v49, %v1704_v49  ;;  %4410 = vrot.lane.b32.xlu1 %v4086_v50, %s27549_s0  ;;  %v3505_v15 = vcombine.low %v1680_v45, %v1704_v49  ;;  %v21815_v37 = vcombine.low %v2576_v42, %v2583_v52 }
 0x16e   : > { %v1286_v35 = vpop.f32.mrb[29].mxu0  ;;  %v3446_v20 = vrot.slane %v3438_v55, %v21612_v56  ;;  %v2666_v31 = vcombine.low %v2644_v14, %v2651_v33  ;;  %v1727_v41 = vcombine.high %v21811_v36, %v21811_v36  ;;  %v3487_v2 = vcombine.low %v21776_v29, %v21779_v18 }
 0x16f   : > { %v21818_v26 = vpop.f32.mrb[30].mxu0  ;;  %3280 = vrot.lane.b32.xlu0 %v3186_v30, %s27571_s1  ;;  %v1728_v23 = vcombine.high %v1718_v27, %v1718_v27  ;;  %v2636_v24 = vcombine.low %v1704_v49, %v1718_v27  ;;  %v19348_v62 = vcombine.high %v1704_v49, %v1718_v27  ;;  %v3506_v63 = vcombine.low %v1718_v27, %v1726_v28 }
 0x170   : > { %v1289_v61 = vpop.f32.mrb[31].mxu0  ;;  %v3521_v54 = vrot.slane %v3505_v15, %v21612_v56  ;;  %v3454_v1 = vcombine.low %v3446_v20, %v3453_v57  ;;  %v2632_v3 = vrot.slane %v21784_v22, %v21612_v56  ;;  %v1725_v7 = vrot.slane %v1697_v60, %v21612_v56 }
 0x171   : > { %v2658_v4 = vrot.slane %v2636_v24, %v21612_v56  ;;  %v3507_v6 = vcombine.low %v1728_v23, %v21811_v36  ;;  %v2665_v8 = vrot.slane %v19348_v62, %v21612_v56  ;;  %v3528_v9 = vrot.slane %v3506_v63, %v21612_v56  ;;  %4489 = vrot.lane.b32.xlu1 %v21815_v37, %s27547_s10 }
 0x172   : > { %v3536_v10 = vcombine.low %v3514_v39, %v3521_v54  ;;  %v3502_v11 = vrot.slane %v3488_v59, %v21612_v56  ;;  %v3190_v13 = vshll.u32 %v21815_v37, 16  ;;  %v2625_v16 = vrot.slane %v21742_v43, %v21612_v56 }
 0x173   : > { %v3535_v12 = vrot.slane %v3507_v6, %v21612_v56  ;;  %4180 = vrot.lane.b32.xlu0 %v4086_v50, %s27557_s8  ;;  %v2674_v29 = vrot.slane %v2666_v31, %v21612_v56  ;;  %v2667_v18 = vcombine.low %v2658_v4, %v2665_v8  ;;  %v2683_v19 = vcombine.low %v1725_v7, %v1727_v41 }
 0x174   : > { %v4090_v25 = vshll.u32 %v3454_v1, 16  ;;  %v21844_v30 = vcombine.low %v2625_v16, %v2632_v3  ;;  %v3495_v32 = vrot.slane %v3487_v2, %v21612_v56  ;;  %v1400_v33 = vpack.c.bf16 %v21773_v17, %v21766_v5 }
 0x175   : > { %v21842_v21 = vpop.f32.mrb[32].mxu0  ;;  %v3537_v22 = vcombine.low %v3528_v9, %v3535_v12  ;;  %4605 = vrot.lane.b32.xlu1 %v3454_v1, %s27563_s29  ;;  %v19329_v43 = vpack.c.bf16 %v21773_v17, %v21773_v17  ;;  %v2681_v34 = vrot.slane %v2667_v18, %v21612_v56  ;;  %v1729_v39 = vcombine.high %v1725_v7, %v1725_v7 }
 0x176   : > { %v1294_v14 = vpop.f32.mrb[33].mxu0  ;;  %v3192_v44 = vrot.slane %v3190_v13, 1  ;;  %v21858_v45 = vcombine.low %v3495_v32, %v3502_v11  ;;  %v2693_v47 = vrot.slane %v2683_v19, %v21612_v56  ;;  %v19363_v5 = vcombine.high %v21811_v36, %v1725_v7 }
 0x177   : > { %v21853_v38 = vpop.f32.mrb[34].mxu0  ;;  %v3551_v40 = vrot.slane %v3537_v22, %v21612_v56  ;;  %4259 = vrot.lane.b32.xlu0 %v21815_v37, %s27551_s9  ;;  %v1737_v17 = vrot.slane %v1400_v33, %v21612_v56  ;;  %v1744_v49 = vrot.slane %v19329_v43, %v21612_v56  ;;  %v3188_v42 = vshrl.u32 %v21815_v37, 16 }
 0x178   : > { %v1297_v46 = vpop.f32.mrb[35].mxu0  ;;  %v4092_v50 = vrot.slane %v4090_v25, 1  ;;  %v21865_v52 = vcombine.low %v2674_v29, %v2681_v34  ;;  %v3544_v55 = vrot.slane %v3536_v10, %v21612_v56  ;;  %v4088_v57 = vshrl.u32 %v3454_v1, 16 }
 0x179   : > { %4047 = vrot.lane.b32.xlu1 %v3454_v1, %s27561_s6  ;;  %v1745_v59 = vcombine.high %v1737_v17, %v1737_v17  ;;  %v1746_v27 = vcombine.high %v1744_v49, %v1744_v49  ;;  %v1753_v28 = vrot.slane %v1737_v17, %v21612_v56  ;;  %v3193_v36 = vor.u32 %v3192_v44, %v3188_v42 }
 0x17a   : > { %27620 = vst [vmem:[#allocation6_spill] sm:$0xff] %v21865_v52  ;;  %v1760_v35 = vrot.slane %v1744_v49, %v21612_v56  ;;  %v21872_v60 = vcombine.low %v3544_v55, %v3551_v40  ;;  %v1401_v15 = vpack.c.bf16 %v21818_v26, %v21808_v58  ;;  %v21881_v61 = vrot.slane %v19363_v5, %v21612_v56 }
 0x17b   : > { %4375 = vrot.lane.b32.xlu0 %v3454_v1, %s27555_s5  ;;  %v1767_v20 = vrot.slane %v1745_v59, %v21612_v56  ;;  %v1774_v31 = vrot.slane %v1746_v27, %v21612_v56  ;;  %v1775_v41 = vcombine.high %v1753_v28, %v1753_v28  ;;  %v2684_v23 = vcombine.low %v1729_v39, %v1753_v28 }
 0x17c   : > { %v4093_v62 = vor.u32 %v4092_v50, %v4088_v57  ;;  %v19330_v63 = vpack.c.bf16 %v21818_v26, %v21818_v26  ;;  %v1786_v3 = vrot.slane %v1401_v15, %v21612_v56  ;;  %v3197_v50 = vshll.u32 %v21844_v30, 16 }
 0x17d   : > { %v21878_v24 = vpop.f32.mrb[36].mxu0  ;;  %4526 = vrot.lane.b32.xlu1 %v3193_v36, %s27575_s11  ;;  %v1777_v58 = vcombine.high %v1767_v20, %v1767_v20  ;;  %v2685_v1 = vcombine.low %v1767_v20, %v1775_v41  ;;  %v2700_v2 = vrot.slane %v2684_v23, %v21612_v56  ;;  %v1778_v6 = vcombine.high %v1774_v31, %v1774_v31 }
 0x17e   : > { %v1302_v54 = vpop.f32.mrb[37].mxu0  ;;  %v3554_v7 = vcombine.low %v1753_v28, %v1767_v20  ;;  %v19364_v8 = vcombine.high %v1753_v28, %v1767_v20  ;;  %v3556_v9 = vcombine.low %v1760_v35, %v1774_v31  ;;  %v1793_v13 = vrot.slane %v19330_v63, %v21612_v56 }
 0x17f   : > { %v21888_v4 = vpop.f32.mrb[38].mxu0  ;;  %4296 = vrot.lane.b32.xlu0 %v3193_v36, %s27573_s28  ;;  %v2686_v26 = vcombine.low %v1777_v58, %v1760_v35  ;;  %v2707_v11 = vrot.slane %v2685_v1, %v21612_v56  ;;  %v21892_v12 = vcombine.low %v2693_v47, %v2700_v2  ;;  %v19349_v16 = vcombine.high %v1760_v35, %v1774_v31 }
 0x180   : > { %v1305_v10 = vpop.f32.mrb[39].mxu0  ;;  %v3570_v29 = vrot.slane %v3554_v7, %v21612_v56  ;;  %v3577_v18 = vrot.slane %v19364_v8, %v21612_v56  ;;  %v3584_v19 = vrot.slane %v3556_v9, %v21612_v56  ;;  %v1794_v25 = vcombine.high %v1786_v3, %v1786_v3 }
 0x181   : > { %4642 = vrot.lane.b32.xlu1 %v4093_v62, %s27569_s2  ;;  %v2714_v22 = vrot.slane %v2686_v26, %v21612_v56  ;;  %v1795_v32 = vcombine.high %v1793_v13, %v1793_v13  ;;  %v1802_v14 = vrot.slane %v1786_v3, %v21612_v56  ;;  %v1809_v34 = vrot.slane %v1793_v13, %v21612_v56  ;;  %v20924_v10 = vld [vmem:[%s27616_s30 + $0x120] ss:$8 sps:$4 sm:$0xff]  }
 0x182   : > { %v3585_v33 = vcombine.low %v21881_v61, %v3570_v29  ;;  %v3586_v43 = vcombine.low %v3577_v18, %v3584_v19  ;;  %v1816_v40 = vrot.slane %v1794_v25, %v21612_v56  ;;  %v21912_v42 = vrot.slane %v19349_v16, %v21612_v56 }
 0x183   : > { %4412 = vrot.lane.b32.xlu0 %v4093_v62, %s27549_s0  ;;  %v2716_v39 = vcombine.low %v2707_v11, %v2714_v22  ;;  %v21906_v44 = vrot.slane %v1795_v32, %v21612_v56  ;;  %v1824_v46 = vcombine.high %v1802_v14, %v1802_v14  ;;  %v1825_v5 = vcombine.high %v1809_v34, %v1809_v34  ;;  %s27553_s0 = smov 96  }
 0x184   : > { %v3602_v17 = vcombine.low %v1778_v6, %v1802_v14  ;;  %v1826_v55 = vcombine.high %v1816_v40, %v1816_v40  ;;  %v2733_v57 = vcombine.low %v1802_v14, %v1816_v40  ;;  %v19350_v27 = vcombine.high %v1802_v14, %v1816_v40  ;;  %v20922_v6 = vld [vmem:[%s27616_s30 + $0x124] ss:$8 sps:$4 sm:$0xff]  }
 0x185   : > { %v21908_v47 = vpop.f32.mrb[40].mxu0  ;;  %3282 = vrot.lane.b32.xlu1 %v3193_v36, %s27571_s1  ;;  %v2735_v28 = vcombine.low %v1809_v34, %v21906_v44  ;;  %v3603_v35 = vcombine.low %v1816_v40, %v1824_v46  ;;  %v3605_v15 = vcombine.low %v21906_v44, %v1825_v5  ;;  %v3600_v36 = vrot.slane %v3586_v43, %v21612_v56 }
 0x186   : > { %v1310_v49 = vpop.f32.mrb[41].mxu0  ;;  %v21923_v31 = vrot.slane %v2733_v57, %v21612_v56  ;;  %v3604_v41 = vcombine.low %v1826_v55, %v1809_v34  ;;  %v3612_v23 = vrot.slane %v3602_v17, %v21612_v56  ;;  %v2756_v61 = vrot.slane %v19350_v27, %v21612_v56  ;;  %1370 = vmatprep.mubr.bf16.mxu0 %v20922_v6 }
 0x187   : > { %v21915_v59 = vpop.f32.mrb[42].mxu0  ;;  %4491 = vrot.lane.b32.xlu0 %v21844_v30, %s27547_s10  ;;  %v2763_v63 = vrot.slane %v2735_v28, %v21612_v56  ;;  %v3619_v54 = vrot.slane %v3603_v35, %v21612_v56  ;;  %v3633_v58 = vrot.slane %v3605_v15, %v21612_v56  ;;  %v2730_v1 = vrot.slane %v2716_v39, %v21612_v56  ;;  %v20925_v49 = vld [vmem:[%s27616_s30 + $0x134] ss:$8 sps:$4 sm:$0xff]   ;;  %v20927_v15 = vld [vmem:[%s27616_s30 + $0x130] ss:$8 sps:$4 sm:$0xff]   ;;  %s27559_s10 = smov 104  }
 0x188   : > { %v1313_v20 = vpop.f32.mrb[43].mxu0  ;;  %v2764_v2 = vcombine.low %v21912_v42, %v21923_v31  ;;  %v3626_v3 = vrot.slane %v3604_v41, %v21612_v56  ;;  %v4097_v7 = vshll.u32 %v21858_v45, 16  ;;  %v1402_v11 = vpack.c.bf16 %v21853_v38, %v21842_v21  ;;  %1371 = vmatmul.mubr.bf16.gmra.mrb[72].mxu0 %v20924_v10 }
 0x189   : > { %4182 = vrot.lane.b32.xlu1 %v4093_v62, %s27557_s8  ;;  %v2765_v8 = vcombine.low %v2756_v61, %v2763_v63  ;;  %v21941_v9 = vcombine.low %v3612_v23, %v3619_v54  ;;  %v3593_v62 = vrot.slane %v3585_v33, %v21612_v56  ;;  %v19331_v13 = vpack.c.bf16 %v21853_v38, %v21853_v38 }
 0x18a   : > { %v21947_v26 = vcombine.low %v3626_v3, %v3633_v58  ;;  %v2723_v16 = vrot.slane %v21892_v12, %v21612_v56  ;;  %v3199_v18 = vrot.slane %v3197_v50, 1  ;;  %v1835_v21 = vrot.slane %v1402_v11, %v21612_v56  ;;  %1378 = vmatprep.mubr.bf16.mxu0 %v20925_v49 }
 0x18b   : > { %4607 = vrot.lane.b32.xlu0 %v21858_v45, %s27563_s29  ;;  %v21957_v19 = vcombine.low %v3593_v62, %v3600_v36  ;;  %v1842_v25 = vrot.slane %v19331_v13, %v21612_v56  ;;  %v3195_v12 = vshrl.u32 %v21844_v30, 16  ;;  %v4099_v14 = vrot.slane %v4097_v7, 1 }
 0x18c   : > { %v21963_v38 = vcombine.low %v2723_v16, %v2730_v1  ;;  %v1827_v33 = vcombine.high %v21906_v44, %v21906_v44  ;;  %v1843_v34 = vcombine.high %v1835_v21, %v1835_v21  ;;  %v1851_v40 = vrot.slane %v1835_v21, %v21612_v56 }
 0x18d   : > { %v21955_v29 = vpop.f32.mrb[44].mxu0  ;;  %4721 = vrot.lane.b32.xlu1 %v21844_v30, %s27553_s0  ;;  %v1844_v39 = vcombine.high %v1842_v25, %v1842_v25  ;;  %v1858_v46 = vrot.slane %v1842_v25, %v21612_v56  ;;  %v21974_v5 = vor.u32 %v3199_v18, %v3195_v12  ;;  %v4095_v17 = vshrl.u32 %v21858_v45, 16 }
 0x18e   : > { %v1318_v22 = vpop.f32.mrb[45].mxu0  ;;  %27621 = vst [vmem:[#allocation7_spill] sm:$0xff] %v21963_v38  ;;  %v1865_v44 = vrot.slane %v1843_v34, %v21612_v56  ;;  %v1873_v55 = vcombine.high %v1851_v40, %v1851_v40  ;;  %v2779_v28 = vrot.slane %v2765_v8, %v21612_v56  ;;  %v2781_v35 = vcombine.low %v1827_v33, %v1851_v40 }
 0x18f   : > { %v21965_v32 = vpop.f32.mrb[46].mxu0  ;;  %4049 = vrot.lane.b32.xlu0 %v21858_v45, %s27561_s6  ;;  %v1872_v50 = vrot.slane %v1844_v39, %v21612_v56  ;;  %v1874_v57 = vcombine.high %v1858_v46, %v1858_v46  ;;  %v21986_v27 = vor.u32 %v4099_v14, %v4095_v17  ;;  %v3649_v11 = vrot.slane %v21947_v26, %v21612_v56 }
 0x190   : > { %v1321_v43 = vpop.f32.mrb[47].mxu0  ;;  %v1875_v20 = vcombine.high %v1865_v44, %v1865_v44  ;;  %v2782_v36 = vcombine.low %v1865_v44, %v1873_v55  ;;  %v3651_v23 = vcombine.low %v1851_v40, %v1865_v44  ;;  %v2791_v61 = vrot.slane %v2781_v35, %v21612_v56  ;;  %1379 = vmatmul.mubr.bf16.gmra.mrb[76].mxu0 %v20927_v15 }
 0x191   : > { %4837 = vrot.lane.b32.xlu1 %v21858_v45, %s27567_s4  ;;  %v2784_v41 = vcombine.low %v1872_v50, %v1874_v57  ;;  %v19365_v63 = vcombine.high %v1851_v40, %v1865_v44  ;;  %v3653_v54 = vcombine.low %v1858_v46, %v1872_v50  ;;  %v19366_v58 = vcombine.high %v1858_v46, %v1872_v50 }
 0x192   : > { %v2783_v1 = vcombine.low %v1875_v20, %v1858_v46  ;;  %v2798_v3 = vrot.slane %v2782_v36, %v21612_v56  ;;  %v3661_v7 = vrot.slane %v3651_v23, %v21612_v56  ;;  %v2772_v18 = vrot.slane %v2764_v2, %v21612_v56 }
 0x193   : > { %4528 = vrot.lane.b32.xlu0 %v21974_v5, %s27575_s11  ;;  %v2812_v6 = vrot.slane %v2784_v41, %v21612_v56  ;;  %v3668_v8 = vrot.slane %v19365_v63, %v21612_v56  ;;  %v3675_v62 = vrot.slane %v3653_v54, %v21612_v56  ;;  %v3682_v10 = vrot.slane %v19366_v58, %v21612_v56 }
 0x194   : > { %v2805_v13 = vrot.slane %v2783_v1, %v21612_v56  ;;  %v22006_v16 = vcombine.low %v2791_v61, %v2798_v3  ;;  %v22016_v12 = vcombine.low %v2772_v18, %v2779_v28  ;;  %v3642_v26 = vrot.slane %v21941_v9, %v21612_v56 }
 0x195   : > { %4261 = vrot.lane.b32.xlu1 %v21844_v30, %s27551_s9  ;;  %v3683_v22 = vcombine.low %v3661_v7, %v3668_v8  ;;  %v3684_v21 = vcombine.low %v3675_v62, %v3682_v10  ;;  %v1403_v42 = vpack.c.bf16 %v21888_v4, %v21878_v24  ;;  %v1404_v2 = vpack.c.bf16 %v21915_v59, %v21908_v47  ;;  %v22053_v28 = vpop.f32.mrb[48].mxu0 }
 0x196   : > { %v22014_v25 = vcombine.low %v2805_v13, %v2812_v6  ;;  %27622 = vst [vmem:[#allocation8_spill] sm:$0xff] %v22016_v12  ;;  %v22023_v33 = vcombine.low %v3642_v26, %v3649_v11  ;;  %v19333_v9 = vpack.c.bf16 %v21915_v59, %v21915_v59  ;;  %v3202_v35 = vshrl.u32 %v21865_v52, 16  ;;  %v1326_v36 = vpop.f32.mrb[49].mxu0 }
 0x197   : > { %4644 = vrot.lane.b32.xlu0 %v21986_v27, %s27569_s2  ;;  %v3698_v14 = vrot.slane %v3684_v21, %v21612_v56  ;;  %v3691_v31 = vrot.slane %v3683_v22, %v21612_v56  ;;  %v1884_v24 = vrot.slane %v1403_v42, %v21612_v56  ;;  %v1933_v34 = vrot.slane %v1404_v2, %v21612_v56  ;;  %v22059_v6 = vpop.f32.mrb[50].mxu0 }
 0x198   : > { %v1940_v47 = vrot.slane %v19333_v9, %v21612_v56  ;;  %v3204_v7 = vshll.u32 %v21865_v52, 16  ;;  %v2828_v8 = vrot.slane %v22014_v25, %v21612_v56  ;;  %v1329_v11 = vpop.f32.mrb[51].mxu0 }
 0x199   : > { %4377 = vrot.lane.b32.xlu1 %v21858_v45, %s27555_s5  ;;  %v19332_v45 = vpack.c.bf16 %v21888_v4, %v21888_v4  ;;  %v22040_v4 = vcombine.low %v3691_v31, %v3698_v14  ;;  %v1892_v39 = vcombine.high %v1884_v24, %v1884_v24  ;;  %v1900_v46 = vrot.slane %v1884_v24, %v21612_v56 }
 0x19a   : > { %v1941_v59 = vcombine.high %v1933_v34, %v1933_v34  ;;  %v1949_v49 = vrot.slane %v1933_v34, %v21612_v56  ;;  %v1942_v15 = vcombine.high %v1940_v47, %v1940_v47  ;;  %v1956_v18 = vrot.slane %v1940_v47, %v21612_v56 }
 0x19b   : > { %4298 = vrot.lane.b32.xlu0 %v21974_v5, %s27573_s28  ;;  %v1891_v43 = vrot.slane %v19332_v45, %v21612_v56  ;;  %v1914_v44 = vrot.slane %v1892_v39, %v21612_v56  ;;  %v1922_v55 = vcombine.high %v1900_v46, %v1900_v46  ;;  %v3206_v47 = vrot.slane %v3204_v7, 1 }
 0x19c   : > { %v1963_v20 = vrot.slane %v1941_v59, %v21612_v56  ;;  %v1971_v63 = vcombine.high %v1949_v49, %v1949_v49  ;;  %v1970_v45 = vrot.slane %v1942_v15, %v21612_v56 }
 0x19d   : > { %4758 = vrot.lane.b32.xlu1 %v21974_v5, %s27559_s10  ;;  %v1893_v40 = vcombine.high %v1891_v43, %v1891_v43  ;;  %v1907_v17 = vrot.slane %v1891_v43, %v21612_v56  ;;  %v1924_v41 = vcombine.high %v1914_v44, %v1914_v44  ;;  %v2830_v23 = vcombine.low %v1900_v46, %v1914_v44 }
 0x19e   : > { %v19351_v61 = vcombine.high %v1900_v46, %v1914_v44  ;;  %v3700_v58 = vcombine.low %v1914_v44, %v1922_v55  ;;  %v1973_v22 = vcombine.high %v1963_v20, %v1963_v20  ;;  %v2879_v14 = vcombine.low %v1963_v20, %v1971_v63 }
 0x19f   : > { %4184 = vrot.lane.b32.xlu0 %v21986_v27, %s27557_s8  ;;  %v1921_v50 = vrot.slane %v1893_v40, %v21612_v56  ;;  %v1923_v57 = vcombine.high %v1907_v17, %v1907_v17  ;;  %v3701_v10 = vcombine.low %v1924_v41, %v1907_v17  ;;  %v2840_v13 = vrot.slane %v2830_v23, %v21612_v56  ;;  %s27628_s8 = smov 24  }
 0x1a0   : > { %v2847_v21 = vrot.slane %v19351_v61, %v21612_v56  ;;  %v2880_v31 = vcombine.low %v1973_v22, %v1956_v18  ;;  %v2889_v43 = vrot.slane %v2879_v14, %v21612_v56  ;;  %v19367_v39 = vcombine.high %v1949_v49, %v1963_v20 }
 0x1a1   : > { %4874 = vrot.lane.b32.xlu1 %v21986_v27, %s27565_s3  ;;  %v2832_v54 = vcombine.low %v1907_v17, %v1921_v50  ;;  %v3702_v1 = vcombine.low %v1921_v50, %v1923_v57  ;;  %v1925_v3 = vcombine.high %v1921_v50, %v1921_v50  ;;  %v19352_v62 = vcombine.high %v1907_v17, %v1921_v50 }
 0x1a2   : > { %v3717_v26 = vrot.slane %v3701_v10, %v21612_v56  ;;  %v3750_v40 = vcombine.low %v1956_v18, %v1970_v45  ;;  %v2862_v46 = vcombine.low %v2840_v13, %v2847_v21  ;;  %v1972_v17 = vcombine.high %v1956_v18, %v1956_v18 }
 0x1a3   : > { %4723 = vrot.lane.b32.xlu0 %v21865_v52, %s27553_s0  ;;  %v3703_v42 = vcombine.low %v1925_v3, %v1949_v49  ;;  %v2854_v25 = vrot.slane %v2832_v54, %v21612_v56  ;;  %v3724_v2 = vrot.slane %v3702_v1, %v21612_v56  ;;  %v2861_v9 = vrot.slane %v19352_v62, %v21612_v56  ;;  %s27624_s0 = smov 64  }
 0x1a4   : > { %v2821_v44 = vrot.slane %v22006_v16, %v21612_v56  ;;  %v3759_v55 = vrot.slane %v19367_v39, %v21612_v56  ;;  %v3766_v57 = vrot.slane %v3750_v40, %v21612_v56  ;;  %v1405_v20 = vpack.c.bf16 %v21965_v32, %v21955_v29 }
 0x1a5   : > { %3284 = vrot.lane.b32.xlu1 %v21974_v5, %s27571_s1  ;;  %v3710_v5 = vrot.slane %v3700_v58, %v21612_v56  ;;  %v3731_v34 = vrot.slane %v3703_v42, %v21612_v56  ;;  %v2863_v49 = vcombine.low %v2854_v25, %v2861_v9  ;;  %v3207_v36 = vor.u32 %v3206_v47, %v3202_v35 }
 0x1a6   : > { %v22096_v15 = vcombine.low %v2821_v44, %v2828_v8  ;;  %v4104_v16 = vshll.u32 %v21872_v60, 16  ;;  %v3781_v41 = vcombine.low %v3759_v55, %v3766_v57  ;;  %v19334_v23 = vpack.c.bf16 %v21965_v32, %v21965_v32  ;;  %v890_v32 = vld [vmem:[%s27616_s30 + $0x140] sm:$0x33]  ;;  %s27644_s30 = smov 72  }
 0x1a7   : > { %4263 = vrot.lane.b32.xlu0 %v21865_v52, %s27551_s9  ;;  %s27623_s9 = smov 56   ;;  %v22079_v24 = vcombine.low %v3710_v5, %v3717_v26  ;;  %v22084_v59 = vcombine.low %v3724_v2, %v3731_v34  ;;  %v2870_v61 = vrot.slane %v2862_v46, %v21612_v56  ;;  %v2881_v63 = vcombine.low %v1970_v45, %v1972_v17 }
 0x1a8   : > { %27625 = vst [vmem:[#allocation9_spill] sm:$0xff] %v22096_v15  ;;  %v1974_v54 = vcombine.high %v1970_v45, %v1970_v45  ;;  %v1982_v58 = vrot.slane %v1405_v20, %v21612_v56  ;;  %v19368_v1 = vcombine.high %v1956_v18, %v1970_v45  ;;  %v1989_v3 = vrot.slane %v19334_v23, %v21612_v56 }
 0x1a9   : > { %4414 = vrot.lane.b32.xlu1 %v21986_v27, %s27623_s9  ;;  %v2896_v27 = vrot.slane %v2880_v31, %v21612_v56  ;;  %v2877_v7 = vrot.slane %v2863_v49, %v21612_v56  ;;  %v4102_v8 = vshrl.u32 %v21872_v60, 16  ;;  %v4106_v62 = vrot.slane %v4104_v16, 1 }
 0x1aa   : > { %v1990_v29 = vcombine.high %v1982_v58, %v1982_v58  ;;  %v1998_v35 = vrot.slane %v1982_v58, %v21612_v56  ;;  %v1991_v10 = vcombine.high %v1989_v3, %v1989_v3  ;;  %v22116_v11 = vrot.slane %v1989_v3, %v21612_v56 }
 0x1ab   : > { %4839 = vrot.lane.b32.xlu0 %v21872_v60, %s27567_s4  ;;  %v22090_v50 = vcombine.low %v2889_v43, %v2896_v27  ;;  %v2903_v18 = vrot.slane %v2881_v63, %v21612_v56  ;;  %v22120_v22 = vcombine.low %v2870_v61, %v2877_v7  ;;  %v3773_v21 = vrot.slane %v19368_v1, %v21612_v56  ;;  %v1332_v61 = vpop.f32.mrb[52].mxu0 }
 0x1ac   : > { %v2012_v13 = vrot.slane %v1990_v29, %v21612_v56  ;;  %v2882_v5 = vcombine.low %v1974_v54, %v1998_v35  ;;  %v22126_v26 = vrot.slane %v1991_v10, %v21612_v56  ;;  %v2021_v14 = vcombine.high %v22116_v11, %v22116_v11  ;;  %v1334_v1 = vpop.f32.mrb[53].mxu0 }
 0x1ad   : > { %4493 = vrot.lane.b32.xlu1 %v21865_v52, %s27624_s0  ;;  %27626 = vst [vmem:[#allocation10_spill] sm:$0xff] %v22120_v22  ;;  %v19306_v42 = vcombine.high %v890_v32, %v890_v32  ;;  %v3740_v9 = vrot.slane %v22079_v24, %v21612_v56  ;;  %v22145_v24 = vor.u32 %v4106_v62, %v4102_v8  ;;  %v22175_v3 = vpop.f32.mrb[54].mxu0 }
 0x1ae   : > { %v2022_v25 = vcombine.high %v2012_v13, %v2012_v13  ;;  %v2910_v45 = vrot.slane %v2882_v5, %v21612_v56  ;;  %v19353_v31 = vcombine.high %v1998_v35, %v2012_v13  ;;  %v3752_v2 = vcombine.low %v1998_v35, %v2012_v13  ;;  %v1337_v7 = vpop.f32.mrb[55].mxu0 }
 0x1af   : > { %4379 = vrot.lane.b32.xlu0 %v21872_v60, %s27555_s5  ;;  %v2929_v43 = vcombine.low %v22116_v11, %v22126_v26  ;;  %v3799_v34 = vcombine.low %v22126_v26, %v2021_v14  ;;  %1386 = vmatprep.mubr.bf16.mxu0 %v19306_v42  ;;  %v2919_v46 = vrot.slane %v22090_v50, %v21612_v56  ;;  %s27636_s5 = smov 112  }
 0x1b0   : > { %v2912_v47 = vcombine.low %v2903_v18, %v2910_v45  ;;  %v22140_v27 = vrot.slane %v19353_v31, %v21612_v56  ;;  %v3780_v39 = vrot.slane %v3752_v2, %v21612_v56  ;;  %v3798_v40 = vcombine.low %v2022_v25, %v22116_v11 }
 0x1b1   : > { %4609 = vrot.lane.b32.xlu1 %v21872_v60, %s27563_s29  ;;  %v22150_v17 = vrot.slane %v2929_v43, %v21612_v56  ;;  %v19305_v20 = vcombine.low %v890_v32, %v890_v32  ;;  %v3789_v16 = vrot.slane %v3781_v41, %v21612_v56  ;;  %v1406_v58 = vpack.c.bf16 %v22059_v6, %v22053_v28 }
 0x1b2   : > { %v2926_v55 = vrot.slane %v2912_v47, %v21612_v56  ;;  %v3782_v57 = vcombine.low %v3773_v21, %v3780_v39  ;;  %v3808_v49 = vrot.slane %v3798_v40, %v21612_v56  ;;  %v19335_v29 = vpack.c.bf16 %v22059_v6, %v22059_v6 }
 0x1b3   : > { %4760 = vrot.lane.b32.xlu0 %v3207_v36, %s27559_s10  ;;  %s27627_s10 = sld [smem:[#allocation19_spill]]  ;;  %v2960_v50 = vcombine.low %v22140_v27, %v22150_v17  ;;  %1387 = vmatmul.mubr.bf16.gmra.mrb[80].mxu0 %v19305_v20  ;;  %v2031_v35 = vrot.slane %v1406_v58, %v21612_v56  ;;  %v19354_v32 = vcombine.high %v22116_v11, %v22126_v26  ;;  %v4111_v18 = vshll.u32 %v21957_v19, 16 }
 0x1b4   : > { %v3796_v63 = vrot.slane %v3782_v57, %v21612_v56  ;;  %v22183_v28 = vcombine.low %v2919_v46, %v2926_v55  ;;  %v2023_v8 = vcombine.high %v22126_v26, %v22126_v26  ;;  %v1407_v62 = vpack.c.bf16 %v22175_v3, %v1332_v61 }
 0x1b5   : > { %4051 = vrot.lane.b32.xlu1 %v21872_v60, %s27561_s6  ;;  %v3747_v60 = vrot.slane %v22084_v59, %v21612_v56  ;;  %v3815_v59 = vrot.slane %v3799_v34, %v21612_v56  ;;  %v2038_v13 = vrot.slane %v19335_v29, %v21612_v56  ;;  %v2039_v6 = vcombine.high %v2031_v35, %v2031_v35 }
 0x1b6   : > { %v22190_v10 = vcombine.low %v3789_v16, %v3796_v63  ;;  %v2047_v5 = vrot.slane %v2031_v35, %v21612_v56  ;;  %v2952_v42 = vrot.slane %v19354_v32, %v21612_v56  ;;  %v2080_v31 = vrot.slane %v1407_v62, %v21612_v56 }
 0x1b7   : > { %4300 = vrot.lane.b32.xlu0 %v3207_v36, %s27573_s28  ;;  %v22162_v23 = vcombine.low %v3740_v9, %v3747_v60  ;;  %v22165_v54 = vcombine.low %v3808_v49, %v3815_v59  ;;  %v2040_v21 = vcombine.high %v2038_v13, %v2038_v13  ;;  %v2054_v26 = vrot.slane %v2038_v13, %v21612_v56 }
 0x1b8   : > { %v2061_v14 = vrot.slane %v2039_v6, %v21612_v56  ;;  %v2069_v25 = vcombine.high %v2047_v5, %v2047_v5  ;;  %v3800_v45 = vcombine.low %v2023_v8, %v2047_v5  ;;  %v4109_v34 = vshrl.u32 %v21957_v19, 16 }
 0x1b9   : > { %4530 = vrot.lane.b32.xlu1 %v3207_v36, %s27575_s11  ;;  %v20930_v44 = vld [vmem:[%s27627_s10] sm:$0xff]   ;;  %v20931_v41 = vld [vmem:[%s27627_s10 + $0x8] sm:$0xff]   ;;  %v20932_v11 = vld [vmem:[%s27627_s10 + $0x10] sm:$0xff]   ;;  %v2068_v2 = vrot.slane %v2040_v21, %v21612_v56  ;;  %v2070_v9 = vcombine.high %v2054_v26, %v2054_v26  ;;  %v4113_v46 = vrot.slane %v4111_v18, 1  ;;  %v2088_v16 = vcombine.high %v2080_v31, %v2080_v31 }
 0x1ba   : > { %v2071_v60 = vcombine.high %v2061_v14, %v2061_v14  ;;  %v2931_v43 = vcombine.low %v2047_v5, %v2061_v14  ;;  %v3801_v47 = vcombine.low %v2061_v14, %v2069_v25  ;;  %v3822_v39 = vrot.slane %v3800_v45, %v21612_v56  ;;  %v20933_v40 = vld [vmem:[%s27627_s10 + $0x18] sm:$0xff]   ;;  %v20934_v35 = vld [vmem:[%s27627_s10 + $0x20] sm:$0xff]   ;;  %v20935_v21 = vld [vmem:[%s27627_s10 + $0x28] sm:$0xff]  }
 0x1bb   : > { %3286 = vrot.lane.b32.xlu0 %v3207_v36, %s27571_s1  ;;  %v27580_v36 = vmov 0.0   ;;  %v2978_v55 = vcombine.low %v2068_v2, %v2070_v9  ;;  %v3847_v49 = vcombine.low %v2054_v26, %v2068_v2  ;;  %v2072_v20 = vcombine.high %v2068_v2, %v2068_v2 }
 0x1bc   : > { %20473 = vmatprep.subr.bf16.mxu1 %v27580_v36  ;;  %20489 = vmatprep.mubr.msk.bf16.mxu1 %vm21321_vm0, %v27580_v36  ;;  %v2959_v59 = vrot.slane %v2931_v43, %v21612_v56  ;;  %v3829_v57 = vrot.slane %v3801_v47, %v21612_v56  ;;  %v2096_v1 = vrot.slane %v2080_v31, %v21612_v56  ;;  %v3211_v8 = vshll.u32 %v21963_v38, 16 }
 0x1bd   : > { %4876 = vrot.lane.b32.xlu1 %v22145_v24, %s27565_s3  ;;  %20474 = vmatpush3.bf16.msra.mxu1 %v20930_v44  ;;  %v2977_v44 = vcombine.low %v2071_v60, %v2054_v26  ;;  %v2994_v58 = vrot.slane %v2978_v55, %v21612_v56  ;;  %v19369_v29 = vcombine.high %v2054_v26, %v2068_v2  ;;  %v3209_v31 = vshrl.u32 %v21963_v38, 16 }
 0x1be   : > { %20475 = vmatprep.subr.bf16.mxu1 %v27580_v36  ;;  %v2961_v61 = vcombine.low %v2952_v42, %v2959_v59  ;;  %v4114_v32 = vor.u32 %v4113_v46, %v4109_v34  ;;  %v2110_v62 = vrot.slane %v2088_v16, %v21612_v56  ;;  %v3857_v13 = vrot.slane %v3847_v49, %v21612_v56  ;;  %v20936_v34 = vld [vmem:[%s27627_s10 + $0x30] sm:$0xff]  }
 0x1bf   : > { %4416 = vrot.lane.b32.xlu0 %v22145_v24, %s27623_s9  ;;  %v2987_v63 = vrot.slane %v2977_v44, %v21612_v56  ;;  %v2118_v6 = vcombine.high %v2096_v1, %v2096_v1  ;;  %v2979_v5 = vcombine.low %v2072_v20, %v2096_v1  ;;  %v3864_v18 = vrot.slane %v19369_v29, %v21612_v56 }
 0x1c0   : > { %v3849_v26 = vcombine.low %v2096_v1, %v2110_v62  ;;  %v3838_v45 = vrot.slane %v22165_v54, %v21612_v56  ;;  %v3213_v2 = vrot.slane %v3211_v8, 1  ;;  %v19336_v54 = vpack.c.bf16 %v22175_v3, %v22175_v3  ;;  %v20937_v3 = vld [vmem:[%s27627_s10 + $0x38] sm:$0xff]   ;;  %v1340_v8 = vpop.f32.mrb[56].mxu0  ;;  %s27643_s10 = smov 88  }
 0x1c1   : > { %4646 = vrot.lane.b32.xlu1 %v22145_v24, %s27569_s2  ;;  %20476 = vmatpush3.bf16.msra.mxu1 %v20931_v41  ;;  %v3831_v41 = vcombine.low %v3822_v39, %v3829_v57  ;;  %v3009_v7 = vcombine.low %v2987_v63, %v2994_v58  ;;  %v2980_v27 = vcombine.low %v2110_v62, %v2118_v6 }
 0x1c2   : > { %20477 = vmatprep.subr.bf16.mxu1 %v27580_v36  ;;  %v3001_v17 = vrot.slane %v2979_v5, %v21612_v56  ;;  %v3871_v25 = vrot.slane %v3849_v26, %v21612_v56  ;;  %v3879_v43 = vcombine.low %v3857_v13, %v3864_v18  ;;  %v3214_v55 = vor.u32 %v3213_v2, %v3209_v31 }
 0x1c3   : > { %4611 = vrot.lane.b32.xlu0 %v21957_v19, %s27563_s29  ;;  %v22247_v14 = vpop.permute.xlu0 %3278  ;;  %v3845_v42 = vrot.slane %v3831_v41, %v21612_v56  ;;  %v3008_v9 = vrot.slane %v2980_v27, %v21612_v56  ;;  %s27630_s29 = smov 96   ;;  %v3017_v20 = vrot.slane %v3009_v7, %v21612_v56 }
 0x1c4   : > { %v3887_v16 = vrot.slane %v3879_v43, %v21612_v56 }
 0x1c5   : > { %4841 = vrot.lane.b32.xlu1 %v21957_v19, %s27567_s4  ;;  %20478 = vmatpush3.bf16.msra.mxu1 %v20932_v11  ;;  %v2975_v11 = vrot.slane %v2961_v61, %v21612_v56  ;;  %v3010_v39 = vcombine.low %v3001_v17, %v3008_v9  ;;  %v22274_v59 = vcombine.low %v3838_v45, %v3845_v42  ;;  %s27635_s4 = smov 104   ;;  %v3218_v45 = vshll.u32 %v22016_v12, 16 }
 0x1c6   : > { %20479 = vmatprep.subr.bf16.mxu1 %v27580_v36  ;;  %v2087_v61 = vrot.slane %v19336_v54, %v21612_v56 }
 0x1c7   : > { %4053 = vrot.lane.b32.xlu0 %v21957_v19, %s27561_s6  ;;  %s27629_s6 = smov 48   ;;  %v3024_v57 = vrot.slane %v3010_v39, %v21612_v56 }
 0x1c8   : > { %v22276_v44 = vpop.permute.xlu0 %4043  ;;  %v2089_v29 = vcombine.high %v2087_v61, %v2087_v61 }
 0x1c9   : > { %4186 = vrot.lane.b32.xlu1 %v22145_v24, %s27628_s8  ;;  %20480 = vmatpush3.bf16.msra.mxu1 %v20933_v40  ;;  %v2968_v24 = vrot.slane %v2960_v50, %v21612_v56  ;;  %v22290_v63 = vcombine.low %v3017_v20, %v3024_v57  ;;  %v3216_v57 = vshrl.u32 %v22016_v12, 16  ;;  %v3220_v20 = vrot.slane %v3218_v45, 1 }
 0x1ca   : > { %20481 = vmatprep.subr.bf16.mxu1 %v27580_v36 }
 0x1cb   : > { %4495 = vrot.lane.b32.xlu0 %v21963_v38, %s27624_s0  ;;  %v22266_v47 = vcombine.low %v2968_v24, %v2975_v11  ;;  %27633 = vst [vmem:[#allocation12_spill] sm:$0xff] %v22290_v63  ;;  %v1342_v24 = vpop.f32.mrb[57].mxu0 }
 0x1cc   : > { %v1343_v5 = vpop.f32.mrb[58].mxu0 }
 0x1cd   : > { %4381 = vrot.lane.b32.xlu1 %v21957_v19, %s27629_s6  ;;  %20482 = vmatpush3.bf16.msra.mxu1 %v20934_v35  ;;  %v19370_v19 = vcombine.high %v2096_v1, %v2110_v62  ;;  %27631 = vst [vmem:[#allocation11_spill] sm:$0xff] %v22266_v47  ;;  %v2103_v35 = vrot.slane %v2087_v61, %v21612_v56  ;;  %v1345_v26 = vpop.f32.mrb[59].mxu0 }
 0x1ce   : > { %20483 = vmatprep.subr.bf16.mxu1 %v27580_v36  ;;  %v2117_v62 = vrot.slane %v2089_v29, %v21612_v56  ;;  %v1408_v18 = vpack.c.bf16 %v1343_v5, %v1340_v8 }
 0x1cf   : > { %4878 = vrot.lane.b32.xlu0 %v4114_v32, %s27565_s3  ;;  %v3878_v60 = vrot.slane %v19370_v19, %v21612_v56  ;;  %s27632_s3 = smov 32   ;;  %v2119_v6 = vcombine.high %v2103_v35, %v2103_v35 }
 0x1d0   : > { %v22252_v50 = vpop.permute.xlu1 %4178  ;;  %v2129_v27 = vrot.slane %v1408_v18, %v21612_v56  ;;  %v3026_v9 = vcombine.low %v2103_v35, %v2117_v62 }
 0x1d1   : > { %4725 = vrot.lane.b32.xlu1 %v21963_v38, %s27630_s29  ;;  %20484 = vmatpush3.bf16.msra.mxu1 %v20935_v21  ;;  %v3880_v40 = vcombine.low %v3871_v25, %v3878_v60  ;;  %v19337_v21 = vpack.c.bf16 %v1343_v5, %v1343_v5  ;;  %v3896_v42 = vcombine.low %v2117_v62, %v2119_v6 }
 0x1d2   : > { %20485 = vmatprep.subr.bf16.mxu1 %v27580_v36  ;;  %v2137_v31 = vcombine.high %v2129_v27, %v2129_v27  ;;  %v2145_v2 = vrot.slane %v2129_v27, %v21612_v56  ;;  %v19355_v60 = vcombine.high %v2103_v35, %v2117_v62  ;;  %v3036_v29 = vrot.slane %v3026_v9, %v21612_v56 }
 0x1d3   : > { %4188 = vrot.lane.b32.xlu0 %v4114_v32, %s27628_s8  ;;  %v3894_v49 = vrot.slane %v3880_v40, %v21612_v56  ;;  %v22317_v17 = vrot.slane %v19337_v21, %v21612_v56  ;;  %v3221_v27 = vor.u32 %v3220_v20, %v3216_v57 }
 0x1d4   : > { %v22272_v46 = vpop.permute.xlu1 %4257  ;;  %v2167_v54 = vcombine.high %v2145_v2, %v2145_v2  ;;  %v3043_v35 = vrot.slane %v19355_v60, %v21612_v56 }
 0x1d5   : > { %4265 = vrot.lane.b32.xlu1 %v21963_v38, %s27632_s3  ;;  %20486 = vmatpush3.bf16.msra.mxu1 %v20936_v34  ;;  %v22292_v58 = vcombine.low %v3887_v16, %v3894_v49  ;;  %v22330_v43 = vrot.slane %v22317_v17, %v21612_v56  ;;  %v2159_v34 = vrot.slane %v2137_v31, %v21612_v56 }
 0x1d6   : > { %20487 = vmatprep.subr.bf16.mxu1 %v27580_v36  ;;  %v3906_v49 = vrot.slane %v3896_v42, %v21612_v56  ;;  %v4118_v42 = vshll.u32 %v22023_v33, 16  ;;  %v3058_v31 = vcombine.low %v3036_v29, %v3043_v35  ;;  %v3225_v36 = vshll.u32 %v22096_v15, 16 }
 0x1d7   : > { %4532 = vrot.lane.b32.xlu0 %v3214_v55, %s27575_s11  ;;  %27634 = vst [vmem:[#allocation13_spill] sm:$0xff] %v22292_v58  ;;  %v3028_v16 = vcombine.low %v2145_v2, %v2159_v34  ;;  %v19356_v61 = vcombine.high %v2145_v2, %v2159_v34  ;;  %v3898_v8 = vcombine.low %v2159_v34, %v2167_v54  ;;  %v4116_v54 = vshrl.u32 %v22023_v33, 16 }
 0x1d8   : > { %v3066_v57 = vrot.slane %v3058_v31, %v21612_v56  ;;  %v3227_v63 = vrot.slane %v3225_v36, 1 }
 0x1d9   : > { %v22294_v1 = vpop.permute.xlu0 %4045  ;;  %4648 = vrot.lane.b32.xlu1 %v4114_v32, %s27569_s2  ;;  %v22297_v41 = vpop.permute.xlu1 %4373  ;;  %20488 = vmatpush3.bf16.msra.mxu1 %v20937_v3  ;;  %v2169_v3 = vcombine.high %v2159_v34, %v2159_v34  ;;  %v3050_v5 = vrot.slane %v3028_v16, %v21612_v56  ;;  %v3057_v18 = vrot.slane %v19356_v61, %v21612_v56  ;;  %s27637_s2 = smov 80  }
 0x1da   : > { %7471 = vmatprep.subr.bf16.mxu1 %v27578_v0  ;;  %v3920_v21 = vrot.slane %v3898_v8, %v21612_v56 }
 0x1db   : > { %4727 = vrot.lane.b32.xlu0 %v22016_v12, %s27630_s29  ;;  %v3899_v24 = vcombine.low %v2169_v3, %v22330_v43  ;;  %v3059_v60 = vcombine.low %v3050_v5, %v3057_v18  ;;  %v4125_v18 = vshll.u32 %v22040_v4, 16 }
 0x1dd   : > { %v22303_v7 = vpop.permute.xlu0 %4294  ;;  %4418 = vrot.lane.b32.xlu1 %v4114_v32, %s27623_s9  ;;  %v2121_v32 = vcombine.high %v2117_v62, %v2117_v62  ;;  %v3927_v45 = vrot.slane %v3899_v24, %v21612_v56  ;;  %v3073_v3 = vrot.slane %v3059_v60, %v21612_v56  ;;  %v2138_v24 = vcombine.high %v22317_v17, %v22317_v17 }
 0x1de   : > { %v2168_v17 = vcombine.high %v22330_v43, %v22330_v43 }
 0x1df   : > { %4302 = vrot.lane.b32.xlu0 %v3214_v55, %s27573_s28  ;;  %v22308_v13 = vpop.permute.xlu1 %4410  ;;  %v3897_v39 = vcombine.low %v2121_v32, %v2145_v2  ;;  %v3929_v2 = vcombine.low %v3920_v21, %v3927_v45  ;;  %v22377_v29 = vcombine.low %v3066_v57, %v3073_v3  ;;  %v1348_v21 = vpop.f32.mrb[60].mxu0  ;;  %v4127_v57 = vrot.slane %v4125_v18, 1 }
 0x1e0   : > { %v1350_v45 = vpop.f32.mrb[61].mxu0 }
 0x1e1   : > { %v22310_v11 = vpop.permute.xlu0 %3280  ;;  %4762 = vrot.lane.b32.xlu1 %v3214_v55, %s27635_s4  ;;  %v3913_v62 = vrot.slane %v3897_v39, %v21612_v56  ;;  %v4120_v39 = vrot.slane %v4118_v42, 1  ;;  %v3943_v20 = vrot.slane %v3929_v2, %v21612_v56  ;;  %27639 = vst [vmem:[#allocation14_spill] sm:$0xff] %v22377_v29  ;;  %v2166_v42 = vrot.slane %v2138_v24, %v21612_v56 }
 0x1e3   : > { %4267 = vrot.lane.b32.xlu0 %v22016_v12, %s27632_s3  ;;  %v22319_v19 = vpop.permute.xlu1 %4489  ;;  %v3928_v26 = vcombine.low %v3906_v49, %v3913_v62  ;;  %v22374_v61 = vor.u32 %v4120_v39, %v4116_v54  ;;  %v4123_v39 = vshrl.u32 %v22040_v4, 16  ;;  %v2170_v3 = vcombine.high %v2166_v42, %v2166_v42 }
 0x1e4   : > { %v3075_v45 = vcombine.low %v2166_v42, %v2168_v17 }
 0x1e5   : > { %v22321_v25 = vpop.permute.xlu0 %4180  ;;  %3288 = vrot.lane.b32.xlu1 %v3214_v55, %s27571_s1  ;;  %s27638_s1 = smov 16   ;;  %v22419_v18 = vor.u32 %v4127_v57, %v4123_v39 }
 0x1e6   : > { %v3085_v39 = vrot.slane %v3075_v45, %v21612_v56 }
 0x1e7   : > { %4843 = vrot.lane.b32.xlu0 %v22023_v33, %s27636_s5  ;;  %v22333_v40 = vpop.permute.xlu1 %4605 }
 0x1e9   : > { %v22337_v55 = vpop.permute.xlu0 %4259  ;;  %4497 = vrot.lane.b32.xlu1 %v22016_v12, %s27624_s0 }
 0x1eb   : > { %4383 = vrot.lane.b32.xlu0 %v22023_v33, %s27629_s6  ;;  %v22347_v6 = vpop.permute.xlu1 %4047 }
 0x1ed   : > { %v22352_v32 = vpop.permute.xlu0 %4375  ;;  %4613 = vrot.lane.b32.xlu1 %v22023_v33, %s27637_s2 }
 0x1ef   : > { %4764 = vrot.lane.b32.xlu0 %v3221_v27, %s27635_s4  ;;  %v22359_v9 = vpop.permute.xlu1 %4526 }
 0x1f1   : > { %v22361_v34 = vpop.permute.xlu0 %4296  ;;  %4055 = vrot.lane.b32.xlu1 %v22023_v33, %s27638_s1  ;;  %v3936_v33 = vrot.slane %v3928_v26, %v21612_v56 }
 0x1f3   : > { %4304 = vrot.lane.b32.xlu0 %v3221_v27, %s27573_s28  ;;  %v22368_v49 = vpop.permute.xlu1 %4642  ;;  %v22384_v8 = vcombine.low %v3936_v33, %v3943_v20  ;;  %s27641_s28 = smov 8  }
 0x1f5   : > { %v22372_v16 = vpop.permute.xlu0 %4412  ;;  %4534 = vrot.lane.b32.xlu1 %v3221_v27, %s27575_s11  ;;  %27640 = vst [vmem:[#allocation15_spill] sm:$0xff] %v22384_v8  ;;  %s27642_s11 = smov 120  }
 0x1f7   : > { %4420 = vrot.lane.b32.xlu0 %v22374_v61, %s27623_s9  ;;  %v22382_v35 = vpop.permute.xlu1 %3282 }
 0x1f9   : > { %v22386_v62 = vpop.permute.xlu0 %4491  ;;  %3290 = vrot.lane.b32.xlu1 %v3221_v27, %s27641_s28  ;;  %v1351_v27 = vpop.f32.mrb[62].mxu0 }
 0x1fa   : > { %v1409_v31 = vpack.c.bf16 %v1351_v27, %v1348_v21  ;;  %v19338_v2 = vpack.c.bf16 %v1351_v27, %v1351_v27  ;;  %v1353_v60 = vpop.f32.mrb[63].mxu0 }
 0x1fb   : > { %4615 = vrot.lane.b32.xlu0 %v22040_v4, %s27637_s2  ;;  %v22393_v5 = vpop.permute.xlu1 %4182 }
 0x1fc   : > { %v2178_v33 = vrot.slane %v1409_v31, %v21612_v56  ;;  %v2185_v24 = vrot.slane %v19338_v2, %v21612_v56  ;;  %v19371_v31 = vcombine.high %v22330_v43, %v2166_v42  ;;  %v3223_v43 = vshrl.u32 %v22096_v15, 16 }
 0x1fd   : > { %v22396_v26 = vpop.permute.xlu0 %4607  ;;  %4880 = vrot.lane.b32.xlu1 %v22374_v61, %s27642_s11 }
 0x1fe   : > { %v2186_v21 = vcombine.high %v2178_v33, %v2178_v33  ;;  %v2187_v27 = vcombine.high %v2185_v24, %v2185_v24  ;;  %v2194_v60 = vrot.slane %v2178_v33, %v21612_v56  ;;  %v22424_v2 = vrot.slane %v2185_v24, %v21612_v56 }
 0x1ff   : > { %4057 = vrot.lane.b32.xlu0 %v22040_v4, %s27638_s1  ;;  %v22405_v54 = vpop.permute.xlu1 %4721 }
 0x200   : > { %v2208_v17 = vrot.slane %v2186_v21, %v21612_v56  ;;  %v22430_v12 = vrot.slane %v2187_v27, %v21612_v56  ;;  %v2216_v8 = vcombine.high %v2194_v60, %v2194_v60  ;;  %v3076_v33 = vcombine.low %v2170_v3, %v2194_v60 }
 0x201   : > { %v22408_v20 = vpop.permute.xlu0 %4049  ;;  %4650 = vrot.lane.b32.xlu1 %v22374_v61, %s27643_s10  ;;  %v3955_v21 = vrot.slane %v19371_v31, %v21612_v56 }
 0x202   : > { %v2218_v42 = vcombine.high %v2208_v17, %v2208_v17  ;;  %v3077_v57 = vcombine.low %v2208_v17, %v2216_v8  ;;  %v3092_v27 = vrot.slane %v3076_v33, %v21612_v56  ;;  %v3946_v3 = vcombine.low %v2194_v60, %v2208_v17 }
 0x203   : > { %4499 = vrot.lane.b32.xlu0 %v22096_v15, %s27624_s0  ;;  %v22417_v0 = vpop.permute.xlu1 %4837  ;;  %v19372_v29 = vcombine.high %v2194_v60, %v2208_v17  ;;  %v3948_v52 = vcombine.low %v22424_v2, %v22430_v12  ;;  %v4906_v33 = vsel %vm4904_vm1, %v21642_v48, %v22247_v14 }
 0x204   : > { %v3078_v45 = vcombine.low %v2218_v42, %v22424_v2  ;;  %v3099_v38 = vrot.slane %v3077_v57, %v21612_v56  ;;  %v3107_v8 = vcombine.low %v3085_v39, %v3092_v27  ;;  %v3962_v31 = vrot.slane %v3946_v3, %v21612_v56 }
 0x205   : > { %v22426_v53 = vpop.permute.xlu0 %4528  ;;  %4845 = vrot.lane.b32.xlu1 %v22040_v4, %s27636_s5  ;;  %v3969_v36 = vrot.slane %v19372_v29, %v21612_v56  ;;  %v3976_v17 = vrot.slane %v3948_v52, %v21612_v56  ;;  %v4937_v39 = vsel %vm4935_vm2, %v4906_v33, %v22276_v44  ;;  %v22465_v27 = vor.u32 %v3227_v63, %v3223_v43 }
 0x206   : > { %v3106_v60 = vrot.slane %v3078_v45, %v21612_v56  ;;  %v4968_v48 = vsel %vm4966_vm3, %v4937_v39, %v22252_v50 }
 0x207   : > { %4652 = vrot.lane.b32.xlu0 %v22419_v18, %s27643_s10  ;;  %v22438_v24 = vpop.permute.xlu1 %4261  ;;  %v3978_v45 = vcombine.low %v3969_v36, %v3976_v17  ;;  %v4999_v14 = vsel %vm4997_vm4, %v4968_v48, %v22272_v46  ;;  %v3115_v36 = vrot.slane %v3107_v8, %v21612_v56 }
 0x208   : > { %v3108_v3 = vcombine.low %v3099_v38, %v3106_v60  ;;  %v5030_v38 = vsel %vm5028_vm5, %v4999_v14, %v22303_v7  ;;  %v3232_v7 = vshll.u32 %v22120_v22, 16  ;;  %v4908_v60 = vsel %vm4904_vm1, %v21751_v51, %v22310_v11 }
 0x209   : > { %v22442_v58 = vpop.permute.xlu0 %4644  ;;  %4190 = vrot.lane.b32.xlu1 %v22374_v61, %s27628_s8  ;;  %v3977_v61 = vcombine.low %v3955_v21, %v3962_v31  ;;  %v5061_v46 = vsel %vm5059_vm6, %v5030_v38, %v22297_v41 }
 0x20a   : > { %v3122_v43 = vrot.slane %v3108_v3, %v21612_v56  ;;  %v5092_v21 = vsel %vm5090_vm7, %v5061_v46, %v22308_v13  ;;  %v3234_v51 = vrot.slane %v3232_v7, 1 }
 0x20b   : > { %4192 = vrot.lane.b32.xlu0 %v22419_v18, %s27628_s8  ;;  %v22459_v42 = vpop.permute.xlu1 %4377  ;;  %v3985_v63 = vrot.slane %v3977_v61, %v21612_v56  ;;  %v5123_v41 = vsel %vm5121_vm8, %v5092_v21, %v22319_v19  ;;  %v3230_v61 = vshrl.u32 %v22120_v22, 16  ;;  %v4939_v19 = vsel %vm4935_vm2, %v4908_v60, %v22294_v1 }
 0x20c   : > { %v5154_v13 = vsel %vm5152_vm9, %v5123_v41, %v22359_v9  ;;  %v22512_v11 = vcombine.low %v3115_v36, %v3122_v43  ;;  %v4970_v9 = vsel %vm4966_vm3, %v4939_v19, %v22321_v25 }
 0x20d   : > { %v22463_v57 = vpop.permute.xlu0 %4298  ;;  %4385 = vrot.lane.b32.xlu1 %v22040_v4, %s27629_s6  ;;  %v3992_v4 = vrot.slane %v3978_v45, %v21612_v56  ;;  %v5185_v8 = vsel %vm5183_vm10, %v5154_v13, %v22333_v40  ;;  %v5001_v39 = vsel %vm4997_vm4, %v4970_v9, %v22337_v55  ;;  %v22536_v40 = vor.u32 %v3234_v51, %v3230_v61 }
 0x20e   : > { %v5216_v1 = vsel %vm5214_vm11, %v5185_v8, %v22368_v49  ;;  %v5032_v45 = vsel %vm5028_vm5, %v5001_v39, %v22361_v34  ;;  %v4132_v55 = vshll.u32 %v22162_v23, 16  ;;  %v1356_v49 = vpop.f32.mrb[64].mxu0 }
 0x20f   : > { %4536 = vrot.lane.b32.xlu0 %v22465_v27, %s27644_s30  ;;  %v4759_v52 = vpop.permute.xlu1 %4758  ;;  %v22495_v31 = vcombine.low %v3985_v63, %v3992_v4  ;;  %v5247_v25 = vsel %vm5245_vm12, %v5216_v1, %v22405_v54  ;;  %v1358_v34 = vpop.f32.mrb[65].mxu0  ;;  %v5063_v54 = vsel %vm5059_vm6, %v5032_v45, %v22352_v32  ;;  %v4130_v32 = vshrl.u32 %v22162_v23, 16 }
 0x210   : > { %v5278_v14 = vsel %vm5276_vm13, %v5247_v25, %v4759_v52  ;;  %v1359_v4 = vpop.f32.mrb[66].mxu0  ;;  %v5094_v52 = vsel %vm5090_vm7, %v5063_v54, %v22372_v16  ;;  %v4134_v41 = vrot.slane %v4132_v55, 1 }
 0x211   : > { %v22475_v44 = vpop.permute.xlu0 %4184  ;;  %4729 = vrot.lane.b32.xlu1 %v22096_v15, %s27630_s29  ;;  %v1410_v46 = vpack.c.bf16 %v1359_v4, %v1356_v49  ;;  %v19339_v7 = vpack.c.bf16 %v1359_v4, %v1359_v4  ;;  %v1361_v43 = vpop.f32.mrb[67].mxu0  ;;  %v5125_v21 = vsel %vm5121_vm8, %v5094_v52, %v22386_v62  ;;  %v2219_v62 = vcombine.high %v22430_v12, %v22430_v12 }
 0x212   : > { %v5156_v16 = vsel %vm5152_vm9, %v5125_v21, %v22426_v53  ;;  %v22577_v39 = vor.u32 %v4134_v41, %v4130_v32 }
 0x213   : > { %4731 = vrot.lane.b32.xlu0 %v22120_v22, %s27630_s29  ;;  %v4875_v50 = vpop.permute.xlu1 %4874  ;;  %v2234_v36 = vrot.slane %v19339_v7, %v21612_v56  ;;  %v5187_v8 = vsel %vm5183_vm10, %v5156_v16, %v22396_v26 }
 0x214   : > { %v5218_v26 = vsel %vm5214_vm11, %v5187_v8, %v22442_v58 }
 0x215   : > { %v22487_v29 = vpop.permute.xlu0 %4723  ;;  %4269 = vrot.lane.b32.xlu1 %v22096_v15, %s27632_s3  ;;  %v2236_v9 = vcombine.high %v2234_v36, %v2234_v36  ;;  %v2250_v1 = vrot.slane %v2234_v36, %v21612_v56 }
 0x217   : > { %3292 = vrot.lane.b32.xlu0 %v22465_v27, %s27641_s28  ;;  %v22507_v17 = vpop.permute.xlu1 %3284  ;;  %v2266_v55 = vcombine.high %v2250_v1, %v2250_v1 }
 0x219   : > { %v22509_v33 = vpop.permute.xlu0 %4263  ;;  %4882 = vrot.lane.b32.xlu1 %v22419_v18, %s27642_s11 }
 0x21b   : > { %4271 = vrot.lane.b32.xlu0 %v22120_v22, %s27632_s3  ;;  %v22528_v3 = vpop.permute.xlu1 %4414 }
 0x21d   : > { %v22534_v48 = vpop.permute.xlu0 %4839  ;;  %4422 = vrot.lane.b32.xlu1 %v22419_v18, %s27623_s9  ;;  %v5309_v18 = vsel %vm5307_vm14, %v5278_v14, %v22417_v0  ;;  %v2227_v0 = vrot.slane %v1410_v46, %v21612_v56  ;;  %v5249_v46 = vsel %vm5245_vm12, %v5218_v26, %v22487_v29 }
 0x21e   : > { %v5340_v60 = vsel %vm5338_vm15, %v5309_v18, %v4875_v50  ;;  %v19357_v50 = vcombine.high %v22424_v2, %v22430_v12  ;;  %v22585_v2 = vrot.slane %v2236_v9, %v21612_v56 }
 0x21f   : > { %4768 = vrot.lane.b32.xlu0 %v22536_v40, %s27635_s4  ;;  %v22546_v38 = vpop.permute.xlu1 %4493  ;;  %v5384_v61 = vcombine.high %v5340_v60, %v5340_v60  ;;  %v2235_v19 = vcombine.high %v2227_v0, %v2227_v0  ;;  %v2243_v53 = vrot.slane %v2227_v0, %v21612_v56  ;;  %v5391_v45 = vrot.slane %v5340_v60, %v21612_v56 }
 0x220   : > { %v3127_v58 = vcombine.low %v2250_v1, %v22585_v2  ;;  %v3997_v43 = vcombine.low %v22585_v2, %v2266_v55 }
 0x221   : > { %v22552_v63 = vpop.permute.xlu0 %4379  ;;  %4766 = vrot.lane.b32.xlu1 %v22465_v27, %s27635_s4  ;;  %v2257_v12 = vrot.slane %v2235_v19, %v21612_v56  ;;  %v2265_v25 = vcombine.high %v2243_v53, %v2243_v53  ;;  %v3994_v49 = vcombine.low %v2219_v62, %v2243_v53  ;;  %v5398_v34 = vrot.slane %v5384_v61, %v21612_v56 }
 0x222   : > { %v5399_v21 = vcombine.high %v5391_v45, %v5391_v45  ;;  %v3155_v29 = vrot.slane %v3127_v58, %v21612_v56  ;;  %v4025_v62 = vrot.slane %v3997_v43, %v21612_v56 }
 0x223   : > { %4847 = vrot.lane.b32.xlu0 %v22162_v23, %s27636_s5  ;;  %v22566_v13 = vpop.permute.xlu1 %4609  ;;  %v2267_v4 = vcombine.high %v2257_v12, %v2257_v12  ;;  %v3125_v52 = vcombine.low %v2243_v53, %v2257_v12  ;;  %v19358_v18 = vcombine.high %v2243_v53, %v2257_v12  ;;  %v3995_v7 = vcombine.low %v2257_v12, %v2265_v25 }
 0x224   : > { %v4004_v0 = vrot.slane %v3994_v49, %v21612_v56  ;;  %v5421_v12 = vrot.slane %v5399_v21, %v21612_v56 }
 0x225   : > { %v4761_v51 = vpop.permute.xlu0 %4760  ;;  %4306 = vrot.lane.b32.xlu1 %v22465_v27, %s27645_s7  ;;  %v3134_v27 = vrot.slane %v19357_v50, %v21612_v56  ;;  %v3141_v60 = vrot.slane %v3125_v52, %v21612_v56  ;;  %v3148_v32 = vrot.slane %v19358_v18, %v21612_v56  ;;  %v3996_v41 = vcombine.low %v2267_v4, %v2250_v1 }
 0x226   : > { %v4011_v36 = vrot.slane %v3995_v7, %v21612_v56  ;;  %v5400_v50 = vcombine.high %v5398_v34, %v5398_v34  ;;  %v5280_v61 = vsel %vm5276_vm13, %v5249_v46, %v4761_v51  ;;  %v1364_v55 = vpop.f32.mrb[68].mxu0  ;;  %v5407_v4 = vrot.slane %v5391_v45, %v21612_v56 }
 0x227   : > { %4308 = vrot.lane.b32.xlu0 %v22536_v40, %s27645_s7  ;;  %v22589_v14 = vpop.permute.xlu1 %4051  ;;  %v3156_v9 = vcombine.low %v3134_v27, %v3141_v60  ;;  %v4018_v53 = vrot.slane %v3996_v41, %v21612_v56  ;;  %v3157_v8 = vcombine.low %v3148_v32, %v3155_v29  ;;  %v5311_v51 = vsel %vm5307_vm14, %v5280_v61, %v22534_v48  ;;  %v1366_v58 = vpop.f32.mrb[69].mxu0 }
 0x228   : > { %v22617_v1 = vcombine.low %v4004_v0, %v4011_v36  ;;  %v5428_v52 = vrot.slane %v5400_v50, %v21612_v56  ;;  %v5414_v7 = vrot.slane %v5398_v34, %v21612_v56  ;;  %v1367_v43 = vpop.f32.mrb[70].mxu0  ;;  %v6473_v45 = vcombine.low %v5407_v4, %v5421_v12 }
 0x229   : > { %v22593_v54 = vpop.permute.xlu0 %4300  ;;  %4501 = vrot.lane.b32.xlu1 %v22120_v22, %s27624_s0  ;;  %v22622_v25 = vcombine.low %v4018_v53, %v4025_v62  ;;  %v3171_v27 = vrot.slane %v3157_v8, %v21612_v56  ;;  %v3164_v49 = vrot.slane %v3156_v9, %v21612_v56  ;;  %v19435_v60 = vcombine.high %v5407_v4, %v5421_v12  ;;  %v1369_v29 = vpop.f32.mrb[71].mxu0 }
 0x22a   : > { %v1411_v32 = vpack.c.bf16 %v1367_v43, %v1364_v55  ;;  %v19340_v41 = vpack.c.bf16 %v1367_v43, %v1367_v43  ;;  %v5432_v36 = vcombine.high %v5428_v52, %v5428_v52  ;;  %v5430_v50 = vcombine.high %v5414_v7, %v5414_v7 }
 0x22b   : > { %4387 = vrot.lane.b32.xlu0 %v22162_v23, %s27629_s6  ;;  %v22605_v16 = vpop.permute.xlu1 %4530  ;;  %v22642_v21 = vcombine.low %v3164_v49, %v3171_v27  ;;  %v6475_v61 = vcombine.low %v5414_v7, %v5428_v52  ;;  %v6483_v53 = vrot.slane %v6473_v45, %v21612_v56  ;;  %v6490_v8 = vrot.slane %v19435_v60, %v21612_v56 }
 0x22c   : > { %v2276_v9 = vrot.slane %v1411_v32, %v21612_v56  ;;  %v3239_v43 = vshll.u32 %v22183_v28, 16  ;;  %v2268_v32 = vcombine.high %v22585_v2, %v22585_v2  ;;  %v3237_v29 = vshrl.u32 %v22183_v28, 16 }
 0x22d   : > { %v22612_v19 = vpop.permute.xlu0 %3286  ;;  %4538 = vrot.lane.b32.xlu1 %v22536_v40, %s27644_s30  ;;  %v6497_v49 = vrot.slane %v6475_v61, %v21612_v56  ;;  %v6505_v52 = vcombine.low %v6483_v53, %v6490_v8  ;;  %v4139_v8 = vshll.u32 %v22190_v10, 16 }
 0x22e   : > { %v22677_v45 = vrot.slane %v2276_v9, %v21612_v56 }
 0x22f   : > { %4884 = vrot.lane.b32.xlu0 %v22577_v39, %s27642_s11  ;;  %v4877_v26 = vpop.permute.xlu1 %4876 }
 0x230   : > { %v22633_v46 = vsel %vm5338_vm15, %v5311_v51, %v4877_v26  ;;  %v2283_v51 = vrot.slane %v19340_v41, %v21612_v56 }
 0x231   : > { %v22630_v18 = vpop.permute.xlu0 %4416  ;;  %v22638_v48 = vrot.slane %v22633_v46, %v21612_v56  ;;  %4617 = vrot.lane.b32.xlu1 %v22162_v23, %s27637_s2 }
 0x232   : > { %v2285_v58 = vcombine.high %v2283_v51, %v2283_v51  ;;  %v22684_v41 = vrot.slane %v2283_v51, %v21612_v56 }
 0x233   : > { %4424 = vrot.lane.b32.xlu0 %v22577_v39, %s27623_s9  ;;  %v22648_v34 = vrot.slane %v22638_v48, %v21612_v56  ;;  %v22650_v0 = vpop.permute.xlu1 %4646 }
 0x234   : > { %v22697_v2 = vrot.slane %v2285_v58, %v21612_v56 }
 0x235   : > { %v22652_v62 = vpop.permute.xlu0 %4611  ;;  %3294 = vrot.lane.b32.xlu1 %v22536_v40, %s27641_s28  ;;  %v19379_v12 = vpack.i.b16 %v22648_v34, %v5432_v36  ;;  %v2284_v40 = vcombine.high %v2276_v9, %v2276_v9  ;;  %v2314_v9 = vcombine.high %v22677_v45, %v22677_v45 }
 0x237   : > { %4194 = vrot.lane.b32.xlu0 %v22577_v39, %s27628_s8  ;;  %v22663_v26 = vpop.permute.xlu1 %4841  ;;  %v6476_v27 = vcombine.low %v5430_v50, %v19379_v12  ;;  %v22690_v36 = vrot.slane %v2284_v40, %v21612_v56  ;;  %v6513_v50 = vrot.slane %v6505_v52, %v21612_v56  ;;  %v2315_v12 = vcombine.high %v22684_v41, %v22684_v41 }
 0x238   : > { %v4208_v52 = vcombine.low %v2268_v32, %v22677_v45 }
 0x239   : > { %v22665_v55 = vpop.permute.xlu0 %4053  ;;  %4059 = vrot.lane.b32.xlu1 %v22162_v23, %s27638_s1  ;;  %v6504_v4 = vrot.slane %v6476_v27, %v21612_v56  ;;  %v2316_v51 = vcombine.high %v22690_v36, %v22690_v36  ;;  %v4910_v27 = vsel %vm4904_vm1, %v21815_v37, %v22382_v35  ;;  %v4209_v58 = vcombine.low %v22690_v36, %v2314_v9 }
 0x23a   : > { %v4034_v37 = vrot.slane %v22617_v1, %v21612_v56  ;;  %v5433_v35 = vcombine.high %v22633_v46, %v22633_v46  ;;  %v4941_v9 = vsel %vm4935_vm2, %v4910_v27, %v22347_v6  ;;  %v4141_v46 = vrot.slane %v4139_v8, 1 }
 0x23b   : > { %4503 = vrot.lane.b32.xlu0 %v22183_v28, %s27624_s0  ;;  %v22673_v7 = vpop.permute.xlu1 %4186  ;;  %v6506_v23 = vcombine.low %v6497_v49, %v6504_v4  ;;  %v4041_v4 = vrot.slane %v22622_v25, %v21612_v56  ;;  %v5448_v25 = vcombine.high %v22638_v48, %v22638_v48  ;;  %v4218_v48 = vrot.slane %v4208_v52, %v21612_v56 }
 0x23c   : > { %v4972_v6 = vsel %vm4966_vm3, %v4941_v9, %v22393_v5 }
 0x23d   : > { %v22679_v60 = vpop.permute.xlu0 %4495  ;;  %4654 = vrot.lane.b32.xlu1 %v22577_v39, %s27643_s10  ;;  %v6520_v61 = vrot.slane %v6506_v23, %v21612_v56  ;;  %v3241_v39 = vrot.slane %v3239_v43, 1  ;;  %v4210_v43 = vcombine.low %v2316_v51, %v22684_v41  ;;  %v4211_v23 = vcombine.low %v22697_v2, %v2315_v12 }
 0x23e   : > { %v4225_v51 = vrot.slane %v4209_v58, %v21612_v56  ;;  %v22744_v15 = vcombine.low %v4034_v37, %v4041_v4  ;;  %v5003_v8 = vsel %vm4997_vm4, %v4972_v6, %v22438_v24 }
 0x23f   : > { %4619 = vrot.lane.b32.xlu0 %v22190_v10, %s27637_s2  ;;  %v22701_v53 = vpop.permute.xlu1 %4381  ;;  %v6521_v49 = vcombine.low %v6513_v50, %v6520_v61  ;;  %v4137_v50 = vshrl.u32 %v22190_v10, 16  ;;  %v27646_v61 = vmov 0.0   ;;  %v22736_v12 = vor.u32 %v3241_v39, %v3237_v29 }
 0x240   : > { %v4239_v22 = vrot.slane %v4211_v23, %v21612_v56  ;;  %v5447_v29 = vrot.slane %v5433_v35, %v21612_v56  ;;  %v5470_v39 = vrot.slane %v5448_v25, %v21612_v56  ;;  %v5034_v52 = vsel %vm5028_vm5, %v5003_v8, %v22463_v57 }
 0x241   : > { %v22711_v40 = vpop.permute.xlu0 %4878  ;;  %4733 = vrot.lane.b32.xlu1 %v22183_v28, %s27630_s29  ;;  %20490 = vmatmul.mubr.bf16.vlgmr.msra.gmra.mrb[0].mxu1 %v6521_v49  ;;  %v4232_v49 = vrot.slane %v4210_v43, %v21612_v56  ;;  %v22760_v58 = vor.u32 %v4141_v46, %v4137_v50  ;;  %v4240_v5 = vcombine.low %v4218_v48, %v4225_v51 }
 0x242   : > { %20493 = vmatprep.mubr.msk.bf16.mxu1 %vm21321_vm0, %v27646_v61  ;;  %v5449_v23 = vcombine.high %v5447_v29, %v5447_v29  ;;  %v5480_v37 = vcombine.high %v5470_v39, %v5470_v39  ;;  %v5065_v24 = vsel %vm5059_vm6, %v5034_v52, %v22459_v42  ;;  %v5463_v51 = vrot.slane %v5447_v29, %v21612_v56 }
 0x243   : > { %4061 = vrot.lane.b32.xlu0 %v22190_v10, %s27638_s1  ;;  %v4726_v32 = vpop.permute.xlu1 %4725  ;;  %v4241_v43 = vcombine.low %v4232_v49, %v4239_v22  ;;  %v4248_v57 = vrot.slane %v4240_v5, %v21612_v56  ;;  %v5096_v50 = vsel %vm5090_vm7, %v5065_v24, %v22528_v3  ;;  %v5478_v22 = vcombine.high %v22648_v34, %v22648_v34 }
 0x244   : > { %v5127_v46 = vsel %vm5121_vm8, %v5096_v50, %v22546_v38  ;;  %v5477_v3 = vrot.slane %v5449_v23, %v21612_v56  ;;  %v6141_v49 = vunpack.i.h.s16 %v5480_v37  ;;  %v6137_v8 = vunpack.i.h.s16 %v5470_v39 }
 0x245   : > { %v22734_v1 = vpop.permute.xlu0 %4188  ;;  %4273 = vrot.lane.b32.xlu1 %v22183_v28, %s27632_s3  ;;  %v4255_v25 = vrot.slane %v4241_v43, %v21612_v56  ;;  %v5158_v48 = vsel %vm5152_vm9, %v5127_v46, %v22605_v16  ;;  %v6139_v38 = vunpack.i.h.s16 %v5478_v22  ;;  %v6135_v16 = vunpack.i.h.s16 %v22648_v34 }
 0x246   : > { %v5189_v29 = vsel %vm5183_vm10, %v5158_v48, %v22566_v13  ;;  %v5479_v5 = vcombine.high %v5463_v51, %v5463_v51  ;;  %v6145_v43 = vunpack.i.h.s16 %v5477_v3  ;;  %v19383_v23 = vpack.i.b16 %v5463_v51, %v6141_v49 }
 0x247   : > { %4540 = vrot.lane.b32.xlu0 %v22736_v12, %s27644_s30  ;;  %v22754_v27 = vpop.permute.xlu1 %4265  ;;  %v22782_v42 = vcombine.low %v4248_v57, %v4255_v25  ;;  %v5220_v24 = vsel %vm5214_vm11, %v5189_v29, %v22650_v0  ;;  %v19381_v34 = vpack.i.b16 %v5478_v22, %v6137_v8  ;;  %v19382_v25 = vpack.i.b16 %v5480_v37, %v6139_v38 }
 0x248   : > { %v5251_v57 = vsel %vm5245_vm12, %v5220_v24, %v4726_v32  ;;  %v5481_v48 = vcombine.high %v5477_v3, %v5477_v3  ;;  %v19380_v49 = vpack.i.b16 %v5470_v39, %v6135_v16  ;;  %v6147_v32 = vunpack.i.h.s16 %v5479_v5 }
 0x249   : > { %v22758_v4 = vpop.permute.xlu0 %4532  ;;  %4849 = vrot.lane.b32.xlu1 %v22190_v10, %s27636_s5  ;;  %v19385_v29 = vpack.i.b16 %v5479_v5, %v6145_v43  ;;  %v6523_v22 = vcombine.low %v19382_v25, %v19383_v23  ;;  %v3246_v8 = vshll.u32 %v22266_v47, 16  ;;  %v3244_v23 = vshrl.u32 %v22266_v47, 16 }
 0x24a   : > { %v6522_v38 = vcombine.low %v19380_v49, %v19381_v34  ;;  %v19386_v16 = vpack.i.b16 %v5481_v48, %v6147_v32  ;;  %v4324_v32 = vcombine.low %v22677_v45, %v22690_v36 }
 0x24b   : > { %4656 = vrot.lane.b32.xlu0 %v22760_v58, %s27643_s10  ;;  %v22768_v35 = vpop.permute.xlu1 %4648  ;;  %v6539_v5 = vrot.slane %v6523_v22, %v21612_v56  ;;  %v4326_v22 = vcombine.low %v22684_v41, %v22697_v2 }
 0x24d   : > { %v22776_v9 = vpop.permute.xlu0 %4727  ;;  %4389 = vrot.lane.b32.xlu1 %v22190_v10, %s27629_s6  ;;  %v4912_v10 = vsel %vm4904_vm1, %v21844_v30, %v22507_v17  ;;  %v6143_v17 = vunpack.i.h.s16 %v5463_v51 }
 0x24e   : > { %v4943_v46 = vsel %vm4935_vm2, %v4912_v10, %v22408_v20 }
 0x24f   : > { %4196 = vrot.lane.b32.xlu0 %v22760_v58, %s27628_s8  ;;  %v22790_v6 = vpop.permute.xlu1 %4418 }
 0x251   : > { %v22792_v52 = vpop.permute.xlu0 %4302  ;;  %4770 = vrot.lane.b32.xlu1 %v22736_v12, %s27635_s4 }
 0x253   : > { %4735 = vrot.lane.b32.xlu0 %v22266_v47, %s27630_s29  ;;  %v4763_v30 = vpop.permute.xlu1 %4762 }
 0x254   : > { %v5282_v13 = vsel %vm5276_vm13, %v5251_v57, %v4763_v30  ;;  %v3248_v30 = vrot.slane %v3246_v8, 1 }
 0x255   : > { %v22808_v50 = vpop.permute.xlu0 %4267  ;;  %v5313_v0 = vsel %vm5307_vm14, %v5282_v13, %v22663_v26  ;;  %3296 = vrot.lane.b32.xlu1 %v22736_v12, %s27641_s28  ;;  %v19384_v26 = vpack.i.b16 %v5477_v3, %v6143_v17 }
 0x256   : > { %v22818_v37 = vsel %vm5338_vm15, %v5313_v0, %v22711_v40  ;;  %v4974_v40 = vsel %vm4966_vm3, %v4943_v46, %v22475_v44  ;;  %v22863_v49 = vor.u32 %v3248_v30, %v3244_v23  ;;  %v4146_v0 = vshll.u32 %v22274_v59, 16 }
 0x257   : > { %4851 = vrot.lane.b32.xlu0 %v22274_v59, %s27636_s5  ;;  %v22824_v20 = vrot.slane %v22818_v37, %v21612_v56  ;;  %v22826_v39 = vpop.permute.xlu1 %3288  ;;  %v6524_v3 = vcombine.low %v19384_v26, %v19385_v29  ;;  %v5005_v44 = vsel %vm4997_vm4, %v4974_v40, %v22509_v33  ;;  %v19373_v29 = vcombine.high %v22677_v45, %v22690_v36 }
 0x258   : > { %v5036_v17 = vsel %vm5028_vm5, %v5005_v44, %v22593_v54 }
 0x259   : > { %v22828_v51 = vpop.permute.xlu0 %4843  ;;  %v22835_v10 = vrot.slane %v22824_v20, %v21612_v56  ;;  %4310 = vrot.lane.b32.xlu1 %v22736_v12, %s27645_s7  ;;  %v6532_v12 = vrot.slane %v6522_v38, %v21612_v56  ;;  %v6546_v34 = vrot.slane %v6524_v3, %v21612_v56  ;;  %v5067_v46 = vsel %vm5059_vm6, %v5036_v17, %v22552_v63 }
 0x25a   : > { %v19374_v63 = vcombine.high %v22684_v41, %v22697_v2  ;;  %v5098_v26 = vsel %vm5090_vm7, %v5067_v46, %v22630_v18  ;;  %v4148_v3 = vrot.slane %v4146_v0, 1  ;;  %v4341_v23 = vrot.slane %v19373_v29, %v21612_v56 }
 0x25b   : > { %4275 = vrot.lane.b32.xlu0 %v22266_v47, %s27632_s3  ;;  %v22842_v43 = vpop.permute.xlu1 %4497  ;;  %v6525_v24 = vcombine.low %v19386_v16, %v22835_v10  ;;  %v6554_v25 = vcombine.low %v6532_v12, %v6539_v5  ;;  %v1372_v38 = vpop.f32.mrb[72].mxu0  ;;  %v5129_v45 = vsel %vm5121_vm8, %v5098_v26, %v22679_v60  ;;  %v4144_v16 = vshrl.u32 %v22274_v59, 16 }
 0x25c   : > { %v1374_v40 = vpop.f32.mrb[73].mxu0  ;;  %v5160_v41 = vsel %vm5152_vm9, %v5129_v45, %v22758_v4  ;;  %v4334_v5 = vrot.slane %v4324_v32, %v21612_v56  ;;  %v4348_v60 = vrot.slane %v4326_v22, %v21612_v56  ;;  %v4355_v44 = vrot.slane %v19374_v63, %v21612_v56  ;;  %v27647_v22 = vld [vmem:[#allocation6_spill] sm:$0xff] }
 0x25d   : > { %v22848_v57 = vpop.permute.xlu0 %4383  ;;  %4886 = vrot.lane.b32.xlu1 %v22760_v58, %s27642_s11  ;;  %v6553_v33 = vrot.slane %v6525_v24, %v21612_v56  ;;  %v5482_v4 = vcombine.high %v22818_v37, %v22818_v37  ;;  %v5497_v24 = vcombine.high %v22824_v20, %v22824_v20  ;;  %v5191_v30 = vsel %vm5183_vm10, %v5160_v41, %v22652_v62 }
 0x25e   : > { %v5222_v17 = vsel %vm5214_vm11, %v5191_v30, %v22768_v35  ;;  %v22913_v37 = vor.u32 %v4148_v3, %v4144_v16  ;;  %v4356_v20 = vcombine.low %v4334_v5, %v4341_v23  ;;  %v4914_v63 = vsel %vm4904_vm1, %v27647_v22, %v22612_v19 }
 0x25f   : > { %4391 = vrot.lane.b32.xlu0 %v22274_v59, %s27629_s6  ;;  %v22859_v13 = vpop.permute.xlu1 %4613  ;;  %v6555_v54 = vcombine.low %v6546_v34, %v6553_v33  ;;  %v4357_v33 = vcombine.low %v4348_v60, %v4355_v44  ;;  %v5519_v62 = vrot.slane %v5497_v24, %v21612_v56  ;;  %v5253_v46 = vsel %vm5245_vm12, %v5222_v17, %v22776_v9  ;;  %v27649_v24 = vld [vmem:[#allocation12_spill] sm:$0xff] }
 0x260   : > { %v4945_v19 = vsel %vm4935_vm2, %v4914_v63, %v22589_v14 }
 0x261   : > { %v4765_v48 = vpop.permute.xlu0 %4764  ;;  %4426 = vrot.lane.b32.xlu1 %v22760_v58, %s27623_s9  ;;  %v6562_v58 = vrot.slane %v6554_v25, %v21612_v56  ;;  %v6569_v8 = vrot.slane %v6555_v54, %v21612_v56  ;;  %v5496_v25 = vrot.slane %v5482_v4, %v21612_v56  ;;  %v4364_v54 = vrot.slane %v4356_v20, %v21612_v56 }
 0x262   : > { %v4371_v0 = vrot.slane %v4357_v33, %v21612_v56  ;;  %v5284_v32 = vsel %vm5276_vm13, %v5253_v46, %v4765_v48  ;;  %v4976_v44 = vsel %vm4966_vm3, %v4945_v19, %v22673_v7  ;;  %v27650_v7 = vld [vmem:[#allocation13_spill] sm:$0xff] }
 0x263   : > { %4772 = vrot.lane.b32.xlu0 %v22863_v49, %s27635_s4  ;;  %v22884_v36 = vpop.permute.xlu1 %4055  ;;  %v6570_v18 = vcombine.low %v6562_v58, %v6569_v8  ;;  %v5498_v9 = vcombine.high %v5496_v25, %v5496_v25  ;;  %v5529_v58 = vcombine.high %v5519_v62, %v5519_v62  ;;  %v1375_v8 = vpop.f32.mrb[74].mxu0  ;;  %v5315_v48 = vsel %vm5307_vm14, %v5284_v32, %v22828_v51  ;;  %v27648_v51 = vld [vmem:[#allocation7_spill] sm:$0xff] }
 0x264   : > { %v22935_v26 = vcombine.low %v4364_v54, %v4371_v0  ;;  %v1412_v40 = vpack.c.bf16 %v1375_v8, %v1372_v38  ;;  %v1377_v41 = vpop.f32.mrb[75].mxu0  ;;  %v4916_v38 = vsel %vm4904_vm1, %v27648_v51, %v22826_v39  ;;  %v19341_v14 = vpack.c.bf16 %v1375_v8, %v1375_v8 }
 0x265   : > { %v22888_v2 = vpop.permute.xlu0 %4304  ;;  %4505 = vrot.lane.b32.xlu1 %v22266_v47, %s27624_s0  ;;  %20494 = vmatmul.mubr.bf16.gmra.mrb[4].mxu1 %v6570_v18  ;;  %v5512_v18 = vrot.slane %v5496_v25, %v21612_v56  ;;  %v22951_v5 = vpop.f32.mrb[76].mxu0  ;;  %v5526_v4 = vrot.slane %v5498_v9, %v21612_v56  ;;  %v3253_v39 = vshll.u32 %v27649_v24, 16  ;;  %v5007_v20 = vsel %vm4997_vm4, %v4976_v44, %v22754_v27 }
 0x266   : > { %20497 = vmatprep.mubr.msk.bf16.mxu1 %vm21321_vm0, %v27646_v61  ;;  %v1382_v60 = vpop.f32.mrb[77].mxu0  ;;  %v4153_v54 = vshll.u32 %v27650_v7, 16  ;;  %v5038_v32 = vsel %vm5028_vm5, %v5007_v20, %v22792_v52  ;;  %v4947_v63 = vsel %vm4935_vm2, %v4916_v38, %v22665_v55  ;;  %v3251_v8 = vshrl.u32 %v27649_v24, 16 }
 0x267   : > { %4312 = vrot.lane.b32.xlu0 %v22863_v49, %s27645_s7  ;;  %v22905_v12 = vpop.permute.xlu1 %4534  ;;  %v6572_v30 = vcombine.low %v5529_v58, %v5512_v18  ;;  %v22967_v17 = vpop.f32.mrb[78].mxu0  ;;  %v5528_v22 = vcombine.high %v5512_v18, %v5512_v18  ;;  %v3255_v55 = vrot.slane %v3253_v39, 1  ;;  %v5069_v41 = vsel %vm5059_vm6, %v5038_v32, %v22701_v53 }
 0x268   : > { %v1385_v0 = vpop.f32.mrb[79].mxu0  ;;  %v4151_v18 = vshrl.u32 %v27650_v7, 16  ;;  %v5100_v20 = vsel %vm5090_vm7, %v5069_v41, %v22790_v6 }
 0x269   : > { %v22911_v34 = vpop.permute.xlu0 %4420  ;;  %4621 = vrot.lane.b32.xlu1 %v22274_v59, %s27637_s2  ;;  %v23013_v39 = vor.u32 %v3255_v55, %v3251_v8  ;;  %v5131_v32 = vsel %vm5121_vm8, %v5100_v20, %v22842_v43 }
 0x26b   : > { %4428 = vrot.lane.b32.xlu0 %v22913_v37, %s27623_s9  ;;  %v22923_v35 = vpop.permute.xlu1 %3290 }
 0x26d   : > { %v22928_v29 = vpop.permute.xlu0 %4615  ;;  %4063 = vrot.lane.b32.xlu1 %v22274_v59, %s27638_s1  ;;  %v5527_v59 = vcombine.high %v22835_v10, %v22835_v10  ;;  %v2325_v10 = vrot.slane %v1412_v40, %v21612_v56  ;;  %v5530_v40 = vcombine.high %v5526_v4, %v5526_v4 }
 0x26f   : > { %3298 = vrot.lane.b32.xlu0 %v22863_v49, %s27641_s28  ;;  %v4881_v45 = vpop.permute.xlu1 %4880  ;;  %v6571_v58 = vcombine.low %v5519_v62, %v5527_v59  ;;  %v6588_v62 = vrot.slane %v6572_v30, %v21612_v56  ;;  %v4155_v59 = vrot.slane %v4153_v54, 1  ;;  %v23024_v0 = vrot.slane %v2325_v10, %v21612_v56 }
 0x270   : > { %v22947_v16 = vsel %vm5338_vm15, %v5315_v48, %v4881_v45  ;;  %v2332_v48 = vrot.slane %v19341_v14, %v21612_v56  ;;  %v2333_v45 = vcombine.high %v2325_v10, %v2325_v10  ;;  %v6573_v14 = vcombine.low %v5526_v4, %v5528_v22 }
 0x271   : > { %v22949_v3 = vpop.permute.xlu0 %4057  ;;  %v5538_v23 = vrot.slane %v22947_v16, %v21612_v56  ;;  %4888 = vrot.lane.b32.xlu1 %v22913_v37, %s27642_s11  ;;  %v6581_v60 = vrot.slane %v6571_v58, %v21612_v56  ;;  %v23021_v54 = vor.u32 %v4155_v59, %v4151_v18  ;;  %v5531_v8 = vcombine.high %v22947_v16, %v22947_v16 }
 0x272   : > { %v2334_v53 = vcombine.high %v2332_v48, %v2332_v48  ;;  %v6595_v6 = vrot.slane %v6573_v14, %v21612_v56 }
 0x273   : > { %4507 = vrot.lane.b32.xlu0 %v27649_v24, %s27624_s0  ;;  %v5546_v33 = vcombine.high %v5538_v23, %v5538_v23  ;;  %v22972_v25 = vrot.slane %v5538_v23, %v21612_v56  ;;  %v22974_v46 = vpop.permute.xlu1 %4650  ;;  %v6603_v30 = vcombine.low %v6581_v60, %v6588_v62 }
 0x274   : > { %v2362_v10 = vrot.slane %v2334_v53, %v21612_v56  ;;  %v19342_v53 = vpack.c.bf16 %v22967_v17, %v22967_v17 }
 0x275   : > { %v22981_v9 = vpop.permute.xlu0 %4499  ;;  %v22984_v27 = vrot.slane %v5546_v33, %v21612_v56  ;;  %4542 = vrot.lane.b32.xlu1 %v22863_v49, %s27644_s30  ;;  %v6165_v52 = vunpack.i.h.s16 %v22972_v25  ;;  %v4978_v49 = vsel %vm4966_vm3, %v4947_v63, %v22734_v1  ;;  %v19387_v51 = vpack.i.b16 %v22972_v25, %v5530_v40 }
 0x276   : > { %v23009_v1 = vrot.slane %v2333_v45, %v21612_v56  ;;  %v5009_v4 = vsel %vm4997_vm4, %v4978_v49, %v22808_v50  ;;  %v23037_v50 = vrot.slane %v2332_v48, %v21612_v56  ;;  %v5162_v40 = vsel %vm5152_vm9, %v5131_v32, %v22905_v12 }
 0x277   : > { %4623 = vrot.lane.b32.xlu0 %v27650_v7, %s27637_s2  ;;  %v22998_v19 = vpop.permute.xlu1 %4845  ;;  %v19388_v38 = vpack.i.b16 %v22984_v27, %v6165_v52  ;;  %v5040_v22 = vsel %vm5028_vm5, %v5009_v4, %v22888_v2  ;;  %v1413_v12 = vpack.c.bf16 %v22967_v17, %v22951_v5  ;;  %v5193_v14 = vsel %vm5183_vm10, %v5162_v40, %v22859_v13 }
 0x278   : > { %v2365_v43 = vcombine.high %v23009_v1, %v23009_v1  ;;  %v4440_v2 = vcombine.low %v23024_v0, %v23009_v1  ;;  %v19375_v48 = vcombine.high %v23024_v0, %v23009_v1  ;;  %v5071_v52 = vsel %vm5059_vm6, %v5040_v22, %v22848_v57 }
 0x279   : > { %v23003_v23 = vpop.permute.xlu0 %4652  ;;  %4658 = vrot.lane.b32.xlu1 %v22913_v37, %s27643_s10  ;;  %v6574_v44 = vcombine.low %v19387_v51, %v19388_v38  ;;  %v4442_v62 = vcombine.low %v23037_v50, %v2362_v10  ;;  %v19376_v16 = vcombine.high %v23037_v50, %v2362_v10  ;;  %v5102_v57 = vsel %vm5090_vm7, %v5071_v52, %v22911_v34 }
 0x27a   : > { %v4450_v18 = vrot.slane %v4440_v2, %v21612_v56  ;;  %v4457_v59 = vrot.slane %v19375_v48, %v21612_v56  ;;  %v23065_v51 = vcombine.low %v2365_v43, %v23037_v50  ;;  %v5545_v38 = vrot.slane %v5531_v8, %v21612_v56 }
 0x27b   : > { %4065 = vrot.lane.b32.xlu0 %v27650_v7, %s27638_s1  ;;  %v23019_v33 = vpop.permute.xlu1 %4190  ;;  %v6602_v58 = vrot.slane %v6574_v44, %v21612_v56  ;;  %v23082_v34 = vsel %vm5214_vm11, %v5193_v14, %v22974_v46  ;;  %v2374_v5 = vrot.slane %v1413_v12, %v21612_v56  ;;  %v4464_v20 = vrot.slane %v4442_v62, %v21612_v56  ;;  %v27651_v46 = vld [vmem:[#allocation14_spill] sm:$0xff] }
 0x27c   : > { %v2363_v4 = vcombine.high %v23024_v0, %v23024_v0  ;;  %v2381_v32 = vrot.slane %v19342_v53, %v21612_v56  ;;  %v4471_v17 = vrot.slane %v19376_v16, %v21612_v56  ;;  %v4472_v22 = vcombine.low %v4450_v18, %v4457_v59 }
 0x27d   : > { %v23030_v63 = vpop.permute.xlu0 %4192  ;;  %4198 = vrot.lane.b32.xlu1 %v22913_v37, %s27628_s8  ;;  %v6604_v45 = vcombine.low %v6595_v6, %v6602_v58  ;;  %v6611_v37 = vrot.slane %v6603_v30, %v21612_v56  ;;  %v2366_v30 = vcombine.high %v2362_v10, %v2362_v10  ;;  %v2364_v58 = vcombine.high %v23037_v50, %v23037_v50 }
 0x27e   : > { %v2382_v43 = vcombine.high %v2374_v5, %v2374_v5  ;;  %v2390_v2 = vrot.slane %v2374_v5, %v21612_v56  ;;  %v5547_v0 = vcombine.high %v5545_v38, %v5545_v38  ;;  %v23103_v8 = vrot.slane %v5545_v38, %v21612_v56 }
 0x27f   : > { %4544 = vrot.lane.b32.xlu0 %v23013_v39, %s27644_s30  ;;  %v23055_v55 = vpop.permute.xlu1 %4385  ;;  %v6618_v49 = vrot.slane %v6604_v45, %v21612_v56  ;;  %v2383_v45 = vcombine.high %v2381_v32, %v2381_v32  ;;  %v5576_v48 = vcombine.high %v22972_v25, %v22972_v25  ;;  %v23114_v16 = vsel %vm5121_vm8, %v5102_v57, %v22981_v9 }
 0x280   : > { %v2404_v52 = vrot.slane %v2382_v43, %v21612_v56  ;;  %v2412_v50 = vcombine.high %v2390_v2, %v2390_v2  ;;  %v4559_v62 = vcombine.low %v2366_v30, %v2390_v2  ;;  %v4556_v18 = vcombine.low %v23009_v1, %v2363_v4 }
 0x281   : > { %v23059_v41 = vpop.permute.xlu0 %4536  ;;  %4737 = vrot.lane.b32.xlu1 %v27649_v24, %s27630_s29  ;;  %v6619_v60 = vcombine.low %v6611_v37, %v6618_v49  ;;  %v4473_v37 = vcombine.low %v4464_v20, %v4471_v17  ;;  %v4480_v59 = vrot.slane %v4472_v22, %v21612_v56  ;;  %v23124_v25 = vrot.slane %v2381_v32, %v21612_v56 }
 0x282   : > { %v23127_v38 = vrot.slane %v2383_v45, %v21612_v56  ;;  %v2414_v14 = vcombine.high %v2404_v52, %v2404_v52  ;;  %v4558_v9 = vcombine.low %v2362_v10, %v2364_v58  ;;  %v23130_v57 = vrot.slane %v5547_v0, %v21612_v56 }
 0x283   : > { %4660 = vrot.lane.b32.xlu0 %v23021_v54, %s27643_s10  ;;  %v23084_v44 = vpop.permute.xlu1 %4729  ;;  %20498 = vmatmul.mubr.bf16.gmra.mrb[8].mxu1 %v6619_v60  ;;  %v4487_v12 = vrot.slane %v4473_v37, %v21612_v56  ;;  %v23134_v1 = vcombine.high %v23103_v8, %v23103_v8  ;;  %v4672_v60 = vcombine.low %v2404_v52, %v2412_v50  ;;  %v6167_v32 = vunpack.i.h.s16 %v22984_v27 }
 0x284   : > { %20501 = vmatprep.mubr.msk.bf16.mxu1 %vm21321_vm0, %v27646_v61  ;;  %v19377_v53 = vcombine.high %v2390_v2, %v2404_v52  ;;  %v5578_v30 = vcombine.high %v22984_v27, %v22984_v27  ;;  %v4587_v20 = vrot.slane %v4559_v62, %v21612_v56  ;;  %v4673_v10 = vcombine.low %v2414_v14, %v23124_v25 }
 0x285   : > { %v23088_v13 = vpop.permute.xlu0 %4731  ;;  %4853 = vrot.lane.b32.xlu1 %v27650_v7, %s27636_s5  ;;  %v4789_v4 = vcombine.low %v23124_v25, %v23127_v38  ;;  %v6169_v17 = vunpack.i.h.s16 %v5576_v48  ;;  %v23147_v58 = vcombine.low %v4480_v59, %v4487_v12  ;;  %v4566_v43 = vrot.slane %v4556_v18, %v21612_v56 }
 0x286   : > { %v6173_v2 = vunpack.i.h.s16 %v23103_v8  ;;  %v23154_v0 = vrot.slane %v19377_v53, %v21612_v56  ;;  %v4573_v45 = vrot.slane %v23065_v51, %v21612_v56  ;;  %v4580_v27 = vrot.slane %v4558_v9, %v21612_v56  ;;  %v1388_v59 = vpop.f32.mrb[80].mxu0 }
 0x287   : > { %4890 = vrot.lane.b32.xlu0 %v23021_v54, %s27642_s11  ;;  %v23109_v40 = vpop.permute.xlu1 %4269  ;;  %v5579_v37 = vcombine.high %v23130_v57, %v23130_v57  ;;  %v2413_v52 = vcombine.high %v23124_v25, %v23124_v25  ;;  %v4682_v50 = vrot.slane %v4672_v60, %v21612_v56  ;;  %v6171_v62 = vunpack.i.h.s16 %v5578_v30  ;;  %v1390_v47 = vpop.f32.mrb[81].mxu0 }
 0x288   : > { %v4588_v51 = vcombine.low %v4566_v43, %v4573_v45  ;;  %v4589_v12 = vcombine.low %v4580_v27, %v4587_v20  ;;  %v23170_v14 = vrot.slane %v4789_v4, %v21612_v56  ;;  %v6175_v9 = vunpack.i.h.s16 %v23130_v57  ;;  %v1391_v43 = vpop.f32.mrb[82].mxu0 }
 0x289   : > { %v23116_v49 = vpop.permute.xlu0 %3292  ;;  %4277 = vrot.lane.b32.xlu1 %v27649_v24, %s27632_s3  ;;  %v6177_v53 = vunpack.i.h.s16 %v23134_v1  ;;  %v1414_v24 = vpack.c.bf16 %v1388_v59, %v1388_v59  ;;  %v19390_v27 = vpack.i.b16 %v5578_v30, %v6169_v17  ;;  %v2415_v47 = vcombine.high %v23127_v38, %v23127_v38 }
 0x28a   : > { %v4596_v20 = vrot.slane %v4588_v51, %v21612_v56  ;;  %v4603_v4 = vrot.slane %v4589_v12, %v21612_v56  ;;  %v4820_v45 = vcombine.low %v23154_v0, %v23170_v14  ;;  %v19392_v59 = vpack.i.b16 %v23130_v57, %v6173_v2 }
 0x28b   : > { %3300 = vrot.lane.b32.xlu0 %v23013_v39, %s27641_s28  ;;  %v4883_v5 = vpop.permute.xlu1 %4882  ;;  %v5255_v0 = vsel %vm5245_vm12, %v23082_v34, %v23084_v44  ;;  %v5164_v57 = vsel %vm5152_vm9, %v23114_v16, %v23059_v41  ;;  %v19394_v44 = vpack.i.b16 %v5579_v37, %v6177_v53 }
 0x28c   : > { %v23197_v17 = vcombine.low %v4596_v20, %v4603_v4 }
 0x28d   : > { %v23145_v22 = vpop.permute.xlu0 %4271  ;;  %4393 = vrot.lane.b32.xlu1 %v27650_v7, %s27629_s6  ;;  %v4689_v7 = vrot.slane %v4673_v10, %v21612_v56  ;;  %v23178_v10 = vpack.i.b16 %v5576_v48, %v6167_v32  ;;  %v2422_v48 = vrot.slane %v1414_v24, %v21612_v56  ;;  %v4674_v32 = vcombine.low %v23127_v38, %v2413_v52 }
 0x28e   : > { %v19378_v24 = vcombine.high %v23124_v25, %v23127_v38 }
 0x28f   : > { %4200 = vrot.lane.b32.xlu0 %v23021_v54, %s27628_s8  ;;  %v23167_v18 = vpop.permute.xlu1 %4422  ;;  %v23176_v60 = vcombine.low %v4682_v50, %v4689_v7  ;;  %v1392_v50 = vpop.f32.mrb[83].mxu0  ;;  %v19391_v7 = vpack.i.b16 %v23103_v8, %v6171_v62  ;;  %v2423_v14 = vcombine.high %v2422_v48, %v2422_v48  ;;  %v2430_v52 = vrot.slane %v2422_v48, %v21612_v56 }
 0x290   : > { %v19393_v8 = vpack.i.b16 %v23134_v1, %v6175_v9  ;;  %v4696_v1 = vrot.slane %v4674_v32, %v21612_v56  ;;  %v4812_v43 = vrot.slane %v19378_v24, %v21612_v56  ;;  %v6620_v32 = vcombine.low %v23178_v10, %v19390_v27 }
 0x291   : > { %v23174_v6 = vpop.permute.xlu0 %4768  ;;  %4774 = vrot.lane.b32.xlu1 %v23013_v39, %s27635_s4  ;;  %v2437_v25 = vrot.slane %v2423_v14, %v21612_v56  ;;  %v4675_v38 = vcombine.low %v2415_v47, %v2430_v52  ;;  %v6621_v9 = vcombine.low %v19391_v7, %v19392_v59  ;;  %v27652_v47 = vshll.u32 %v27651_v46, 16 }
 0x292   : > { %v6622_v50 = vcombine.low %v19393_v8, %v19394_v44  ;;  %v4828_v8 = vrot.slane %v4820_v45, %v21612_v56 }
 0x293   : > { %4739 = vrot.lane.b32.xlu0 %v27651_v46, %s27630_s29  ;;  %v4767_v30 = vpop.permute.xlu1 %4766  ;;  %v4703_v37 = vrot.slane %v4675_v38, %v21612_v56  ;;  %v4791_v53 = vcombine.low %v2430_v52, %v2437_v25  ;;  %v3262_v48 = vrot.slane %v27652_v47, 1  ;;  %v6637_v27 = vrot.slane %v6621_v9, %v21612_v56 }
 0x294   : > { %v5286_v51 = vsel %vm5276_vm13, %v5255_v0, %v4767_v30  ;;  %v4712_v0 = vrot.slane %v23176_v60, %v21612_v56 }
 0x295   : > { %v4848_v12 = vpop.permute.xlu0 %4847  ;;  %v5317_v34 = vsel %vm5307_vm14, %v5286_v51, %v22998_v19  ;;  %4314 = vrot.lane.b32.xlu1 %v23013_v39, %s27645_s7  ;;  %v3258_v19 = vshrl.u32 %v27651_v46, 16  ;;  %v5195_v39 = vsel %vm5183_vm10, %v5164_v57, %v22928_v29  ;;  %v27653_v29 = vld [vmem:[#allocation15_spill] sm:$0xff]  ;;  %v4705_v7 = vcombine.low %v4696_v1, %v4703_v37 }
 0x296   : > { %v5348_v2 = vsel %vm5338_vm15, %v5317_v34, %v4883_v5  ;;  %v4819_v59 = vrot.slane %v4791_v53, %v21612_v56  ;;  %v5226_v30 = vsel %vm5214_vm11, %v5195_v39, %v23003_v23  ;;  %v4160_v14 = vshll.u32 %v27653_v29, 16 }
 0x297   : > { %4279 = vrot.lane.b32.xlu0 %v27651_v46, %s27632_s3  ;;  %v5580_v62 = vcombine.high %v5348_v2, %v5348_v2  ;;  %v5587_v41 = vrot.slane %v5348_v2, %v21612_v56  ;;  %v23217_v16 = vpop.permute.xlu1 %4306  ;;  %v4719_v60 = vrot.slane %v4705_v7, %v21612_v56  ;;  %v6630_v34 = vrot.slane %v6620_v32, %v21612_v56 }
 0x298   : > { %v4821_v52 = vcombine.low %v4812_v43, %v4819_v59  ;;  %v5257_v44 = vsel %vm5245_vm12, %v5226_v30, %v23088_v13  ;;  %v3263_v2 = vor.u32 %v3262_v48, %v3258_v19  ;;  %v4158_v37 = vshrl.u32 %v27653_v29, 16 }
 0x299   : > { %v23222_v5 = vpop.permute.xlu0 %4308  ;;  %v5594_v20 = vrot.slane %v5580_v62, %v21612_v56  ;;  %v5595_v4 = vcombine.high %v5587_v41, %v5587_v41  ;;  %4430 = vrot.lane.b32.xlu1 %v23021_v54, %s27623_s9  ;;  %v23240_v54 = vrot.slane %v5587_v41, %v21612_v56  ;;  %v23262_v25 = vcombine.low %v4712_v0, %v4719_v60 }
 0x29a   : > { %v4835_v45 = vrot.slane %v4821_v52, %v21612_v56  ;;  %v5288_v38 = vsel %vm5276_vm13, %v5257_v44, %v23174_v6  ;;  %v6644_v62 = vrot.slane %v6622_v50, %v21612_v56  ;;  %v6652_v9 = vcombine.low %v6630_v34, %v6637_v27 }
 0x29b   : > { %4855 = vrot.lane.b32.xlu0 %v27653_v29, %s27636_s5  ;;  %v23243_v51 = vrot.slane %v5595_v4, %v21612_v56  ;;  %v23245_v10 = vpop.permute.xlu1 %4501  ;;  %v5596_v23 = vcombine.high %v5594_v20, %v5594_v20  ;;  %v5319_v13 = vsel %vm5307_vm14, %v5288_v38, %v4848_v12  ;;  %v4162_v19 = vrot.slane %v4160_v14, 1 }
 0x29c   : > { %v23273_v53 = vcombine.low %v4828_v8, %v4835_v45  ;;  %v6660_v48 = vrot.slane %v6652_v9, %v21612_v56  ;;  %v5610_v50 = vrot.slane %v5594_v20, %v21612_v56 }
 0x29d   : > { %v23248_v24 = vpop.permute.xlu0 %4387  ;;  %v6623_v57 = vcombine.low %v23240_v54, %v23243_v51  ;;  %4509 = vrot.lane.b32.xlu1 %v27651_v46, %s27624_s0  ;;  %v5624_v43 = vrot.slane %v5596_v23, %v21612_v56  ;;  %v23292_v30 = vor.u32 %v4162_v19, %v4158_v37 }
 0x29e   : > { %v5626_v34 = vcombine.high %v5610_v50, %v5610_v50 }
 0x29f   : > { %4395 = vrot.lane.b32.xlu0 %v27653_v29, %s27629_s6  ;;  %v23267_v1 = vpop.permute.xlu1 %4538  ;;  %v6651_v41 = vrot.slane %v6623_v57, %v21612_v56  ;;  %v5628_v27 = vcombine.high %v5624_v43, %v5624_v43  ;;  %v6670_v60 = vcombine.low %v5610_v50, %v5624_v43  ;;  %v19436_v57 = vcombine.high %v23240_v54, %v23243_v51 }
 0x2a1   : > { %v4885_v39 = vpop.permute.xlu0 %4884  ;;  %4625 = vrot.lane.b32.xlu1 %v27653_v29, %s27637_s2  ;;  %v6653_v6 = vcombine.low %v6644_v62, %v6651_v41  ;;  %v6686_v54 = vrot.slane %v6670_v60, %v21612_v56  ;;  %v4165_v60 = vshrl.u32 %v22495_v31, 16 }
 0x2a2   : > { %v23277_v4 = vsel %vm5338_vm15, %v5319_v13, %v4885_v39  ;;  %v6679_v39 = vrot.slane %v19436_v57, %v21612_v56 }
 0x2a3   : > { %v5636_v47 = vrot.slane %v23277_v4, %v21612_v56  ;;  %4316 = vrot.lane.b32.xlu0 %v3263_v2, %s27645_s7  ;;  %v23284_v12 = vpop.permute.xlu1 %4617  ;;  %v6667_v32 = vrot.slane %v6653_v6, %v21612_v56 }
 0x2a4   : > { %v6701_v43 = vcombine.low %v6679_v39, %v6686_v54  ;;  %v3265_v39 = vshrl.u32 %v22512_v11, 16 }
 0x2a5   : > { %v5644_v7 = vcombine.high %v5636_v47, %v5636_v47  ;;  %v5652_v59 = vrot.slane %v5636_v47, %v21612_v56  ;;  %v23290_v0 = vpop.permute.xlu0 %4424  ;;  %4067 = vrot.lane.b32.xlu1 %v27653_v29, %s27638_s1  ;;  %v6668_v14 = vcombine.low %v6660_v48, %v6667_v32  ;;  %v4167_v32 = vshll.u32 %v22495_v31, 16 }
 0x2a6   : > { %v6709_v50 = vrot.slane %v6701_v43, %v21612_v56 }
 0x2a7   : > { %v23297_v52 = vrot.slane %v5644_v7, %v21612_v56  ;;  %4892 = vrot.lane.b32.xlu0 %v23292_v30, %s27642_s11  ;;  %v6195_v20 = vunpack.i.h.s16 %v5652_v59  ;;  %v19395_v8 = vpack.i.b16 %v5652_v59, %v5628_v27  ;;  %20502 = vmatmul.mubr.bf16.gmra.mrb[12].mxu1 %v6668_v14  ;;  %v23301_v23 = vpop.permute.xlu1 %3294  ;;  %v23305_v44 = vcombine.high %v5652_v59, %v5652_v59 }
 0x2a8   : > { %20505 = vmatprep.mubr.msk.bf16.mxu1 %vm21321_vm0, %v27646_v61 }
 0x2a9   : > { %v6197_v29 = vunpack.i.h.s16 %v23297_v52  ;;  %v23308_v45 = vpop.permute.xlu0 %4194  ;;  %4776 = vrot.lane.b32.xlu1 %v3263_v2, %s27635_s4  ;;  %v19396_v38 = vpack.i.b16 %v23297_v52, %v6195_v20  ;;  %v6671_v41 = vcombine.low %v5626_v34, %v19395_v8  ;;  %v4169_v20 = vrot.slane %v4167_v32, 1  ;;  %v27654_v8 = vld [vmem:[#allocation8_spill] sm:$0xff] }
 0x2aa   : > { %v4918_v57 = vsel %vm4904_vm1, %v27654_v8, %v22923_v35 }
 0x2ab   : > { %v19397_v62 = vpack.i.b16 %v23305_v44, %v6197_v29  ;;  %4432 = vrot.lane.b32.xlu0 %v23292_v30, %s27623_s9  ;;  %v23318_v51 = vpop.permute.xlu1 %4059  ;;  %v6693_v37 = vrot.slane %v6671_v41, %v21612_v56  ;;  %v23352_v29 = vor.u32 %v4169_v20, %v4165_v60  ;;  %v4949_v41 = vsel %vm4935_vm2, %v4918_v57, %v22884_v36 }
 0x2ac   : > { %v4980_v35 = vsel %vm4966_vm3, %v4949_v41, %v23019_v33  ;;  %v6199_v41 = vunpack.i.h.s16 %v23305_v44 }
 0x2ad   : > { %v23320_v9 = vpop.permute.xlu0 %4503  ;;  %v6672_v13 = vcombine.low %v19396_v38, %v19397_v62  ;;  %4546 = vrot.lane.b32.xlu1 %v3263_v2, %s27644_s30  ;;  %v3267_v38 = vshll.u32 %v22512_v11, 16  ;;  %v5629_v62 = vcombine.high %v23277_v4, %v23277_v4  ;;  %v5011_v4 = vsel %vm4997_vm4, %v4980_v35, %v23109_v40 }
 0x2ae   : > { %v5042_v36 = vsel %vm5028_vm5, %v5011_v4, %v23217_v16 }
 0x2af   : > { %4627 = vrot.lane.b32.xlu0 %v22495_v31, %s27637_s2  ;;  %v6700_v19 = vrot.slane %v6672_v13, %v21612_v56  ;;  %v4655_v6 = vpop.permute.xlu1 %4654  ;;  %v5073_v40 = vsel %vm5059_vm6, %v5042_v36, %v23055_v55 }
 0x2b1   : > { %v23328_v47 = vpop.permute.xlu0 %4619  ;;  %v6702_v48 = vcombine.low %v6693_v37, %v6700_v19  ;;  %3302 = vrot.lane.b32.xlu1 %v3263_v2, %s27641_s28  ;;  %v3269_v37 = vrot.slane %v3267_v38, 1  ;;  %v5643_v19 = vrot.slane %v5629_v62, %v21612_v56  ;;  %v27655_v38 = vld [vmem:[#allocation9_spill] sm:$0xff] }
 0x2b3   : > { %4069 = vrot.lane.b32.xlu0 %v22495_v31, %s27638_s1  ;;  %v6716_v7 = vrot.slane %v6702_v48, %v21612_v56  ;;  %v4734_v59 = vpop.permute.xlu1 %4733  ;;  %v23381_v48 = vor.u32 %v3269_v37, %v3265_v39  ;;  %v5645_v32 = vcombine.high %v5643_v19, %v5643_v19  ;;  %v5659_v55 = vrot.slane %v5643_v19, %v21612_v56 }
 0x2b5   : > { %v23336_v27 = vpop.permute.xlu0 %4061  ;;  %v6717_v14 = vcombine.low %v6709_v50, %v6716_v7  ;;  %4662 = vrot.lane.b32.xlu1 %v23292_v30, %s27643_s10  ;;  %v5673_v7 = vrot.slane %v5645_v32, %v21612_v56  ;;  %v6203_v35 = vunpack.i.h.s16 %v5659_v55 }
 0x2b7   : > { %20506 = vmatmul.mubr.bf16.gmra.mrb[16].mxu1 %v6717_v14  ;;  %4511 = vrot.lane.b32.xlu0 %v22512_v11, %s27624_s0  ;;  %v23343_v2 = vpop.permute.xlu1 %4273  ;;  %v5676_v14 = vcombine.high %v23297_v52, %v23297_v52  ;;  %v6205_v52 = vunpack.i.h.s16 %v5673_v7  ;;  %v5677_v32 = vcombine.high %v5673_v7, %v5673_v7 }
 0x2b8   : > { %20509 = vmatprep.mubr.msk.bf16.mxu1 %vm21321_vm0, %v27646_v61 }
 0x2b9   : > { %v23350_v34 = vpop.permute.xlu0 %4540  ;;  %4857 = vrot.lane.b32.xlu1 %v22495_v31, %s27636_s5  ;;  %v6201_v8 = vunpack.i.h.s16 %v5676_v14  ;;  %v19398_v44 = vpack.i.b16 %v5676_v14, %v6199_v41 }
 0x2bb   : > { %4664 = vrot.lane.b32.xlu0 %v23352_v29, %s27643_s10  ;;  %v4850_v54 = vpop.permute.xlu1 %4849  ;;  %v19399_v19 = vpack.i.b16 %v5659_v55, %v6201_v8 }
 0x2bd   : > { %v23365_v13 = vpop.permute.xlu0 %4656  ;;  %4202 = vrot.lane.b32.xlu1 %v23292_v30, %s27628_s8  ;;  %v5104_v30 = vsel %vm5090_vm7, %v5073_v40, %v23167_v18  ;;  %v6718_v14 = vcombine.low %v19398_v44, %v19399_v19 }
 0x2bf   : > { %4204 = vrot.lane.b32.xlu0 %v23352_v29, %s27628_s8  ;;  %v23377_v33 = vpop.permute.xlu1 %4389  ;;  %v6728_v41 = vrot.slane %v6718_v14, %v21612_v56 }
 0x2c1   : > { %v23379_v43 = vpop.permute.xlu0 %4196  ;;  %4397 = vrot.lane.b32.xlu1 %v22495_v31, %s27629_s6  ;;  %v5135_v31 = vsel %vm5121_vm8, %v5104_v30, %v23245_v10  ;;  %v4920_v10 = vsel %vm4904_vm1, %v27655_v38, %v23116_v49 }
 0x2c2   : > { %v5166_v18 = vsel %vm5152_vm9, %v5135_v31, %v23267_v1  ;;  %v5675_v1 = vcombine.high %v5659_v55, %v5659_v55  ;;  %v4951_v49 = vsel %vm4935_vm2, %v4920_v10, %v22949_v3  ;;  %v3274_v55 = vshll.u32 %v22642_v21, 16 }
 0x2c3   : > { %4548 = vrot.lane.b32.xlu0 %v23381_v48, %s27644_s30  ;;  %v4771_v16 = vpop.permute.xlu1 %4770  ;;  %v5197_v57 = vsel %vm5183_vm10, %v5166_v18, %v23284_v12  ;;  %v4982_v18 = vsel %vm4966_vm3, %v4951_v49, %v23030_v63  ;;  %v3272_v10 = vshrl.u32 %v22642_v21, 16 }
 0x2c4   : > { %v5228_v62 = vsel %vm5214_vm11, %v5197_v57, %v4655_v6  ;;  %v19401_v36 = vpack.i.b16 %v5675_v1, %v6205_v52  ;;  %v19400_v6 = vpack.i.b16 %v5673_v7, %v6203_v35  ;;  %v5013_v57 = vsel %vm4997_vm4, %v4982_v18, %v23145_v22 }
 0x2c5   : > { %v23391_v50 = vpop.permute.xlu0 %4735  ;;  %4741 = vrot.lane.b32.xlu1 %v22512_v11, %s27630_s29  ;;  %v5259_v39 = vsel %vm5245_vm12, %v5228_v62, %v4734_v59  ;;  %v3276_v62 = vrot.slane %v3274_v55, 1 }
 0x2c6   : > { %v5290_v12 = vsel %vm5276_vm13, %v5259_v39, %v4771_v16  ;;  %v6207_v16 = vunpack.i.h.s16 %v5675_v1  ;;  %v6719_v8 = vcombine.low %v19400_v6, %v19401_v36  ;;  %v5044_v39 = vsel %vm5028_vm5, %v5013_v57, %v23222_v5 }
 0x2c7   : > { %4743 = vrot.lane.b32.xlu0 %v22642_v21, %s27630_s29  ;;  %v23403_v60 = vpop.permute.xlu1 %3296  ;;  %v5321_v59 = vsel %vm5307_vm14, %v5290_v12, %v4850_v54  ;;  %v5075_v12 = vsel %vm5059_vm6, %v5044_v39, %v23248_v24  ;;  %v23470_v6 = vor.u32 %v3276_v62, %v3272_v10  ;;  %v4174_v5 = vshll.u32 %v22744_v15, 16 }
 0x2c8   : > { %v19402_v38 = vpack.i.b16 %v5677_v32, %v6207_v16  ;;  %v6735_v35 = vrot.slane %v6719_v8, %v21612_v56  ;;  %v5106_v49 = vsel %vm5090_vm7, %v5075_v12, %v23290_v0 }
 0x2c9   : > { %v23407_v20 = vpop.permute.xlu0 %4851  ;;  %4281 = vrot.lane.b32.xlu1 %v22512_v11, %s27632_s3 }
 0x2ca   : > { %v6750_v24 = vcombine.low %v6728_v41, %v6735_v35 }
 0x2cb   : > { %3304 = vrot.lane.b32.xlu0 %v23381_v48, %s27641_s28  ;;  %v23421_v37 = vpop.permute.xlu1 %4310 }
 0x2cc   : > { %v6758_v8 = vrot.slane %v6750_v24, %v21612_v56 }
 0x2cd   : > { %v23424_v4 = vpop.permute.xlu0 %4275  ;;  %4894 = vrot.lane.b32.xlu1 %v23352_v29, %s27642_s11 }
 0x2cf   : > { %4283 = vrot.lane.b32.xlu0 %v22642_v21, %s27632_s3  ;;  %v4887_v40 = vpop.permute.xlu1 %4886 }
 0x2d0   : > { %v5352_v30 = vsel %vm5338_vm15, %v5321_v59, %v4887_v40  ;;  %v5137_v59 = vsel %vm5121_vm8, %v5106_v49, %v23320_v9 }
 0x2d1   : > { %v23434_v31 = vpop.permute.xlu0 %4391  ;;  %v5685_v3 = vrot.slane %v5352_v30, %v21612_v56  ;;  %4434 = vrot.lane.b32.xlu1 %v23352_v29, %s27623_s9  ;;  %v5168_v40 = vsel %vm5152_vm9, %v5137_v59, %v23350_v34  ;;  %v5678_v32 = vcombine.high %v5352_v30, %v5352_v30 }
 0x2d2   : > { %v5199_v14 = vsel %vm5183_vm10, %v5168_v40, %v23328_v47 }
 0x2d3   : > { %4859 = vrot.lane.b32.xlu0 %v22744_v15, %s27636_s5  ;;  %v5693_v54 = vcombine.high %v5685_v3, %v5685_v3  ;;  %v5701_v7 = vrot.slane %v5685_v3, %v21612_v56  ;;  %v23445_v52 = vpop.permute.xlu1 %4426  ;;  %v4172_v3 = vshrl.u32 %v22744_v15, 16  ;;  %v5230_v34 = vsel %vm5214_vm11, %v5199_v14, %v23365_v13 }
 0x2d4   : > { %v5692_v30 = vrot.slane %v5678_v32, %v21612_v56  ;;  %v4404_v14 = vshrl.u32 %v22935_v26, 16 }
 0x2d5   : > { %v4773_v63 = vpop.permute.xlu0 %4772  ;;  %v23451_v29 = vrot.slane %v5693_v54, %v21612_v56  ;;  %v5723_v1 = vcombine.high %v5701_v7, %v5701_v7  ;;  %4778 = vrot.lane.b32.xlu1 %v23381_v48, %s27635_s4  ;;  %v6720_v22 = vcombine.low %v19402_v38, %v5701_v7  ;;  %v5261_v7 = vsel %vm5245_vm12, %v5230_v34, %v23391_v50 }
 0x2d6   : > { %v5292_v47 = vsel %vm5276_vm13, %v5261_v7, %v4773_v63  ;;  %v5694_v62 = vcombine.high %v5692_v30, %v5692_v30  ;;  %v4290_v34 = vshll.u32 %v22782_v42, 16 }
 0x2d7   : > { %4399 = vrot.lane.b32.xlu0 %v22744_v15, %s27629_s6  ;;  %v6721_v19 = vcombine.low %v23451_v29, %v5723_v1  ;;  %v23464_v36 = vpop.permute.xlu1 %4505  ;;  %v6742_v16 = vrot.slane %v6720_v22, %v21612_v56  ;;  %v5708_v1 = vrot.slane %v5692_v30, %v21612_v56  ;;  %v5323_v41 = vsel %vm5307_vm14, %v5292_v47, %v23407_v20 }
 0x2d8   : > { %v5725_v39 = vcombine.high %v23451_v29, %v23451_v29  ;;  %v5722_v12 = vrot.slane %v5694_v62, %v21612_v56  ;;  %v4406_v29 = vshll.u32 %v22935_v26, 16 }
 0x2d9   : > { %v23468_v44 = vpop.permute.xlu0 %4312  ;;  %4318 = vrot.lane.b32.xlu1 %v23381_v48, %s27645_s7  ;;  %v6749_v0 = vrot.slane %v6721_v19, %v21612_v56  ;;  %v4176_v48 = vrot.slane %v4174_v5, 1  ;;  %v5724_v19 = vcombine.high %v5708_v1, %v5708_v1 }
 0x2da   : > { %v6767_v24 = vcombine.low %v5725_v39, %v5708_v1  ;;  %v4408_v47 = vrot.slane %v4406_v29, 1  ;;  %v27656_v29 = vld [vmem:[#allocation10_spill] sm:$0xff] }
 0x2db   : > { %4780 = vrot.lane.b32.xlu0 %v23470_v6, %s27635_s4  ;;  %v23483_v55 = vpop.permute.xlu1 %4621  ;;  %v6751_v9 = vcombine.low %v6742_v16, %v6749_v0  ;;  %v23506_v13 = vor.u32 %v4176_v48, %v4172_v3  ;;  %v6768_v16 = vcombine.low %v5722_v12, %v5724_v19 }
 0x2dc   : > { %v23558_v19 = vor.u32 %v4408_v47, %v4404_v14 }
 0x2dd   : > { %v23485_v18 = vpop.permute.xlu0 %4428  ;;  %4513 = vrot.lane.b32.xlu1 %v22642_v21, %s27624_s0  ;;  %v6765_v54 = vrot.slane %v6751_v9, %v21612_v56 }
 0x2df   : > { %4320 = vrot.lane.b32.xlu0 %v23470_v6, %s27645_s7  ;;  %v23501_v57 = vpop.permute.xlu1 %4063  ;;  %v6766_v10 = vcombine.low %v6758_v8, %v6765_v54 }
 0x2e1   : > { %v23504_v38 = vpop.permute.xlu0 %3298  ;;  %4629 = vrot.lane.b32.xlu1 %v22744_v15, %s27637_s2  ;;  %20510 = vmatmul.mubr.bf16.gmra.mrb[20].mxu1 %v6766_v10  ;;  %v6777_v10 = vrot.slane %v6767_v24, %v21612_v56  ;;  %v4922_v24 = vsel %vm4904_vm1, %v27656_v29, %v23301_v23 }
 0x2e2   : > { %20513 = vmatprep.mubr.msk.bf16.mxu1 %vm21321_vm0, %v27646_v61 }
 0x2e3   : > { %4896 = vrot.lane.b32.xlu0 %v23506_v13, %s27642_s11  ;;  %v4889_v50 = vpop.permute.xlu1 %4888 }
 0x2e4   : > { %v5354_v63 = vsel %vm5338_vm15, %v5323_v41, %v4889_v50  ;;  %v6784_v41 = vrot.slane %v6768_v16, %v21612_v56 }
 0x2e5   : > { %v23518_v35 = vpop.permute.xlu0 %4507  ;;  %v5734_v22 = vrot.slane %v5354_v63, %v21612_v56  ;;  %4071 = vrot.lane.b32.xlu1 %v22744_v15, %s27638_s1  ;;  %v5726_v15 = vcombine.high %v5722_v12, %v5722_v12  ;;  %v5727_v39 = vcombine.high %v5354_v63, %v5354_v63 }
 0x2e7   : > { %4436 = vrot.lane.b32.xlu0 %v23506_v13, %s27623_s9  ;;  %v5742_v20 = vcombine.high %v5734_v22, %v5734_v22  ;;  %v5750_v49 = vrot.slane %v5734_v22, %v21612_v56  ;;  %v23529_v5 = vpop.permute.xlu1 %4542  ;;  %v5741_v16 = vrot.slane %v5727_v39, %v21612_v56 }
 0x2e9   : > { %v23531_v59 = vpop.permute.xlu0 %4623  ;;  %v5764_v40 = vrot.slane %v5742_v20, %v21612_v56  ;;  %v5772_v32 = vcombine.high %v5750_v49, %v5750_v49  ;;  %4550 = vrot.lane.b32.xlu1 %v23470_v6, %s27644_s30  ;;  %v6225_v0 = vunpack.i.h.s16 %v5750_v49  ;;  %v19403_v8 = vpack.i.b16 %v5750_v49, %v5726_v15 }
 0x2ea   : > { %v4292_v20 = vrot.slane %v4290_v34, 1  ;;  %v4953_v15 = vsel %vm4935_vm2, %v4922_v24, %v23318_v51  ;;  %v5757_v47 = vrot.slane %v5741_v16, %v21612_v56 }
 0x2eb   : > { %4631 = vrot.lane.b32.xlu0 %v22935_v26, %s27637_s2  ;;  %v23539_v9 = vcombine.high %v5764_v40, %v5764_v40  ;;  %v6227_v3 = vunpack.i.h.s16 %v5764_v40  ;;  %v23541_v48 = vpop.permute.xlu1 %4658  ;;  %v6229_v30 = vunpack.i.h.s16 %v5772_v32  ;;  %v19404_v54 = vpack.i.b16 %v5764_v40, %v6225_v0 }
 0x2ec   : > { %v4984_v23 = vsel %vm4966_vm3, %v4953_v15, %v23308_v45  ;;  %v6233_v15 = vunpack.i.h.s16 %v5757_v47 }
 0x2ed   : > { %v23545_v7 = vpop.permute.xlu0 %4065  ;;  %3306 = vrot.lane.b32.xlu1 %v23470_v6, %s27641_s28  ;;  %v19405_v62 = vpack.i.b16 %v5772_v32, %v6227_v3  ;;  %v19406_v1 = vpack.i.b16 %v23539_v9, %v6229_v30  ;;  %v6769_v50 = vcombine.low %v19403_v8, %v19404_v54  ;;  %v4288_v6 = vshrl.u32 %v22782_v42, 16  ;;  %s27664_s28 = sld [smem:[#allocation23_spill]] }
 0x2ee   : > { %v6799_v32 = vcombine.low %v6777_v10, %v6784_v41  ;;  %v5015_v8 = vsel %vm4997_vm4, %v4984_v23, %v23343_v2  ;;  %v5743_v54 = vcombine.high %v5741_v16, %v5741_v16  ;;  %v5773_v41 = vcombine.high %v5757_v47, %v5757_v47 }
 0x2ef   : > { %4515 = vrot.lane.b32.xlu0 %v22782_v42, %s27624_s0  ;;  %v23554_v22 = vpop.permute.xlu1 %4198  ;;  %v6770_v49 = vcombine.low %v19405_v62, %v19406_v1  ;;  %v6791_v63 = vrot.slane %v6769_v50, %v21612_v56  ;;  %v23575_v14 = vor.u32 %v4292_v20, %v4288_v6  ;;  %v5046_v62 = vsel %vm5028_vm5, %v5015_v8, %v23421_v37 }
 0x2f0   : > { %v6807_v30 = vrot.slane %v6799_v32, %v21612_v56  ;;  %v5077_v45 = vsel %vm5059_vm6, %v5046_v62, %v23377_v33  ;;  %v5771_v2 = vrot.slane %v5743_v54, %v21612_v56  ;;  %v6231_v29 = vunpack.i.h.s16 %v23539_v9 }
 0x2f1   : > { %v23556_v12 = vpop.permute.xlu0 %4544  ;;  %4666 = vrot.lane.b32.xlu1 %v23506_v13, %s27643_s10  ;;  %v6798_v40 = vrot.slane %v6770_v49, %v21612_v56  ;;  %v5108_v37 = vsel %vm5090_vm7, %v5077_v45, %v23445_v52  ;;  %v6237_v24 = vunpack.i.h.s16 %v5773_v41 }
 0x2f2   : > { %v5139_v20 = vsel %vm5121_vm8, %v5108_v37, %v23464_v36  ;;  %v5775_v49 = vcombine.high %v5771_v2, %v5771_v2  ;;  %v6235_v52 = vunpack.i.h.s16 %v5771_v2  ;;  %v4520_v36 = vshrl.u32 %v23147_v58, 16 }
 0x2f3   : > { %4668 = vrot.lane.b32.xlu0 %v23558_v19, %s27643_s10  ;;  %v4738_v0 = vpop.permute.xlu1 %4737  ;;  %v6800_v34 = vcombine.low %v6791_v63, %v6798_v40  ;;  %v5170_v33 = vsel %vm5152_vm9, %v5139_v20, %v23529_v5  ;;  %v19407_v9 = vpack.i.b16 %v5757_v47, %v6231_v29  ;;  %v19408_v62 = vpack.i.b16 %v5771_v2, %v6233_v15 }
 0x2f4   : > { %v5201_v16 = vsel %vm5183_vm10, %v5170_v33, %v23483_v55 }
 0x2f5   : > { %v23573_v3 = vpop.permute.xlu0 %4660  ;;  %4861 = vrot.lane.b32.xlu1 %v22935_v26, %s27636_s5  ;;  %v6814_v51 = vrot.slane %v6800_v34, %v21612_v56  ;;  %v5232_v5 = vsel %vm5214_vm11, %v5201_v16, %v23541_v48  ;;  %v19409_v34 = vpack.i.b16 %v5773_v41, %v6235_v52  ;;  %v4924_v48 = vsel %vm4904_vm1, %v22183_v28, %v23403_v60 }
 0x2f6   : > { %v5263_v23 = vsel %vm5245_vm12, %v5232_v5, %v4738_v0  ;;  %v6816_v45 = vcombine.low %v19407_v9, %v19408_v62 }
 0x2f7   : > { %4552 = vrot.lane.b32.xlu0 %v23575_v14, %s27644_s30  ;;  %v4854_v10 = vpop.permute.xlu1 %4853  ;;  %v6815_v50 = vcombine.low %v6807_v30, %v6814_v51  ;;  %v19410_v51 = vpack.i.b16 %v5775_v49, %v6237_v24  ;;  %v4636_v49 = vshrl.u32 %v23197_v17, 16 }
 0x2f9   : > { %v4891_v1 = vpop.permute.xlu0 %4890  ;;  %4206 = vrot.lane.b32.xlu1 %v23506_v13, %s27628_s8  ;;  %20514 = vmatmul.mubr.bf16.gmra.mrb[24].mxu1 %v6815_v50  ;;  %v4522_v13 = vshll.u32 %v23147_v58, 16  ;;  %v6817_v41 = vcombine.low %v19409_v34, %v19410_v51  ;;  %s27663_s8 = sld [smem:[#allocation22_spill]] }
 0x2fa   : > { %20517 = vmatprep.mubr.msk.bf16.mxu1 %vm21321_vm0, %v27646_v61 }
 0x2fb   : > { %4438 = vrot.lane.b32.xlu0 %v23558_v19, %s27623_s9  ;;  %v23597_v39 = vpop.permute.xlu1 %4277  ;;  %v4524_v32 = vrot.slane %v4522_v13, 1  ;;  %v6826_v13 = vrot.slane %v6816_v45, %v21612_v56  ;;  %v6833_v20 = vrot.slane %v6817_v41, %v21612_v56  ;;  %s27660_s9 = sld [smem:[#allocation20_spill]] }
 0x2fd   : > { %v23603_v6 = vpop.permute.xlu0 %3300  ;;  %4745 = vrot.lane.b32.xlu1 %v22782_v42, %s27630_s29  ;;  %v4525_v55 = vor.u32 %v4524_v32, %v4520_v36  ;;  %v6848_v15 = vcombine.low %v6826_v13, %v6833_v20 }
 0x2ff   : > { %4747 = vrot.lane.b32.xlu0 %v23147_v58, %s27630_s29  ;;  %v23615_v63 = vpop.permute.xlu1 %4393  ;;  %v6856_v51 = vrot.slane %v6848_v15, %v21612_v56 }
 0x301   : > { %v23617_v40 = vpop.permute.xlu0 %4200  ;;  %4285 = vrot.lane.b32.xlu1 %v22782_v42, %s27632_s3 }
 0x303   : > { %4322 = vrot.lane.b32.xlu0 %v23575_v14, %s27645_s7  ;;  %v4775_v30 = vpop.permute.xlu1 %4774 }
 0x304   : > { %v5294_v8 = vsel %vm5276_vm13, %v5263_v23, %v4775_v30 }
 0x305   : > { %v23630_v54 = vpop.permute.xlu0 %4739  ;;  %v5325_v42 = vsel %vm5307_vm14, %v5294_v8, %v4854_v10  ;;  %4898 = vrot.lane.b32.xlu1 %v23558_v19, %s27642_s11  ;;  %v4638_v10 = vshll.u32 %v23197_v17, 16  ;;  %v4955_v19 = vsel %vm4935_vm2, %v4924_v48, %v23336_v27 }
 0x306   : > { %v5356_v47 = vsel %vm5338_vm15, %v5325_v42, %v4891_v1  ;;  %v4986_v27 = vsel %vm4966_vm3, %v4955_v19, %v23379_v43  ;;  %v4870_v42 = vshll.u32 %v23273_v53, 16 }
 0x307   : > { %4784 = vrot.lane.b32.xlu0 %v4525_v55, %s27635_s4  ;;  %v5783_v0 = vrot.slane %v5356_v47, %v21612_v56  ;;  %v23641_v50 = vpop.permute.xlu1 %4314  ;;  %v5017_v24 = vsel %vm4997_vm4, %v4986_v27, %v23424_v4  ;;  %v5776_v4 = vcombine.high %v5356_v47, %v5356_v47 }
 0x308   : > { %v5048_v16 = vsel %vm5028_vm5, %v5017_v24, %v23468_v44 }
 0x309   : > { %v23643_v2 = vpop.permute.xlu0 %4279  ;;  %v5791_v37 = vcombine.high %v5783_v0, %v5783_v0  ;;  %4782 = vrot.lane.b32.xlu1 %v23575_v14, %s27635_s4  ;;  %v5799_v28 = vrot.slane %v5783_v0, %v21612_v56  ;;  %v4640_v14 = vrot.slane %v4638_v10, 1  ;;  %v5079_v23 = vsel %vm5059_vm6, %v5048_v16, %v23434_v31 }
 0x30a   : > { %v5110_v8 = vsel %vm5090_vm7, %v5079_v23, %v23485_v18  ;;  %v5790_v18 = vrot.slane %v5776_v4, %v21612_v56 }
 0x30b   : > { %4863 = vrot.lane.b32.xlu0 %v23197_v17, %s27636_s5  ;;  %v5813_v60 = vrot.slane %v5791_v37, %v21612_v56  ;;  %v23654_v1 = vpop.permute.xlu1 %4430  ;;  %v4641_v9 = vor.u32 %v4640_v14, %v4636_v49  ;;  %v5141_v48 = vsel %vm5121_vm8, %v5110_v8, %v23518_v35  ;;  %v27657_v14 = vmov 0  }
 0x30c   : > { %v5172_v0 = vsel %vm5152_vm9, %v5141_v48, %v23556_v12  ;;  %v5792_v20 = vcombine.high %v5790_v18, %v5790_v18  ;;  %v5806_v16 = vrot.slane %v5790_v18, %v21612_v56 }
 0x30d   : > { %v4856_v33 = vpop.permute.xlu0 %4855  ;;  %v6818_v29 = vcombine.low %v5799_v28, %v5813_v60  ;;  %v19437_v52 = vcombine.high %v5799_v28, %v5813_v60  ;;  %4401 = vrot.lane.b32.xlu1 %v22935_v26, %s27629_s6  ;;  %v4754_v26 = vshll.u32 %v23262_v25, 16  ;;  %v4868_v60 = vshrl.u32 %v23273_v53, 16 }
 0x30e   : > { %v5203_v12 = vsel %vm5183_vm10, %v5172_v0, %v23531_v59 }
 0x30f   : > { %4554 = vrot.lane.b32.xlu0 %v4525_v55, %s27644_s30  ;;  %v23666_v36 = vpop.permute.xlu1 %4509  ;;  %v6840_v32 = vrot.slane %v6818_v29, %v21612_v56  ;;  %v6847_v43 = vrot.slane %v19437_v52, %v21612_v56  ;;  %v4756_v62 = vrot.slane %v4754_v26, 1  ;;  %v5234_v13 = vsel %vm5214_vm11, %v5203_v12, %v23573_v3  ;;  %s27671_s30 = sld [smem:[#allocation28_spill]] }
 0x310   : > { %v5265_v27 = vsel %vm5245_vm12, %v5234_v13, %v23630_v54  ;;  %v5820_v3 = vrot.slane %v5792_v20, %v21612_v56 }
 0x311   : > { %v23672_v5 = vpop.permute.xlu0 %4395  ;;  %4517 = vrot.lane.b32.xlu1 %v23147_v58, %s27624_s0  ;;  %v6849_v34 = vcombine.low %v6840_v32, %v6847_v43  ;;  %v4752_v58 = vshrl.u32 %v23262_v25, 16 }
 0x312   : > { %v5824_v26 = vcombine.high %v5820_v3, %v5820_v3 }
 0x313   : > { %4900 = vrot.lane.b32.xlu0 %v4641_v9, %s27642_s11  ;;  %v23680_v30 = vpop.permute.xlu1 %4625  ;;  %v6863_v44 = vrot.slane %v6849_v34, %v21612_v56  ;;  %v4757_v28 = vor.u32 %v4756_v62, %v4752_v58  ;;  %v5822_v58 = vcombine.high %v5806_v16, %v5806_v16 }
 0x314   : > { %v7270_v31 = vpop.f32.mrb[0].mxu1 }
 0x315   : > { %v23686_v55 = vpop.permute.xlu0 %4316  ;;  %4633 = vrot.lane.b32.xlu1 %v23197_v17, %s27637_s2  ;;  %v6864_v47 = vcombine.low %v6856_v51, %v6863_v44  ;;  %v20491_v45 = vpop.f32.mrb[1].mxu1  ;;  %v4872_v17 = vrot.slane %v4870_v42, 1 }
 0x316   : > { %v7273_v41 = vpop.f32.mrb[2].mxu1 }
 0x317   : > { %4670 = vrot.lane.b32.xlu0 %v4641_v9, %s27643_s10  ;;  %20518 = vmatmul.mubr.bf16.gmra.mrb[28].mxu1 %v6864_v47  ;;  %v23698_v10 = vpop.permute.xlu1 %4067  ;;  %v7396_v19 = vpack.c.bf16 %v7273_v41, %v7270_v31  ;;  %v20492_v37 = vpop.f32.mrb[3].mxu1  ;;  %v4873_v59 = vor.u32 %v4872_v17, %v4868_v60  ;;  %v6865_v47 = vcombine.low %v5806_v16, %v5820_v3  ;;  %s27662_s10 = sld [smem:[#allocation21_spill]] }
 0x318   : > { %20521 = vmatprep.mubr.msk.bf16.mxu1 %vm21321_vm0, %v27646_v61 }
 0x319   : > { %v4893_v35 = vpop.permute.xlu0 %4892  ;;  %4749 = vrot.lane.b32.xlu1 %v23262_v25, %s27630_s29  ;;  %7472 = vmatpush1.bf16.msra.mxu1 %v7396_v19  ;;  %v6875_v20 = vrot.slane %v6865_v47, %v21612_v56  ;;  %v27659_v47 = vld [vmem:[#allocation12_spill] sm:$0xff] }
 0x31a   : > { %7473 = vmatprep.subr.bf16.mxu1 %v27657_v14 }
 0x31b   : > { %4786 = vrot.lane.b32.xlu0 %v4757_v28, %s27635_s4  ;;  %v4777_v49 = vpop.permute.xlu1 %4776 }
 0x31c   : > { %v5296_v29 = vsel %vm5276_vm13, %v5265_v27, %v4777_v49 }
 0x31d   : > { %v23714_v52 = vpop.permute.xlu0 %4432  ;;  %v5327_v25 = vsel %vm5307_vm14, %v5296_v29, %v4856_v33  ;;  %4865 = vrot.lane.b32.xlu1 %v23273_v53, %s27636_s5 }
 0x31e   : > { %v5358_v24 = vsel %vm5338_vm15, %v5327_v25, %v4893_v35 }
 0x31f   : > { %4902 = vrot.lane.b32.xlu0 %v4873_v59, %s27642_s11  ;;  %v5825_v54 = vcombine.high %v5358_v24, %v5358_v24  ;;  %v5832_v32 = vrot.slane %v5358_v24, %v21612_v56  ;;  %v23723_v43 = vpop.permute.xlu1 %4546  ;;  %s27665_s11 = sld [smem:[#allocation24_spill]] }
 0x321   : > { %v23725_v15 = vpop.permute.xlu0 %4627  ;;  %v5840_v9 = vcombine.high %v5832_v32, %v5832_v32  ;;  %v5848_v33 = vrot.slane %v5832_v32, %v21612_v56  ;;  %v23730_v53 = vrot.slane %v5825_v54, %v21612_v56 }
 0x323   : > { %v5862_v34 = vrot.slane %v5840_v9, %v21612_v56  ;;  %v5870_v4 = vcombine.high %v5848_v33, %v5848_v33  ;;  %v23733_v23 = vpop.permute.xlu1 %3302  ;;  %v6255_v51 = vunpack.i.h.s16 %v5848_v33  ;;  %v19411_v44 = vpack.i.b16 %v5848_v33, %v5824_v26  ;;  %v27658_v26 = vld [vmem:[#allocation11_spill] sm:$0xff] }
 0x324   : > { %v23739_v48 = vrot.slane %v23730_v53, %v21612_v56 }
 0x325   : > { %v23735_v8 = vpop.permute.xlu0 %4069  ;;  %v5872_v62 = vcombine.high %v5862_v34, %v5862_v34  ;;  %v6257_v42 = vunpack.i.h.s16 %v5862_v34  ;;  %v6259_v31 = vunpack.i.h.s16 %v5870_v4  ;;  %v19412_v45 = vpack.i.b16 %v5862_v34, %v6255_v51 }
 0x326   : > { %v6866_v19 = vcombine.low %v5822_v58, %v19411_v44  ;;  %v4926_v34 = vsel %vm4904_vm1, %v27658_v26, %v23504_v38  ;;  %v4928_v38 = vsel %vm4904_vm1, %v27659_v47, %v23603_v6 }
 0x327   : > { %v23741_v0 = vpop.permute.xlu1 %4662  ;;  %v6261_v18 = vunpack.i.h.s16 %v5872_v62  ;;  %v19413_v41 = vpack.i.b16 %v5870_v4, %v6257_v42  ;;  %v19414_v35 = vpack.i.b16 %v5872_v62, %v6259_v31  ;;  %v4957_v44 = vsel %vm4935_vm2, %v4926_v34, %v23501_v57 }
 0x328   : > { %v6882_v17 = vrot.slane %v6866_v19, %v21612_v56  ;;  %v4988_v62 = vsel %vm4966_vm3, %v4957_v44, %v23554_v22  ;;  %v4959_v22 = vsel %vm4935_vm2, %v4928_v38, %v23545_v7 }
 0x329   : > { %v4512_v37 = vpop.permute.xlu0 %4511  ;;  %v19415_v28 = vpack.i.b16 %v23739_v48, %v6261_v18  ;;  %v6867_v60 = vcombine.low %v19412_v45, %v19413_v41  ;;  %v5019_v31 = vsel %vm4997_vm4, %v4988_v62, %v23597_v39  ;;  %v4990_v39 = vsel %vm4966_vm3, %v4959_v22, %v23617_v40 }
 0x32a   : > { %v6897_v59 = vcombine.low %v6875_v20, %v6882_v17  ;;  %v5050_v41 = vsel %vm5028_vm5, %v5019_v31, %v23641_v50  ;;  %v5021_v50 = vsel %vm4997_vm4, %v4990_v39, %v23643_v2 }
 0x32b   : > { %v4858_v12 = vpop.permute.xlu1 %4857  ;;  %v6868_v13 = vcombine.low %v19414_v35, %v19415_v28  ;;  %v6889_v49 = vrot.slane %v6867_v60, %v21612_v56  ;;  %v5081_v6 = vsel %vm5059_vm6, %v5050_v41, %v23615_v63  ;;  %v5841_v28 = vcombine.high %v23730_v53, %v23730_v53 }
 0x32c   : > { %v6905_v54 = vrot.slane %v6897_v59, %v21612_v56  ;;  %v5112_v17 = vsel %vm5090_vm7, %v5081_v6, %v23654_v1  ;;  %v5052_v63 = vsel %vm5028_vm5, %v5021_v50, %v23686_v55  ;;  %v5871_v55 = vcombine.high %v23739_v48, %v23739_v48 }
 0x32d   : > { %v23746_v27 = vpop.permute.xlu0 %4664  ;;  %v6896_v29 = vrot.slane %v6868_v13, %v21612_v56  ;;  %v5143_v40 = vsel %vm5121_vm8, %v5112_v17, %v23666_v36  ;;  %v5869_v13 = vrot.slane %v5841_v28, %v21612_v56  ;;  %v5083_v2 = vsel %vm5059_vm6, %v5052_v63, %v23672_v5 }
 0x32e   : > { %v5174_v53 = vsel %vm5152_vm9, %v5143_v40, %v23723_v43  ;;  %v5114_v1 = vsel %vm5090_vm7, %v5083_v2, %v23714_v52  ;;  %v6267_v34 = vunpack.i.h.s16 %v5871_v55 }
 0x32f   : > { %v23750_v25 = vpop.permute.xlu1 %4202  ;;  %v6898_v3 = vcombine.low %v6889_v49, %v6896_v29  ;;  %v5205_v36 = vsel %vm5183_vm10, %v5174_v53, %v23680_v30  ;;  %v5145_v29 = vsel %vm5121_vm8, %v5114_v1, %v4512_v37 }
 0x330   : > { %v5236_v43 = vsel %vm5214_vm11, %v5205_v36, %v23741_v0  ;;  %v5873_v0 = vcombine.high %v5869_v13, %v5869_v13 }
 0x331   : > { %v23752_v24 = vpop.permute.xlu0 %4204  ;;  %v6912_v32 = vrot.slane %v6898_v3, %v21612_v56 }
 0x332   : > { %v19418_v47 = vpack.i.b16 %v5873_v0, %v6267_v34 }
 0x333   : > { %v23756_v16 = vpop.permute.xlu1 %4397  ;;  %v6913_v9 = vcombine.low %v6905_v54, %v6912_v32  ;;  %v6265_v54 = vunpack.i.h.s16 %v5869_v13  ;;  %v6263_v32 = vunpack.i.h.s16 %v23739_v48 }
 0x335   : > { %v4549_v33 = vpop.permute.xlu0 %4548  ;;  %20522 = vmatmul.mubr.bf16.gmra.mrb[32].mxu1 %v6913_v9  ;;  %v19416_v62 = vpack.i.b16 %v5869_v13, %v6263_v32 }
 0x336   : > { %20525 = vmatprep.mubr.msk.bf16.mxu1 %vm21321_vm0, %v27646_v61  ;;  %v5176_v59 = vsel %vm5152_vm9, %v5145_v29, %v4549_v33 }
 0x337   : > { %v4742_v4 = vpop.permute.xlu1 %4741  ;;  %v5207_v26 = vsel %vm5183_vm10, %v5176_v59, %v23725_v15 }
 0x338   : > { %v7278_v58 = vpop.f32.mrb[4].mxu1  ;;  %v5267_v3 = vsel %vm5245_vm12, %v5236_v43, %v4742_v4 }
 0x339   : > { %v23763_v51 = vpop.permute.xlu0 %4743  ;;  %v20495_v42 = vpop.f32.mrb[5].mxu1 }
 0x33a   : > { %v7281_v18 = vpop.f32.mrb[6].mxu1  ;;  %v5238_v42 = vsel %vm5214_vm11, %v5207_v26, %v23746_v27 }
 0x33b   : > { %v23774_v45 = vpop.permute.xlu1 %4281  ;;  %v7397_v19 = vpack.c.bf16 %v7281_v18, %v7278_v58  ;;  %v20496_v57 = vpop.f32.mrb[7].mxu1  ;;  %v19417_v58 = vpack.i.b16 %v5871_v55, %v6265_v54 }
 0x33c   : > { %v5269_v57 = vsel %vm5245_vm12, %v5238_v42, %v23763_v51 }
 0x33d   : > { %v23778_v35 = vpop.permute.xlu0 %3304  ;;  %7474 = vmatpush1.bf16.msra.mxu1 %v7397_v19  ;;  %v6914_v19 = vcombine.low %v19416_v62, %v19417_v58 }
 0x33e   : > { %7475 = vmatprep.subr.bf16.mxu1 %v27657_v14 }
 0x33f   : > { %v4895_v60 = vpop.permute.xlu1 %4894  ;;  %v6924_v53 = vrot.slane %v6914_v19, %v21612_v56 }
 0x341   : > { %v23793_v7 = vpop.permute.xlu0 %4283 }
 0x343   : > { %v23802_v20 = vpop.permute.xlu1 %4434 }
 0x345   : > { %v4860_v49 = vpop.permute.xlu0 %4859 }
 0x347   : > { %v4779_v5 = vpop.permute.xlu1 %4778 }
 0x348   : > { %v5298_v52 = vsel %vm5276_vm13, %v5267_v3, %v4779_v5 }
 0x349   : > { %v23819_v9 = vpop.permute.xlu0 %4399  ;;  %v5329_v30 = vsel %vm5307_vm14, %v5298_v52, %v4858_v12 }
 0x34a   : > { %v5360_v37 = vsel %vm5338_vm15, %v5329_v30, %v4895_v60 }
 0x34b   : > { %v5874_v33 = vcombine.high %v5360_v37, %v5360_v37  ;;  %v5881_v4 = vrot.slane %v5360_v37, %v21612_v56  ;;  %v23826_v44 = vpop.permute.xlu1 %4318 }
 0x34d   : > { %v4781_v48 = vpop.permute.xlu0 %4780  ;;  %v5888_v12 = vrot.slane %v5874_v33, %v21612_v56  ;;  %v5889_v31 = vcombine.high %v5881_v4, %v5881_v4  ;;  %v5897_v15 = vrot.slane %v5881_v4, %v21612_v56 }
 0x34e   : > { %v5300_v28 = vsel %vm5276_vm13, %v5269_v57, %v4781_v48 }
 0x34f   : > { %v5911_v38 = vrot.slane %v5889_v31, %v21612_v56  ;;  %v5919_v18 = vcombine.high %v5897_v15, %v5897_v15  ;;  %v23833_v41 = vpop.permute.xlu1 %4513  ;;  %v6915_v22 = vcombine.low %v19418_v47, %v5897_v15  ;;  %v5904_v27 = vrot.slane %v5888_v12, %v21612_v56 }
 0x350   : > { %v5890_v17 = vcombine.high %v5888_v12, %v5888_v12  ;;  %v5331_v13 = vsel %vm5307_vm14, %v5300_v28, %v4860_v49 }
 0x351   : > { %v23837_v39 = vpop.permute.xlu0 %4320  ;;  %v5921_v6 = vcombine.high %v5911_v38, %v5911_v38  ;;  %v6916_v60 = vcombine.low %v5911_v38, %v5919_v18  ;;  %v6931_v50 = vrot.slane %v6915_v22, %v21612_v56  ;;  %v5920_v0 = vcombine.high %v5904_v27, %v5904_v27 }
 0x352   : > { %v5918_v59 = vrot.slane %v5890_v17, %v21612_v56 }
 0x353   : > { %v23842_v40 = vpop.permute.xlu1 %4629  ;;  %v6917_v63 = vcombine.low %v5921_v6, %v5904_v27  ;;  %v6938_v1 = vrot.slane %v6916_v60, %v21612_v56  ;;  %v6946_v55 = vcombine.low %v6924_v53, %v6931_v50 }
 0x354   : > { %v5922_v12 = vcombine.high %v5918_v59, %v5918_v59  ;;  %v6963_v17 = vcombine.low %v5918_v59, %v5920_v0 }
 0x355   : > { %v4897_v51 = vpop.permute.xlu0 %4896  ;;  %v6945_v36 = vrot.slane %v6917_v63, %v21612_v56  ;;  %v6954_v37 = vrot.slane %v6946_v55, %v21612_v56 }
 0x356   : > { %v5362_v2 = vsel %vm5338_vm15, %v5331_v13, %v4897_v51  ;;  %v7286_v3 = vpop.f32.mrb[8].mxu1  ;;  %v6973_v59 = vrot.slane %v6963_v17, %v21612_v56 }
 0x357   : > { %v5923_v43 = vcombine.high %v5362_v2, %v5362_v2  ;;  %v5930_v29 = vrot.slane %v5362_v2, %v21612_v56  ;;  %v23851_v5 = vpop.permute.xlu1 %4071  ;;  %v6947_v54 = vcombine.low %v6938_v1, %v6945_v36  ;;  %v20499_v30 = vpop.f32.mrb[9].mxu1 }
 0x358   : > { %v7289_v34 = vpop.f32.mrb[10].mxu1  ;;  %v4930_v30 = vsel %vm4904_vm1, %v27651_v46, %v23733_v23  ;;  %v4932_v46 = vsel %vm4904_vm1, %v22512_v11, %v23778_v35 }
 0x359   : > { %v5937_v32 = vrot.slane %v5923_v43, %v21612_v56  ;;  %v5938_v49 = vcombine.high %v5930_v29, %v5930_v29  ;;  %v5946_v52 = vrot.slane %v5930_v29, %v21612_v56  ;;  %v23855_v26 = vpop.permute.xlu0 %4436  ;;  %v6961_v33 = vrot.slane %v6947_v54, %v21612_v56  ;;  %v20500_v42 = vpop.f32.mrb[11].mxu1 }
 0x35a   : > { %v7398_v15 = vpack.c.bf16 %v7289_v34, %v7286_v3 }
 0x35b   : > { %v5939_v4 = vcombine.high %v5937_v32, %v5937_v32  ;;  %v23860_v58 = vrot.slane %v5937_v32, %v21612_v56  ;;  %v5960_v48 = vrot.slane %v5938_v49, %v21612_v56  ;;  %v5968_v62 = vcombine.high %v5946_v52, %v5946_v52  ;;  %v4551_v47 = vpop.permute.xlu1 %4550 }
 0x35c   : > { %v6285_v31 = vunpack.i.h.s16 %v5946_v52  ;;  %v6962_v38 = vcombine.low %v6954_v37, %v6961_v33  ;;  %v19419_v28 = vpack.i.b16 %v5946_v52, %v5922_v12  ;;  %7476 = vmatpush1.bf16.msra.mxu1 %v7398_v15 }
 0x35d   : > { %v23864_v18 = vrot.slane %v5939_v4, %v21612_v56  ;;  %v5970_v19 = vcombine.high %v5960_v48, %v5960_v48  ;;  %v6287_v57 = vunpack.i.h.s16 %v5960_v48  ;;  %v23866_v22 = vpop.permute.xlu0 %4631  ;;  %v6289_v27 = vunpack.i.h.s16 %v5968_v62  ;;  %7477 = vmatprep.subr.bf16.mxu1 %v27657_v14 }
 0x35e   : > { %v6293_v6 = vunpack.i.h.s16 %v23860_v58  ;;  %v19420_v60 = vpack.i.b16 %v5960_v48, %v6285_v31  ;;  %20526 = vmatmul.mubr.bf16.gmra.mrb[36].mxu1 %v6962_v38  ;;  %v4961_v48 = vsel %vm4935_vm2, %v4930_v30, %v23698_v10  ;;  %v4963_v10 = vsel %vm4935_vm2, %v4932_v46, %v23735_v8 }
 0x35f   : > { %v6291_v50 = vunpack.i.h.s16 %v5970_v19  ;;  %v19421_v63 = vpack.i.b16 %v5968_v62, %v6287_v57  ;;  %v19422_v53 = vpack.i.b16 %v5970_v19, %v6289_v27  ;;  %v3307_v51 = vpop.permute.xlu1 %3306  ;;  %20529 = vmatprep.mubr.msk.bf16.mxu1 %vm21321_vm0, %v27646_v61  ;;  %v4992_v62 = vsel %vm4966_vm3, %v4961_v48, %v23750_v25 }
 0x360   : > { %v6964_v13 = vcombine.low %v19419_v28, %v19420_v60  ;;  %v19424_v1 = vpack.i.b16 %v23864_v18, %v6293_v6  ;;  %v5023_v12 = vsel %vm4997_vm4, %v4992_v62, %v23774_v45  ;;  %v4994_v11 = vsel %vm4966_vm3, %v4963_v10, %v23752_v24 }
 0x361   : > { %v19423_v2 = vpack.i.b16 %v23860_v58, %v6291_v50  ;;  %v4516_v36 = vpop.permute.xlu0 %4515  ;;  %v6965_v55 = vcombine.low %v19421_v63, %v19422_v53  ;;  %v5054_v31 = vsel %vm5028_vm5, %v5023_v12, %v23826_v44  ;;  %v5025_v19 = vsel %vm4997_vm4, %v4994_v11, %v23793_v7 }
 0x362   : > { %v6980_v43 = vrot.slane %v6964_v13, %v21612_v56  ;;  %v5085_v25 = vsel %vm5059_vm6, %v5054_v31, %v23756_v16  ;;  %v5056_v8 = vsel %vm5028_vm5, %v5025_v19, %v23837_v39  ;;  %v4934_v6 = vsel %vm4904_vm1, %v22642_v21, %v3307_v51 }
 0x363   : > { %v6966_v29 = vcombine.low %v19423_v2, %v19424_v1  ;;  %v4667_v3 = vpop.permute.xlu1 %4666  ;;  %v6987_v32 = vrot.slane %v6965_v55, %v21612_v56  ;;  %v5116_v35 = vsel %vm5090_vm7, %v5085_v25, %v23802_v20  ;;  %v5969_v20 = vcombine.high %v23860_v58, %v23860_v58 }
 0x364   : > { %v6995_v52 = vcombine.low %v6973_v59, %v6980_v43  ;;  %v5147_v27 = vsel %vm5121_vm8, %v5116_v35, %v23833_v41  ;;  %v5087_v28 = vsel %vm5059_vm6, %v5056_v8, %v23819_v9  ;;  %v4965_v21 = vsel %vm4935_vm2, %v4934_v6, %v23851_v5 }
 0x365   : > { %v23876_v54 = vpop.permute.xlu0 %4668  ;;  %v6994_v49 = vrot.slane %v6966_v29, %v21612_v56  ;;  %v5178_v16 = vsel %vm5152_vm9, %v5147_v27, %v4551_v47  ;;  %v5118_v60 = vsel %vm5090_vm7, %v5087_v28, %v23855_v26  ;;  %v5971_v58 = vcombine.high %v23864_v18, %v23864_v18 }
 0x366   : > { %v7003_v33 = vrot.slane %v6995_v52, %v21612_v56  ;;  %v5209_v41 = vsel %vm5183_vm10, %v5178_v16, %v23842_v40  ;;  %v5149_v39 = vsel %vm5121_vm8, %v5118_v60, %v4516_v36  ;;  %v6295_v40 = vunpack.i.h.s16 %v23864_v18 }
 0x367   : > { %v6996_v0 = vcombine.low %v6987_v32, %v6994_v49  ;;  %v4862_v34 = vpop.permute.xlu1 %4861  ;;  %v5240_v47 = vsel %vm5214_vm11, %v5209_v41, %v4667_v3  ;;  %v6297_v13 = vunpack.i.h.s16 %v5969_v20  ;;  %vm7452_vm1 = vcmask 793600  }
 0x368   : > { %v19425_v52 = vpack.i.b16 %v5969_v20, %v6295_v40 }
 0x369   : > { %v4553_v37 = vpop.permute.xlu0 %4552  ;;  %v7010_v4 = vrot.slane %v6996_v0, %v21612_v56 }
 0x36a   : > { %v5180_v9 = vsel %vm5152_vm9, %v5149_v39, %v4553_v37 }
 0x36b   : > { %v7011_v42 = vcombine.low %v7003_v33, %v7010_v4  ;;  %v4207_v23 = vpop.permute.xlu1 %4206  ;;  %v5211_v29 = vsel %vm5183_vm10, %v5180_v9, %v23866_v22 }
 0x36c   : > { %v4996_v17 = vsel %vm4966_vm3, %v4965_v21, %v4207_v23  ;;  %v5242_v37 = vsel %vm5214_vm11, %v5211_v29, %v23876_v54  ;;  %vm7465_vm3 = vcmask 1040384  }
 0x36d   : > { %20530 = vmatmul.mubr.bf16.gmra.mrb[40].mxu1 %v7011_v42  ;;  %v4439_v15 = vpop.permute.xlu0 %4438 }
 0x36e   : > { %20533 = vmatprep.mubr.msk.bf16.mxu1 %vm21321_vm0, %v27646_v61 }
 0x36f   : > { %v4746_v45 = vpop.permute.xlu1 %4745 }
 0x370   : > { %v5271_v26 = vsel %vm5245_vm12, %v5240_v47, %v4746_v45 }
 0x371   : > { %v4748_v38 = vpop.permute.xlu0 %4747 }
 0x372   : > { %v5273_v4 = vsel %vm5245_vm12, %v5242_v37, %v4748_v38 }
 0x373   : > { %v4286_v44 = vpop.permute.xlu1 %4285 }
 0x374   : > { %v5027_v51 = vsel %vm4997_vm4, %v4996_v17, %v4286_v44 }
 0x375   : > { %v4323_v57 = vpop.permute.xlu0 %4322 }
 0x376   : > { %v5058_v3 = vsel %vm5028_vm5, %v5027_v51, %v4323_v57 }
 0x377   : > { %v4899_v24 = vpop.permute.xlu1 %4898 }
 0x379   : > { %v4785_v7 = vpop.permute.xlu0 %4784 }
 0x37a   : > { %v7294_v50 = vpop.f32.mrb[12].mxu1  ;;  %v5304_v23 = vsel %vm5276_vm13, %v5273_v4, %v4785_v7 }
 0x37b   : > { %v20503_v63 = vpop.f32.mrb[13].mxu1  ;;  %v4783_v53 = vpop.permute.xlu1 %4782 }
 0x37c   : > { %v5302_v2 = vsel %vm5276_vm13, %v5271_v26, %v4783_v53  ;;  %v7297_v1 = vpop.f32.mrb[14].mxu1 }
 0x37d   : > { %v4864_v5 = vpop.permute.xlu0 %4863  ;;  %v5333_v36 = vsel %vm5307_vm14, %v5302_v2, %v4862_v34  ;;  %v7399_v55 = vpack.c.bf16 %v7297_v1, %v7294_v50  ;;  %v20504_v43 = vpop.f32.mrb[15].mxu1  ;;  %v19426_v34 = vpack.i.b16 %v5971_v58, %v6297_v13 }
 0x37e   : > { %v5364_v59 = vsel %vm5338_vm15, %v5333_v36, %v4899_v24  ;;  %v5335_v11 = vsel %vm5307_vm14, %v5304_v23, %v4864_v5 }
 0x37f   : > { %v5972_v32 = vcombine.high %v5364_v59, %v5364_v59  ;;  %v5979_v18 = vrot.slane %v5364_v59, %v21612_v56  ;;  %7478 = vmatpush1.bf16.msra.mxu1 %v7399_v55  ;;  %v4402_v49 = vpop.permute.xlu1 %4401  ;;  %v7012_v25 = vcombine.low %v19425_v52, %v19426_v34 }
 0x380   : > { %v5089_v30 = vsel %vm5059_vm6, %v5058_v3, %v4402_v49  ;;  %7479 = vmatprep.subr.bf16.mxu1 %v27657_v14 }
 0x381   : > { %v4555_v0 = vpop.permute.xlu0 %4554  ;;  %v5986_v22 = vrot.slane %v5972_v32, %v21612_v56  ;;  %v5987_v33 = vcombine.high %v5979_v18, %v5979_v18  ;;  %v5995_v62 = vrot.slane %v5979_v18, %v21612_v56  ;;  %v5120_v46 = vsel %vm5090_vm7, %v5089_v30, %v4439_v15 }
 0x382   : > { %v7022_v20 = vrot.slane %v7012_v25, %v21612_v56 }
 0x383   : > { %v5988_v48 = vcombine.high %v5986_v22, %v5986_v22  ;;  %v6009_v42 = vrot.slane %v5987_v33, %v21612_v56  ;;  %v4518_v12 = vpop.permute.xlu1 %4517  ;;  %v6002_v54 = vrot.slane %v5986_v22, %v21612_v56 }
 0x384   : > { %v5151_v31 = vsel %vm5121_vm8, %v5120_v46, %v4518_v12 }
 0x385   : > { %v4901_v10 = vpop.permute.xlu0 %4900  ;;  %v7013_v45 = vcombine.low %v5995_v62, %v6009_v42  ;;  %v6016_v38 = vrot.slane %v5988_v48, %v21612_v56  ;;  %v19438_v35 = vcombine.high %v5995_v62, %v6009_v42  ;;  %v5182_v27 = vsel %vm5152_vm9, %v5151_v31, %v4555_v0 }
 0x386   : > { %v5366_v44 = vsel %vm5338_vm15, %v5335_v11, %v4901_v10  ;;  %v6018_v47 = vcombine.high %v6002_v54, %v6002_v54 }
 0x387   : > { %v6021_v19 = vcombine.high %v5366_v44, %v5366_v44  ;;  %v6028_v57 = vrot.slane %v5366_v44, %v21612_v56  ;;  %v4634_v15 = vpop.permute.xlu1 %4633  ;;  %v7015_v8 = vcombine.low %v6002_v54, %v6016_v38  ;;  %v6020_v16 = vcombine.high %v6016_v38, %v6016_v38 }
 0x388   : > { %v5213_v6 = vsel %vm5183_vm10, %v5182_v27, %v4634_v15  ;;  %v7029_v39 = vrot.slane %v7013_v45, %v21612_v56  ;;  %v7036_v58 = vrot.slane %v19438_v35, %v21612_v56 }
 0x389   : > { %v4671_v24 = vpop.permute.xlu0 %4670  ;;  %v6035_v28 = vrot.slane %v6021_v19, %v21612_v56  ;;  %v6036_v7 = vcombine.high %v6028_v57, %v6028_v57  ;;  %v6044_v60 = vrot.slane %v6028_v57, %v21612_v56  ;;  %v7043_v9 = vrot.slane %v7015_v8, %v21612_v56 }
 0x38a   : > { %v7302_v41 = vpop.f32.mrb[16].mxu1  ;;  %v5244_v21 = vsel %vm5214_vm11, %v5213_v6, %v4671_v24  ;;  %v7044_v3 = vcombine.low %v7022_v20, %v7029_v39 }
 0x38b   : > { %v20507_v50 = vpop.f32.mrb[17].mxu1  ;;  %v6037_v17 = vcombine.high %v6035_v28, %v6035_v28  ;;  %v6051_v26 = vrot.slane %v6035_v28, %v21612_v56  ;;  %v6058_v63 = vrot.slane %v6036_v7, %v21612_v56  ;;  %v6066_v53 = vcombine.high %v6044_v60, %v6044_v60  ;;  %v4750_v13 = vpop.permute.xlu1 %4749 }
 0x38c   : > { %v7305_v40 = vpop.f32.mrb[18].mxu1  ;;  %v6315_v51 = vunpack.i.h.s16 %v6044_v60  ;;  %v19427_v2 = vpack.i.b16 %v6044_v60, %v6020_v16  ;;  %v5275_v36 = vsel %vm5245_vm12, %v5244_v21, %v4750_v13  ;;  %v7045_v45 = vcombine.low %v7036_v58, %v7043_v9 }
 0x38d   : > { %v7400_v5 = vpack.c.bf16 %v7305_v40, %v7302_v41  ;;  %v20508_v1 = vpop.f32.mrb[19].mxu1  ;;  %v4787_v55 = vpop.permute.xlu0 %4786  ;;  %v6065_v43 = vrot.slane %v6037_v17, %v21612_v56  ;;  %v6068_v29 = vcombine.high %v6058_v63, %v6058_v63  ;;  %v6317_v59 = vunpack.i.h.s16 %v6058_v63 }
 0x38e   : > { %v6067_v32 = vcombine.high %v6051_v26, %v6051_v26  ;;  %v6319_v18 = vunpack.i.h.s16 %v6066_v53  ;;  %v6323_v49 = vunpack.i.h.s16 %v6051_v26  ;;  %v19428_v52 = vpack.i.b16 %v6058_v63, %v6315_v51 }
 0x38f   : > { %7480 = vmatpush1.bf16.msra.mxu1 %v7400_v5  ;;  %v6321_v30 = vunpack.i.h.s16 %v6068_v29  ;;  %v6325_v0 = vunpack.i.h.s16 %v6065_v43  ;;  %v19429_v34 = vpack.i.b16 %v6066_v53, %v6317_v59  ;;  %v5306_v37 = vsel %vm5276_vm13, %v5275_v36, %v4787_v55  ;;  %v4866_v22 = vpop.permute.xlu1 %4865 }
 0x390   : > { %7481 = vmatprep.subr.bf16.mxu1 %v27657_v14  ;;  %v19430_v33 = vpack.i.b16 %v6068_v29, %v6319_v18  ;;  %v19432_v4 = vpack.i.b16 %v6065_v43, %v6323_v49  ;;  %v7061_v48 = vcombine.low %v6018_v47, %v19427_v2  ;;  %v5337_v62 = vsel %vm5307_vm14, %v5306_v37, %v4866_v22 }
 0x391   : > { %v4903_v42 = vpop.permute.xlu0 %4902  ;;  %v19431_v12 = vpack.i.b16 %v6051_v26, %v6321_v30  ;;  %v19433_v46 = vpack.i.b16 %v6067_v32, %v6325_v0  ;;  %v6069_v23 = vcombine.high %v6065_v43, %v6065_v43  ;;  %v6327_v10 = vunpack.i.h.s16 %v6067_v32 }
 0x392   : > { %v5368_v31 = vsel %vm5338_vm15, %v5337_v62, %v4903_v42  ;;  %v7052_v11 = vrot.slane %v7044_v3, %v21612_v56  ;;  %v7062_v38 = vcombine.low %v19428_v52, %v19429_v34  ;;  %v7059_v27 = vrot.slane %v7045_v45, %v21612_v56  ;;  %v20940_v45 = vld [vmem:[%s27660_s9 + $0x4] ss:$8 sps:$4 sm:$0xff]  }
 0x393   : > { %v6070_v25 = vcombine.high %v5368_v31, %v5368_v31  ;;  %v6077_v54 = vrot.slane %v5368_v31, %v21612_v56  ;;  %v7063_v35 = vcombine.low %v19430_v33, %v19431_v12  ;;  %v7064_v44 = vcombine.low %v19432_v4, %v19433_v46 }
 0x394   : > { %v7071_v8 = vrot.slane %v7061_v48, %v21612_v56  ;;  %v7078_v16 = vrot.slane %v7062_v38, %v21612_v56  ;;  %v19434_v41 = vpack.i.b16 %v6069_v23, %v6327_v10  ;;  %v7060_v39 = vcombine.low %v7052_v11, %v7059_v27 }
 0x395   : > { %v6084_v19 = vrot.slane %v6070_v25, %v21612_v56  ;;  %v6085_v57 = vcombine.high %v6077_v54, %v6077_v54  ;;  %v6093_v15 = vrot.slane %v6077_v54, %v21612_v56  ;;  %v7085_v6 = vrot.slane %v7063_v35, %v21612_v56 }
 0x396   : > { %v7092_v24 = vrot.slane %v7064_v44, %v21612_v56  ;;  %v7093_v47 = vcombine.low %v7071_v8, %v7078_v16  ;;  %20534 = vmatmul.mubr.bf16.gmra.mrb[44].mxu1 %v7060_v39 }
 0x397   : > { %v6086_v20 = vcombine.high %v6084_v19, %v6084_v19  ;;  %v6100_v28 = vrot.slane %v6084_v19, %v21612_v56  ;;  %v6107_v7 = vrot.slane %v6085_v57, %v21612_v56  ;;  %v6115_v60 = vcombine.high %v6093_v15, %v6093_v15  ;;  %20537 = vmatprep.mubr.msk.bf16.mxu1 %vm21321_vm0, %v27646_v61 }
 0x398   : > { %v7094_v21 = vcombine.low %v7085_v6, %v7092_v24  ;;  %v7110_v26 = vcombine.low %v19434_v41, %v6093_v15  ;;  %v7101_v13 = vrot.slane %v7093_v47, %v21612_v56 }
 0x399   : > { %v6114_v50 = vrot.slane %v6086_v20, %v21612_v56  ;;  %v6116_v58 = vcombine.high %v6100_v28, %v6100_v28  ;;  %v6117_v9 = vcombine.high %v6107_v7, %v6107_v7  ;;  %v7111_v17 = vcombine.low %v6107_v7, %v6115_v60 }
 0x39a   : > { %v7108_v63 = vrot.slane %v7094_v21, %v21612_v56  ;;  %v7120_v1 = vrot.slane %v7110_v26, %v21612_v56 }
 0x39b   : > { %v7112_v53 = vcombine.low %v6117_v9, %v6100_v28  ;;  %v7113_v40 = vcombine.low %v6114_v50, %v6116_v58  ;;  %v7127_v51 = vrot.slane %v7111_v17, %v21612_v56  ;;  %v6118_v3 = vcombine.high %v6114_v50, %v6114_v50 }
 0x39c   : > { %v7109_v36 = vcombine.low %v7101_v13, %v7108_v63 }
 0x39d   : > { %v7134_v2 = vrot.slane %v7112_v53, %v21612_v56  ;;  %v7141_v5 = vrot.slane %v7113_v40, %v21612_v56  ;;  %v7142_v43 = vcombine.low %v7120_v1, %v7127_v51  ;;  %v6343_v18 = vunpack.i.l.s16 %v6118_v3  ;;  %v20944_v3 = vld [vmem:[%s27660_s9 + $0x24] ss:$8 sps:$4 sm:$0xff]  }
 0x39e   : > { %20538 = vmatmul.mubr.bf16.gmra.mrb[48].mxu1 %v7109_v36  ;;  %v24016_v51 = vsel %vm7465_vm3, 65535, %v27657_v14 }
 0x39f   : > { %v7143_v55 = vcombine.low %v7134_v2, %v7141_v5  ;;  %20541 = vmatprep.mubr.msk.bf16.mxu1 %vm21321_vm0, %v27646_v61  ;;  %v7150_v59 = vrot.slane %v7142_v43, %v21612_v56  ;;  %v7165_v49 = vrot.slane %v6343_v18, %v21612_v56  ;;  %v20938_v43 = vld [vmem:[%s27660_s9] ss:$8 sps:$4 sm:$0xff]   ;;  %v20947_v18 = vld [vmem:[%s27660_s9 + $0x34] ss:$8 sps:$4 sm:$0xff]  }
 0x3a1   : > { %v7157_v29 = vrot.slane %v7143_v55, %v21612_v56  ;;  %v7172_v52 = vrot.slane %v7165_v49, %v21612_v56  ;;  %v20949_v49 = vld [vmem:[%s27660_s9 + $0x30] ss:$8 sps:$4 sm:$0xff]  }
 0x3a3   : > { %v7158_v32 = vcombine.low %v7150_v59, %v7157_v29  ;;  %v20941_v29 = vld [vmem:[%s27660_s9 + $0x14] ss:$8 sps:$4 sm:$0xff]   ;;  %v20943_v59 = vld [vmem:[%s27660_s9 + $0x10] ss:$8 sps:$4 sm:$0xff]  }
 0x3a6   : > { %20542 = vmatmul.mubr.bf16.gmra.mrb[52].mxu1 %v7158_v32  ;;  %v20946_v32 = vld [vmem:[%s27660_s9 + $0x20] ss:$8 sps:$4 sm:$0xff]   ;;  %s27666_s9 = sld [smem:[#allocation25_spill]] }
 0x3a7   : > { %20545 = vmatprep.mubr.msk.bf16.mxu1 %vm21321_vm0, %v27646_v61 }
 0x3ae   : > { %20546 = vmatmul.mubr.bf16.gmra.mrb[56].mxu1 %v7172_v52  ;;  %v19447_v52 = vld [vmem:[%s27661_s22] ss:$0 sm:$0xff] }
 0x3af   : > { %19456 = vmatprep.mubr.msk.bf16.mxu1 %vm7452_vm1, %v20940_v45 }
 0x3b4   : > { %v7310_v30 = vpop.f32.mrb[20].mxu1 }
 0x3b5   : > { %v20511_v0 = vpop.f32.mrb[21].mxu1 }
 0x3b6   : > { %v7313_v34 = vpop.f32.mrb[22].mxu1 }
 0x3b7   : > { %v7401_v37 = vpack.c.bf16 %v7313_v34, %v7310_v30  ;;  %v20512_v22 = vpop.f32.mrb[23].mxu1 }
 0x3b9   : > { %7482 = vmatpush1.bf16.msra.mxu1 %v7401_v37 }
 0x3ba   : > { %7483 = vmatprep.subr.bf16.mxu1 %v27657_v14 }
 0x3cc   : > { %v7318_v33 = vpop.f32.mrb[24].mxu1 }
 0x3cd   : > { %v20515_v4 = vpop.f32.mrb[25].mxu1 }
 0x3ce   : > { %v7321_v48 = vpop.f32.mrb[26].mxu1 }
 0x3cf   : > { %v7402_v62 = vpack.c.bf16 %v7321_v48, %v7318_v33  ;;  %v20516_v42 = vpop.f32.mrb[27].mxu1 }
 0x3d1   : > { %7484 = vmatpush1.bf16.msra.mxu1 %v7402_v62 }
 0x3d2   : > { %7485 = vmatprep.subr.bf16.mxu1 %v27657_v14 }
 0x3ea   : > { %v7326_v12 = vpop.f32.mrb[28].mxu1 }
 0x3eb   : > { %v20519_v46 = vpop.f32.mrb[29].mxu1 }
 0x3ec   : > { %v7329_v23 = vpop.f32.mrb[30].mxu1 }
 0x3ed   : > { %v7403_v31 = vpack.c.bf16 %v7329_v23, %v7326_v12  ;;  %v20520_v10 = vpop.f32.mrb[31].mxu1 }
 0x3ef   : > { %7486 = vmatpush1.bf16.msra.mxu1 %v7403_v31 }
 0x3f0   : > { %7487 = vmatprep.subr.bf16.mxu1 %v27657_v14 }
 0x408   : > { %v7334_v25 = vpop.f32.mrb[32].mxu1 }
 0x409   : > { %v20523_v54 = vpop.f32.mrb[33].mxu1 }
 0x40a   : > { %v7337_v11 = vpop.f32.mrb[34].mxu1 }
 0x40b   : > { %v7404_v38 = vpack.c.bf16 %v7337_v11, %v7334_v25  ;;  %v20524_v35 = vpop.f32.mrb[35].mxu1 }
 0x40d   : > { %7488 = vmatpush1.bf16.msra.mxu1 %v7404_v38 }
 0x40e   : > { %7489 = vmatprep.subr.bf16.mxu1 %v27657_v14 }
 0x431   : > { %v7342_v44 = vpop.f32.mrb[36].mxu1 }
 0x432   : > { %v20527_v19 = vpop.f32.mrb[37].mxu1 }
 0x433   : > { %v7345_v57 = vpop.f32.mrb[38].mxu1 }
 0x434   : > { %v7405_v15 = vpack.c.bf16 %v7345_v57, %v7342_v44  ;;  %v20528_v27 = vpop.f32.mrb[39].mxu1 }
 0x436   : > { %7490 = vmatpush1.bf16.msra.mxu1 %v7405_v15 }
 0x437   : > { %7491 = vmatprep.subr.bf16.mxu1 %v27657_v14 }
 0x440   : > { %v7350_v8 = vpop.f32.mrb[40].mxu1 }
 0x441   : > { %v20531_v16 = vpop.f32.mrb[41].mxu1 }
 0x442   : > { %v7353_v6 = vpop.f32.mrb[42].mxu1 }
 0x443   : > { %v7406_v24 = vpack.c.bf16 %v7353_v6, %v7350_v8  ;;  %v20532_v20 = vpop.f32.mrb[43].mxu1 }
 0x445   : > { %7492 = vmatpush1.bf16.msra.mxu1 %v7406_v24 }
 0x446   : > { %7493 = vmatprep.subr.bf16.mxu1 %v27657_v14 }
 0x469   : > { %v7358_v28 = vpop.f32.mrb[44].mxu1 }
 0x46a   : > { %v20535_v7 = vpop.f32.mrb[45].mxu1 }
 0x46b   : > { %v7361_v60 = vpop.f32.mrb[46].mxu1 }
 0x46c   : > { %v7407_v41 = vpack.c.bf16 %v7361_v60, %v7358_v28  ;;  %v20536_v39 = vpop.f32.mrb[47].mxu1 }
 0x46e   : > { %7494 = vmatpush1.bf16.msra.mxu1 %v7407_v41 }
 0x46f   : > { %7495 = vmatprep.subr.bf16.mxu1 %v27657_v14 }
 0x471   : > { %v7366_v47 = vpop.f32.mrb[48].mxu1 }
 0x472   : > { %v20539_v21 = vpop.f32.mrb[49].mxu1 }
 0x473   : > { %v7369_v50 = vpop.f32.mrb[50].mxu1 }
 0x474   : > { %v7408_v58 = vpack.c.bf16 %v7369_v50, %v7366_v47  ;;  %v20540_v9 = vpop.f32.mrb[51].mxu1 }
 0x476   : > { %7496 = vmatpush1.bf16.msra.mxu1 %v7408_v58 }
 0x477   : > { %7497 = vmatprep.subr.bf16.mxu1 %v27657_v14 }
 0x479   : > { %v7374_v17 = vpop.f32.mrb[52].mxu1 }
 0x47a   : > { %v20543_v26 = vpop.f32.mrb[53].mxu1 }
 0x47b   : > { %v7377_v63 = vpop.f32.mrb[54].mxu1 }
 0x47c   : > { %v7409_v53 = vpack.c.bf16 %v7377_v63, %v7374_v17  ;;  %v20544_v40 = vpop.f32.mrb[55].mxu1 }
 0x47d   : > { %v20951_v40 = vld [vmem:[%s27662_s10 + $0x8] sm:$0xff]  }
 0x47e   : > { %7498 = vmatpush1.bf16.msra.mxu1 %v7409_v53  ;;  %v20950_v53 = vld [vmem:[%s27662_s10] sm:$0xff]  }
 0x47f   : > { %7499 = vmatprep.subr.bf16.mxu1 %v27657_v14 }
 0x481   : > { %v7382_v13 = vpop.f32.mrb[56].mxu1 }
 0x482   : > { %v7410_v2 = vpack.c.bf16 %v7382_v13, %v7382_v13  ;;  %v20547_v5 = vpop.f32.mrb[57].mxu1  ;;  %v20952_v13 = vld [vmem:[%s27662_s10 + $0x10] sm:$0xff]  }
 0x483   : > { %v7385_v1 = vpop.f32.mrb[58].mxu1  ;;  %v20954_v5 = vld [vmem:[%s27662_s10 + $0x20] sm:$0xff]  }
 0x484   : > { %v7469_v36 = vand.u32 %v24016_v51, %v7410_v2  ;;  %v20548_v55 = vpop.f32.mrb[59].mxu1  ;;  %v20953_v2 = vld [vmem:[%s27662_s10 + $0x18] sm:$0xff]   ;;  %v20955_v1 = vld [vmem:[%s27662_s10 + $0x28] sm:$0xff]  }
 0x485   : > { %v20957_v55 = vld [vmem:[%s27663_s8] sm:$0xff]  }
 0x486   : > { %7500 = vmatpush1.bf16.msra.mxu1 %v7469_v36  ;;  %v20956_v36 = vld [vmem:[%s27662_s10 + $0x30] ss:$0 sps:$4 sm:$0x33]   ;;  %9107 = vmatpush1.bf16.msra.mxu0 %v20957_v55 }
 0x487   : > { %20549 = vmatprep.subr.bf16.mxu1 %v27646_v61  ;;  %9108 = vmatprep.subr.bf16.mxu0 %v27657_v14 }
 0x489   : > { %7504 = vmatmul.mubr.bf16.vlgmr.msra.gmra.mrb[60].mxu1 %v20938_v43  ;;  %v20958_v43 = vld [vmem:[%s27663_s8 + $0x8] sm:$0xff]  }
 0x48a   : > { %19457 = vmatprep.mubr.msk.bf16.mxu1 %vm7452_vm1, %v20941_v29  ;;  %9109 = vmatpush1.bf16.msra.mxu0 %v20958_v43  ;;  %v20959_v29 = vld [vmem:[%s27663_s8 + $0x10] sm:$0xff]  }
 0x48b   : > { %9110 = vmatprep.subr.bf16.mxu0 %v27657_v14 }
 0x48e   : > { %9111 = vmatpush1.bf16.msra.mxu0 %v20959_v29 }
 0x48f   : > { %9112 = vmatprep.subr.bf16.mxu0 %v27657_v14 }
 0x491   : > { %7512 = vmatmul.mubr.bf16.gmra.mrb[64].mxu1 %v20943_v59 }
 0x492   : > { %19458 = vmatprep.mubr.msk.bf16.mxu1 %vm7452_vm1, %v20944_v3 }
 0x499   : > { %7520 = vmatmul.mubr.bf16.gmra.mrb[68].mxu1 %v20946_v32 }
 0x49a   : > { %19459 = vmatprep.mubr.msk.bf16.mxu1 %vm7452_vm1, %v20947_v18 }
 0x4a1   : > { %7528 = vmatmul.mubr.bf16.gmra.mrb[72].mxu1 %v20949_v49 }
 0x4a2   : > { %20557 = vmatprep.mubr.msk.bf16.mxu1 %vm21321_vm0, %v27646_v61 }
 0x55c   : > { %v7505_v30 = vpop.f32.mrb[60].mxu1 }
 0x55d   : > { %v7506_v0 = vadd.f32 %v19447_v52, %v7505_v30  ;;  %v7507_v34 = vpop.f32.mrb[61].mxu1 }
 0x55e   : > { %v7508_v37 = vpop.f32.mrb[62].mxu1 }
 0x55f   : > { %v7544_v22 = vmul.f32 0.2, %v7506_v0  ;;  %v7509_v33 = vadd.f32 %v19447_v52, %v7508_v37  ;;  %v7510_v4 = vpop.f32.mrb[63].mxu1  ;;  %vm7536_vm5 = vcmp.ge.f32.partialorder %v7506_v0, 0.0 }
 0x561   : > { %vm7537_vm7 = vcmp.ge.f32.partialorder %v7509_v33, 0.0  ;;  %v7545_v48 = vmul.f32 0.2, %v7509_v33  ;;  %v7552_v62 = vsel %vm7536_vm5, %v7506_v0, %v7544_v22 }
 0x563   : > { %v7553_v42 = vsel %vm7537_vm7, %v7509_v33, %v7545_v48 }
 0x564   : > { %v24049_v12 = vpack.c.bf16 %v7553_v42, %v7552_v62  ;;  %v7513_v46 = vpop.f32.mrb[64].mxu1 }
 0x565   : > { %v7514_v23 = vadd.f32 %v19447_v52, %v7513_v46  ;;  %v7515_v31 = vpop.f32.mrb[65].mxu1 }
 0x566   : > { %v7516_v10 = vpop.f32.mrb[66].mxu1  ;;  %20550 = vmatpush3.bf16.msra.mxu1 %v24049_v12 }
 0x567   : > { %v7546_v25 = vmul.f32 0.2, %v7514_v23  ;;  %v7517_v54 = vadd.f32 %v19447_v52, %v7516_v10  ;;  %v7518_v45 = vpop.f32.mrb[67].mxu1  ;;  %20551 = vmatprep.subr.bf16.mxu1 %v27646_v61  ;;  %vm7538_vm9 = vcmp.ge.f32.partialorder %v7514_v23, 0.0 }
 0x569   : > { %vm7539_vm11 = vcmp.ge.f32.partialorder %v7517_v54, 0.0  ;;  %v7547_v11 = vmul.f32 0.2, %v7517_v54  ;;  %v7554_v38 = vsel %vm7538_vm9, %v7514_v23, %v7546_v25 }
 0x56b   : > { %v7555_v35 = vsel %vm7539_vm11, %v7517_v54, %v7547_v11 }
 0x56c   : > { %v24053_v44 = vpack.c.bf16 %v7555_v35, %v7554_v38  ;;  %v7521_v19 = vpop.f32.mrb[68].mxu1 }
 0x56d   : > { %v7522_v57 = vadd.f32 %v19447_v52, %v7521_v19  ;;  %v7523_v15 = vpop.f32.mrb[69].mxu1 }
 0x56e   : > { %v7524_v27 = vpop.f32.mrb[70].mxu1  ;;  %20552 = vmatpush3.bf16.msra.mxu1 %v24053_v44 }
 0x56f   : > { %v7548_v8 = vmul.f32 0.2, %v7522_v57  ;;  %v7525_v16 = vadd.f32 %v19447_v52, %v7524_v27  ;;  %v7526_v6 = vpop.f32.mrb[71].mxu1  ;;  %20553 = vmatprep.subr.bf16.mxu1 %v27646_v61  ;;  %vm7540_vm13 = vcmp.ge.f32.partialorder %v7522_v57, 0.0 }
 0x571   : > { %vm7541_vm15 = vcmp.ge.f32.partialorder %v7525_v16, 0.0  ;;  %v7549_v24 = vmul.f32 0.2, %v7525_v16  ;;  %v7556_v20 = vsel %vm7540_vm13, %v7522_v57, %v7548_v8 }
 0x573   : > { %v7557_v28 = vsel %vm7541_vm15, %v7525_v16, %v7549_v24 }
 0x574   : > { %v24057_v7 = vpack.c.bf16 %v7557_v28, %v7556_v20  ;;  %v7529_v60 = vpop.f32.mrb[72].mxu1  ;;  %v20960_v20 = vld [vmem:[%s27663_s8 + $0x18] sm:$0xff]  }
 0x575   : > { %v7530_v41 = vadd.f32 %v19447_v52, %v7529_v60  ;;  %v7531_v39 = vpop.f32.mrb[73].mxu1  ;;  %9113 = vmatpush1.bf16.msra.mxu0 %v20960_v20 }
 0x576   : > { %v7532_v47 = vpop.f32.mrb[74].mxu1  ;;  %20554 = vmatpush3.bf16.msra.mxu1 %v24057_v7  ;;  %9114 = vmatprep.subr.bf16.mxu0 %v27657_v14 }
 0x577   : > { %v7550_v21 = vmul.f32 0.2, %v7530_v41  ;;  %v7533_v50 = vadd.f32 %v19447_v52, %v7532_v47  ;;  %v7534_v58 = vpop.f32.mrb[75].mxu1  ;;  %20555 = vmatprep.subr.bf16.mxu1 %v27646_v61  ;;  %vm7542_vm1 = vcmp.ge.f32.partialorder %v7530_v41, 0.0 }
 0x579   : > { %vm7543_vm3 = vcmp.ge.f32.partialorder %v7533_v50, 0.0  ;;  %v7551_v9 = vmul.f32 0.2, %v7533_v50  ;;  %v7558_v17 = vsel %vm7542_vm1, %v7530_v41, %v7550_v21 }
 0x57b   : > { %v7559_v26 = vsel %vm7543_vm3, %v7533_v50, %v7551_v9 }
 0x57c   : > { %v24061_v63 = vpack.c.bf16 %v7559_v26, %v7558_v17 }
 0x57e   : > { %20556 = vmatpush3.bf16.msra.mxu1 %v24061_v63 }
 0x57f   : > { %20585 = vmatprep.subr.bf16.mxu1 %v27646_v61 }
 0x581   : > { %20558 = vmatmul.mubr.msk.bf16.vlgmr.msra.gmra.mrb[76].mxu1 %vm5121_vm8, %v20950_v53 }
 0x582   : > { %20561 = vmatprep.mubr.msk.bf16.mxu1 %vm21321_vm0, %v27646_v61 }
 0x589   : > { %20562 = vmatmul.mubr.msk.bf16.gmra.mrb[80].mxu1 %vm5121_vm8, %v20951_v40 }
 0x58a   : > { %20565 = vmatprep.mubr.msk.bf16.mxu1 %vm21321_vm0, %v27646_v61 }
 0x591   : > { %20566 = vmatmul.mubr.msk.bf16.gmra.mrb[84].mxu1 %vm5121_vm8, %v20952_v13 }
 0x592   : > { %20569 = vmatprep.mubr.msk.bf16.mxu1 %vm21321_vm0, %v27646_v61 }
 0x599   : > { %20570 = vmatmul.mubr.msk.bf16.gmra.mrb[88].mxu1 %vm5121_vm8, %v20953_v2 }
 0x59a   : > { %20573 = vmatprep.mubr.msk.bf16.mxu1 %vm21321_vm0, %v27646_v61 }
 0x5a1   : > { %20574 = vmatmul.mubr.msk.bf16.gmra.mrb[92].mxu1 %vm5121_vm8, %v20954_v5 }
 0x5a2   : > { %20577 = vmatprep.mubr.msk.bf16.mxu1 %vm21321_vm0, %v27646_v61 }
 0x5a9   : > { %20578 = vmatmul.mubr.msk.bf16.gmra.mrb[96].mxu1 %vm5121_vm8, %v20955_v1 }
 0x5aa   : > { %20581 = vmatprep.mubr.msk.bf16.mxu1 %vm21321_vm0, %v27646_v61 }
 0x5b1   : > { %20582 = vmatmul.mubr.msk.bf16.gmra.mrb[100].mxu1 %vm5121_vm8, %v20956_v36 }
 0x5b2   : > { %20593 = vmatprep.mubr.msk.bf16.mxu1 %vm21321_vm0, %v27646_v61 }
 0x654   : > { %v7665_v59 = vpop.f32.mrb[76].mxu1 }
 0x655   : > { %v20559_v3 = vpop.f32.mrb[77].mxu1 }
 0x656   : > { %v7668_v32 = vpop.f32.mrb[78].mxu1 }
 0x657   : > { %v7719_v18 = vpack.c.bf16 %v7668_v32, %v7665_v59  ;;  %v19474_v49 = vpack.c.bf16 %v7668_v32, %v7668_v32  ;;  %v20560_v52 = vpop.f32.mrb[79].mxu1 }
 0x659   : > { %v7740_v30 = vrot.slane %v7719_v18, %v21612_v56  ;;  %v7747_v0 = vrot.slane %v19474_v49, %v21612_v56 }
 0x65b   : > { %v7748_v34 = vcombine.high %v7740_v30, %v7740_v30  ;;  %v7749_v37 = vcombine.high %v7747_v0, %v7747_v0  ;;  %v7756_v22 = vrot.slane %v7740_v30, %v21612_v56  ;;  %v7763_v33 = vrot.slane %v7747_v0, %v21612_v56 }
 0x65c   : > { %v7673_v4 = vpop.f32.mrb[80].mxu1 }
 0x65d   : > { %v7770_v48 = vrot.slane %v7748_v34, %v21612_v56  ;;  %v7778_v62 = vcombine.high %v7756_v22, %v7756_v22  ;;  %v20563_v42 = vpop.f32.mrb[81].mxu1  ;;  %v7777_v23 = vrot.slane %v7749_v37, %v21612_v56  ;;  %v7779_v31 = vcombine.high %v7763_v33, %v7763_v33 }
 0x65e   : > { %v7676_v46 = vpop.f32.mrb[82].mxu1  ;;  %v8247_v15 = vrot.slane %v7763_v33, %v21612_v56 }
 0x65f   : > { %v8049_v10 = vcombine.low %v7756_v22, %v7770_v48  ;;  %v19480_v25 = vcombine.high %v7756_v22, %v7770_v48  ;;  %v20564_v54 = vpop.f32.mrb[83].mxu1  ;;  %v8433_v45 = vcombine.low %v7770_v48, %v7778_v62  ;;  %v7720_v11 = vpack.c.bf16 %v7676_v46, %v7673_v4 }
 0x660   : > { %v19475_v38 = vpack.c.bf16 %v7676_v46, %v7676_v46  ;;  %v7780_v57 = vcombine.high %v7770_v48, %v7770_v48  ;;  %v8073_v6 = vcombine.low %v7777_v23, %v7779_v31  ;;  %v7781_v28 = vcombine.high %v7777_v23, %v7777_v23 }
 0x661   : > { %v8057_v35 = vrot.slane %v8049_v10, %v21612_v56  ;;  %v8064_v19 = vrot.slane %v19480_v25, %v21612_v56  ;;  %v7789_v27 = vrot.slane %v7720_v11, %v21612_v56  ;;  %v8441_v47 = vrot.slane %v8433_v45, %v21612_v56 }
 0x662   : > { %v7796_v8 = vrot.slane %v19475_v38, %v21612_v56  ;;  %v8434_v24 = vcombine.low %v7780_v57, %v7763_v33  ;;  %v8254_v13 = vrot.slane %v8247_v15, %v21612_v56  ;;  %v19484_v2 = vcombine.high %v7763_v33, %v7777_v23 }
 0x663   : > { %v8065_v16 = vcombine.low %v8057_v35, %v8064_v19  ;;  %v7797_v60 = vcombine.high %v7789_v27, %v7789_v27  ;;  %v7805_v41 = vrot.slane %v7789_v27, %v21612_v56  ;;  %v8081_v43 = vrot.slane %v8073_v6, %v21612_v56 }
 0x664   : > { %v7681_v39 = vpop.f32.mrb[84].mxu1  ;;  %v7798_v21 = vcombine.high %v7796_v8, %v7796_v8  ;;  %v7812_v50 = vrot.slane %v7796_v8, %v21612_v56  ;;  %v8448_v9 = vrot.slane %v8434_v24, %v21612_v56  ;;  %v8465_v37 = vrot.slane %v19484_v2, %v21612_v56 }
 0x665   : > { %v20567_v58 = vpop.f32.mrb[85].mxu1  ;;  %v24138_v17 = vrot.slane %v8065_v16, %v21612_v56  ;;  %v24141_v26 = vrot.slane %v7797_v60, %v21612_v56  ;;  %v8074_v53 = vcombine.low %v7781_v28, %v7805_v41 }
 0x666   : > { %v7684_v40 = vpop.f32.mrb[86].mxu1  ;;  %v8449_v1 = vcombine.low %v8441_v47, %v8448_v9  ;;  %v24150_v59 = vrot.slane %v7798_v21, %v21612_v56  ;;  %v24152_v3 = vcombine.high %v7812_v50, %v7812_v50 }
 0x667   : > { %v7721_v5 = vpack.c.bf16 %v7684_v40, %v7681_v39  ;;  %v20568_v36 = vpop.f32.mrb[87].mxu1  ;;  %v7829_v55 = vcombine.high %v24141_v26, %v24141_v26  ;;  %v8255_v29 = vcombine.low %v24138_v17, %v8254_v13  ;;  %v8458_v32 = vcombine.low %v7805_v41, %v24141_v26 }
 0x668   : > { %v19476_v52 = vpack.c.bf16 %v7684_v40, %v7684_v40  ;;  %v8456_v30 = vrot.slane %v8449_v1, %v21612_v56  ;;  %v8088_v0 = vrot.slane %v8074_v53, %v21612_v56  ;;  %v19481_v33 = vcombine.high %v7805_v41, %v24141_v26 }
 0x669   : > { %v7838_v18 = vrot.slane %v7721_v5, %v21612_v56  ;;  %v8481_v49 = vcombine.low %v7829_v55, %v7812_v50  ;;  %v8472_v22 = vrot.slane %v8458_v32, %v21612_v56  ;;  %v8364_v62 = vshll.u32 %v8255_v29, 16 }
 0x66a   : > { %8625 = vrot.lane.b32.xlu1 %v8456_v30, %s27632_s3  ;;  %v8089_v4 = vcombine.low %v8081_v43, %v8088_v0  ;;  %v8098_v42 = vcombine.low %v7812_v50, %v24150_v59  ;;  %v8482_v25 = vcombine.low %v24150_v59, %v24152_v3  ;;  %v7845_v54 = vrot.slane %v19476_v52, %v21612_v56 }
 0x66b   : > { %v7846_v34 = vcombine.high %v7838_v18, %v7838_v18  ;;  %v24164_v46 = vrot.slane %v7838_v18, %v21612_v56  ;;  %v8473_v31 = vcombine.low %v8465_v37, %v8472_v22  ;;  %v8366_v38 = vrot.slane %v8364_v62, 1 }
 0x66c   : > { %v7689_v48 = vpop.f32.mrb[88].mxu1  ;;  %v24173_v45 = vrot.slane %v8089_v4, %v21612_v56  ;;  %v8362_v15 = vshrl.u32 %v8255_v29, 16  ;;  %v8105_v16 = vrot.slane %v19481_v33, %v21612_v56  ;;  %v8112_v41 = vrot.slane %v8098_v42, %v21612_v56 }
 0x66d   : > { %v24167_v23 = vrot.slane %v7846_v34, %v21612_v56  ;;  %v20571_v10 = vpop.f32.mrb[89].mxu1  ;;  %v8480_v57 = vrot.slane %v8473_v31, %v21612_v56  ;;  %v8489_v39 = vrot.slane %v8481_v49, %v21612_v56  ;;  %v8496_v47 = vrot.slane %v8482_v25, %v21612_v56  ;;  %v20961_v34 = vld [vmem:[%s27663_s8 + $0x20] sm:$0xff]  }
 0x66e   : > { %v7692_v11 = vpop.f32.mrb[90].mxu1  ;;  %8665 = vrot.lane.b32.xlu1 %v24173_v45, %s27629_s6  ;;  %v8367_v28 = vor.u32 %v8366_v38, %v8362_v15  ;;  %v7847_v21 = vcombine.high %v7845_v54, %v7845_v54  ;;  %v8113_v53 = vcombine.low %v8105_v16, %v8112_v41  ;;  %v8262_v2 = vrot.slane %v24141_v26, %v21612_v56 }
 0x66f   : > { %v8505_v35 = vcombine.low %v24164_v46, %v24167_v23  ;;  %v19485_v19 = vcombine.high %v24164_v46, %v24167_v23  ;;  %v20572_v27 = vpop.f32.mrb[91].mxu1  ;;  %v7722_v8 = vpack.c.bf16 %v7692_v11, %v7689_v48  ;;  %8627 = vrot.lane.b32.xlu0 %v8480_v57, %s27632_s3  ;;  %v19477_v20 = vpack.c.bf16 %v7692_v11, %v7692_v11 }
 0x670   : > { %v8497_v40 = vcombine.low %v8489_v39, %v8496_v47  ;;  %v7830_v5 = vcombine.high %v24150_v59, %v24150_v59  ;;  %v8277_v1 = vrot.slane %v24152_v3, %v21612_v56  ;;  %v24202_v29 = vrot.slane %v7845_v54, %v21612_v56  ;;  %9115 = vmatpush1.bf16.msra.mxu0 %v20961_v34 }
 0x671   : > { %v8513_v6 = vrot.slane %v8505_v35, %v21612_v56  ;;  %v8520_v24 = vrot.slane %v19485_v19, %v21612_v56  ;;  %v7887_v60 = vrot.slane %v7722_v8, %v21612_v56  ;;  %v7894_v50 = vrot.slane %v19477_v20, %v21612_v56  ;;  %9116 = vmatprep.subr.bf16.mxu0 %v27657_v14 }
 0x672   : > { %8417 = vrot.lane.b32.xlu1 %v8367_v28, %s27638_s1  ;;  %v7876_v32 = vcombine.high %v24164_v46, %v24164_v46  ;;  %v24210_v26 = vrot.slane %v8113_v53, %v21612_v56  ;;  %v24213_v3 = vrot.slane %v7847_v21, %v21612_v56  ;;  %v8504_v52 = vrot.slane %v8497_v40, %v21612_v56 }
 0x673   : > { %v8521_v58 = vcombine.low %v8513_v6, %v8520_v24  ;;  %v7895_v9 = vcombine.high %v7887_v60, %v7887_v60  ;;  %v7896_v36 = vcombine.high %v7894_v50, %v7894_v50  ;;  %v24216_v49 = vrot.slane %v7894_v50, %v21612_v56 }
 0x674   : > { %v7697_v13 = vpop.f32.mrb[92].mxu1  ;;  %8667 = vrot.lane.b32.xlu0 %v24210_v26, %s27629_s6  ;;  %v8269_v33 = vrot.slane %v8262_v2, %v21612_v56  ;;  %v24232_v4 = vrot.slane %v7887_v60, %v21612_v56  ;;  %v8284_v42 = vrot.slane %v8277_v1, %v21612_v56  ;;  %v7877_v11 = vcombine.high %v24202_v29, %v24202_v29 }
 0x675   : > { %v20575_v55 = vpop.f32.mrb[93].mxu1  ;;  %v24199_v43 = vrot.slane %v8521_v58, %v21612_v56  ;;  %v24207_v18 = vrot.slane %v7895_v9, %v21612_v56  ;;  %v24223_v37 = vrot.slane %v7896_v36, %v21612_v56  ;;  %v8145_v38 = vcombine.low %v24202_v29, %v24213_v3 }
 0x676   : > { %v7700_v59 = vpop.f32.mrb[94].mxu1  ;;  %8743 = vrot.lane.b32.xlu1 %v8480_v57, %s27637_s2  ;;  %v8270_v54 = vcombine.low %v24173_v45, %v8269_v33  ;;  %v8285_v35 = vcombine.low %v24210_v26, %v8284_v42  ;;  %v8121_v19 = vcombine.low %v7830_v5, %v24164_v46  ;;  %v7925_v57 = vcombine.high %v24232_v4, %v24232_v4 }
 0x677   : > { %v7723_v30 = vpack.c.bf16 %v7700_v59, %v7697_v13  ;;  %v20576_v0 = vpop.f32.mrb[95].mxu1  ;;  %v7927_v22 = vcombine.high %v24207_v18, %v24207_v18  ;;  %v19492_v48 = vcombine.low %v8504_v52, %v24199_v43  ;;  %v19478_v62 = vpack.c.bf16 %v7700_v59, %v7700_v59 }
 0x678   : > { %v7928_v10 = vcombine.high %v24223_v37, %v24223_v37  ;;  %8745 = vrot.lane.b32.xlu0 %v8504_v52, %s27637_s2  ;;  %v7878_v16 = vcombine.high %v24167_v23, %v24167_v23  ;;  %v8371_v6 = vshll.u32 %v8270_v54, 16  ;;  %v8378_v24 = vshll.u32 %v8285_v35, 16 }
 0x679   : > { %v24237_v31 = vcombine.low %v7927_v22, %v24216_v49  ;;  %v7936_v25 = vrot.slane %v7723_v30, %v21612_v56  ;;  %19508 = vmatprep.mubr.msk.bf16.mxu0 %vm4935_vm2, %v19492_v48  ;;  %v8122_v46 = vcombine.low %v24167_v23, %v7876_v32  ;;  %v19482_v28 = vcombine.high %v24202_v29, %v24213_v3  ;;  %v20962_v29 = vld [vmem:[%s27663_s8 + $0x28] sm:$0xff]  }
 0x67a   : > { %8783 = vrot.lane.b32.xlu1 %v24210_v26, %s27630_s29  ;;  %v24265_v60 = vrot.slane %v19478_v62, %v21612_v56  ;;  %v19486_v21 = vcombine.high %v24232_v4, %v24207_v18  ;;  %v8554_v50 = vcombine.low %v24216_v49, %v24223_v37  ;;  %v8369_v23 = vshrl.u32 %v8270_v54, 16  ;;  %9117 = vmatpush1.bf16.msra.mxu0 %v20962_v29 }
 0x67b   : > { %v7944_v15 = vcombine.high %v7936_v25, %v7936_v25  ;;  %v7952_v27 = vrot.slane %v7936_v25, %v21612_v56  ;;  %v8373_v58 = vrot.slane %v8371_v6, 1  ;;  %v8529_v53 = vcombine.low %v24213_v3, %v7877_v11  ;;  %9118 = vmatprep.subr.bf16.mxu0 %v27657_v14 }
 0x67c   : > { %v24257_v8 = vpop.f32.mrb[96].mxu1  ;;  %v8169_v40 = vcombine.low %v24207_v18, %v7925_v57  ;;  %v19483_v13 = vcombine.high %v24216_v49, %v24223_v37  ;;  %v24282_v2 = vrot.slane %v8145_v38, %v21612_v56  ;;  %v8380_v1 = vrot.slane %v8378_v24, 1  ;;  %v20963_v38 = vld [vmem:[%s27663_s8 + $0x30] sm:$0xff]  }
 0x67d   : > { %v20579_v20 = vpop.f32.mrb[97].mxu1  ;;  %v24268_v41 = vrot.slane %v7944_v15, %v21612_v56  ;;  %v24270_v39 = vcombine.low %v7928_v10, %v7952_v27  ;;  %v8374_v5 = vor.u32 %v8373_v58, %v8369_v23  ;;  %v8129_v36 = vrot.slane %v8121_v19, %v21612_v56 }
 0x67e   : > { %v7708_v47 = vpop.f32.mrb[98].mxu1  ;;  %8629 = vrot.lane.b32.xlu1 %v8504_v52, %s27632_s3  ;;  %v8136_v55 = vrot.slane %v8122_v46, %v21612_v56  ;;  %v7945_v32 = vcombine.high %v24265_v60, %v24265_v60  ;;  %v8376_v59 = vshrl.u32 %v8285_v35, 16  ;;  %v7879_v49 = vcombine.high %v24213_v3, %v24213_v3  ;;  %9119 = vmatpush1.bf16.msra.mxu0 %v20963_v38 }
 0x67f   : > { %v20580_v9 = vpop.f32.mrb[99].mxu1  ;;  %v8194_v18 = vcombine.low %v7952_v27, %v24268_v41  ;;  %8419 = vrot.lane.b32.xlu0 %v8374_v5, %s27638_s1  ;;  %v8292_v30 = vrot.slane %v7878_v16, %v21612_v56  ;;  %v24297_v0 = vrot.slane %v19486_v21, %v21612_v56  ;;  %v24300_v34 = vrot.slane %v8554_v50, %v21612_v56 }
 0x680   : > { %v8137_v52 = vcombine.low %v8129_v36, %v8136_v55  ;;  %v24302_v22 = vcombine.high %v7952_v27, %v7952_v27  ;;  %v8530_v33 = vcombine.low %v7879_v49, %v24232_v4  ;;  %v8537_v48 = vrot.slane %v8529_v53, %v21612_v56  ;;  %9120 = vmatprep.subr.bf16.mxu0 %v27657_v14 }
 0x681   : > { %v8177_v3 = vrot.slane %v8169_v40, %v21612_v56  ;;  %v8381_v42 = vor.u32 %v8380_v1, %v8376_v59  ;;  %v8569_v10 = vcombine.low %v24297_v0, %v24300_v34  ;;  %v8184_v25 = vrot.slane %v24237_v31, %v21612_v56  ;;  %v20965_v59 = vld [vmem:[%s27663_s8 + $0x40] sm:$0xff]  }
 0x682   : > { %8703 = vrot.lane.b32.xlu1 %v8374_v5, %s27624_s0  ;;  %v24315_v54 = vrot.slane %v19483_v13, %v21612_v56  ;;  %v8578_v35 = vcombine.low %v24268_v41, %v24302_v22  ;;  %v8544_v19 = vrot.slane %v8530_v33, %v21612_v56  ;;  %v24324_v57 = vrot.slane %v8194_v18, %v21612_v56 }
 0x683   : > { %v7724_v15 = vpack.c.bf16 %v7708_v47, %v24257_v8  ;;  %8705 = vrot.lane.b32.xlu0 %v8381_v42, %s27624_s0  ;;  %v8160_v27 = vrot.slane %v19482_v28, %v21612_v56  ;;  %v8299_v16 = vrot.slane %v8292_v30, %v21612_v56  ;;  %v24331_v6 = vcombine.low %v8177_v3, %v8184_v25  ;;  %v20964_v28 = vld [vmem:[%s27663_s8 + $0x38] sm:$0xff]   ;;  %s27668_s8 = sld [smem:[#allocation27_spill]] }
 0x684   : > { %v24308_v62 = vpop.f32.mrb[100].mxu1  ;;  %v19479_v24 = vpack.c.bf16 %v7708_v47, %v7708_v47  ;;  %v24334_v20 = vrot.slane %v8137_v52, %v21612_v56  ;;  %v8545_v21 = vcombine.low %v8537_v48, %v8544_v19  ;;  %v8209_v8 = vcombine.low %v24315_v54, %v24324_v57  ;;  %9121 = vmatpush1.bf16.msra.mxu0 %v20964_v28 }
 0x685   : > { %v20583_v11 = vpop.f32.mrb[101].mxu1  ;;  %v7985_v50 = vrot.slane %v7724_v15, %v21612_v56  ;;  %v8307_v47 = vrot.slane %v24232_v4, %v21612_v56  ;;  %v7959_v58 = vrot.slane %v24265_v60, %v21612_v56  ;;  %v24350_v9 = vrot.slane %v7945_v32, %v21612_v56  ;;  %9122 = vmatprep.subr.bf16.mxu0 %v27657_v14 }
 0x686   : > { %v7716_v31 = vpop.f32.mrb[102].mxu1  ;;  %8821 = vrot.lane.b32.xlu1 %v8381_v42, %s27636_s5  ;;  %v7992_v23 = vrot.slane %v19479_v24, %v21612_v56  ;;  %v8161_v13 = vcombine.low %v24282_v2, %v8160_v27  ;;  %v8300_v5 = vcombine.low %v24334_v20, %v8299_v16  ;;  %v8585_v4 = vrot.slane %v24270_v39, %v21612_v56 }
 0x687   : > { %v20584_v46 = vpop.f32.mrb[103].mxu1  ;;  %8785 = vrot.lane.b32.xlu0 %v24334_v20, %s27630_s29  ;;  %v7993_v53 = vcombine.high %v7985_v50, %v7985_v50  ;;  %v8592_v1 = vrot.slane %v8578_v35, %v21612_v56  ;;  %v8001_v60 = vrot.slane %v7985_v50, %v21612_v56  ;;  %v7975_v32 = vcombine.high %v7959_v58, %v7959_v58 }
 0x688   : > { %v7994_v40 = vcombine.high %v7992_v23, %v7992_v23  ;;  %v24362_v36 = vrot.slane %v7992_v23, %v21612_v56  ;;  %v7976_v2 = vcombine.high %v24268_v41, %v24268_v41  ;;  %v24378_v49 = vrot.slane %v8161_v13, %v21612_v56  ;;  %9123 = vmatpush1.bf16.msra.mxu0 %v20965_v59 }
 0x689   : > { %v24365_v55 = vrot.slane %v7993_v53, %v21612_v56  ;;  %v8593_v18 = vcombine.low %v8585_v4, %v8592_v1  ;;  %v8385_v52 = vshll.u32 %v8300_v5, 16  ;;  %v8314_v41 = vrot.slane %v8307_v47, %v21612_v56  ;;  %10674 = vmatprep.subr.bf16.mxu0 %v27657_v14 }
 0x68a   : > { %8421 = vrot.lane.b32.xlu1 %v8381_v42, %s27638_s1  ;;  %v8022_v29 = vrot.slane %v7994_v40, %v21612_v56  ;;  %v7725_v30 = vpack.c.bf16 %v24308_v62, %v24308_v62  ;;  %v8601_v3 = vcombine.low %v7959_v58, %v24350_v9  ;;  %v19487_v42 = vcombine.high %v7959_v58, %v24350_v9 }
 0x68b   : > { %8631 = vrot.lane.b32.xlu0 %v24199_v43, %s27632_s3  ;;  %v8641_v33 = vcombine.low %v8001_v60, %v24365_v55  ;;  %v19488_v48 = vcombine.high %v8001_v60, %v24365_v55  ;;  %v8217_v38 = vcombine.low %v7976_v2, %v7959_v58  ;;  %v8218_v35 = vcombine.low %v24350_v9, %v7975_v32 }
 0x68c   : > { %v19489_v39 = vcombine.high %v24362_v36, %v8022_v29  ;;  %v8026_v25 = vcombine.high %v8022_v29, %v8022_v29  ;;  %v8033_v11 = vrot.slane %v7725_v30, %v21612_v56  ;;  %v8023_v62 = vcombine.high %v8001_v60, %v8001_v60 }
 0x68d   : > { %v8024_v19 = vcombine.high %v24362_v36, %v24362_v36  ;;  %v8609_v15 = vrot.slane %v8601_v3, %v21612_v56  ;;  %v8616_v31 = vrot.slane %v19487_v42, %v21612_v56  ;;  %v8225_v24 = vrot.slane %v8217_v38, %v21612_v56 }
 0x68e   : > { %8669 = vrot.lane.b32.xlu1 %v24334_v20, %s27629_s6  ;;  %v8034_v27 = vcombine.high %v8033_v11, %v8033_v11  ;;  %v8041_v16 = vrot.slane %v8033_v11, %v21612_v56  ;;  %v8232_v46 = vrot.slane %v8218_v35, %v21612_v56  ;;  %v24404_v50 = vrot.slane %v8545_v21, %v21612_v56 }
 0x68f   : > { %8671 = vrot.lane.b32.xlu0 %v24378_v49, %s27629_s6  ;;  %v8387_v23 = vrot.slane %v8385_v52, 1  ;;  %v8649_v28 = vrot.slane %v8641_v33, %v21612_v56  ;;  %v8656_v47 = vrot.slane %v19488_v48, %v21612_v56  ;;  %v8617_v40 = vcombine.low %v8609_v15, %v8616_v31 }
 0x690   : > { %v8048_v58 = vrot.slane %v8034_v27, %v21612_v56  ;;  %v8760_v53 = vcombine.low %v8026_v25, %v8041_v16  ;;  %v8383_v13 = vshrl.u32 %v8300_v5, 16  ;;  %v24417_v21 = vrot.slane %v8569_v10, %v21612_v56 }
 0x691   : > { %v8315_v4 = vcombine.low %v24378_v49, %v8314_v41  ;;  %v8719_v1 = vcombine.low %v24365_v55, %v8023_v62  ;;  %v8687_v60 = vrot.slane %v24362_v36, %v21612_v56  ;;  %v8759_v32 = vcombine.low %v8022_v29, %v8024_v19 }
 0x692   : > { %8747 = vrot.lane.b32.xlu1 %v24199_v43, %s27637_s2  ;;  %v24409_v43 = vcombine.low %v8225_v24, %v8232_v46  ;;  %v8838_v2 = vcombine.low %v8041_v16, %v8048_v58  ;;  %v8845_v5 = vrot.slane %v19489_v39, %v21612_v56  ;;  %v8388_v59 = vor.u32 %v8387_v23, %v8383_v13 }
 0x693   : > { %8749 = vrot.lane.b32.xlu0 %v24404_v50, %s27637_s2  ;;  %v24427_v52 = vrot.slane %v8593_v18, %v21612_v56  ;;  %v8805_v0 = vrot.slane %v8048_v58, %v21612_v56  ;;  %v8657_v34 = vcombine.low %v8649_v28, %v8656_v47  ;;  %v8774_v10 = vrot.slane %v8760_v53, %v21612_v56 }
 0x694   : > { %v8852_v41 = vrot.slane %v8838_v2, %v21612_v56  ;;  %v24433_v30 = vrot.slane %v8617_v40, %v21612_v56  ;;  %v8025_v29 = vcombine.high %v24365_v55, %v24365_v55  ;;  %v8727_v18 = vrot.slane %v8719_v1, %v21612_v56 }
 0x695   : > { %v24439_v39 = vrot.slane %v8657_v34, %v21612_v56  ;;  %v8767_v3 = vrot.slane %v8759_v32, %v21612_v56  ;;  %v8694_v42 = vrot.slane %v8687_v60, %v21612_v56  ;;  %v8392_v25 = vshll.u32 %v8315_v4, 16 }
 0x696   : > { %8787 = vrot.lane.b32.xlu1 %v24378_v49, %s27630_s29  ;;  %v8853_v33 = vcombine.low %v8845_v5, %v8852_v41  ;;  %v8720_v48 = vcombine.low %v8025_v29, %v24362_v36  ;;  %v8812_v55 = vrot.slane %v8805_v0, %v21612_v56  ;;  %v19494_v11 = vcombine.low %v24404_v50, %v24417_v21 }
 0x697   : > { %8823 = vrot.lane.b32.xlu0 %v8388_v59, %s27636_s5  ;;  %v8775_v35 = vcombine.low %v8767_v3, %v8774_v10  ;;  %v24452_v62 = vcombine.low %v24439_v39, %v8694_v42  ;;  %v19496_v19 = vcombine.low %v24427_v52, %v24433_v30  ;;  %v8390_v27 = vshrl.u32 %v8315_v4, 16 }
 0x698   : > { %v8734_v38 = vrot.slane %v8720_v48, %v21612_v56  ;;  %v24462_v31 = vrot.slane %v8853_v33, %v21612_v56  ;;  %v8394_v16 = vrot.slane %v8392_v25, 1  ;;  %v8322_v47 = vrot.slane %v24223_v37, %v21612_v56 }
 0x699   : > { %v24459_v15 = vrot.slane %v8775_v35, %v21612_v56  ;;  %v24482_v58 = vrot.slane %v24331_v6, %v21612_v56  ;;  %v24492_v37 = vrot.slane %v8209_v8, %v21612_v56  ;;  %v8337_v6 = vrot.slane %v24302_v22, %v21612_v56 }
 0x69a   : > { %8633 = vrot.lane.b32.xlu1 %v24404_v50, %s27632_s3  ;;  %v8735_v36 = vcombine.low %v8727_v18, %v8734_v38  ;;  %v8395_v28 = vor.u32 %v8394_v16, %v8390_v27  ;;  %v8329_v53 = vrot.slane %v8322_v47, %v21612_v56  ;;  %v7977_v54 = vcombine.high %v24350_v9, %v24350_v9 }
 0x69b   : > { %8423 = vrot.lane.b32.xlu0 %v8388_v59, %s27638_s1  ;;  %v24468_v46 = vcombine.low %v24459_v15, %v8812_v55  ;;  %v8344_v4 = vrot.slane %v8337_v6, %v21612_v56  ;;  %v24519_v9 = vrot.slane %v24409_v43, %v21612_v56  ;;  %v8699_v18 = vshll.u32 %v24452_v62, 16 }
 0x69c   : > { %v24465_v24 = vrot.slane %v8735_v36, %v21612_v56  ;;  %v8330_v40 = vcombine.low %v24482_v58, %v8329_v53  ;;  %v8352_v60 = vrot.slane %v7977_v54, %v21612_v56  ;;  %v8697_v33 = vshrl.u32 %v24452_v62, 16 }
 0x69d   : > { %v8345_v1 = vcombine.low %v24492_v37, %v8344_v4  ;;  %v8701_v48 = vrot.slane %v8699_v18, 1  ;;  %v8817_v42 = vshll.u32 %v24468_v46, 16 }
 0x69e   : > { %8707 = vrot.lane.b32.xlu1 %v8388_v59, %s27624_s0  ;;  %v19498_v23 = vcombine.low %v24465_v24, %v24462_v31  ;;  %v8399_v13 = vshll.u32 %v8330_v40, 16  ;;  %v8397_v57 = vshrl.u32 %v8330_v40, 16  ;;  %v8359_v2 = vrot.slane %v8352_v60, %v21612_v56 }
 0x69f   : > { %8635 = vrot.lane.b32.xlu0 %v24417_v21, %s27632_s3  ;;  %v8406_v32 = vshll.u32 %v8345_v1, 16  ;;  %v8404_v5 = vshrl.u32 %v8345_v1, 16  ;;  %v8702_v3 = vor.u32 %v8701_v48, %v8697_v33  ;;  %v8819_v25 = vrot.slane %v8817_v42, 1 }
 0x6a0   : > { %v8401_v8 = vrot.slane %v8399_v13, 1  ;;  %v8360_v0 = vcombine.low %v24519_v9, %v8359_v2 }
 0x6a1   : > { %v8408_v59 = vrot.slane %v8406_v32, 1 }
 0x6a2   : > { %8751 = vrot.lane.b32.xlu1 %v24417_v21, %s27637_s2  ;;  %v8402_v22 = vor.u32 %v8401_v8, %v8397_v57  ;;  %v8413_v43 = vshll.u32 %v8360_v0, 16  ;;  %v8411_v10 = vshrl.u32 %v8360_v0, 16 }
 0x6a3   : > { %8709 = vrot.lane.b32.xlu0 %v8395_v28, %s27624_s0  ;;  %v8409_v34 = vor.u32 %v8408_v59, %v8404_v5 }
 0x6a4   : > { %v8415_v41 = vrot.slane %v8413_v43, 1 }
 0x6a6   : > { %8825 = vrot.lane.b32.xlu1 %v8395_v28, %s27636_s5  ;;  %v8416_v29 = vor.u32 %v8415_v41, %v8411_v10 }
 0x6a7   : > { %8789 = vrot.lane.b32.xlu0 %v24482_v58, %s27630_s29 }
 0x6aa   : > { %8425 = vrot.lane.b32.xlu1 %v8395_v28, %s27638_s1 }
 0x6ab   : > { %8675 = vrot.lane.b32.xlu0 %v24492_v37, %s27629_s6 }
 0x6ae   : > { %8673 = vrot.lane.b32.xlu1 %v24482_v58, %s27629_s6 }
 0x6af   : > { %8753 = vrot.lane.b32.xlu0 %v24427_v52, %s27637_s2 }
 0x6b2   : > { %8791 = vrot.lane.b32.xlu1 %v24492_v37, %s27630_s29 }
 0x6b3   : > { %8639 = vrot.lane.b32.xlu0 %v24433_v30, %s27632_s3 }
 0x6b6   : > { %8637 = vrot.lane.b32.xlu1 %v24427_v52, %s27632_s3 }
 0x6b7   : > { %8827 = vrot.lane.b32.xlu0 %v8402_v22, %s27636_s5 }
 0x6ba   : > { %8755 = vrot.lane.b32.xlu1 %v24433_v30, %s27637_s2 }
 0x6bb   : > { %8427 = vrot.lane.b32.xlu0 %v8402_v22, %s27638_s1 }
 0x6be   : > { %8711 = vrot.lane.b32.xlu1 %v8402_v22, %s27624_s0 }
 0x6bf   : > { %8793 = vrot.lane.b32.xlu0 %v24519_v9, %s27630_s29 }
 0x6c2   : > { %8677 = vrot.lane.b32.xlu1 %v24519_v9, %s27629_s6 }
 0x6c3   : > { %8713 = vrot.lane.b32.xlu0 %v8409_v34, %s27624_s0 }
 0x6c6   : > { %8829 = vrot.lane.b32.xlu1 %v8409_v34, %s27636_s5 }
 0x6c7   : > { %8679 = vrot.lane.b32.xlu0 %v24439_v39, %s27629_s6 }
 0x6ca   : > { %8429 = vrot.lane.b32.xlu1 %v8409_v34, %s27638_s1 }
 0x6cb   : > { %8831 = vrot.lane.b32.xlu0 %v8416_v29, %s27636_s5 }
 0x6ce   : > { %8795 = vrot.lane.b32.xlu1 %v24439_v39, %s27630_s29  ;;  %v8815_v39 = vshrl.u32 %v24468_v46, 16 }
 0x6cf   : > { %8431 = vrot.lane.b32.xlu0 %v8416_v29, %s27638_s1 }
 0x6d0   : > { %v8820_v38 = vor.u32 %v8819_v25, %v8815_v39 }
 0x6d2   : > { %8715 = vrot.lane.b32.xlu1 %v8416_v29, %s27624_s0 }
 0x6d3   : > { %8757 = vrot.lane.b32.xlu0 %v24465_v24, %s27637_s2 }
 0x6d6   : > { %8833 = vrot.lane.b32.xlu1 %v8702_v3, %s27636_s5 }
 0x6d7   : > { %8797 = vrot.lane.b32.xlu0 %v24459_v15, %s27630_s29 }
 0x6db   : > { %8717 = vrot.lane.b32.xlu0 %v8702_v3, %s27624_s0 }
 0x6dc   : > { %v8626_v55 = vpop.permute.xlu1 %8625 }
 0x6df   : > { %8835 = vrot.lane.b32.xlu0 %v8820_v38, %s27636_s5 }
 0x6e0   : > { %v8666_v35 = vpop.permute.xlu1 %8665 }
 0x6e1   : > { %v8628_v62 = vpop.permute.xlu0 %8627 }
 0x6e4   : > { %v8418_v36 = vpop.permute.xlu1 %8417 }
 0x6e5   : > { %v8863_v54 = vsel %vm4935_vm2, %v24138_v17, %v8418_v36 }
 0x6e6   : > { %v8668_v27 = vpop.permute.xlu0 %8667  ;;  %v8886_v4 = vsel %vm4997_vm4, %v8863_v54, %v8626_v55 }
 0x6e7   : > { %v8902_v32 = vsel %vm5059_vm6, %v8886_v4, %v8666_v35 }
 0x6e8   : > { %v8744_v16 = vpop.permute.xlu1 %8743 }
 0x6ea   : > { %v8746_v47 = vpop.permute.xlu0 %8745 }
 0x6ec   : > { %v8784_v28 = vpop.permute.xlu1 %8783 }
 0x6f0   : > { %v8630_v53 = vpop.permute.xlu1 %8629 }
 0x6f1   : > { %v8420_v40 = vpop.permute.xlu0 %8419 }
 0x6f2   : > { %v8866_v8 = vsel %vm4935_vm2, %v24173_v45, %v8420_v40 }
 0x6f3   : > { %v8888_v60 = vsel %vm4997_vm4, %v8866_v8, %v8628_v62 }
 0x6f4   : > { %v8704_v6 = vpop.permute.xlu1 %8703  ;;  %v8904_v59 = vsel %vm5059_vm6, %v8888_v60, %v8668_v27 }
 0x6f5   : > { %v8706_v15 = vpop.permute.xlu0 %8705  ;;  %v8918_v2 = vsel %vm5121_vm8, %v8902_v32, %v8704_v6 }
 0x6f6   : > { %v8934_v17 = vsel %vm5183_vm10, %v8918_v2, %v8744_v16  ;;  %v8920_v34 = vsel %vm5121_vm8, %v8904_v59, %v8706_v15 }
 0x6f7   : > { %v8950_v10 = vsel %vm5245_vm12, %v8934_v17, %v8784_v28  ;;  %v8936_v41 = vsel %vm5183_vm10, %v8920_v34, %v8746_v47 }
 0x6f8   : > { %v8822_v13 = vpop.permute.xlu1 %8821 }
 0x6f9   : > { %v8786_v46 = vpop.permute.xlu0 %8785  ;;  %v8966_v33 = vsel %vm5307_vm14, %v8950_v10, %v8822_v13 }
 0x6fa   : > { %v8952_v29 = vsel %vm5245_vm12, %v8936_v41, %v8786_v46 }
 0x6fc   : > { %v8422_v57 = vpop.permute.xlu1 %8421 }
 0x6fd   : > { %v8632_v22 = vpop.permute.xlu0 %8631  ;;  %v8869_v28 = vsel %vm4935_vm2, %v24210_v26, %v8422_v57 }
 0x6fe   : > { %v8890_v6 = vsel %vm4997_vm4, %v8869_v28, %v8630_v53 }
 0x700   : > { %v8670_v1 = vpop.permute.xlu1 %8669 }
 0x701   : > { %v8672_v5 = vpop.permute.xlu0 %8671 }
 0x704   : > { %v8748_v0 = vpop.permute.xlu1 %8747 }
 0x705   : > { %v8750_v43 = vpop.permute.xlu0 %8749 }
 0x708   : > { %v8788_v45 = vpop.permute.xlu1 %8787 }
 0x709   : > { %v8824_v18 = vpop.permute.xlu0 %8823 }
 0x70a   : > { %v8968_v48 = vsel %vm5307_vm14, %v8952_v29, %v8824_v18 }
 0x70b   : > { %v19491_v42 = vcombine.low %v8966_v33, %v8968_v48 }
 0x70c   : > { %v8634_v3 = vpop.permute.xlu1 %8633 }
 0x70d   : > { %9139 = vmatmul.mubr.bf16.vlgmr.msra.gmra.mrb[84].mxu0 %v19491_v42  ;;  %v8424_v39 = vpop.permute.xlu0 %8423 }
 0x70e   : > { %19509 = vmatprep.mubr.msk.bf16.mxu0 %vm4935_vm2, %v19494_v11  ;;  %v8872_v47 = vsel %vm4935_vm2, %v24334_v20, %v8424_v39  ;;  %v8906_v11 = vsel %vm5059_vm6, %v8890_v6, %v8670_v1 }
 0x70f   : > { %v8892_v50 = vsel %vm4997_vm4, %v8872_v47, %v8632_v22 }
 0x710   : > { %v8708_v25 = vpop.permute.xlu1 %8707  ;;  %v8908_v46 = vsel %vm5059_vm6, %v8892_v50, %v8672_v5 }
 0x711   : > { %v8636_v55 = vpop.permute.xlu0 %8635  ;;  %v8922_v13 = vsel %vm5121_vm8, %v8906_v11, %v8708_v25 }
 0x712   : > { %v8938_v26 = vsel %vm5183_vm10, %v8922_v13, %v8748_v0 }
 0x713   : > { %v8954_v4 = vsel %vm5245_vm12, %v8938_v26, %v8788_v45 }
 0x714   : > { %v8752_v38 = vpop.permute.xlu1 %8751 }
 0x715   : > { %v8710_v35 = vpop.permute.xlu0 %8709 }
 0x716   : > { %v8924_v54 = vsel %vm5121_vm8, %v8908_v46, %v8710_v35 }
 0x717   : > { %v8940_v20 = vsel %vm5183_vm10, %v8924_v54, %v8750_v43 }
 0x718   : > { %v8826_v62 = vpop.permute.xlu1 %8825 }
 0x719   : > { %v8790_v36 = vpop.permute.xlu0 %8789  ;;  %v8970_v1 = vsel %vm5307_vm14, %v8954_v4, %v8826_v62 }
 0x71a   : > { %v8956_v53 = vsel %vm5245_vm12, %v8940_v20, %v8790_v36 }
 0x71c   : > { %v8426_v27 = vpop.permute.xlu1 %8425 }
 0x71d   : > { %v8676_v16 = vpop.permute.xlu0 %8675  ;;  %v8875_v34 = vsel %vm4935_vm2, %v24378_v49, %v8426_v27 }
 0x71e   : > { %v8894_v10 = vsel %vm4997_vm4, %v8875_v34, %v8634_v3 }
 0x720   : > { %v8674_v40 = vpop.permute.xlu1 %8673 }
 0x721   : > { %v8754_v21 = vpop.permute.xlu0 %8753  ;;  %v8910_v29 = vsel %vm5059_vm6, %v8894_v10, %v8674_v40 }
 0x724   : > { %v8792_v15 = vpop.permute.xlu1 %8791 }
 0x725   : > { %v8640_v8 = vpop.permute.xlu0 %8639 }
 0x728   : > { %v8638_v57 = vpop.permute.xlu1 %8637 }
 0x729   : > { %v8828_v22 = vpop.permute.xlu0 %8827 }
 0x72a   : > { %v8972_v60 = vsel %vm5307_vm14, %v8956_v53, %v8828_v22 }
 0x72b   : > { %v19493_v2 = vcombine.low %v8970_v1, %v8972_v60 }
 0x72c   : > { %v8756_v32 = vpop.permute.xlu1 %8755 }
 0x72d   : > { %9147 = vmatmul.mubr.bf16.gmra.mrb[88].mxu0 %v19493_v2  ;;  %v8428_v5 = vpop.permute.xlu0 %8427 }
 0x72e   : > { %19510 = vmatprep.mubr.msk.bf16.mxu0 %vm4935_vm2, %v19496_v19  ;;  %v8878_v0 = vsel %vm4935_vm2, %v24482_v58, %v8428_v5 }
 0x72f   : > { %v8896_v45 = vsel %vm4997_vm4, %v8878_v0, %v8636_v55 }
 0x730   : > { %v8712_v59 = vpop.permute.xlu1 %8711  ;;  %v8912_v52 = vsel %vm5059_vm6, %v8896_v45, %v8676_v16 }
 0x731   : > { %v8794_v17 = vpop.permute.xlu0 %8793  ;;  %v8926_v19 = vsel %vm5121_vm8, %v8910_v29, %v8712_v59 }
 0x732   : > { %v8942_v33 = vsel %vm5183_vm10, %v8926_v19, %v8752_v38 }
 0x733   : > { %v8958_v42 = vsel %vm5245_vm12, %v8942_v33, %v8792_v15 }
 0x734   : > { %v8678_v43 = vpop.permute.xlu1 %8677 }
 0x735   : > { %v8714_v41 = vpop.permute.xlu0 %8713 }
 0x736   : > { %v8928_v18 = vsel %vm5121_vm8, %v8912_v52, %v8714_v41 }
 0x737   : > { %v8944_v49 = vsel %vm5183_vm10, %v8928_v18, %v8754_v21 }
 0x738   : > { %v8830_v30 = vpop.permute.xlu1 %8829  ;;  %v8960_v3 = vsel %vm5245_vm12, %v8944_v49, %v8794_v17 }
 0x739   : > { %v8680_v58 = vpop.permute.xlu0 %8679  ;;  %v8974_v25 = vsel %vm5307_vm14, %v8958_v42, %v8830_v30 }
 0x73c   : > { %v8430_v48 = vpop.permute.xlu1 %8429 }
 0x73d   : > { %v8832_v39 = vpop.permute.xlu0 %8831  ;;  %v8881_v27 = vsel %vm4935_vm2, %v24492_v37, %v8430_v48 }
 0x73e   : > { %v8976_v55 = vsel %vm5307_vm14, %v8960_v3, %v8832_v39  ;;  %v8898_v38 = vsel %vm4997_vm4, %v8881_v27, %v8638_v57  ;;  %v19490_v57 = vld [vmem:[%s27661_s22 + $0x1] ss:$0 sm:$0xff] }
 0x73f   : > { %v19495_v35 = vcombine.low %v8974_v25, %v8976_v55  ;;  %v8914_v40 = vsel %vm5059_vm6, %v8898_v38, %v8678_v43 }
 0x740   : > { %v8796_v62 = vpop.permute.xlu1 %8795 }
 0x741   : > { %9155 = vmatmul.mubr.bf16.gmra.mrb[92].mxu0 %v19495_v35  ;;  %v8432_v36 = vpop.permute.xlu0 %8431 }
 0x742   : > { %19511 = vmatprep.mubr.msk.bf16.mxu0 %vm4935_vm2, %v19498_v23  ;;  %v8884_v47 = vsel %vm4935_vm2, %v24519_v9, %v8432_v36 }
 0x743   : > { %v8900_v21 = vsel %vm4997_vm4, %v8884_v47, %v8640_v8 }
 0x744   : > { %v8716_v28 = vpop.permute.xlu1 %8715  ;;  %v8916_v31 = vsel %vm5059_vm6, %v8900_v21, %v8680_v58 }
 0x745   : > { %v8758_v16 = vpop.permute.xlu0 %8757  ;;  %v8930_v6 = vsel %vm5121_vm8, %v8914_v40, %v8716_v28 }
 0x746   : > { %v8946_v37 = vsel %vm5183_vm10, %v8930_v6, %v8756_v32 }
 0x747   : > { %v8962_v11 = vsel %vm5245_vm12, %v8946_v37, %v8796_v62 }
 0x748   : > { %v8834_v15 = vpop.permute.xlu1 %8833 }
 0x749   : > { %v8798_v50 = vpop.permute.xlu0 %8797  ;;  %v8978_v54 = vsel %vm5307_vm14, %v8962_v11, %v8834_v15  ;;  %v21291_v11 = vld [vmem:[%s27662_s10 + $0x18] sm:$0xff]   ;;  %v21292_v15 = vld [vmem:[%s27662_s10 + $0x20] sm:$0xff]  }
 0x74d   : > { %v8718_v24 = vpop.permute.xlu0 %8717 }
 0x74e   : > { %v8932_v23 = vsel %vm5121_vm8, %v8916_v31, %v8718_v24  ;;  %v21288_v31 = vld [vmem:[%s27662_s10] sm:$0xff]   ;;  %v21289_v24 = vld [vmem:[%s27662_s10 + $0x8] sm:$0xff]  }
 0x74f   : > { %v8948_v13 = vsel %vm5183_vm10, %v8932_v23, %v8758_v16  ;;  %v21290_v23 = vld [vmem:[%s27662_s10 + $0x10] sm:$0xff]  }
 0x750   : > { %v8964_v9 = vsel %vm5245_vm12, %v8948_v13, %v8798_v50  ;;  %v21293_v13 = vld [vmem:[%s27662_s10 + $0x28] sm:$0xff]  }
 0x751   : > { %v8836_v46 = vpop.permute.xlu0 %8835 }
 0x752   : > { %v8980_v26 = vsel %vm5307_vm14, %v8964_v9, %v8836_v46  ;;  %v21294_v9 = vld [vmem:[%s27662_s10 + $0x30] ss:$0 sps:$4 sm:$0x33]  }
 0x753   : > { %v19497_v8 = vcombine.low %v8978_v54, %v8980_v26 }
 0x755   : > { %9163 = vmatmul.mubr.bf16.gmra.mrb[96].mxu0 %v19497_v8 }
 0x7e0   : > { %v9140_v20 = vpop.f32.mrb[84].mxu0 }
 0x7e1   : > { %v9141_v53 = vadd.f32 %v19490_v57, %v9140_v20  ;;  %v9142_v4 = vpop.f32.mrb[85].mxu0 }
 0x7e2   : > { %v9143_v22 = vpop.f32.mrb[86].mxu0 }
 0x7e3   : > { %v9179_v1 = vmul.f32 0.2, %v9141_v53  ;;  %v9144_v60 = vadd.f32 %v19490_v57, %v9143_v22  ;;  %v9145_v32 = vpop.f32.mrb[87].mxu0  ;;  %vm9171_vm5 = vcmp.ge.f32.partialorder %v9141_v53, 0.0 }
 0x7e5   : > { %vm9172_vm7 = vcmp.ge.f32.partialorder %v9144_v60, 0.0  ;;  %v9180_v2 = vmul.f32 0.2, %v9144_v60  ;;  %v9187_v5 = vsel %vm9171_vm5, %v9141_v53, %v9179_v1 }
 0x7e7   : > { %v9188_v59 = vsel %vm9172_vm7, %v9144_v60, %v9180_v2 }
 0x7e8   : > { %v9195_v0 = vpack.c.bf16 %v9188_v59, %v9187_v5 }
 0x7ea   : > { %20586 = vmatpush3.bf16.msra.mxu1 %v9195_v0 }
 0x7eb   : > { %20587 = vmatprep.subr.bf16.mxu1 %v27646_v61 }
 0x800   : > { %v9148_v17 = vpop.f32.mrb[88].mxu0 }
 0x801   : > { %v9149_v34 = vadd.f32 %v19490_v57, %v9148_v17  ;;  %v9150_v43 = vpop.f32.mrb[89].mxu0 }
 0x802   : > { %v9151_v45 = vpop.f32.mrb[90].mxu0 }
 0x803   : > { %v9181_v10 = vmul.f32 0.2, %v9149_v34  ;;  %v9152_v41 = vadd.f32 %v19490_v57, %v9151_v45  ;;  %v9153_v29 = vpop.f32.mrb[91].mxu0  ;;  %vm9173_vm9 = vcmp.ge.f32.partialorder %v9149_v34, 0.0 }
 0x805   : > { %vm9174_vm11 = vcmp.ge.f32.partialorder %v9152_v41, 0.0  ;;  %v9182_v52 = vmul.f32 0.2, %v9152_v41  ;;  %v9189_v30 = vsel %vm9173_vm9, %v9149_v34, %v9181_v10 }
 0x807   : > { %v9190_v19 = vsel %vm9174_vm11, %v9152_v41, %v9182_v52  ;;  %vm15912_vm11 = vcmask 1041408  }
 0x808   : > { %v9196_v18 = vpack.c.bf16 %v9190_v19, %v9189_v30 }
 0x80a   : > { %20588 = vmatpush3.bf16.msra.mxu1 %v9196_v18 }
 0x80b   : > { %20589 = vmatprep.subr.bf16.mxu1 %v27646_v61 }
 0x814   : > { %v9156_v58 = vpop.f32.mrb[92].mxu0 }
 0x815   : > { %v9157_v33 = vadd.f32 %v19490_v57, %v9156_v58  ;;  %v9158_v49 = vpop.f32.mrb[93].mxu0 }
 0x816   : > { %v9159_v48 = vpop.f32.mrb[94].mxu0 }
 0x817   : > { %v9183_v42 = vmul.f32 0.2, %v9157_v33  ;;  %v9160_v3 = vadd.f32 %v19490_v57, %v9159_v48  ;;  %v9161_v39 = vpop.f32.mrb[95].mxu0  ;;  %vm9175_vm13 = vcmp.ge.f32.partialorder %v9157_v33, 0.0 }
 0x819   : > { %vm9176_vm15 = vcmp.ge.f32.partialorder %v9160_v3, 0.0  ;;  %v9184_v25 = vmul.f32 0.2, %v9160_v3  ;;  %v9191_v55 = vsel %vm9175_vm13, %v9157_v33, %v9183_v42  ;;  %vm15908_vm13 = vcmask 31744  }
 0x81b   : > { %v9192_v35 = vsel %vm9176_vm15, %v9160_v3, %v9184_v25 }
 0x81c   : > { %v9197_v62 = vpack.c.bf16 %v9192_v35, %v9191_v55 }
 0x81e   : > { %20590 = vmatpush3.bf16.msra.mxu1 %v9197_v62 }
 0x81f   : > { %20591 = vmatprep.subr.bf16.mxu1 %v27646_v61 }
 0x828   : > { %v9164_v36 = vpop.f32.mrb[96].mxu0 }
 0x829   : > { %v9165_v27 = vadd.f32 %v19490_v57, %v9164_v36  ;;  %v9166_v38 = vpop.f32.mrb[97].mxu0 }
 0x82a   : > { %v9167_v16 = vpop.f32.mrb[98].mxu0 }
 0x82b   : > { %v9185_v28 = vmul.f32 0.2, %v9165_v27  ;;  %v9168_v47 = vadd.f32 %v19490_v57, %v9167_v16  ;;  %v9169_v40 = vpop.f32.mrb[99].mxu0  ;;  %vm9177_vm1 = vcmp.ge.f32.partialorder %v9165_v27, 0.0 }
 0x82d   : > { %vm9178_vm3 = vcmp.ge.f32.partialorder %v9168_v47, 0.0  ;;  %v9186_v6 = vmul.f32 0.2, %v9168_v47  ;;  %v9193_v50 = vsel %vm9177_vm1, %v9165_v27, %v9185_v28 }
 0x82f   : > { %v9194_v21 = vsel %vm9178_vm3, %v9168_v47, %v9186_v6  ;;  %vm18142_vm3 = vcmask 7168  }
 0x830   : > { %v9198_v37 = vpack.c.bf16 %v9194_v21, %v9193_v50 }
 0x832   : > { %20592 = vmatpush3.bf16.msra.mxu1 %v9198_v37 }
 0x833   : > { %20621 = vmatprep.subr.bf16.mxu1 %v27646_v61 }
 0x835   : > { %20594 = vmatmul.mubr.msk.bf16.vlgmr.msra.gmra.mrb[104].mxu1 %vm5121_vm8, %v21288_v31 }
 0x836   : > { %20597 = vmatprep.mubr.msk.bf16.mxu1 %vm21321_vm0, %v27646_v61 }
 0x83d   : > { %20598 = vmatmul.mubr.msk.bf16.gmra.mrb[108].mxu1 %vm5121_vm8, %v21289_v24 }
 0x83e   : > { %20601 = vmatprep.mubr.msk.bf16.mxu1 %vm21321_vm0, %v27646_v61 }
 0x845   : > { %20602 = vmatmul.mubr.msk.bf16.gmra.mrb[112].mxu1 %vm5121_vm8, %v21290_v23 }
 0x846   : > { %20605 = vmatprep.mubr.msk.bf16.mxu1 %vm21321_vm0, %v27646_v61 }
 0x84d   : > { %20606 = vmatmul.mubr.msk.bf16.gmra.mrb[116].mxu1 %vm5121_vm8, %v21291_v11 }
 0x84e   : > { %20609 = vmatprep.mubr.msk.bf16.mxu1 %vm21321_vm0, %v27646_v61 }
 0x855   : > { %20610 = vmatmul.mubr.msk.bf16.gmra.mrb[120].mxu1 %vm5121_vm8, %v21292_v15 }
 0x856   : > { %20613 = vmatprep.mubr.msk.bf16.mxu1 %vm21321_vm0, %v27646_v61 }
 0x85d   : > { %20614 = vmatmul.mubr.msk.bf16.gmra.mrb[124].mxu1 %vm5121_vm8, %v21293_v13 }
 0x85e   : > { %20617 = vmatprep.mubr.msk.bf16.mxu1 %vm21321_vm0, %v27646_v61 }
 0x865   : > { %20618 = vmatmul.mubr.msk.bf16.gmra.mrb[128].mxu1 %vm5121_vm8, %v21294_v9 }
 0x866   : > { %20629 = vmatprep.mubr.msk.bf16.mxu1 %vm21321_vm0, %v27646_v61 }
 0x908   : > { %v9233_v46 = vpop.f32.mrb[104].mxu1 }
 0x909   : > { %v20595_v54 = vpop.f32.mrb[105].mxu1 }
 0x90a   : > { %v9236_v26 = vpop.f32.mrb[106].mxu1 }
 0x90b   : > { %v9287_v8 = vpack.c.bf16 %v9236_v26, %v9233_v46  ;;  %v19519_v57 = vpack.c.bf16 %v9236_v26, %v9236_v26  ;;  %v20596_v20 = vpop.f32.mrb[107].mxu1 }
 0x90d   : > { %v9308_v53 = vrot.slane %v9287_v8, %v21612_v56  ;;  %v9315_v4 = vrot.slane %v19519_v57, %v21612_v56 }
 0x90f   : > { %v9316_v22 = vcombine.high %v9308_v53, %v9308_v53  ;;  %v9317_v1 = vcombine.high %v9315_v4, %v9315_v4  ;;  %v9324_v60 = vrot.slane %v9308_v53, %v21612_v56  ;;  %v9331_v32 = vrot.slane %v9315_v4, %v21612_v56  ;;  %v20966_v4 = vld [vmem:[%s27664_s28] sm:$0xff]  }
 0x910   : > { %v9241_v2 = vpop.f32.mrb[108].mxu1  ;;  %10675 = vmatpush1.bf16.msra.mxu0 %v20966_v4 }
 0x911   : > { %v9338_v5 = vrot.slane %v9316_v22, %v21612_v56  ;;  %v9346_v59 = vcombine.high %v9324_v60, %v9324_v60  ;;  %v20599_v0 = vpop.f32.mrb[109].mxu1  ;;  %v9345_v34 = vrot.slane %v9317_v1, %v21612_v56  ;;  %v9347_v43 = vcombine.high %v9331_v32, %v9331_v32  ;;  %10676 = vmatprep.subr.bf16.mxu0 %v27657_v14 }
 0x912   : > { %v9244_v17 = vpop.f32.mrb[110].mxu1  ;;  %v9815_v33 = vrot.slane %v9331_v32, %v21612_v56 }
 0x913   : > { %v9617_v45 = vcombine.low %v9324_v60, %v9338_v5  ;;  %v19525_v10 = vcombine.high %v9324_v60, %v9338_v5  ;;  %v20600_v41 = vpop.f32.mrb[111].mxu1  ;;  %v10001_v29 = vcombine.low %v9338_v5, %v9346_v59  ;;  %v9288_v52 = vpack.c.bf16 %v9244_v17, %v9241_v2 }
 0x914   : > { %v19520_v30 = vpack.c.bf16 %v9244_v17, %v9244_v17  ;;  %v9348_v58 = vcombine.high %v9338_v5, %v9338_v5  ;;  %v9641_v3 = vcombine.low %v9345_v34, %v9347_v43  ;;  %v9349_v25 = vcombine.high %v9345_v34, %v9345_v34 }
 0x915   : > { %v9625_v19 = vrot.slane %v9617_v45, %v21612_v56  ;;  %v9632_v18 = vrot.slane %v19525_v10, %v21612_v56  ;;  %v9357_v49 = vrot.slane %v9288_v52, %v21612_v56  ;;  %v10009_v36 = vrot.slane %v10001_v29, %v21612_v56 }
 0x916   : > { %v9364_v48 = vrot.slane %v19520_v30, %v21612_v56  ;;  %v10002_v39 = vcombine.low %v9348_v58, %v9331_v32  ;;  %v9822_v21 = vrot.slane %v9815_v33, %v21612_v56  ;;  %v19529_v37 = vcombine.high %v9331_v32, %v9345_v34 }
 0x917   : > { %v9633_v42 = vcombine.low %v9625_v19, %v9632_v18  ;;  %v9365_v55 = vcombine.high %v9357_v49, %v9357_v49  ;;  %v9373_v35 = vrot.slane %v9357_v49, %v21612_v56  ;;  %v9649_v15 = vrot.slane %v9641_v3, %v21612_v56  ;;  %v20967_v19 = vld [vmem:[%s27664_s28 + $0x8] sm:$0xff]  }
 0x918   : > { %v9249_v62 = vpop.f32.mrb[112].mxu1  ;;  %v9366_v27 = vcombine.high %v9364_v48, %v9364_v48  ;;  %v9380_v38 = vrot.slane %v9364_v48, %v21612_v56  ;;  %v10016_v28 = vrot.slane %v10002_v39, %v21612_v56  ;;  %v10033_v1 = vrot.slane %v19529_v37, %v21612_v56  ;;  %10677 = vmatpush1.bf16.msra.mxu0 %v20967_v19 }
 0x919   : > { %v20603_v16 = vpop.f32.mrb[113].mxu1  ;;  %v24691_v47 = vrot.slane %v9633_v42, %v21612_v56  ;;  %v24694_v40 = vrot.slane %v9365_v55, %v21612_v56  ;;  %v9642_v6 = vcombine.low %v9349_v25, %v9373_v35  ;;  %10678 = vmatprep.subr.bf16.mxu0 %v27657_v14 }
 0x91a   : > { %v9252_v50 = vpop.f32.mrb[114].mxu1  ;;  %v10017_v24 = vcombine.low %v10009_v36, %v10016_v28  ;;  %v24702_v9 = vrot.slane %v9366_v27, %v21612_v56  ;;  %v24704_v46 = vcombine.high %v9380_v38, %v9380_v38 }
 0x91b   : > { %v9289_v31 = vpack.c.bf16 %v9252_v50, %v9249_v62  ;;  %v20604_v23 = vpop.f32.mrb[115].mxu1  ;;  %v9397_v11 = vcombine.high %v24694_v40, %v24694_v40  ;;  %v9823_v13 = vcombine.low %v24691_v47, %v9822_v21  ;;  %v10026_v54 = vcombine.low %v9373_v35, %v24694_v40 }
 0x91c   : > { %v19521_v57 = vpack.c.bf16 %v9252_v50, %v9252_v50  ;;  %v10024_v20 = vrot.slane %v10017_v24, %v21612_v56  ;;  %v9656_v53 = vrot.slane %v9642_v6, %v21612_v56  ;;  %v19526_v32 = vcombine.high %v9373_v35, %v24694_v40 }
 0x91d   : > { %v9406_v26 = vrot.slane %v9289_v31, %v21612_v56  ;;  %v10049_v8 = vcombine.low %v9397_v11, %v9380_v38  ;;  %v10040_v60 = vrot.slane %v10026_v54, %v21612_v56  ;;  %v9932_v59 = vshll.u32 %v9823_v13, 16 }
 0x91e   : > { %10193 = vrot.lane.b32.xlu1 %v10024_v20, %s27632_s3  ;;  %v9657_v2 = vcombine.low %v9649_v15, %v9656_v53  ;;  %v9666_v0 = vcombine.low %v9380_v38, %v24702_v9  ;;  %v10050_v10 = vcombine.low %v24702_v9, %v24704_v46  ;;  %v9413_v41 = vrot.slane %v19521_v57, %v21612_v56 }
 0x91f   : > { %v9414_v22 = vcombine.high %v9406_v26, %v9406_v26  ;;  %v24719_v17 = vrot.slane %v9406_v26, %v21612_v56  ;;  %v10041_v43 = vcombine.low %v10033_v1, %v10040_v60  ;;  %v9934_v30 = vrot.slane %v9932_v59, 1  ;;  %v20968_v1 = vld [vmem:[%s27664_s28 + $0x10] sm:$0xff]  }
 0x920   : > { %v9257_v5 = vpop.f32.mrb[116].mxu1  ;;  %v24729_v29 = vrot.slane %v9657_v2, %v21612_v56  ;;  %v9930_v49 = vshrl.u32 %v9823_v13, 16  ;;  %v9673_v3 = vrot.slane %v19526_v32, %v21612_v56  ;;  %v9680_v36 = vrot.slane %v9666_v0, %v21612_v56  ;;  %10679 = vmatpush1.bf16.msra.mxu0 %v20968_v1 }
 0x921   : > { %v24722_v34 = vrot.slane %v9414_v22, %v21612_v56  ;;  %v20607_v45 = vpop.f32.mrb[117].mxu1  ;;  %v10048_v33 = vrot.slane %v10041_v43, %v21612_v56  ;;  %v10057_v27 = vrot.slane %v10049_v8, %v21612_v56  ;;  %v10064_v38 = vrot.slane %v10050_v10, %v21612_v56  ;;  %10680 = vmatprep.subr.bf16.mxu0 %v27657_v14 }
 0x922   : > { %v9260_v52 = vpop.f32.mrb[118].mxu1  ;;  %10233 = vrot.lane.b32.xlu1 %v24729_v29, %s27629_s6  ;;  %v9935_v35 = vor.u32 %v9934_v30, %v9930_v49  ;;  %v9415_v16 = vcombine.high %v9413_v41, %v9413_v41  ;;  %v9681_v21 = vcombine.low %v9673_v3, %v9680_v36  ;;  %v9830_v24 = vrot.slane %v24694_v40, %v21612_v56  ;;  %v20969_v30 = vld [vmem:[%s27664_s28 + $0x18] sm:$0xff]  }
 0x923   : > { %v10073_v18 = vcombine.low %v24719_v17, %v24722_v34  ;;  %v19530_v58 = vcombine.high %v24719_v17, %v24722_v34  ;;  %v20608_v48 = vpop.f32.mrb[119].mxu1  ;;  %v9290_v42 = vpack.c.bf16 %v9260_v52, %v9257_v5  ;;  %10195 = vrot.lane.b32.xlu0 %v10048_v33, %s27632_s3  ;;  %v19522_v55 = vpack.c.bf16 %v9260_v52, %v9260_v52 }
 0x924   : > { %v10065_v37 = vcombine.low %v10057_v27, %v10064_v38  ;;  %v9398_v23 = vcombine.high %v24702_v9, %v24702_v9  ;;  %v9845_v11 = vrot.slane %v24704_v46, %v21612_v56  ;;  %v24762_v26 = vrot.slane %v9413_v41, %v21612_v56  ;;  %10681 = vmatpush1.bf16.msra.mxu0 %v20969_v30 }
 0x925   : > { %v10081_v39 = vrot.slane %v10073_v18, %v21612_v56  ;;  %v10088_v25 = vrot.slane %v19530_v58, %v21612_v56  ;;  %v9455_v62 = vrot.slane %v9290_v42, %v21612_v56  ;;  %v9462_v28 = vrot.slane %v19522_v55, %v21612_v56  ;;  %10682 = vmatprep.subr.bf16.mxu0 %v27657_v14 }
 0x926   : > { %9985 = vrot.lane.b32.xlu1 %v9935_v35, %s27638_s1  ;;  %v9444_v8 = vcombine.high %v24719_v17, %v24719_v17  ;;  %v24770_v40 = vrot.slane %v9681_v21, %v21612_v56  ;;  %v24773_v46 = vrot.slane %v9415_v16, %v21612_v56  ;;  %v10072_v53 = vrot.slane %v10065_v37, %v21612_v56 }
 0x927   : > { %v10089_v6 = vcombine.low %v10081_v39, %v10088_v25  ;;  %v9463_v50 = vcombine.high %v9455_v62, %v9455_v62  ;;  %v9464_v15 = vcombine.high %v9462_v28, %v9462_v28  ;;  %v24776_v20 = vrot.slane %v9462_v28, %v21612_v56 }
 0x928   : > { %v9265_v31 = vpop.f32.mrb[120].mxu1  ;;  %10235 = vrot.lane.b32.xlu0 %v24770_v40, %s27629_s6  ;;  %v9837_v2 = vrot.slane %v9830_v24, %v21612_v56  ;;  %v24792_v5 = vrot.slane %v9455_v62, %v21612_v56  ;;  %v9852_v43 = vrot.slane %v9845_v11, %v21612_v56  ;;  %v9445_v19 = vcombine.high %v24762_v26, %v24762_v26 }
 0x929   : > { %v20611_v13 = vpop.f32.mrb[121].mxu1  ;;  %v24759_v54 = vrot.slane %v10089_v6, %v21612_v56  ;;  %v24767_v57 = vrot.slane %v9463_v50, %v21612_v56  ;;  %v24783_v60 = vrot.slane %v9464_v15, %v21612_v56  ;;  %v9713_v18 = vcombine.low %v24762_v26, %v24773_v46 }
 0x92a   : > { %v9268_v9 = vpop.f32.mrb[122].mxu1  ;;  %10311 = vrot.lane.b32.xlu1 %v10048_v33, %s27637_s2  ;;  %v9838_v52 = vcombine.low %v24729_v29, %v9837_v2  ;;  %v9853_v58 = vcombine.low %v24770_v40, %v9852_v43  ;;  %v9689_v33 = vcombine.low %v9398_v23, %v24719_v17  ;;  %v9493_v49 = vcombine.high %v24792_v5, %v24792_v5 }
 0x92b   : > { %v9291_v4 = vpack.c.bf16 %v9268_v9, %v9265_v31  ;;  %v20612_v22 = vpop.f32.mrb[123].mxu1  ;;  %v9495_v32 = vcombine.high %v24767_v57, %v24767_v57  ;;  %v19537_v59 = vcombine.low %v10072_v53, %v24759_v54  ;;  %v19523_v0 = vpack.c.bf16 %v9268_v9, %v9268_v9  ;;  %v20971_v9 = vld [vmem:[%s27664_s28 + $0x28] sm:$0xff]  }
 0x92c   : > { %v9496_v10 = vcombine.high %v24783_v60, %v24783_v60  ;;  %10313 = vrot.lane.b32.xlu0 %v10072_v53, %s27637_s2  ;;  %v9446_v39 = vcombine.high %v24722_v34, %v24722_v34  ;;  %v9939_v25 = vshll.u32 %v9838_v52, 16  ;;  %v9946_v55 = vshll.u32 %v9853_v58, 16 }
 0x92d   : > { %v24797_v45 = vcombine.low %v9495_v32, %v24776_v20  ;;  %v9504_v41 = vrot.slane %v9291_v4, %v21612_v56  ;;  %19553 = vmatprep.mubr.msk.bf16.mxu0 %vm4935_vm2, %v19537_v59  ;;  %v9690_v17 = vcombine.low %v24722_v34, %v9444_v8  ;;  %v19527_v62 = vcombine.high %v24762_v26, %v24773_v46  ;;  %v20970_v34 = vld [vmem:[%s27664_s28 + $0x20] sm:$0xff]  }
 0x92e   : > { %10351 = vrot.lane.b32.xlu1 %v24770_v40, %s27630_s29  ;;  %v24828_v36 = vrot.slane %v19523_v0, %v21612_v56  ;;  %v19531_v28 = vcombine.high %v24792_v5, %v24767_v57  ;;  %v10122_v6 = vcombine.low %v24776_v20, %v24783_v60  ;;  %v9937_v50 = vshrl.u32 %v9838_v52, 16  ;;  %10683 = vmatpush1.bf16.msra.mxu0 %v20970_v34 }
 0x92f   : > { %v9512_v48 = vcombine.high %v9504_v41, %v9504_v41  ;;  %v9520_v42 = vrot.slane %v9504_v41, %v21612_v56  ;;  %v9941_v21 = vrot.slane %v9939_v25, 1  ;;  %v10097_v31 = vcombine.low %v24773_v46, %v9445_v19  ;;  %10684 = vmatprep.subr.bf16.mxu0 %v27657_v14 }
 0x930   : > { %v24820_v3 = vpop.f32.mrb[124].mxu1  ;;  %v9737_v24 = vcombine.low %v24767_v57, %v9493_v49  ;;  %v19528_v23 = vcombine.high %v24776_v20, %v24783_v60  ;;  %v24849_v11 = vrot.slane %v9713_v18, %v21612_v56  ;;  %v9948_v13 = vrot.slane %v9946_v55, 1 }
 0x931   : > { %v20615_v35 = vpop.f32.mrb[125].mxu1  ;;  %v24831_v27 = vrot.slane %v9512_v48, %v21612_v56  ;;  %v24833_v38 = vcombine.low %v9496_v10, %v9520_v42  ;;  %v9942_v15 = vor.u32 %v9941_v21, %v9937_v50  ;;  %v9697_v26 = vrot.slane %v9689_v33, %v21612_v56 }
 0x932   : > { %v9276_v16 = vpop.f32.mrb[126].mxu1  ;;  %10197 = vrot.lane.b32.xlu1 %v10072_v53, %s27632_s3  ;;  %v9704_v8 = vrot.slane %v9690_v17, %v21612_v56  ;;  %v9513_v57 = vcombine.high %v24828_v36, %v24828_v36  ;;  %v9944_v53 = vshrl.u32 %v9853_v58, 16  ;;  %v9447_v4 = vcombine.high %v24773_v46, %v24773_v46  ;;  %10685 = vmatpush1.bf16.msra.mxu0 %v20971_v9  ;;  %v20972_v58 = vld [vmem:[%s27664_s28 + $0x30] sm:$0xff]  }
 0x933   : > { %v20616_v37 = vpop.f32.mrb[127].mxu1  ;;  %v9762_v20 = vcombine.low %v9520_v42, %v24831_v27  ;;  %9987 = vrot.lane.b32.xlu0 %v9942_v15, %s27638_s1  ;;  %v9860_v1 = vrot.slane %v9446_v39, %v21612_v56  ;;  %v24865_v32 = vrot.slane %v19531_v28, %v21612_v56  ;;  %v24868_v2 = vrot.slane %v10122_v6, %v21612_v56 }
 0x934   : > { %v9705_v22 = vcombine.low %v9697_v26, %v9704_v8  ;;  %v24870_v59 = vcombine.high %v9520_v42, %v9520_v42  ;;  %v10098_v0 = vcombine.low %v9447_v4, %v24792_v5  ;;  %v10105_v46 = vrot.slane %v10097_v31, %v21612_v56  ;;  %10686 = vmatprep.subr.bf16.mxu0 %v27657_v14 }
 0x935   : > { %v9745_v43 = vrot.slane %v9737_v24, %v21612_v56  ;;  %v9949_v41 = vor.u32 %v9948_v13, %v9944_v53  ;;  %v10137_v52 = vcombine.low %v24865_v32, %v24868_v2  ;;  %v9752_v30 = vrot.slane %v24797_v45, %v21612_v56  ;;  %v20974_v53 = vld [vmem:[%s27664_s28 + $0x40] sm:$0xff]  }
 0x936   : > { %10271 = vrot.lane.b32.xlu1 %v9942_v15, %s27624_s0  ;;  %v24883_v19 = vrot.slane %v19528_v23, %v21612_v56  ;;  %v10146_v33 = vcombine.low %v24831_v27, %v24870_v59  ;;  %v10112_v49 = vrot.slane %v10098_v0, %v21612_v56  ;;  %v24892_v48 = vrot.slane %v9762_v20, %v21612_v56 }
 0x937   : > { %v9292_v42 = vpack.c.bf16 %v9276_v16, %v24820_v3  ;;  %10273 = vrot.lane.b32.xlu0 %v9949_v41, %s27624_s0  ;;  %v9728_v39 = vrot.slane %v19527_v62, %v21612_v56  ;;  %v9867_v25 = vrot.slane %v9860_v1, %v21612_v56  ;;  %v24899_v55 = vcombine.low %v9745_v43, %v9752_v30  ;;  %v20973_v62 = vld [vmem:[%s27664_s28 + $0x38] sm:$0xff]   ;;  %s27670_s28 = sld [smem:[#allocation4_spill]] }
 0x938   : > { %v24876_v10 = vpop.f32.mrb[128].mxu1  ;;  %v19524_v17 = vpack.c.bf16 %v9276_v16, %v9276_v16  ;;  %v24902_v34 = vrot.slane %v9705_v22, %v21612_v56  ;;  %v10113_v28 = vcombine.low %v10105_v46, %v10112_v49  ;;  %v9777_v3 = vcombine.low %v24883_v19, %v24892_v48  ;;  %10687 = vmatpush1.bf16.msra.mxu0 %v20972_v58 }
 0x939   : > { %v20619_v18 = vpop.f32.mrb[129].mxu1  ;;  %v9553_v6 = vrot.slane %v9292_v42, %v21612_v56  ;;  %v9875_v16 = vrot.slane %v24792_v5, %v21612_v56  ;;  %10688 = vmatprep.subr.bf16.mxu0 %v27657_v14  ;;  %v9527_v21 = vrot.slane %v24828_v36, %v21612_v56  ;;  %v24918_v37 = vrot.slane %v9513_v57, %v21612_v56 }
 0x93a   : > { %v9284_v45 = vpop.f32.mrb[130].mxu1  ;;  %10389 = vrot.lane.b32.xlu1 %v9949_v41, %s27636_s5  ;;  %v9560_v50 = vrot.slane %v19524_v17, %v21612_v56  ;;  %v9729_v23 = vcombine.low %v24849_v11, %v9728_v39  ;;  %v9868_v15 = vcombine.low %v24902_v34, %v9867_v25  ;;  %v10153_v5 = vrot.slane %v24833_v38, %v21612_v56 }
 0x93b   : > { %v20620_v35 = vpop.f32.mrb[131].mxu1  ;;  %10353 = vrot.lane.b32.xlu0 %v24902_v34, %s27630_s29  ;;  %v9561_v31 = vcombine.high %v9553_v6, %v9553_v6  ;;  %v10160_v13 = vrot.slane %v10146_v33, %v21612_v56  ;;  %v9569_v36 = vrot.slane %v9553_v6, %v21612_v56  ;;  %v9543_v57 = vcombine.high %v9527_v21, %v9527_v21 }
 0x93c   : > { %v9562_v24 = vcombine.high %v9560_v50, %v9560_v50  ;;  %v24930_v26 = vrot.slane %v9560_v50, %v21612_v56  ;;  %10689 = vmatpush1.bf16.msra.mxu0 %v20973_v62  ;;  %v9544_v11 = vcombine.high %v24831_v27, %v24831_v27  ;;  %v24946_v4 = vrot.slane %v9729_v23, %v21612_v56 }
 0x93d   : > { %v24933_v8 = vrot.slane %v9561_v31, %v21612_v56  ;;  %v10161_v20 = vcombine.low %v10153_v5, %v10160_v13  ;;  %10690 = vmatprep.subr.bf16.mxu0 %v27657_v14  ;;  %v9953_v22 = vshll.u32 %v9868_v15, 16  ;;  %v9882_v27 = vrot.slane %v9875_v16, %v21612_v56 }
 0x93e   : > { %9989 = vrot.lane.b32.xlu1 %v9949_v41, %s27638_s1  ;;  %v9590_v9 = vrot.slane %v9562_v24, %v21612_v56  ;;  %v9293_v14 = vpack.c.bf16 %v24876_v10, %v24876_v10  ;;  %v10169_v46 = vcombine.low %v9527_v21, %v24918_v37  ;;  %v19532_v43 = vcombine.high %v9527_v21, %v24918_v37 }
 0x93f   : > { %10199 = vrot.lane.b32.xlu0 %v24759_v54, %s27632_s3  ;;  %v10209_v1 = vcombine.low %v9569_v36, %v24933_v8  ;;  %v19533_v0 = vcombine.high %v9569_v36, %v24933_v8  ;;  %v9785_v18 = vcombine.low %v9544_v11, %v9527_v21  ;;  %v9786_v58 = vcombine.low %v24918_v37, %v9543_v57 }
 0x940   : > { %v19534_v38 = vcombine.high %v24930_v26, %v9590_v9  ;;  %10691 = vmatpush1.bf16.msra.mxu0 %v20974_v53  ;;  %v9594_v41 = vcombine.high %v9590_v9, %v9590_v9  ;;  %v9601_v30 = vrot.slane %v9293_v14, %v21612_v56  ;;  %v9591_v33 = vcombine.high %v9569_v36, %v9569_v36 }
 0x941   : > { %v9592_v10 = vcombine.high %v24930_v26, %v24930_v26  ;;  %v10177_v49 = vrot.slane %v10169_v46, %v21612_v56  ;;  %v10184_v42 = vrot.slane %v19532_v43, %v21612_v56  ;;  %v9793_v25 = vrot.slane %v9785_v18, %v21612_v56 }
 0x942   : > { %10237 = vrot.lane.b32.xlu1 %v24902_v34, %s27629_s6  ;;  %v9602_v45 = vcombine.high %v9601_v30, %v9601_v30  ;;  %v9609_v39 = vrot.slane %v9601_v30, %v21612_v56  ;;  %v9800_v17 = vrot.slane %v9786_v58, %v21612_v56  ;;  %v24971_v35 = vrot.slane %v10113_v28, %v21612_v56 }
 0x943   : > { %10239 = vrot.lane.b32.xlu0 %v24946_v4, %s27629_s6  ;;  %v9955_v6 = vrot.slane %v9953_v22, 1  ;;  %v10217_v50 = vrot.slane %v10209_v1, %v21612_v56  ;;  %v10224_v62 = vrot.slane %v19533_v0, %v21612_v56  ;;  %v10185_v31 = vcombine.low %v10177_v49, %v10184_v42 }
 0x944   : > { %v9616_v16 = vrot.slane %v9602_v45, %v21612_v56  ;;  %v10328_v21 = vcombine.low %v9594_v41, %v9609_v39  ;;  %v9951_v24 = vshrl.u32 %v9868_v15, 16  ;;  %v24984_v28 = vrot.slane %v10137_v52, %v21612_v56 }
 0x945   : > { %v9883_v23 = vcombine.low %v24946_v4, %v9882_v27  ;;  %v10287_v5 = vcombine.low %v24933_v8, %v9591_v33  ;;  %v10255_v13 = vrot.slane %v24930_v26, %v21612_v56  ;;  %v10327_v36 = vcombine.low %v9590_v9, %v9592_v10 }
 0x946   : > { %10315 = vrot.lane.b32.xlu1 %v24759_v54, %s27637_s2  ;;  %v24976_v54 = vcombine.low %v9793_v25, %v9800_v17  ;;  %v10406_v57 = vcombine.low %v9609_v39, %v9616_v16  ;;  %v10413_v15 = vrot.slane %v19534_v38, %v21612_v56  ;;  %v9956_v11 = vor.u32 %v9955_v6, %v9951_v24 }
 0x947   : > { %10317 = vrot.lane.b32.xlu0 %v24971_v35, %s27637_s2  ;;  %v24994_v53 = vrot.slane %v10161_v20, %v21612_v56  ;;  %v10373_v32 = vrot.slane %v9616_v16, %v21612_v56  ;;  %v10225_v2 = vcombine.low %v10217_v50, %v10224_v62  ;;  %v10342_v52 = vrot.slane %v10328_v21, %v21612_v56 }
 0x948   : > { %v10420_v22 = vrot.slane %v10406_v57, %v21612_v56  ;;  %v25000_v27 = vrot.slane %v10185_v31, %v21612_v56  ;;  %v9593_v9 = vcombine.high %v24933_v8, %v24933_v8  ;;  %v10295_v20 = vrot.slane %v10287_v5, %v21612_v56 }
 0x949   : > { %v25006_v38 = vrot.slane %v10225_v2, %v21612_v56  ;;  %v10335_v0 = vrot.slane %v10327_v36, %v21612_v56  ;;  %v10262_v46 = vrot.slane %v10255_v13, %v21612_v56  ;;  %v9960_v43 = vshll.u32 %v9883_v23, 16 }
 0x94a   : > { %10355 = vrot.lane.b32.xlu1 %v24946_v4, %s27630_s29  ;;  %v10421_v14 = vcombine.low %v10413_v15, %v10420_v22  ;;  %v10288_v1 = vcombine.low %v9593_v9, %v24930_v26  ;;  %v10380_v8 = vrot.slane %v10373_v32, %v21612_v56  ;;  %v19539_v41 = vcombine.low %v24971_v35, %v24984_v28 }
 0x94b   : > { %10391 = vrot.lane.b32.xlu0 %v9956_v11, %s27636_s5  ;;  %v10343_v18 = vcombine.low %v10335_v0, %v10342_v52  ;;  %v25019_v58 = vcombine.low %v25006_v38, %v10262_v46  ;;  %v19541_v33 = vcombine.low %v24994_v53, %v25000_v27  ;;  %v9958_v42 = vshrl.u32 %v9883_v23, 16 }
 0x94c   : > { %v10302_v30 = vrot.slane %v10288_v1, %v21612_v56  ;;  %v25029_v49 = vrot.slane %v10421_v14, %v21612_v56  ;;  %v9962_v45 = vrot.slane %v9960_v43, 1  ;;  %v9890_v50 = vrot.slane %v24783_v60, %v21612_v56 }
 0x94d   : > { %v25026_v10 = vrot.slane %v10343_v18, %v21612_v56  ;;  %v25049_v62 = vrot.slane %v24899_v55, %v21612_v56  ;;  %v25059_v60 = vrot.slane %v9777_v3, %v21612_v56  ;;  %v9905_v55 = vrot.slane %v24870_v59, %v21612_v56 }
 0x94e   : > { %10201 = vrot.lane.b32.xlu1 %v24971_v35, %s27632_s3  ;;  %v10303_v26 = vcombine.low %v10295_v20, %v10302_v30  ;;  %v9963_v6 = vor.u32 %v9962_v45, %v9958_v42  ;;  %v9897_v16 = vrot.slane %v9890_v50, %v21612_v56  ;;  %v9545_v19 = vcombine.high %v24918_v37, %v24918_v37 }
 0x94f   : > { %9991 = vrot.lane.b32.xlu0 %v9956_v11, %s27638_s1  ;;  %v25035_v25 = vcombine.low %v25026_v10, %v10380_v8  ;;  %v9912_v24 = vrot.slane %v9905_v55, %v21612_v56  ;;  %v25086_v37 = vrot.slane %v24976_v54, %v21612_v56  ;;  %v10267_v9 = vshll.u32 %v25019_v58, 16 }
 0x950   : > { %v25032_v39 = vrot.slane %v10303_v26, %v21612_v56  ;;  %v9898_v21 = vcombine.low %v25049_v62, %v9897_v16  ;;  %v9920_v5 = vrot.slane %v9545_v19, %v21612_v56  ;;  %v10265_v20 = vshrl.u32 %v25019_v58, 16 }
 0x951   : > { %v9913_v23 = vcombine.low %v25059_v60, %v9912_v24  ;;  %v10269_v14 = vrot.slane %v10267_v9, 1  ;;  %v10385_v0 = vshll.u32 %v25035_v25, 16 }
 0x952   : > { %10275 = vrot.lane.b32.xlu1 %v9956_v11, %s27624_s0  ;;  %v19543_v17 = vcombine.low %v25032_v39, %v25029_v49  ;;  %v9967_v31 = vshll.u32 %v9898_v21, 16  ;;  %v9965_v48 = vshrl.u32 %v9898_v21, 16  ;;  %v9927_v36 = vrot.slane %v9920_v5, %v21612_v56 }
 0x953   : > { %10203 = vrot.lane.b32.xlu0 %v24984_v28, %s27632_s3  ;;  %v9974_v13 = vshll.u32 %v9913_v23, 16  ;;  %v9972_v57 = vshrl.u32 %v9913_v23, 16  ;;  %v10270_v1 = vor.u32 %v10269_v14, %v10265_v20  ;;  %v10387_v46 = vrot.slane %v10385_v0, 1 }
 0x954   : > { %v9969_v3 = vrot.slane %v9967_v31, 1  ;;  %v9928_v11 = vcombine.low %v25086_v37, %v9927_v36 }
 0x955   : > { %v9976_v15 = vrot.slane %v9974_v13, 1 }
 0x956   : > { %10319 = vrot.lane.b32.xlu1 %v24984_v28, %s27637_s2  ;;  %v9970_v59 = vor.u32 %v9969_v3, %v9965_v48  ;;  %v9981_v54 = vshll.u32 %v9928_v11, 16  ;;  %v9979_v2 = vshrl.u32 %v9928_v11, 16 }
 0x957   : > { %10277 = vrot.lane.b32.xlu0 %v9963_v6, %s27624_s0  ;;  %v9977_v32 = vor.u32 %v9976_v15, %v9972_v57 }
 0x958   : > { %v9983_v52 = vrot.slane %v9981_v54, 1 }
 0x95a   : > { %10393 = vrot.lane.b32.xlu1 %v9963_v6, %s27636_s5  ;;  %v9984_v22 = vor.u32 %v9983_v52, %v9979_v2 }
 0x95b   : > { %10357 = vrot.lane.b32.xlu0 %v25049_v62, %s27630_s29 }
 0x95e   : > { %9993 = vrot.lane.b32.xlu1 %v9963_v6, %s27638_s1 }
 0x95f   : > { %10243 = vrot.lane.b32.xlu0 %v25059_v60, %s27629_s6 }
 0x962   : > { %10241 = vrot.lane.b32.xlu1 %v25049_v62, %s27629_s6 }
 0x963   : > { %10321 = vrot.lane.b32.xlu0 %v24994_v53, %s27637_s2 }
 0x966   : > { %10359 = vrot.lane.b32.xlu1 %v25059_v60, %s27630_s29 }
 0x967   : > { %10207 = vrot.lane.b32.xlu0 %v25000_v27, %s27632_s3 }
 0x96a   : > { %10205 = vrot.lane.b32.xlu1 %v24994_v53, %s27632_s3 }
 0x96b   : > { %10395 = vrot.lane.b32.xlu0 %v9970_v59, %s27636_s5 }
 0x96e   : > { %10323 = vrot.lane.b32.xlu1 %v25000_v27, %s27637_s2 }
 0x96f   : > { %9995 = vrot.lane.b32.xlu0 %v9970_v59, %s27638_s1 }
 0x972   : > { %10279 = vrot.lane.b32.xlu1 %v9970_v59, %s27624_s0 }
 0x973   : > { %10361 = vrot.lane.b32.xlu0 %v25086_v37, %s27630_s29 }
 0x976   : > { %10245 = vrot.lane.b32.xlu1 %v25086_v37, %s27629_s6 }
 0x977   : > { %10281 = vrot.lane.b32.xlu0 %v9977_v32, %s27624_s0 }
 0x97a   : > { %10397 = vrot.lane.b32.xlu1 %v9977_v32, %s27636_s5 }
 0x97b   : > { %10247 = vrot.lane.b32.xlu0 %v25006_v38, %s27629_s6 }
 0x97e   : > { %9997 = vrot.lane.b32.xlu1 %v9977_v32, %s27638_s1 }
 0x97f   : > { %10399 = vrot.lane.b32.xlu0 %v9984_v22, %s27636_s5 }
 0x982   : > { %10363 = vrot.lane.b32.xlu1 %v25006_v38, %s27630_s29  ;;  %v10383_v38 = vshrl.u32 %v25035_v25, 16 }
 0x983   : > { %9999 = vrot.lane.b32.xlu0 %v9984_v22, %s27638_s1 }
 0x984   : > { %v10388_v8 = vor.u32 %v10387_v46, %v10383_v38 }
 0x986   : > { %10283 = vrot.lane.b32.xlu1 %v9984_v22, %s27624_s0 }
 0x987   : > { %10325 = vrot.lane.b32.xlu0 %v25032_v39, %s27637_s2 }
 0x98a   : > { %10401 = vrot.lane.b32.xlu1 %v10270_v1, %s27636_s5 }
 0x98b   : > { %10365 = vrot.lane.b32.xlu0 %v25026_v10, %s27630_s29 }
 0x98f   : > { %10285 = vrot.lane.b32.xlu0 %v10270_v1, %s27624_s0 }
 0x990   : > { %v10194_v43 = vpop.permute.xlu1 %10193 }
 0x993   : > { %10403 = vrot.lane.b32.xlu0 %v10388_v8, %s27636_s5 }
 0x994   : > { %v10234_v30 = vpop.permute.xlu1 %10233 }
 0x995   : > { %v10196_v18 = vpop.permute.xlu0 %10195 }
 0x998   : > { %v9986_v58 = vpop.permute.xlu1 %9985 }
 0x999   : > { %v10431_v31 = vsel %vm4935_vm2, %v24691_v47, %v9986_v58 }
 0x99a   : > { %v10236_v26 = vpop.permute.xlu0 %10235  ;;  %v10454_v3 = vsel %vm4997_vm4, %v10431_v31, %v10194_v43 }
 0x99b   : > { %v10470_v5 = vsel %vm5059_vm6, %v10454_v3, %v10234_v30 }
 0x99c   : > { %v10312_v42 = vpop.permute.xlu1 %10311 }
 0x99e   : > { %v10314_v6 = vpop.permute.xlu0 %10313 }
 0x9a0   : > { %v10352_v45 = vpop.permute.xlu1 %10351 }
 0x9a4   : > { %v10198_v50 = vpop.permute.xlu1 %10197 }
 0x9a5   : > { %v9988_v16 = vpop.permute.xlu0 %9987 }
 0x9a6   : > { %v10434_v48 = vsel %vm4935_vm2, %v24729_v29, %v9988_v16 }
 0x9a7   : > { %v10456_v23 = vsel %vm4997_vm4, %v10434_v48, %v10196_v18 }
 0x9a8   : > { %v10272_v21 = vpop.permute.xlu1 %10271  ;;  %v10472_v57 = vsel %vm5059_vm6, %v10456_v23, %v10236_v26 }
 0x9a9   : > { %v10274_v10 = vpop.permute.xlu0 %10273  ;;  %v10486_v13 = vsel %vm5121_vm8, %v10470_v5, %v10272_v21 }
 0x9aa   : > { %v10502_v47 = vsel %vm5183_vm10, %v10486_v13, %v10312_v42  ;;  %v10488_v11 = vsel %vm5121_vm8, %v10472_v57, %v10274_v10 }
 0x9ab   : > { %v10518_v54 = vsel %vm5245_vm12, %v10502_v47, %v10352_v45  ;;  %v10504_v2 = vsel %vm5183_vm10, %v10488_v11, %v10314_v6 }
 0x9ac   : > { %v10390_v55 = vpop.permute.xlu1 %10389 }
 0x9ad   : > { %v10354_v25 = vpop.permute.xlu0 %10353  ;;  %v10534_v9 = vsel %vm5307_vm14, %v10518_v54, %v10390_v55 }
 0x9ae   : > { %v10520_v52 = vsel %vm5245_vm12, %v10504_v2, %v10354_v25 }
 0x9b0   : > { %v9990_v19 = vpop.permute.xlu1 %9989 }
 0x9b1   : > { %v10200_v24 = vpop.permute.xlu0 %10199  ;;  %v10437_v42 = vsel %vm4935_vm2, %v24770_v40, %v9990_v19 }
 0x9b2   : > { %v10458_v16 = vsel %vm4997_vm4, %v10437_v42, %v10198_v50 }
 0x9b4   : > { %v10238_v59 = vpop.permute.xlu1 %10237 }
 0x9b5   : > { %v10240_v36 = vpop.permute.xlu0 %10239 }
 0x9b8   : > { %v10316_v15 = vpop.permute.xlu1 %10315 }
 0x9b9   : > { %v10318_v32 = vpop.permute.xlu0 %10317 }
 0x9bc   : > { %v10356_v29 = vpop.permute.xlu1 %10355 }
 0x9bd   : > { %v10392_v22 = vpop.permute.xlu0 %10391 }
 0x9be   : > { %v10536_v20 = vsel %vm5307_vm14, %v10520_v52, %v10392_v22 }
 0x9bf   : > { %v19536_v1 = vcombine.low %v10534_v9, %v10536_v20 }
 0x9c0   : > { %v10202_v14 = vpop.permute.xlu1 %10201 }
 0x9c1   : > { %10707 = vmatmul.mubr.bf16.vlgmr.msra.gmra.mrb[100].mxu0 %v19536_v1  ;;  %v9992_v0 = vpop.permute.xlu0 %9991 }
 0x9c2   : > { %19554 = vmatprep.mubr.msk.bf16.mxu0 %vm4935_vm2, %v19539_v41  ;;  %v10440_v45 = vsel %vm4935_vm2, %v24902_v34, %v9992_v0  ;;  %v10474_v41 = vsel %vm5059_vm6, %v10458_v16, %v10238_v59 }
 0x9c3   : > { %v10460_v35 = vsel %vm4997_vm4, %v10440_v45, %v10200_v24 }
 0x9c4   : > { %v10276_v38 = vpop.permute.xlu1 %10275  ;;  %v10476_v55 = vsel %vm5059_vm6, %v10460_v35, %v10240_v36 }
 0x9c5   : > { %v10204_v46 = vpop.permute.xlu0 %10203  ;;  %v10490_v10 = vsel %vm5121_vm8, %v10474_v41, %v10276_v38 }
 0x9c6   : > { %v10506_v40 = vsel %vm5183_vm10, %v10490_v10, %v10316_v15 }
 0x9c7   : > { %v10522_v48 = vsel %vm5245_vm12, %v10506_v40, %v10356_v29  ;;  %v19535_v40 = vld [vmem:[%s27661_s22 + $0x2] ss:$0 sm:$0xff] }
 0x9c8   : > { %v10320_v43 = vpop.permute.xlu1 %10319 }
 0x9c9   : > { %v10278_v8 = vpop.permute.xlu0 %10277 }
 0x9ca   : > { %v10492_v25 = vsel %vm5121_vm8, %v10476_v55, %v10278_v8 }
 0x9cb   : > { %v10508_v34 = vsel %vm5183_vm10, %v10492_v25, %v10318_v32 }
 0x9cc   : > { %v10394_v30 = vpop.permute.xlu1 %10393 }
 0x9cd   : > { %v10358_v18 = vpop.permute.xlu0 %10357  ;;  %v10538_v24 = vsel %vm5307_vm14, %v10522_v48, %v10394_v30 }
 0x9ce   : > { %v10524_v50 = vsel %vm5245_vm12, %v10508_v34, %v10358_v18 }
 0x9d0   : > { %v9994_v58 = vpop.permute.xlu1 %9993 }
 0x9d1   : > { %v10244_v26 = vpop.permute.xlu0 %10243  ;;  %v10443_v47 = vsel %vm4935_vm2, %v24946_v4, %v9994_v58 }
 0x9d2   : > { %v10462_v29 = vsel %vm4997_vm4, %v10443_v47, %v10202_v14  ;;  %v10741_v47 = vunpack.c.l.bf16 %v24053_v44 }
 0x9d4   : > { %v10242_v6 = vpop.permute.xlu1 %10241 }
 0x9d5   : > { %v10322_v28 = vpop.permute.xlu0 %10321  ;;  %v10478_v2 = vsel %vm5059_vm6, %v10462_v29, %v10242_v6 }
 0x9d8   : > { %v10360_v21 = vpop.permute.xlu1 %10359 }
 0x9d9   : > { %v10208_v31 = vpop.permute.xlu0 %10207 }
 0x9dc   : > { %v10206_v19 = vpop.permute.xlu1 %10205 }
 0x9dd   : > { %v10396_v3 = vpop.permute.xlu0 %10395 }
 0x9de   : > { %v10540_v59 = vsel %vm5307_vm14, %v10524_v50, %v10396_v3  ;;  %v10739_v50 = vunpack.c.l.bf16 %v24049_v12 }
 0x9df   : > { %v19538_v5 = vcombine.low %v10538_v24, %v10540_v59 }
 0x9e0   : > { %v10324_v23 = vpop.permute.xlu1 %10323 }
 0x9e1   : > { %10715 = vmatmul.mubr.bf16.gmra.mrb[104].mxu0 %v19538_v5  ;;  %v9996_v13 = vpop.permute.xlu0 %9995 }
 0x9e2   : > { %19555 = vmatprep.mubr.msk.bf16.mxu0 %vm4935_vm2, %v19541_v33  ;;  %v10446_v57 = vsel %vm4935_vm2, %v25049_v62, %v9996_v13 }
 0x9e3   : > { %v10464_v32 = vsel %vm4997_vm4, %v10446_v57, %v10204_v46 }
 0x9e4   : > { %v10280_v36 = vpop.permute.xlu1 %10279  ;;  %v10480_v53 = vsel %vm5059_vm6, %v10464_v32, %v10244_v26 }
 0x9e5   : > { %v10362_v15 = vpop.permute.xlu0 %10361  ;;  %v10494_v33 = vsel %vm5121_vm8, %v10478_v2, %v10280_v36  ;;  %v10742_v2 = vunpack.c.h.bf16 %v24053_v44 }
 0x9e6   : > { %v10510_v22 = vsel %vm5183_vm10, %v10494_v33, %v10320_v43 }
 0x9e7   : > { %v10526_v20 = vsel %vm5245_vm12, %v10510_v22, %v10360_v21 }
 0x9e8   : > { %v10246_v11 = vpop.permute.xlu1 %10245 }
 0x9e9   : > { %v10282_v54 = vpop.permute.xlu0 %10281 }
 0x9ea   : > { %v10496_v52 = vsel %vm5121_vm8, %v10480_v53, %v10282_v54 }
 0x9eb   : > { %v10512_v4 = vsel %vm5183_vm10, %v10496_v52, %v10322_v28 }
 0x9ec   : > { %v10398_v27 = vpop.permute.xlu1 %10397  ;;  %v10528_v14 = vsel %vm5245_vm12, %v10512_v4, %v10362_v15 }
 0x9ed   : > { %v10248_v62 = vpop.permute.xlu0 %10247  ;;  %v10542_v0 = vsel %vm5307_vm14, %v10526_v20, %v10398_v27 }
 0x9f0   : > { %v9998_v9 = vpop.permute.xlu1 %9997 }
 0x9f1   : > { %v10400_v1 = vpop.permute.xlu0 %10399  ;;  %v10449_v18 = vsel %vm4935_vm2, %v25059_v60, %v9998_v9 }
 0x9f2   : > { %v10544_v38 = vsel %vm5307_vm14, %v10528_v14, %v10400_v1  ;;  %v10466_v43 = vsel %vm4997_vm4, %v10449_v18, %v10206_v19  ;;  %v10744_v14 = vunpack.c.h.bf16 %v24057_v7 }
 0x9f3   : > { %v19540_v46 = vcombine.low %v10542_v0, %v10544_v38  ;;  %v10482_v45 = vsel %vm5059_vm6, %v10466_v43, %v10246_v11 }
 0x9f4   : > { %v10364_v8 = vpop.permute.xlu1 %10363 }
 0x9f5   : > { %10723 = vmatmul.mubr.bf16.gmra.mrb[108].mxu0 %v19540_v46  ;;  %v10000_v30 = vpop.permute.xlu0 %9999 }
 0x9f6   : > { %19556 = vmatprep.mubr.msk.bf16.mxu0 %vm4935_vm2, %v19543_v17  ;;  %v10452_v42 = vsel %vm4935_vm2, %v25086_v37, %v10000_v30 }
 0x9f7   : > { %v10468_v35 = vsel %vm4997_vm4, %v10452_v42, %v10208_v31 }
 0x9f8   : > { %v10284_v26 = vpop.permute.xlu1 %10283  ;;  %v10484_v49 = vsel %vm5059_vm6, %v10468_v35, %v10248_v62  ;;  %v10743_v62 = vunpack.c.l.bf16 %v24057_v7  ;;  %v20975_v7 = vld [vmem:[%s27665_s11] sm:$0xff]   ;;  %v20978_v35 = vld [vmem:[%s27665_s11 + $0x18] sm:$0xff]  }
 0x9f9   : > { %v10326_v58 = vpop.permute.xlu0 %10325  ;;  %v10498_v6 = vsel %vm5121_vm8, %v10482_v45, %v10284_v26  ;;  %v10746_v26 = vunpack.c.h.bf16 %v24061_v63 }
 0x9fa   : > { %v10514_v60 = vsel %vm5183_vm10, %v10498_v6, %v10324_v23  ;;  %v10740_v23 = vunpack.c.h.bf16 %v24049_v12 }
 0x9fb   : > { %v10530_v28 = vsel %vm5245_vm12, %v10514_v60, %v10364_v8  ;;  %v10745_v8 = vunpack.c.l.bf16 %v24061_v63  ;;  %v20977_v63 = vld [vmem:[%s27665_s11 + $0x10] sm:$0xff]   ;;  %v20979_v60 = vld [vmem:[%s27665_s11 + $0x20] sm:$0xff]  }
 0x9fc   : > { %v10402_v41 = vpop.permute.xlu1 %10401 }
 0x9fd   : > { %v10366_v16 = vpop.permute.xlu0 %10365  ;;  %v10546_v55 = vsel %vm5307_vm14, %v10530_v28, %v10402_v41 }
 0xa01   : > { %v10286_v39 = vpop.permute.xlu0 %10285 }
 0xa02   : > { %v10500_v17 = vsel %vm5121_vm8, %v10484_v49, %v10286_v39  ;;  %v20980_v49 = vld [vmem:[%s27665_s11 + $0x28] sm:$0xff]   ;;  %v20981_v39 = vld [vmem:[%s27665_s11 + $0x30] ss:$0 sps:$4 sm:$0x33]  }
 0xa03   : > { %v10516_v21 = vsel %vm5183_vm10, %v10500_v17, %v10326_v58 }
 0xa04   : > { %v10532_v37 = vsel %vm5245_vm12, %v10516_v21, %v10366_v16  ;;  %v20976_v16 = vld [vmem:[%s27665_s11 + $0x8] sm:$0xff]  }
 0xa05   : > { %v10404_v10 = vpop.permute.xlu0 %10403 }
 0xa06   : > { %v10548_v25 = vsel %vm5307_vm14, %v10532_v37, %v10404_v10 }
 0xa07   : > { %v19542_v31 = vcombine.low %v10546_v55, %v10548_v25 }
 0xa09   : > { %10731 = vmatmul.mubr.bf16.gmra.mrb[112].mxu0 %v19542_v31 }
 0xa94   : > { %v10708_v19 = vpop.f32.mrb[100].mxu0 }
 0xa95   : > { %v10709_v34 = vadd.f32 %v19535_v40, %v10708_v19  ;;  %v10710_v48 = vpop.f32.mrb[101].mxu0 }
 0xa96   : > { %v10711_v3 = vpop.f32.mrb[102].mxu0 }
 0xa97   : > { %v10747_v24 = vadd.f32 %v10739_v50, %v10709_v34  ;;  %v10712_v59 = vadd.f32 %v19535_v40, %v10711_v3  ;;  %v10713_v5 = vpop.f32.mrb[103].mxu0 }
 0xa99   : > { %v10748_v13 = vadd.f32 %v10740_v23, %v10712_v59 }
 0xa9b   : > { %v10755_v36 = vpack.c.bf16 %v10748_v13, %v10747_v24 }
 0xa9d   : > { %20622 = vmatpush3.bf16.msra.mxu1 %v10755_v36 }
 0xa9e   : > { %20623 = vmatprep.subr.bf16.mxu1 %v27646_v61 }
 0xab4   : > { %v10716_v57 = vpop.f32.mrb[104].mxu0 }
 0xab5   : > { %v10717_v15 = vadd.f32 %v19535_v40, %v10716_v57  ;;  %v10718_v11 = vpop.f32.mrb[105].mxu0 }
 0xab6   : > { %v10719_v32 = vpop.f32.mrb[106].mxu0 }
 0xab7   : > { %v10749_v29 = vadd.f32 %v10741_v47, %v10717_v15  ;;  %v10720_v54 = vadd.f32 %v19535_v40, %v10719_v32  ;;  %v10721_v53 = vpop.f32.mrb[107].mxu0 }
 0xab9   : > { %v10750_v27 = vadd.f32 %v10742_v2, %v10720_v54 }
 0xabb   : > { %v10756_v33 = vpack.c.bf16 %v10750_v27, %v10749_v29 }
 0xabd   : > { %20624 = vmatpush3.bf16.msra.mxu1 %v10756_v33 }
 0xabe   : > { %20625 = vmatprep.subr.bf16.mxu1 %v27646_v61 }
 0xac8   : > { %v10724_v12 = vpop.f32.mrb[108].mxu0 }
 0xac9   : > { %v10725_v52 = vadd.f32 %v19535_v40, %v10724_v12  ;;  %v10726_v22 = vpop.f32.mrb[109].mxu0 }
 0xaca   : > { %v10727_v4 = vpop.f32.mrb[110].mxu0 }
 0xacb   : > { %v10751_v9 = vadd.f32 %v10743_v62, %v10725_v52  ;;  %v10728_v20 = vadd.f32 %v19535_v40, %v10727_v4  ;;  %v10729_v1 = vpop.f32.mrb[111].mxu0 }
 0xacd   : > { %v10752_v0 = vadd.f32 %v10744_v14, %v10728_v20 }
 0xacf   : > { %v10757_v38 = vpack.c.bf16 %v10752_v0, %v10751_v9 }
 0xad1   : > { %20626 = vmatpush3.bf16.msra.mxu1 %v10757_v38 }
 0xad2   : > { %20627 = vmatprep.subr.bf16.mxu1 %v27646_v61 }
 0xadc   : > { %v10732_v44 = vpop.f32.mrb[112].mxu0 }
 0xadd   : > { %v10733_v46 = vadd.f32 %v19535_v40, %v10732_v44  ;;  %v10734_v30 = vpop.f32.mrb[113].mxu0 }
 0xade   : > { %v10735_v18 = vpop.f32.mrb[114].mxu0 }
 0xadf   : > { %v10753_v43 = vadd.f32 %v10745_v8, %v10733_v46  ;;  %v10736_v58 = vadd.f32 %v19535_v40, %v10735_v18  ;;  %v10737_v42 = vpop.f32.mrb[115].mxu0 }
 0xae1   : > { %v10754_v45 = vadd.f32 %v10746_v26, %v10736_v58 }
 0xae3   : > { %v10758_v6 = vpack.c.bf16 %v10754_v45, %v10753_v43 }
 0xae5   : > { %20628 = vmatpush3.bf16.msra.mxu1 %v10758_v6 }
 0xae8   : > { %20630 = vmatmul.mubr.msk.bf16.vlgmr.msra.gmra.mrb[132].mxu1 %vm5121_vm8, %v20975_v7 }
 0xae9   : > { %20633 = vmatprep.mubr.msk.bf16.mxu1 %vm21321_vm0, %v27646_v61 }
 0xaf0   : > { %20634 = vmatmul.mubr.msk.bf16.gmra.mrb[136].mxu1 %vm5121_vm8, %v20976_v16 }
 0xaf1   : > { %20637 = vmatprep.mubr.msk.bf16.mxu1 %vm21321_vm0, %v27646_v61 }
 0xaf8   : > { %20638 = vmatmul.mubr.msk.bf16.gmra.mrb[140].mxu1 %vm5121_vm8, %v20977_v63 }
 0xaf9   : > { %20641 = vmatprep.mubr.msk.bf16.mxu1 %vm21321_vm0, %v27646_v61 }
 0xb00   : > { %20642 = vmatmul.mubr.msk.bf16.gmra.mrb[144].mxu1 %vm5121_vm8, %v20978_v35 }
 0xb01   : > { %20645 = vmatprep.mubr.msk.bf16.mxu1 %vm21321_vm0, %v27646_v61 }
 0xb08   : > { %20646 = vmatmul.mubr.msk.bf16.gmra.mrb[148].mxu1 %vm5121_vm8, %v20979_v60 }
 0xb09   : > { %20649 = vmatprep.mubr.msk.bf16.mxu1 %vm21321_vm0, %v27646_v61 }
 0xb10   : > { %20650 = vmatmul.mubr.msk.bf16.gmra.mrb[152].mxu1 %vm5121_vm8, %v20980_v49 }
 0xb11   : > { %20653 = vmatprep.mubr.msk.bf16.mxu1 %vm21321_vm0, %v27646_v61 }
 0xb18   : > { %20654 = vmatmul.mubr.msk.bf16.gmra.mrb[156].mxu1 %vm5121_vm8, %v20981_v39 }
 0xbbb   : > { %v10860_v17 = vpop.f32.mrb[132].mxu1 }
 0xbbc   : > { %v20631_v28 = vpop.f32.mrb[133].mxu1 }
 0xbbd   : > { %v10863_v41 = vpop.f32.mrb[134].mxu1 }
 0xbbe   : > { %v10914_v21 = vpack.c.bf16 %v10863_v41, %v10860_v17  ;;  %v19571_v37 = vpack.c.bf16 %v10863_v41, %v10863_v41  ;;  %v20632_v10 = vpop.f32.mrb[135].mxu1 }
 0xbc0   : > { %v10935_v55 = vrot.slane %v10914_v21, %v21612_v56  ;;  %v10942_v25 = vrot.slane %v19571_v37, %v21612_v56 }
 0xbc2   : > { %v10943_v31 = vcombine.high %v10935_v55, %v10935_v55  ;;  %v10951_v40 = vrot.slane %v10935_v55, %v21612_v56  ;;  %v10944_v19 = vcombine.high %v10942_v25, %v10942_v25  ;;  %v10958_v24 = vrot.slane %v10942_v25, %v21612_v56 }
 0xbc3   : > { %v10868_v34 = vpop.f32.mrb[136].mxu1 }
 0xbc4   : > { %v10965_v50 = vrot.slane %v10943_v31, %v21612_v56  ;;  %v10973_v48 = vcombine.high %v10951_v40, %v10951_v40  ;;  %v20635_v3 = vpop.f32.mrb[137].mxu1  ;;  %v10972_v57 = vrot.slane %v10944_v19, %v21612_v56  ;;  %v10974_v2 = vcombine.high %v10958_v24, %v10958_v24 }
 0xbc5   : > { %v10871_v59 = vpop.f32.mrb[138].mxu1 }
 0xbc6   : > { %v10975_v23 = vcombine.high %v10965_v50, %v10965_v50  ;;  %v11244_v5 = vcombine.low %v10951_v40, %v10965_v50  ;;  %v19577_v13 = vcombine.high %v10951_v40, %v10965_v50  ;;  %v20636_v36 = vpop.f32.mrb[139].mxu1  ;;  %v11475_v15 = vcombine.low %v10965_v50, %v10973_v48 }
 0xbc7   : > { %v10915_v47 = vpack.c.bf16 %v10871_v59, %v10868_v34  ;;  %v19572_v54 = vpack.c.bf16 %v10871_v59, %v10871_v59  ;;  %v10976_v62 = vcombine.high %v10972_v57, %v10972_v57  ;;  %v11268_v38 = vcombine.low %v10972_v57, %v10974_v2 }
 0xbc8   : > { %v11252_v11 = vrot.slane %v11244_v5, %v21612_v56  ;;  %v11259_v32 = vrot.slane %v19577_v13, %v21612_v56  ;;  %v11476_v29 = vcombine.low %v10975_v23, %v10958_v24  ;;  %v11483_v12 = vrot.slane %v11475_v15, %v21612_v56 }
 0xbc9   : > { %v10984_v53 = vrot.slane %v10915_v47, %v21612_v56  ;;  %v10991_v33 = vrot.slane %v19572_v54, %v21612_v56  ;;  %v19581_v18 = vcombine.high %v10958_v24, %v10972_v57  ;;  %v11276_v41 = vrot.slane %v11268_v38, %v21612_v56 }
 0xbca   : > { %v11260_v27 = vcombine.low %v11252_v11, %v11259_v32  ;;  %v11490_v52 = vrot.slane %v11476_v29, %v21612_v56 }
 0xbcb   : > { %v10992_v22 = vcombine.high %v10984_v53, %v10984_v53  ;;  %v11000_v4 = vrot.slane %v10984_v53, %v21612_v56  ;;  %v10876_v9 = vpop.f32.mrb[140].mxu1  ;;  %v10993_v20 = vcombine.high %v10991_v33, %v10991_v33  ;;  %v11007_v14 = vrot.slane %v10991_v33, %v21612_v56 }
 0xbcc   : > { %v20639_v1 = vpop.f32.mrb[141].mxu1  ;;  %v11491_v0 = vcombine.low %v11483_v12, %v11490_v52  ;;  %v25263_v30 = vrot.slane %v11260_v27, %v21612_v56  ;;  %v11507_v17 = vrot.slane %v19581_v18, %v21612_v56 }
 0xbcd   : > { %v11014_v44 = vrot.slane %v10992_v22, %v21612_v56  ;;  %v11269_v46 = vcombine.low %v10976_v62, %v11000_v4  ;;  %v10879_v8 = vpop.f32.mrb[142].mxu1  ;;  %v25266_v43 = vrot.slane %v10993_v20, %v21612_v56  ;;  %v11023_v16 = vcombine.high %v11007_v14, %v11007_v14 }
 0xbce   : > { %v10916_v58 = vpack.c.bf16 %v10879_v8, %v10876_v9  ;;  %v19573_v26 = vpack.c.bf16 %v10879_v8, %v10879_v8  ;;  %v20640_v42 = vpop.f32.mrb[143].mxu1  ;;  %v11498_v7 = vrot.slane %v11491_v0, %v21612_v56  ;;  %v11415_v39 = vshll.u32 %v25263_v30, 16 }
 0xbcf   : > { %v11024_v45 = vcombine.high %v11014_v44, %v11014_v44  ;;  %v11500_v6 = vcombine.low %v11000_v4, %v11014_v44  ;;  %v19578_v63 = vcombine.high %v11000_v4, %v11014_v44  ;;  %v11293_v35 = vcombine.low %v11007_v14, %v25266_v43 }
 0xbd0   : > { %v11040_v49 = vrot.slane %v19573_v26, %v21612_v56  ;;  %11643 = vrot.lane.b32.xlu1 %v11498_v7, %s27632_s3  ;;  %v11283_v21 = vrot.slane %v11269_v46, %v21612_v56  ;;  %v11033_v37 = vrot.slane %v10916_v58, %v21612_v56  ;;  %v11413_v55 = vshrl.u32 %v25263_v30, 16 }
 0xbd1   : > { %v11523_v60 = vcombine.low %v11024_v45, %v11007_v14  ;;  %v11514_v28 = vrot.slane %v11500_v6, %v21612_v56  ;;  %v11417_v25 = vrot.slane %v11415_v39, 1  ;;  %v11300_v34 = vrot.slane %v19578_v63, %v21612_v56 }
 0xbd2   : > { %v11042_v10 = vcombine.high %v11040_v49, %v11040_v49  ;;  %v11284_v19 = vcombine.low %v11276_v41, %v11283_v21  ;;  %v11524_v48 = vcombine.low %v25266_v43, %v11023_v16  ;;  %v11307_v24 = vrot.slane %v11293_v35, %v21612_v56 }
 0xbd3   : > { %v10884_v31 = vpop.f32.mrb[144].mxu1  ;;  %v11515_v40 = vcombine.low %v11507_v17, %v11514_v28  ;;  %v11418_v3 = vor.u32 %v11417_v25, %v11413_v55  ;;  %v11041_v13 = vcombine.high %v11033_v37, %v11033_v37  ;;  %v25293_v15 = vrot.slane %v11033_v37, %v21612_v56 }
 0xbd4   : > { %v20643_v50 = vpop.f32.mrb[145].mxu1  ;;  %v25286_v36 = vrot.slane %v11042_v10, %v21612_v56  ;;  %v25290_v57 = vrot.slane %v11284_v19, %v21612_v56  ;;  %v11308_v47 = vcombine.low %v11300_v34, %v11307_v24  ;;  %v11660_v11 = vshll.u32 %v11498_v7, 16 }
 0xbd5   : > { %v10887_v59 = vpop.f32.mrb[146].mxu1  ;;  %v25283_v23 = vrot.slane %v11515_v40, %v21612_v56  ;;  %11461 = vrot.lane.b32.xlu1 %v11418_v3, %s27638_s1  ;;  %v11531_v32 = vrot.slane %v11523_v60, %v21612_v56  ;;  %v11538_v29 = vrot.slane %v11524_v48, %v21612_v56  ;;  %v11658_v27 = vshrl.u32 %v11498_v7, 16 }
 0xbd6   : > { %v20644_v5 = vpop.f32.mrb[147].mxu1  ;;  %v10917_v54 = vpack.c.bf16 %v10887_v59, %v10884_v31  ;;  %v19574_v2 = vpack.c.bf16 %v10887_v59, %v10887_v59  ;;  %v25300_v53 = vrot.slane %v11308_v47, %v21612_v56  ;;  %v11662_v33 = vrot.slane %v11660_v11, 1 }
 0xbd7   : > { %11645 = vrot.lane.b32.xlu0 %v25283_v23, %s27632_s3  ;;  %v11422_v12 = vshll.u32 %v25290_v57, 16  ;;  %v11539_v52 = vcombine.low %v11531_v32, %v11538_v29  ;;  %v11074_v62 = vcombine.high %v25286_v36, %v25286_v36  ;;  %v25310_v20 = vrot.slane %v11040_v49, %v21612_v56 }
 0xbd8   : > { %v11082_v22 = vrot.slane %v10917_v54, %v21612_v56  ;;  %v11089_v4 = vrot.slane %v19574_v2, %v21612_v56  ;;  %v11063_v14 = vrot.slane %v11041_v13, %v21612_v56  ;;  %v11071_v1 = vcombine.high %v25293_v15, %v25293_v15 }
 0xbd9   : > { %11744 = vrot.lane.b32.xlu1 %v25290_v57, %s27624_s0  ;;  %v11663_v38 = vor.u32 %v11662_v33, %v11658_v27  ;;  %v11424_v8 = vrot.slane %v11422_v12, 1  ;;  %v25323_v58 = vrot.slane %v11539_v52, %v21612_v56  ;;  %v11667_v42 = vshll.u32 %v25283_v23, 16 }
 0xbda   : > { %v11090_v44 = vcombine.high %v11082_v22, %v11082_v22  ;;  %v25318_v46 = vrot.slane %v11082_v22, %v21612_v56  ;;  %v11091_v26 = vcombine.high %v11089_v4, %v11089_v4  ;;  %v25328_v6 = vrot.slane %v11089_v4, %v21612_v56 }
 0xbdb   : > { %v10892_v9 = vpop.f32.mrb[148].mxu1  ;;  %11746 = vrot.lane.b32.xlu0 %v25300_v53, %s27624_s0  ;;  %v11420_v63 = vshrl.u32 %v25290_v57, 16  ;;  %v11025_v35 = vcombine.high %v25266_v43, %v25266_v43  ;;  %v11072_v60 = vcombine.high %v25310_v20, %v25310_v20  ;;  %v11317_v49 = vcombine.low %v11063_v14, %v11071_v1 }
 0xbdc   : > { %v20647_v0 = vpop.f32.mrb[149].mxu1  ;;  %v25331_v7 = vrot.slane %v11090_v44, %v21612_v56  ;;  %v25334_v16 = vcombine.low %v11074_v62, %v25318_v46  ;;  %v25346_v28 = vrot.slane %v11091_v26, %v21612_v56  ;;  %v11669_v41 = vrot.slane %v11667_v42, 1 }
 0xbdd   : > { %v25320_v18 = vpop.f32.mrb[150].mxu1  ;;  %11706 = vrot.lane.b32.xlu1 %v11663_v38, %s27629_s6  ;;  %v11425_v17 = vor.u32 %v11424_v8, %v11420_v63  ;;  %v11429_v21 = vshll.u32 %v25300_v53, 16  ;;  %v11547_v43 = vcombine.low %v25293_v15, %v11063_v14  ;;  %v19582_v10 = vcombine.high %v25293_v15, %v11063_v14 }
 0xbde   : > { %v20648_v45 = vpop.f32.mrb[151].mxu1  ;;  %v11122_v39 = vcombine.high %v25331_v7, %v25331_v7  ;;  %v10918_v37 = vpack.c.bf16 %v25320_v18, %v10892_v9  ;;  %v11665_v31 = vshrl.u32 %v25283_v23, 16  ;;  %v11123_v40 = vcombine.high %v25346_v28, %v25346_v28 }
 0xbdf   : > { %11805 = vrot.lane.b32.xlu0 %v25323_v58, %s27630_s29  ;;  %v11316_v34 = vcombine.low %v11025_v35, %v25293_v15  ;;  %v11340_v48 = vcombine.low %v25310_v20, %v25286_v36  ;;  %v11571_v3 = vcombine.low %v25286_v36, %v11072_v60  ;;  %v11120_v24 = vcombine.high %v25318_v46, %v25318_v46 }
 0xbe0   : > { %v25353_v55 = vcombine.low %v11122_v39, %v25328_v6  ;;  %v11131_v19 = vrot.slane %v10918_v37, %v21612_v56  ;;  %v11331_v59 = vrot.slane %v11317_v49, %v21612_v56  ;;  %v11431_v13 = vrot.slane %v11429_v21, 1 }
 0xbe1   : > { %11803 = vrot.lane.b32.xlu1 %v25283_v23, %s27630_s29  ;;  %v11670_v23 = vor.u32 %v11669_v41, %v11665_v31  ;;  %v19579_v15 = vcombine.high %v25310_v20, %v25286_v36  ;;  %v11427_v29 = vshrl.u32 %v25300_v53, 16  ;;  %v11674_v54 = vshll.u32 %v25323_v58, 16 }
 0xbe2   : > { %v11139_v47 = vcombine.high %v11131_v19, %v11131_v19  ;;  %v11147_v11 = vrot.slane %v11131_v19, %v21612_v56  ;;  %v11324_v2 = vrot.slane %v11316_v34, %v21612_v56  ;;  %v19583_v27 = vcombine.high %v25318_v46, %v25331_v7 }
 0xbe3   : > { %v25357_v25 = vpop.f32.mrb[152].mxu1  ;;  %11463 = vrot.lane.b32.xlu0 %v11425_v17, %s27638_s1  ;;  %v19575_v33 = vpack.c.bf16 %v25320_v18, %v25320_v18  ;;  %v11596_v52 = vcombine.low %v25328_v6, %v25346_v28  ;;  %v11555_v62 = vrot.slane %v11547_v43, %v21612_v56  ;;  %v11562_v22 = vrot.slane %v19582_v10, %v21612_v56 }
 0xbe4   : > { %v20651_v50 = vpop.f32.mrb[153].mxu1  ;;  %v25387_v12 = vrot.slane %v11139_v47, %v21612_v56  ;;  %v11619_v36 = vcombine.low %v11123_v40, %v11147_v11  ;;  %v11332_v4 = vcombine.low %v11324_v2, %v11331_v59  ;;  %v11364_v9 = vcombine.low %v25331_v7, %v11120_v24 }
 0xbe5   : > { %v25371_v5 = vpop.f32.mrb[154].mxu1  ;;  %11647 = vrot.lane.b32.xlu1 %v25323_v58, %s27632_s3  ;;  %v11432_v20 = vor.u32 %v11431_v13, %v11427_v29  ;;  %v11169_v14 = vcombine.high %v11147_v11, %v11147_v11  ;;  %v11579_v1 = vrot.slane %v11571_v3, %v21612_v56  ;;  %v19580_v0 = vcombine.high %v25328_v6, %v25346_v28 }
 0xbe6   : > { %v20652_v32 = vpop.f32.mrb[155].mxu1  ;;  %v11348_v38 = vrot.slane %v11340_v48, %v21612_v56  ;;  %v11355_v44 = vrot.slane %v19579_v15, %v21612_v56  ;;  %v11676_v8 = vrot.slane %v11674_v54, 1  ;;  %v11138_v18 = vrot.slane %v19575_v33, %v21612_v56 }
 0xbe7   : > { %11708 = vrot.lane.b32.xlu0 %v11670_v23, %s27629_s6  ;;  %v11389_v26 = vcombine.low %v11147_v11, %v25387_v12  ;;  %v11586_v42 = vrot.slane %v25334_v16, %v21612_v56  ;;  %v11672_v6 = vshrl.u32 %v25323_v58, 16  ;;  %v11563_v7 = vcombine.low %v11555_v62, %v11562_v22 }
 0xbe8   : > { %v25409_v63 = vrot.slane %v19583_v27, %v21612_v56  ;;  %v25412_v35 = vrot.slane %v11596_v52, %v21612_v56  ;;  %v11620_v49 = vcombine.low %v25387_v12, %v11169_v14  ;;  %v25416_v39 = vrot.slane %v11332_v4, %v21612_v56 }
 0xbe9   : > { %11765 = vrot.lane.b32.xlu1 %v11425_v17, %s27637_s2  ;;  %v25418_v17 = vcombine.low %v11579_v1, %v11586_v42  ;;  %v11372_v16 = vrot.slane %v11364_v9, %v21612_v56  ;;  %v11356_v58 = vcombine.low %v11348_v38, %v11355_v44  ;;  %v11379_v21 = vrot.slane %v25353_v55, %v21612_v56 }
 0xbea   : > { %v11611_v41 = vcombine.low %v25409_v63, %v25412_v35  ;;  %v25427_v37 = vrot.slane %v19580_v0, %v21612_v56  ;;  %v11677_v43 = vor.u32 %v11676_v8, %v11672_v6  ;;  %v11140_v10 = vcombine.high %v11138_v18, %v11138_v18 }
 0xbeb   : > { %v25400_v46 = vpop.f32.mrb[156].mxu1  ;;  %11767 = vrot.lane.b32.xlu0 %v11432_v20, %s27637_s2  ;;  %v25431_v31 = vrot.slane %v11389_v26, %v21612_v56  ;;  %v25434_v40 = vrot.slane %v11138_v18, %v21612_v56  ;;  %v11570_v19 = vrot.slane %v11563_v7, %v21612_v56  ;;  %v25437_v34 = vcombine.low %v11372_v16, %v11379_v21 }
 0xbec   : > { %v20655_v45 = vpop.f32.mrb[157].mxu1  ;;  %v11627_v50 = vrot.slane %v11619_v36, %v21612_v56  ;;  %v11436_v55 = vshll.u32 %v25416_v39, 16  ;;  %v11634_v3 = vrot.slane %v11620_v49, %v21612_v56  ;;  %v25446_v24 = vrot.slane %v11356_v58, %v21612_v56 }
 0xbed   : > { %v10911_v60 = vpop.f32.mrb[158].mxu1  ;;  %11465 = vrot.lane.b32.xlu1 %v11432_v20, %s27638_s1  ;;  %v11404_v48 = vcombine.low %v25427_v37, %v25431_v31  ;;  %v10919_v59 = vpack.c.bf16 %v25371_v5, %v25357_v25  ;;  %v19576_v13 = vpack.c.bf16 %v25371_v5, %v25371_v5  ;;  %v25456_v47 = vrot.slane %v11140_v10, %v21612_v56  ;;  %v20992_v37 = vld [vmem:[%s27666_s9 + $0x68] sm:$0xff]  }
 0xbee   : > { %v20656_v28 = vpop.f32.mrb[159].mxu1  ;;  %v11170_v11 = vcombine.high %v25434_v40, %v25434_v40  ;;  %v11681_v32 = vshll.u32 %v11570_v19, 16  ;;  %v11438_v29 = vrot.slane %v11436_v55, 1  ;;  %v11171_v25 = vcombine.high %v25387_v12, %v25387_v12 }
 0xbef   : > { %11824 = vrot.lane.b32.xlu0 %v11670_v23, %s27636_s5  ;;  %v25451_v23 = vcombine.low %v11627_v50, %v11634_v3  ;;  %v11180_v15 = vrot.slane %v10919_v59, %v21612_v56  ;;  %v11187_v54 = vrot.slane %v19576_v13, %v21612_v56  ;;  %v11443_v5 = vshll.u32 %v25446_v24, 16 }
 0xbf0   : > { %v11434_v33 = vshrl.u32 %v25416_v39, 16  ;;  %v10920_v12 = vpack.c.bf16 %v25400_v46, %v25400_v46  ;;  %v11721_v62 = vcombine.low %v25456_v47, %v11170_v11  ;;  %v11679_v22 = vshrl.u32 %v11570_v19, 16 }
 0xbf1   : > { %11710 = vrot.lane.b32.xlu1 %v11677_v43, %s27629_s6  ;;  %v11188_v2 = vcombine.high %v11180_v15, %v11180_v15  ;;  %v25468_v27 = vrot.slane %v11180_v15, %v21612_v56  ;;  %v11189_v36 = vcombine.high %v11187_v54, %v11187_v54  ;;  %v11203_v52 = vrot.slane %v11187_v54, %v21612_v56 }
 0xbf2   : > { %v11683_v4 = vrot.slane %v11681_v32, 1  ;;  %v11439_v20 = vor.u32 %v11438_v29, %v11434_v33  ;;  %v11228_v0 = vrot.slane %v10920_v12, %v21612_v56  ;;  %v11441_v46 = vshrl.u32 %v25446_v24, 16  ;;  %v20982_v12 = vld [vmem:[%s27666_s9 + $0x40] sm:$0xff]  }
 0xbf3   : > { %11649 = vrot.lane.b32.xlu0 %v11570_v19, %s27632_s3  ;;  %v25478_v9 = vrot.slane %v11188_v2, %v21612_v56  ;;  %v11217_v14 = vrot.slane %v11189_v36, %v21612_v56  ;;  %v11218_v1 = vcombine.high %v25468_v27, %v25468_v27  ;;  %v11219_v38 = vcombine.high %v11203_v52, %v11203_v52 }
 0xbf4   : > { %v11445_v8 = vrot.slane %v11443_v5, 1  ;;  %v11229_v45 = vcombine.high %v11228_v0, %v11228_v0  ;;  %v11236_v6 = vrot.slane %v11228_v0, %v21612_v56  ;;  %v11684_v7 = vor.u32 %v11683_v4, %v11679_v22  ;;  %v20984_v22 = vld [vmem:[%s27666_s9 + $0x48] sm:$0xff]   ;;  %20021 = vmatprep.subr.bf16.mxu0 %v20982_v12 }
 0xbf5   : > { %11748 = vrot.lane.b32.xlu1 %v25416_v39, %s27624_s0  ;;  %v11220_v44 = vcombine.high %v25478_v9, %v25478_v9  ;;  %v11221_v18 = vcombine.high %v11217_v14, %v11217_v14  ;;  %v19586_v42 = vcombine.high %v11203_v52, %v11217_v14  ;;  %v11873_v60 = vcombine.low %v25478_v9, %v11218_v1  ;;  %v20987_v1 = vld [vmem:[%s27666_s9 + $0x10] sm:$0xff]  }
 0xbf6   : > { %v11720_v49 = vcombine.low %v11171_v25, %v25434_v40  ;;  %v11735_v16 = vrot.slane %v11721_v62, %v21612_v56  ;;  %v11912_v28 = vcombine.low %v11217_v14, %v11219_v38  ;;  %v11243_v58 = vrot.slane %v11229_v45, %v21612_v56  ;;  %v20983_v62 = vld [vmem:[%s27666_s9] sm:$0xff]   ;;  %v20986_v14 = vld [vmem:[%s27666_s9 + $0x50] sm:$0xff]  }
 0xbf7   : > { %11750 = vrot.lane.b32.xlu0 %v25446_v24, %s27624_s0  ;;  %v11874_v26 = vcombine.low %v11220_v44, %v11203_v52  ;;  %v11913_v21 = vcombine.low %v11221_v18, %v11236_v6  ;;  %v25500_v50 = vrot.slane %v19586_v42, %v21612_v56  ;;  %v11446_v59 = vor.u32 %v11445_v8, %v11441_v46  ;;  %v20988_v18 = vld [vmem:[%s27666_s9 + $0x58] sm:$0xff]   ;;  %v20990_v42 = vld [vmem:[%s27666_s9 + $0x60] sm:$0xff]  }
 0xbf8   : > { %v11728_v10 = vrot.slane %v11720_v49, %v21612_v56  ;;  %v11952_v3 = vcombine.low %v11236_v6, %v11243_v58  ;;  %v11618_v15 = vrot.slane %v11611_v41, %v21612_v56  ;;  %v25529_v52 = vrot.slane %v25437_v34, %v21612_v56  ;;  %20022 = vmatpush3.bf16.msra.mxu0 %v20983_v62  ;;  %v20985_v34 = vld [vmem:[%s27666_s9 + $0x8] sm:$0xff]   ;;  %v20991_v6 = vld [vmem:[%s27666_s9 + $0x20] sm:$0xff]   ;;  %v20994_v49 = vld [vmem:[%s27666_s9 + $0x70] sm:$0xff]  }
 0xbf9   : > { %11807 = vrot.lane.b32.xlu1 %v11570_v19, %s27630_s29  ;;  %v11594_v19 = vrot.slane %v25418_v17, %v21612_v56  ;;  %v11927_v55 = vrot.slane %v11913_v21, %v21612_v56  ;;  %v11888_v32 = vrot.slane %v11874_v26, %v21612_v56  ;;  %v11920_v17 = vrot.slane %v11912_v28, %v21612_v56  ;;  %v20989_v26 = vld [vmem:[%s27666_s9 + $0x18] sm:$0xff]   ;;  %v20995_v21 = vld [vmem:[%s27666_s9 + $0x30] sm:$0xff]  }
 0xbfa   : > { %v25503_v13 = vcombine.low %v11728_v10, %v11735_v16  ;;  %v25508_v11 = vrot.slane %v11952_v3, %v21612_v56  ;;  %v11695_v36 = vshll.u32 %v11618_v15, 16  ;;  %v11693_v35 = vshrl.u32 %v11618_v15, 16  ;;  %20023 = vmatprep.subr.bf16.mxu0 %v20984_v22  ;;  %v20996_v3 = vld [vmem:[%s27666_s9 + $0x78] sm:$0xff]  }
 0xbfb   : > { %11467 = vrot.lane.b32.xlu0 %v11439_v20, %s27638_s1  ;;  %v11688_v29 = vshll.u32 %v11594_v19, 16  ;;  %v25521_v5 = vcombine.low %v11920_v17, %v11927_v55  ;;  %v11686_v2 = vshrl.u32 %v11594_v19, 16  ;;  %v11448_v0 = vshrl.u32 %v25529_v52, 16 }
 0xbfc   : > { %v11967_v54 = vcombine.low %v25500_v50, %v25508_v11  ;;  %v11697_v41 = vrot.slane %v11695_v36, 1  ;;  %20024 = vmatpush3.bf16.msra.mxu0 %v20985_v34  ;;  %v11779_v44 = vcombine.low %v25434_v40, %v25456_v47  ;;  %v19584_v46 = vcombine.high %v25434_v40, %v25456_v47 }
 0xbfd   : > { %11826 = vrot.lane.b32.xlu1 %v11677_v43, %s27636_s5  ;;  %v11881_v43 = vrot.slane %v11873_v60, %v21612_v56  ;;  %v11690_v33 = vrot.slane %v11688_v29, 1  ;;  %20025 = vmatprep.subr.bf16.mxu0 %v20986_v14  ;;  %v25577_v40 = vrot.slane %v11404_v48, %v21612_v56  ;;  %v11642_v31 = vrot.slane %v25451_v23, %v21612_v56  ;;  %v20993_v60 = vld [vmem:[%s27666_s9 + $0x28] sm:$0xff]  }
 0xbfe   : > { %v11698_v4 = vor.u32 %v11697_v41, %v11693_v35  ;;  %v11787_v47 = vrot.slane %v11779_v44, %v21612_v56  ;;  %v11794_v45 = vrot.slane %v19584_v46, %v21612_v56  ;;  %v11838_v10 = vcombine.low %v25468_v27, %v25478_v9 }
 0xbff   : > { %11712 = vrot.lane.b32.xlu0 %v11684_v7, %s27629_s6  ;;  %v25519_v25 = vcombine.low %v11881_v43, %v11888_v32  ;;  %v11691_v63 = vor.u32 %v11690_v33, %v11686_v2  ;;  %v11455_v23 = vshrl.u32 %v25577_v40, 16  ;;  %v11702_v58 = vshll.u32 %v11642_v31, 16 }
 0xc00   : > { %20026 = vmatpush3.bf16.msra.mxu0 %v20987_v1  ;;  %v11795_v48 = vcombine.low %v11787_v47, %v11794_v45  ;;  %v11700_v55 = vshrl.u32 %v11642_v31, 16  ;;  %v25617_v43 = vrot.slane %v25503_v13, %v21612_v56  ;;  %v11935_v14 = vrot.slane %v25521_v5, %v21612_v56 }
 0xc01   : > { %11769 = vrot.lane.b32.xlu1 %v11439_v20, %s27637_s2  ;;  %v11450_v20 = vshll.u32 %v25529_v52, 16  ;;  %20027 = vmatprep.subr.bf16.mxu0 %v20988_v18  ;;  %v11704_v32 = vrot.slane %v11702_v58, 1  ;;  %v11896_v22 = vrot.slane %v25519_v25, %v21612_v56  ;;  %v11974_v25 = vrot.slane %v11967_v54, %v21612_v56 }
 0xc02   : > { %v11802_v16 = vrot.slane %v11795_v48, %v21612_v56  ;;  %v11761_v13 = vshll.u32 %v25617_v43, 16  ;;  %v11943_v46 = vshll.u32 %v11935_v14, 16  ;;  %v11941_v18 = vshrl.u32 %v11935_v14, 16 }
 0xc03   : > { %11771 = vrot.lane.b32.xlu0 %v11446_v59, %s27637_s2  ;;  %v11452_v38 = vrot.slane %v11450_v20, 1  ;;  %v11705_v29 = vor.u32 %v11704_v32, %v11700_v55  ;;  %v11904_v1 = vshll.u32 %v11896_v22, 16  ;;  %v11980_v54 = vshrl.u32 %v11974_v25, 16 }
 0xc04   : > { %20028 = vmatpush3.bf16.msra.mxu0 %v20989_v26  ;;  %v11820_v17 = vshll.u32 %v11802_v16, 16  ;;  %v11763_v35 = vrot.slane %v11761_v13, 1  ;;  %v11945_v26 = vrot.slane %v11943_v46, 1 }
 0xc05   : > { %11469 = vrot.lane.b32.xlu1 %v11446_v59, %s27638_s1  ;;  %v11453_v8 = vor.u32 %v11452_v38, %v11448_v0  ;;  %20029 = vmatprep.subr.bf16.mxu0 %v20990_v42  ;;  %v11902_v38 = vshrl.u32 %v11896_v22, 16  ;;  %v11906_v44 = vrot.slane %v11904_v1, 1  ;;  %v11982_v42 = vshll.u32 %v11974_v25, 16 }
 0xc06   : > { %v11822_v2 = vrot.slane %v11820_v17, 1  ;;  %v11946_v11 = vor.u32 %v11945_v26, %v11941_v18 }
 0xc07   : > { %11809 = vrot.lane.b32.xlu0 %v11594_v19, %s27630_s29  ;;  %v11907_v5 = vor.u32 %v11906_v44, %v11902_v38  ;;  %v11984_v47 = vrot.slane %v11982_v42, 1 }
 0xc08   : > { %20030 = vmatpush3.bf16.msra.mxu0 %v20991_v6 }
 0xc09   : > { %11653 = vrot.lane.b32.xlu1 %v11618_v15, %s27632_s3  ;;  %20031 = vmatprep.subr.bf16.mxu0 %v20992_v37  ;;  %v11985_v37 = vor.u32 %v11984_v47, %v11980_v54 }
 0xc0b   : > { %11828 = vrot.lane.b32.xlu0 %v11684_v7, %s27636_s5  ;;  %v11457_v7 = vshll.u32 %v25577_v40, 16 }
 0xc0c   : > { %20032 = vmatpush3.bf16.msra.mxu0 %v20993_v60 }
 0xc0d   : > { %11830 = vrot.lane.b32.xlu1 %v11691_v63, %s27636_s5  ;;  %v11459_v28 = vrot.slane %v11457_v7, 1  ;;  %20033 = vmatprep.subr.bf16.mxu0 %v20994_v49 }
 0xc0f   : > { %11651 = vrot.lane.b32.xlu0 %v11594_v19, %s27632_s3  ;;  %v19585_v19 = vcombine.high %v25468_v27, %v25478_v9  ;;  %v11460_v59 = vor.u32 %v11459_v28, %v11455_v23  ;;  %v20997_v27 = vld [vmem:[%s27666_s9 + $0x38] sm:$0xff]   ;;  %v11818_v9 = vshrl.u32 %v11802_v16, 16 }
 0xc10   : > { %20034 = vmatpush3.bf16.msra.mxu0 %v20995_v21 }
 0xc11   : > { %11716 = vrot.lane.b32.xlu1 %v11698_v4, %s27629_s6  ;;  %20035 = vmatprep.subr.bf16.mxu0 %v20996_v3  ;;  %v11853_v33 = vrot.slane %v19585_v19, %v21612_v56  ;;  %v11823_v36 = vor.u32 %v11822_v2, %v11818_v9 }
 0xc13   : > { %11811 = vrot.lane.b32.xlu0 %v11618_v15, %s27630_s29  ;;  %v11846_v15 = vrot.slane %v11838_v10, %v21612_v56 }
 0xc14   : > { %20036 = vmatpush3.bf16.msra.mxu0 %v20997_v27 }
 0xc15   : > { %11832 = vrot.lane.b32.xlu1 %v11698_v4, %s27636_s5  ;;  %20657 = vmatprep.subr.bf16.mxu0 %v27646_v61  ;;  %v11854_v41 = vcombine.low %v11846_v15, %v11853_v33 }
 0xc17   : > { %11752 = vrot.lane.b32.xlu0 %v25529_v52, %s27624_s0  ;;  %v25635_v62 = vrot.slane %v11854_v41, %v21612_v56 }
 0xc19   : > { %11471 = vrot.lane.b32.xlu1 %v11453_v8, %s27638_s1  ;;  %v11865_v34 = vshll.u32 %v25635_v62, 16  ;;  %v11863_v4 = vshrl.u32 %v25635_v62, 16 }
 0xc1b   : > { %11714 = vrot.lane.b32.xlu0 %v11691_v63, %s27629_s6  ;;  %v11759_v63 = vshrl.u32 %v25617_v43, 16  ;;  %v11867_v20 = vrot.slane %v11865_v34, 1 }
 0xc1d   : > { %11754 = vrot.lane.b32.xlu1 %v25577_v40, %s27624_s0  ;;  %v11764_v12 = vor.u32 %v11763_v35, %v11759_v63  ;;  %v11868_v0 = vor.u32 %v11867_v20, %v11863_v4 }
 0xc1f   : > { %11773 = vrot.lane.b32.xlu0 %v11453_v8, %s27637_s2 }
 0xc21   : > { %11813 = vrot.lane.b32.xlu1 %v11642_v31, %s27630_s29 }
 0xc23   : > { %11655 = vrot.lane.b32.xlu0 %v11642_v31, %s27632_s3 }
 0xc25   : > { %11815 = vrot.lane.b32.xlu1 %v11802_v16, %s27630_s29 }
 0xc27   : > { %11897 = vrot.lane.b32.xlu0 %v11802_v16, %s27632_s3 }
 0xc29   : > { %11473 = vrot.lane.b32.xlu1 %v11460_v59, %s27638_s1 }
 0xc2b   : > { %11756 = vrot.lane.b32.xlu0 %v25617_v43, %s27624_s0 }
 0xc2d   : > { %11834 = vrot.lane.b32.xlu1 %v11705_v29, %s27636_s5 }
 0xc2f   : > { %11775 = vrot.lane.b32.xlu0 %v11460_v59, %s27637_s2 }
 0xc31   : > { %11836 = vrot.lane.b32.xlu1 %v11823_v36, %s27636_s5 }
 0xc33   : > { %11718 = vrot.lane.b32.xlu0 %v11705_v29, %s27629_s6 }
 0xc35   : > { %11777 = vrot.lane.b32.xlu1 %v11764_v12, %s27637_s2 }
 0xc37   : > { %11908 = vrot.lane.b32.xlu0 %v11823_v36, %s27629_s6 }
 0xc39   : > { %11936 = vrot.lane.b32.xlu1 %v25635_v62, %s27624_s0 }
 0xc3b   : > { %11869 = vrot.lane.b32.xlu0 %v11764_v12, %s27638_s1 }
 0xc3d   : > { %11975 = vrot.lane.b32.xlu1 %v11896_v22, %s27630_s29 }
 0xc3f   : > { %11899 = vrot.lane.b32.xlu0 %v11896_v22, %s27632_s3 }
 0xc41   : > { %11947 = vrot.lane.b32.xlu1 %v11868_v0, %s27637_s2 }
 0xc42   : > { %v11644_v8 = vpop.permute.xlu1 %11643 }
 0xc43   : > { %11938 = vrot.lane.b32.xlu0 %v11935_v14, %s27624_s0 }
 0xc45   : > { %11986 = vrot.lane.b32.xlu1 %v11907_v5, %s27636_s5 }
 0xc47   : > { %11871 = vrot.lane.b32.xlu0 %v11868_v0, %s27638_s1  ;;  %v11462_v50 = vpop.permute.xlu1 %11461  ;;  %s816_s1 = scalar_lea.vmem %s27671_s30, %s27670_s28 }
 0xc48   : > { %v11991_v15 = vsel %vm4935_vm2, %v25263_v30, %v11462_v50 }
 0xc49   : > { %v11646_v45 = vpop.permute.xlu0 %11645  ;;  %11949 = vrot.lane.b32.xlu1 %v11946_v11, %s27637_s2  ;;  %v12005_v13 = vsel %vm4997_vm4, %v11991_v15, %v11644_v8 }
 0xc4b   : > { %11910 = vrot.lane.b32.xlu0 %v11907_v5, %s27629_s6  ;;  %v11745_v6 = vpop.permute.xlu1 %11744  ;;  %s27667_s6 = sld [smem:[#allocation26_spill]] }
 0xc4d   : > { %v11747_v31 = vpop.permute.xlu0 %11746  ;;  %11988 = vrot.lane.b32.xlu1 %v11985_v37, %s27636_s5 }
 0xc4f   : > { %11977 = vrot.lane.b32.xlu0 %v11974_v25, %s27630_s29  ;;  %v11707_v48 = vpop.permute.xlu1 %11706 }
 0xc50   : > { %v12019_v63 = vsel %vm5059_vm6, %v12005_v13, %v11707_v48 }
 0xc51   : > { %v11806_v7 = vpop.permute.xlu0 %11805  ;;  %v12033_v34 = vsel %vm5121_vm8, %v12019_v63, %v11745_v6 }
 0xc53   : > { %v11804_v60 = vpop.permute.xlu1 %11803 }
 0xc55   : > { %v11464_v49 = vpop.permute.xlu0 %11463 }
 0xc56   : > { %v11993_v33 = vsel %vm4935_vm2, %v25290_v57, %v11464_v49 }
 0xc57   : > { %v11648_v16 = vpop.permute.xlu1 %11647  ;;  %v12007_v12 = vsel %vm4997_vm4, %v11993_v33, %v11646_v45 }
 0xc59   : > { %v11709_v23 = vpop.permute.xlu0 %11708 }
 0xc5b   : > { %v11766_v28 = vpop.permute.xlu1 %11765 }
 0xc5c   : > { %v12047_v20 = vsel %vm5183_vm10, %v12033_v34, %v11766_v28 }
 0xc5d   : > { %v11768_v58 = vpop.permute.xlu0 %11767  ;;  %v12061_v44 = vsel %vm5245_vm12, %v12047_v20, %v11804_v60 }
 0xc5f   : > { %v11466_v21 = vpop.permute.xlu1 %11465 }
 0xc60   : > { %v11995_v29 = vsel %vm4935_vm2, %v25300_v53, %v11466_v21  ;;  %v12021_v53 = vsel %vm5059_vm6, %v12007_v12, %v11709_v23 }
 0xc61   : > { %v11825_v10 = vpop.permute.xlu0 %11824  ;;  %v12009_v35 = vsel %vm4997_vm4, %v11995_v29, %v11648_v16  ;;  %v12035_v25 = vsel %vm5121_vm8, %v12021_v53, %v11747_v31 }
 0xc62   : > { %v12049_v38 = vsel %vm5183_vm10, %v12035_v25, %v11768_v58  ;;  %v12075_v5 = vsel %vm5307_vm14, %v12061_v44, %v11825_v10 }
 0xc63   : > { %v11711_v19 = vpop.permute.xlu1 %11710  ;;  %v12063_v11 = vsel %vm5245_vm12, %v12049_v38, %v11806_v7 }
 0xc64   : > { %v12023_v30 = vsel %vm5059_vm6, %v12009_v35, %v11711_v19 }
 0xc65   : > { %v11650_v55 = vpop.permute.xlu0 %11649 }
 0xc67   : > { %v11749_v3 = vpop.permute.xlu1 %11748 }
 0xc68   : > { %v12037_v4 = vsel %vm5121_vm8, %v12023_v30, %v11749_v3 }
 0xc69   : > { %v11751_v59 = vpop.permute.xlu0 %11750 }
 0xc6b   : > { %v11808_v32 = vpop.permute.xlu1 %11807 }
 0xc6d   : > { %v11468_v17 = vpop.permute.xlu0 %11467 }
 0xc6e   : > { %v11997_v41 = vsel %vm4935_vm2, %v25416_v39, %v11468_v17 }
 0xc6f   : > { %v11827_v27 = vpop.permute.xlu1 %11826  ;;  %v12011_v14 = vsel %vm4997_vm4, %v11997_v41, %v11650_v55 }
 0xc70   : > { %v12077_v45 = vsel %vm5307_vm14, %v12063_v11, %v11827_v27 }
 0xc71   : > { %v11713_v9 = vpop.permute.xlu0 %11712 }
 0xc72   : > { %v12025_v39 = vsel %vm5059_vm6, %v12011_v14, %v11713_v9 }
 0xc73   : > { %v11770_v2 = vpop.permute.xlu1 %11769  ;;  %v12039_v18 = vsel %vm5121_vm8, %v12025_v39, %v11751_v59 }
 0xc74   : > { %v12051_v1 = vsel %vm5183_vm10, %v12037_v4, %v11770_v2 }
 0xc75   : > { %v11772_v36 = vpop.permute.xlu0 %11771  ;;  %v12065_v46 = vsel %vm5245_vm12, %v12051_v1, %v11808_v32 }
 0xc76   : > { %v12053_v42 = vsel %vm5183_vm10, %v12039_v18, %v11772_v36 }
 0xc77   : > { %v11470_v22 = vpop.permute.xlu1 %11469 }
 0xc78   : > { %v11999_v10 = vsel %vm4935_vm2, %v25446_v24, %v11470_v22 }
 0xc79   : > { %v11810_v57 = vpop.permute.xlu0 %11809 }
 0xc7a   : > { %v12067_v54 = vsel %vm5245_vm12, %v12053_v42, %v11810_v57 }
 0xc7b   : > { %v11654_v0 = vpop.permute.xlu1 %11653 }
 0xc7d   : > { %v11829_v8 = vpop.permute.xlu0 %11828 }
 0xc7e   : > { %v12079_v26 = vsel %vm5307_vm14, %v12065_v46, %v11829_v8 }
 0xc7f   : > { %v12125_v50 = vcombine.low %v12075_v5, %v12079_v26  ;;  %v11831_v47 = vpop.permute.xlu1 %11830 }
 0xc80   : > { %v25695_v37 = vsel %vm5307_vm14, %v12067_v54, %v11831_v47 }
 0xc81   : > { %v12132_v6 = vrot.slane %v12125_v50, %v21612_v56  ;;  %v11652_v31 = vpop.permute.xlu0 %11651  ;;  %v12150_v48 = vcombine.low %v12077_v45, %v25695_v37 }
 0xc82   : > { %v12013_v32 = vsel %vm4997_vm4, %v11999_v10, %v11652_v31 }
 0xc83   : > { %v11717_v60 = vpop.permute.xlu1 %11716  ;;  %v12133_v49 = vcombine.high %v12132_v6, %v12132_v6  ;;  %v12157_v16 = vrot.slane %v12150_v48, %v21612_v56  ;;  %v12140_v9 = vrot.slane %v12132_v6, %v21612_v56 }
 0xc85   : > { %v11812_v23 = vpop.permute.xlu0 %11811  ;;  %v12147_v7 = vrot.slane %v12133_v49, %v21612_v56  ;;  %v12158_v58 = vcombine.high %v12157_v16, %v12157_v16  ;;  %v12165_v19 = vrot.slane %v12157_v16, %v21612_v56  ;;  %v12148_v63 = vcombine.high %v12140_v9, %v12140_v9 }
 0xc87   : > { %v11833_v28 = vpop.permute.xlu1 %11832  ;;  %v12149_v3 = vcombine.high %v12147_v7, %v12147_v7  ;;  %v12172_v59 = vrot.slane %v12158_v58, %v21612_v56  ;;  %v12173_v15 = vcombine.high %v12165_v19, %v12165_v19  ;;  %v12308_v35 = vunpack.i.h.s16 %v12165_v19 }
 0xc88   : > { %v12406_v1 = vcombine.low %v12140_v9, %v12147_v7 }
 0xc89   : > { %v11753_v21 = vpop.permute.xlu0 %11752  ;;  %v12310_v2 = vunpack.i.h.s16 %v12172_v59  ;;  %v19587_v13 = vpack.i.b16 %v12165_v19, %v12149_v3  ;;  %v12174_v12 = vcombine.high %v12172_v59, %v12172_v59  ;;  %v12312_v30 = vunpack.i.h.s16 %v12173_v15 }
 0xc8a   : > { %v19588_v39 = vpack.i.b16 %v12172_v59, %v12308_v35  ;;  %v12416_v50 = vrot.slane %v12406_v1, %v21612_v56 }
 0xc8b   : > { %v11472_v55 = vpop.permute.xlu1 %11471  ;;  %v19589_v34 = vpack.i.b16 %v12173_v15, %v12310_v2  ;;  %v12407_v20 = vcombine.low %v12148_v63, %v19587_v13  ;;  %v19590_v44 = vpack.i.b16 %v12174_v12, %v12312_v30 }
 0xc8c   : > { %v12001_v14 = vsel %vm4935_vm2, %v25529_v52, %v11472_v55 }
 0xc8d   : > { %v11715_v17 = vpop.permute.xlu0 %11714  ;;  %v12015_v46 = vsel %vm4997_vm4, %v12001_v14, %v11654_v0  ;;  %v12408_v18 = vcombine.low %v19588_v39, %v19589_v34  ;;  %v12423_v42 = vrot.slane %v12407_v20, %v21612_v56 }
 0xc8e   : > { %v12027_v27 = vsel %vm5059_vm6, %v12013_v32, %v11715_v17  ;;  %v12029_v11 = vsel %vm5059_vm6, %v12015_v46, %v11717_v60 }
 0xc8f   : > { %v11755_v29 = vpop.permute.xlu1 %11754  ;;  %v12041_v33 = vsel %vm5121_vm8, %v12027_v27, %v11753_v21  ;;  %v12430_v47 = vrot.slane %v12408_v18, %v21612_v56  ;;  %v12438_v6 = vcombine.low %v12416_v50, %v12423_v42  ;;  %v12439_v31 = vcombine.high %v12416_v50, %v12423_v42 }
 0xc90   : > { %v12043_v49 = vsel %vm5121_vm8, %v12029_v11, %v11755_v29 }
 0xc91   : > { %v11774_v24 = vpop.permute.xlu0 %11773  ;;  %v12448_v60 = vrot.slane %v12438_v6, %v21612_v56 }
 0xc92   : > { %v12055_v36 = vsel %vm5183_vm10, %v12041_v33, %v11774_v24 }
 0xc93   : > { %v12069_v41 = vsel %vm5245_vm12, %v12055_v36, %v11812_v23  ;;  %v11814_v53 = vpop.permute.xlu1 %11813 }
 0xc94   : > { %v25711_v22 = vsel %vm5307_vm14, %v12069_v41, %v11833_v28  ;;  %v12455_v28 = vrot.slane %v12439_v31, %v21612_v56 }
 0xc95   : > { %v12175_v4 = vcombine.low %v12079_v26, %v25711_v22  ;;  %v11656_v57 = vpop.permute.xlu0 %11655 }
 0xc97   : > { %v12182_v25 = vrot.slane %v12175_v4, %v21612_v56  ;;  %v11816_v38 = vpop.permute.xlu1 %11815 }
 0xc99   : > { %v12190_v8 = vrot.slane %v12182_v25, %v21612_v56  ;;  %v11898_v5 = vpop.permute.xlu0 %11897  ;;  %v12183_v21 = vcombine.high %v12182_v25, %v12182_v25 }
 0xc9b   : > { %v12409_v26 = vcombine.low %v19590_v44, %v12190_v8  ;;  %v11474_v52 = vpop.permute.xlu1 %11473  ;;  %v12197_v29 = vrot.slane %v12183_v21, %v21612_v56  ;;  %v12198_v41 = vcombine.high %v12190_v8, %v12190_v8 }
 0xc9c   : > { %v12003_v10 = vsel %vm4935_vm2, %v25577_v40, %v11474_v52 }
 0xc9d   : > { %v11757_v54 = vpop.permute.xlu0 %11756  ;;  %v12437_v45 = vrot.slane %v12409_v26, %v21612_v56  ;;  %v12017_v27 = vsel %vm4997_vm4, %v12003_v10, %v11656_v57  ;;  %v12472_v18 = vcombine.low %v12197_v29, %v12198_v41 }
 0xc9f   : > { %v12440_v0 = vcombine.low %v12430_v47, %v12437_v45  ;;  %v12441_v48 = vcombine.high %v12430_v47, %v12437_v45  ;;  %v11835_v16 = vpop.permute.xlu1 %11834 }
 0xca1   : > { %v11776_v23 = vpop.permute.xlu0 %11775  ;;  %v12469_v7 = vrot.slane %v12441_v48, %v21612_v56  ;;  %v12462_v58 = vrot.slane %v12440_v0, %v21612_v56 }
 0xca2   : > { %v12057_v19 = vsel %vm5183_vm10, %v12043_v49, %v11776_v23 }
 0xca3   : > { %v12071_v55 = vsel %vm5245_vm12, %v12057_v19, %v11814_v53  ;;  %v12471_v3 = vcombine.low %v12455_v28, %v12469_v7  ;;  %v12470_v59 = vcombine.low %v12448_v60, %v12462_v58  ;;  %v11837_v32 = vpop.permute.xlu1 %11836 }
 0xca4   : > { %v25734_v17 = vsel %vm5307_vm14, %v12071_v55, %v11835_v16 }
 0xca5   : > { %12762 = vmatprep.mubr.bf16.mxu0 %v12471_v3  ;;  %v11719_v9 = vpop.permute.xlu0 %11718  ;;  %v12200_v15 = vcombine.low %v25695_v37, %v25734_v17  ;;  %v12199_v37 = vcombine.high %v12197_v29, %v12197_v29 }
 0xca6   : > { %v12031_v40 = vsel %vm5059_vm6, %v12017_v27, %v11719_v9  ;;  %12763 = vmatmul.mubr.bf16.vlgmr.msra.gmra.mrb[116].mxu0 %v12470_v59 }
 0xca7   : > { %v12045_v2 = vsel %vm5121_vm8, %v12031_v40, %v11757_v54  ;;  %v12207_v13 = vrot.slane %v12200_v15, %v21612_v56  ;;  %v11778_v33 = vpop.permute.xlu1 %11777 }
 0xca8   : > { %v12059_v24 = vsel %vm5183_vm10, %v12045_v2, %v11778_v33 }
 0xca9   : > { %v11909_v36 = vpop.permute.xlu0 %11908  ;;  %v12208_v63 = vcombine.high %v12207_v13, %v12207_v13  ;;  %v12215_v35 = vrot.slane %v12207_v13, %v21612_v56  ;;  %v12073_v12 = vsel %vm5245_vm12, %v12059_v24, %v11816_v38 }
 0xcaa   : > { %v25747_v30 = vsel %vm5307_vm14, %v12073_v12, %v11837_v32 }
 0xcab   : > { %v12222_v53 = vrot.slane %v12208_v63, %v21612_v56  ;;  %v12223_v34 = vcombine.high %v12215_v35, %v12215_v35  ;;  %v12322_v4 = vunpack.i.h.s16 %v12215_v35  ;;  %v12225_v57 = vcombine.low %v25711_v22, %v25747_v30  ;;  %v11937_v20 = vpop.permute.xlu1 %11936 }
 0xcac   : > { %v19591_v14 = vpack.i.b16 %v12215_v35, %v12199_v37 }
 0xcad   : > { %v11870_v1 = vpop.permute.xlu0 %11869  ;;  %v12224_v39 = vcombine.high %v12222_v53, %v12222_v53  ;;  %v12324_v25 = vunpack.i.h.s16 %v12222_v53  ;;  %v12326_v44 = vunpack.i.h.s16 %v12223_v34  ;;  %v19592_v46 = vpack.i.b16 %v12222_v53, %v12322_v4 }
 0xcae   : > { %v12232_v38 = vrot.slane %v12225_v57, %v21612_v56  ;;  %v12089_v8 = vsel %vm4935_vm2, %v25617_v43, %v11870_v1  ;;  %v12482_v43 = vrot.slane %v12472_v18, %v21612_v56 }
 0xcaf   : > { %v12093_v42 = vsel %vm4997_vm4, %v12089_v8, %v11898_v5  ;;  %v19593_v26 = vpack.i.b16 %v12223_v34, %v12324_v25  ;;  %v19594_v50 = vpack.i.b16 %v12224_v39, %v12326_v44  ;;  %v12473_v11 = vcombine.low %v19591_v14, %v19592_v46  ;;  %v11976_v22 = vpop.permute.xlu1 %11975 }
 0xcb0   : > { %v12233_v52 = vcombine.high %v12232_v38, %v12232_v38  ;;  %v12097_v47 = vsel %vm5059_vm6, %v12093_v42, %v11909_v36  ;;  %v12240_v6 = vrot.slane %v12232_v38, %v21612_v56 }
 0xcb1   : > { %v11900_v54 = vpop.permute.xlu0 %11899  ;;  %v12489_v45 = vrot.slane %v12473_v11, %v21612_v56  ;;  %v12474_v0 = vcombine.low %v19593_v26, %v19594_v50  ;;  %v12101_v48 = vsel %vm5121_vm8, %v12097_v47, %v11937_v20 }
 0xcb2   : > { %v12247_v31 = vrot.slane %v12233_v52, %v21612_v56  ;;  %v12248_v42 = vcombine.high %v12240_v6, %v12240_v6 }
 0xcb3   : > { %v11948_v5 = vpop.permute.xlu1 %11947  ;;  %v12505_v28 = vcombine.high %v12482_v43, %v12489_v45  ;;  %v12504_v7 = vcombine.low %v12482_v43, %v12489_v45  ;;  %v12496_v60 = vrot.slane %v12474_v0, %v21612_v56 }
 0xcb4   : > { %v12475_v49 = vcombine.low %v12240_v6, %v12247_v31  ;;  %v12105_v16 = vsel %vm5183_vm10, %v12101_v48, %v11948_v5  ;;  %v12249_v57 = vcombine.high %v12247_v31, %v12247_v31 }
 0xcb5   : > { %v11939_v23 = vpop.permute.xlu0 %11938  ;;  %v12109_v21 = vsel %vm5245_vm12, %v12105_v16, %v11976_v22  ;;  %v12521_v32 = vrot.slane %v12505_v28, %v21612_v56  ;;  %v12514_v27 = vrot.slane %v12504_v7, %v21612_v56 }
 0xcb6   : > { %v12503_v58 = vrot.slane %v12475_v49, %v21612_v56 }
 0xcb7   : > { %v11987_v10 = vpop.permute.xlu1 %11986 }
 0xcb8   : > { %v12507_v19 = vcombine.high %v12496_v60, %v12503_v58  ;;  %v12506_v55 = vcombine.low %v12496_v60, %v12503_v58  ;;  %v12113_v3 = vsel %vm5307_vm14, %v12109_v21, %v11987_v10 }
 0xcb9   : > { %v11872_v59 = vpop.permute.xlu0 %11871  ;;  %v12250_v9 = vcombine.low %v25734_v17, %v12113_v3 }
 0xcba   : > { %v12091_v15 = vsel %vm4935_vm2, %v25635_v62, %v11872_v59  ;;  %v12535_v29 = vrot.slane %v12507_v19, %v21612_v56  ;;  %v12528_v40 = vrot.slane %v12506_v55, %v21612_v56 }
 0xcbb   : > { %v12257_v2 = vrot.slane %v12250_v9, %v21612_v56  ;;  %v11950_v24 = vpop.permute.xlu1 %11949  ;;  %v12095_v36 = vsel %vm4997_vm4, %v12091_v15, %v11900_v54 }
 0xcbc   : > { %v12537_v13 = vcombine.low %v12521_v32, %v12535_v29  ;;  %v12536_v33 = vcombine.low %v12514_v27, %v12528_v40 }
 0xcbd   : > { %v11911_v63 = vpop.permute.xlu0 %11910  ;;  %v12258_v35 = vcombine.high %v12257_v2, %v12257_v2  ;;  %v12265_v41 = vrot.slane %v12257_v2, %v21612_v56 }
 0xcbe   : > { %12770 = vmatprep.mubr.bf16.mxu0 %v12537_v13  ;;  %v12099_v17 = vsel %vm5059_vm6, %v12095_v36, %v11911_v63  ;;  %vm12810_vm6 = vcmask 400384  }
 0xcbf   : > { %v12103_v62 = vsel %vm5121_vm8, %v12099_v17, %v11939_v23  ;;  %12771 = vmatmul.mubr.bf16.gmra.mrb[120].mxu0 %v12536_v33  ;;  %v12272_v12 = vrot.slane %v12258_v35, %v21612_v56  ;;  %v12336_v37 = vunpack.i.h.s16 %v12265_v41  ;;  %v12273_v53 = vcombine.high %v12265_v41, %v12265_v41  ;;  %v11989_v14 = vpop.permute.xlu1 %11988 }
 0xcc0   : > { %v12107_v34 = vsel %vm5183_vm10, %v12103_v62, %v11950_v24  ;;  %v19595_v39 = vpack.i.b16 %v12265_v41, %v12249_v57 }
 0xcc1   : > { %v11978_v4 = vpop.permute.xlu0 %11977  ;;  %v12338_v20 = vunpack.i.h.s16 %v12272_v12  ;;  %v19596_v25 = vpack.i.b16 %v12272_v12, %v12336_v37  ;;  %v12274_v38 = vcombine.high %v12272_v12, %v12272_v12  ;;  %v12340_v8 = vunpack.i.h.s16 %v12273_v53 }
 0xcc2   : > { %v12111_v1 = vsel %vm5245_vm12, %v12107_v34, %v11978_v4  ;;  %v12538_v11 = vcombine.low %v12248_v42, %v19595_v39 }
 0xcc3   : > { %v19597_v44 = vpack.i.b16 %v12273_v53, %v12338_v20  ;;  %v12115_v46 = vsel %vm5307_vm14, %v12111_v1, %v11989_v14  ;;  %v19598_v52 = vpack.i.b16 %v12274_v38, %v12340_v8  ;;  %v20998_v8 = vld [vmem:[%s27667_s6] sm:$0xff]  }
 0xcc4   : > { %v12275_v18 = vcombine.low %v25747_v30, %v12115_v46  ;;  %v12548_v43 = vrot.slane %v12538_v11, %v21612_v56 }
 0xcc5   : > { %v12539_v26 = vcombine.low %v19596_v25, %v19597_v44 }
 0xcc6   : > { %v12282_v50 = vrot.slane %v12275_v18, %v21612_v56  ;;  %v19615_v18 = vld [vmem:[%s27661_s22 + $0x3] ss:$0 sm:$0xff] }
 0xcc7   : > { %v12555_v47 = vrot.slane %v12539_v26, %v21612_v56 }
 0xcc8   : > { %v12283_v22 = vcombine.high %v12282_v50, %v12282_v50  ;;  %v12290_v54 = vrot.slane %v12282_v50, %v21612_v56 }
 0xcc9   : > { %v12571_v30 = vcombine.high %v12548_v43, %v12555_v47  ;;  %v12570_v16 = vcombine.low %v12548_v43, %v12555_v47  ;;  %v25818_v43 = vld [vmem:[%s27668_s8] sm:$0xff]  }
 0xcca   : > { %v12297_v45 = vrot.slane %v12283_v22, %v21612_v56  ;;  %v12298_v31 = vcombine.high %v12290_v54, %v12290_v54  ;;  %v12540_v0 = vcombine.low %v19598_v52, %v12290_v54 }
 0xccb   : > { %v12587_v58 = vrot.slane %v12571_v30, %v21612_v56  ;;  %v12580_v10 = vrot.slane %v12570_v16, %v21612_v56 }
 0xccc   : > { %v12541_v48 = vcombine.low %v12297_v45, %v12298_v31  ;;  %v12299_v5 = vcombine.high %v12297_v45, %v12297_v45  ;;  %v12562_v6 = vrot.slane %v12540_v0, %v21612_v56 }
 0xcce   : > { %v12569_v49 = vrot.slane %v12541_v48, %v21612_v56  ;;  %v12348_v23 = vunpack.i.l.s16 %v12299_v5  ;;  %v25829_v48 = vld [vmem:[%s27668_s8 + $0x8] sm:$0xff]   ;;  %v25838_v5 = vld [vmem:[%s27668_s8 + $0x10] ss:$0 sps:$4 sm:$0x33]  }
 0xcd0   : > { %v12573_v28 = vcombine.high %v12562_v6, %v12569_v49  ;;  %v12572_v7 = vcombine.low %v12562_v6, %v12569_v49  ;;  %v12610_v60 = vrot.slane %v12348_v23, %v21612_v56 }
 0xcd2   : > { %v12601_v21 = vrot.slane %v12573_v28, %v21612_v56  ;;  %v12594_v19 = vrot.slane %v12572_v7, %v21612_v56  ;;  %v12611_v55 = vcombine.high %v12610_v60, %v12610_v60  ;;  %v12618_v27 = vrot.slane %v12610_v60, %v21612_v56 }
 0xcd4   : > { %v12603_v3 = vcombine.low %v12587_v58, %v12601_v21  ;;  %v12602_v59 = vcombine.low %v12580_v10, %v12594_v19  ;;  %v12625_v32 = vrot.slane %v12611_v55, %v21612_v56 }
 0xcd6   : > { %12778 = vmatprep.mubr.bf16.mxu0 %v12603_v3 }
 0xcd7   : > { %12779 = vmatmul.mubr.bf16.gmra.mrb[124].mxu0 %v12602_v59 }
 0xcd8   : > { %12786 = vmatprep.mubr.bf16.mxu0 %v12625_v32 }
 0xcdf   : > { %12787 = vmatmul.mubr.bf16.gmra.mrb[128].mxu0 %v12618_v27 }
 0xce0   : > { %20665 = vmatprep.mubr.msk.bf16.mxu0 %vm21321_vm0, %v27646_v61 }
 0xd79   : > { %v20037_v9 = vpop.f32.mrb[116].mxu0 }
 0xd7a   : > { %v20038_v15 = vpop.f32.mrb[117].mxu0 }
 0xd7b   : > { %v20039_v29 = vadd.f32 %v20038_v15, %v20037_v9  ;;  %v20040_v40 = vpop.f32.mrb[118].mxu0 }
 0xd7c   : > { %v20041_v2 = vpop.f32.mrb[119].mxu0 }
 0xd7d   : > { %v20042_v13 = vadd.f32 %v20041_v2, %v20040_v40 }
 0xd7f   : > { %v12796_v33 = vpack.c.bf16 %v20042_v13, %v20039_v29 }
 0xd81   : > { %20658 = vmatpush3.bf16.msra.mxu0 %v12796_v33 }
 0xd82   : > { %20659 = vmatprep.subr.bf16.mxu0 %v27646_v61 }
 0xd92   : > { %v20043_v24 = vpop.f32.mrb[120].mxu0 }
 0xd93   : > { %v20044_v36 = vpop.f32.mrb[121].mxu0 }
 0xd94   : > { %v20045_v63 = vadd.f32 %v20044_v36, %v20043_v24  ;;  %v20046_v35 = vpop.f32.mrb[122].mxu0 }
 0xd95   : > { %v20047_v41 = vpop.f32.mrb[123].mxu0 }
 0xd96   : > { %v20048_v17 = vadd.f32 %v20047_v41, %v20046_v35  ;;  %v21322_v35 = vmov 1983009808  }
 0xd97   : > { %v13500_v41 = vunpack.c.l.s4 %v21322_v35  ;;  %v21003_v35 = vld [vmem:[%s27521_s12] sm:$0xff]  }
 0xd98   : > { %v12797_v62 = vpack.c.bf16 %v20048_v17, %v20045_v63 }
 0xd9a   : > { %20660 = vmatpush3.bf16.msra.mxu0 %v12797_v62 }
 0xd9b   : > { %20661 = vmatprep.subr.bf16.mxu0 %v27646_v61 }
 0xdaa   : > { %v20049_v12 = vpop.f32.mrb[124].mxu0 }
 0xdab   : > { %v20050_v37 = vpop.f32.mrb[125].mxu0 }
 0xdac   : > { %v20051_v53 = vadd.f32 %v20050_v37, %v20049_v12  ;;  %v20052_v34 = vpop.f32.mrb[126].mxu0 }
 0xdad   : > { %v20053_v4 = vpop.f32.mrb[127].mxu0 }
 0xdae   : > { %v20054_v57 = vadd.f32 %v20053_v4, %v20052_v34 }
 0xdb0   : > { %v12798_v20 = vpack.c.bf16 %v20054_v57, %v20051_v53 }
 0xdb2   : > { %v20055_v14 = vpop.f32.mrb[128].mxu0  ;;  %20662 = vmatpush3.bf16.msra.mxu0 %v12798_v20 }
 0xdb3   : > { %v20056_v1 = vpop.f32.mrb[129].mxu0  ;;  %20663 = vmatprep.subr.bf16.mxu0 %v27646_v61 }
 0xdb4   : > { %v20057_v39 = vadd.f32 %v20056_v1, %v20055_v14  ;;  %v20058_v25 = vpop.f32.mrb[130].mxu0 }
 0xdb5   : > { %v20059_v44 = vpop.f32.mrb[131].mxu0 }
 0xdb6   : > { %v12799_v46 = vpack.c.bf16 %v20057_v39, %v20057_v39 }
 0xdb8   : > { %v12815_v38 = vand.u32 %v12799_v46, %v24016_v51 }
 0xdba   : > { %20664 = vmatpush3.bf16.msra.mxu0 %v12815_v38 }
 0xdbb   : > { %20669 = vmatprep.subr.bf16.mxu0 %v27646_v61 }
 0xdbd   : > { %20666 = vmatmul.mubr.msk.bf16.vlgmr.msra.gmra.mrb[132].mxu0 %vm12810_vm6, %v20998_v8 }
 0xdbe   : > { %20671 = vmatprep.mubr.msk.bf16.mxu0 %vm21321_vm0, %v27646_v61 }
 0xe90   : > { %v12851_v42 = vpop.f32.mrb[132].mxu0 }
 0xe91   : > { %v12852_v26 = vadd.f32 %v19615_v18, %v12851_v42  ;;  %v20667_v50 = vpop.f32.mrb[133].mxu0 }
 0xe92   : > { %v12854_v11 = vpop.f32.mrb[134].mxu0 }
 0xe93   : > { %v12860_v52 = vmul.f32 0.2, %v12852_v26  ;;  %v12855_v22 = vadd.f32 %v19615_v18, %v12854_v11  ;;  %v20668_v54 = vpop.f32.mrb[135].mxu0  ;;  %vm12858_vm10 = vcmp.ge.f32.partialorder %v12852_v26, 0.0 }
 0xe94   : > { %v13501_v54 = vunpack.c.0.s8 %v13500_v41 }
 0xe95   : > { %vm12859_vm14 = vcmp.ge.f32.partialorder %v12855_v22, 0.0  ;;  %v12861_v47 = vmul.f32 0.2, %v12855_v22  ;;  %v12862_v45 = vsel %vm12858_vm10, %v12852_v26, %v12860_v52 }
 0xe97   : > { %v12863_v31 = vsel %vm12859_vm14, %v12855_v22, %v12861_v47 }
 0xe98   : > { %v25813_v0 = vpack.c.bf16 %v12863_v31, %v12862_v45 }
 0xe9a   : > { %20670 = vmatpush3.bf16.msra.mxu0 %v25813_v0 }
 0xe9b   : > { %20691 = vmatprep.subr.bf16.mxu0 %v27646_v61 }
 0xe9d   : > { %20672 = vmatmul.mubr.msk.bf16.vlgmr.msra.gmra.mrb[136].mxu0 %vm4935_vm2, %v25818_v43 }
 0xe9e   : > { %20675 = vmatprep.mubr.msk.bf16.mxu0 %vm21321_vm0, %v27646_v61 }
 0xea5   : > { %20676 = vmatmul.mubr.msk.bf16.gmra.mrb[140].mxu0 %vm4935_vm2, %v25829_v48 }
 0xea6   : > { %20679 = vmatprep.mubr.msk.bf16.mxu0 %vm21321_vm0, %v27646_v61 }
 0xead   : > { %20680 = vmatmul.mubr.msk.bf16.gmra.mrb[144].mxu0 %vm4935_vm2, %v25838_v5 }
 0xeae   : > { %20693 = vmatprep.mubr.msk.bf16.mxu0 %vm21321_vm0, %v27646_v61 }
 0xf70   : > { %v12926_v30 = vpop.f32.mrb[136].mxu0 }
 0xf71   : > { %v20673_v6 = vpop.f32.mrb[137].mxu0 }
 0xf72   : > { %v12929_v49 = vpop.f32.mrb[138].mxu0 }
 0xf73   : > { %v12948_v16 = vpack.c.bf16 %v12929_v49, %v12926_v30  ;;  %v19624_v23 = vpack.c.bf16 %v12929_v49, %v12929_v49  ;;  %v20674_v28 = vpop.f32.mrb[139].mxu0 }
 0xf75   : > { %v12961_v7 = vrot.slane %v12948_v16, %v21612_v56  ;;  %v12968_v60 = vrot.slane %v19624_v23, %v21612_v56 }
 0xf77   : > { %v12969_v58 = vcombine.high %v12961_v7, %v12961_v7  ;;  %v12970_v21 = vcombine.high %v12968_v60, %v12968_v60  ;;  %v12977_v10 = vrot.slane %v12961_v7, %v21612_v56  ;;  %v12984_v55 = vrot.slane %v12968_v60, %v21612_v56 }
 0xf78   : > { %v12934_v19 = vpop.f32.mrb[140].mxu0 }
 0xf79   : > { %v12991_v3 = vrot.slane %v12969_v58, %v21612_v56  ;;  %v12998_v59 = vrot.slane %v12970_v21, %v21612_v56  ;;  %v12999_v32 = vcombine.high %v12977_v10, %v12977_v10  ;;  %v20677_v27 = vpop.f32.mrb[141].mxu0 }
 0xf7a   : > { %v12937_v9 = vpop.f32.mrb[142].mxu0 }
 0xf7b   : > { %v13001_v15 = vcombine.high %v12991_v3, %v12991_v3  ;;  %v13074_v29 = vcombine.low %v12977_v10, %v12991_v3  ;;  %v19626_v40 = vcombine.high %v12984_v55, %v12998_v59  ;;  %v20678_v2 = vpop.f32.mrb[143].mxu0  ;;  %v13230_v13 = vcombine.low %v12991_v3, %v12999_v32  ;;  %v27669_v3 = vld [vmem:[#allocation5_spill] sm:$0xff] }
 0xf7c   : > { %v13245_v33 = vcombine.low %v12984_v55, %v12998_v59  ;;  %v12949_v24 = vpack.c.bf16 %v12937_v9, %v12934_v19  ;;  %v19625_v36 = vpack.c.bf16 %v12937_v9, %v12937_v9  ;;  %v13140_v17 = vrot.slane %v12999_v32, %v21612_v56 }
 0xf7d   : > { %v13089_v63 = vcombine.low %v13001_v15, %v12984_v55  ;;  %v25855_v53 = vrot.slane %v13074_v29, %v21612_v56  ;;  %v13111_v34 = vrot.slane %v19626_v40, %v21612_v56  ;;  %v13237_v4 = vrot.slane %v13230_v13, %v21612_v56 }
 0xf7e   : > { %v13010_v62 = vrot.slane %v12949_v24, %v21612_v56  ;;  %v13017_v12 = vrot.slane %v19625_v36, %v21612_v56  ;;  %v13252_v37 = vrot.slane %v13245_v33, %v21612_v56  ;;  %v13002_v38 = vcombine.high %v12998_v59, %v12998_v59 }
 0xf7f   : > { %v13096_v57 = vrot.slane %v13089_v63, %v21612_v56  ;;  %v13155_v8 = vrot.slane %v12998_v59, %v21612_v56  ;;  %v13141_v30 = vcombine.low %v25855_v53, %v13140_v17  ;;  %v25884_v49 = vrot.slane %v13111_v34, %v21612_v56  ;;  %v21002_v63 = vld [vmem:[%s27521_s12 + $0x40] sm:$0xff]  }
 0xf80   : > { %v13018_v20 = vcombine.high %v13010_v62, %v13010_v62  ;;  %v13019_v14 = vcombine.high %v13017_v12, %v13017_v12  ;;  %v13026_v1 = vrot.slane %v13010_v62, %v21612_v56  ;;  %v25862_v39 = vrot.slane %v13017_v12, %v21612_v56  ;;  %v12942_v25 = vpop.f32.mrb[144].mxu0  ;;  %20070 = vmatprep.subr.bf16.mxu1 %v21002_v63 }
 0xf81   : > { %v12950_v44 = vpack.c.bf16 %v12942_v25, %v12942_v25  ;;  %v13259_v46 = vrot.slane %v13252_v37, %v21612_v56  ;;  %v20681_v18 = vpop.f32.mrb[145].mxu0  ;;  %v13156_v45 = vcombine.low %v13096_v57, %v13155_v8  ;;  %v13244_v16 = vrot.slane %v13237_v4, %v21612_v56  ;;  %20071 = vmatpush3.bf16.msra.mxu1 %v21003_v35 }
 0xf82   : > { %v25867_v42 = vrot.slane %v13018_v20, %v21612_v56  ;;  %v25870_v26 = vrot.slane %v13019_v14, %v21612_v56  ;;  %v25874_v50 = vcombine.high %v25862_v39, %v25862_v39  ;;  %v13170_v11 = vrot.slane %v13026_v1, %v21612_v56  ;;  %v12945_v52 = vpop.f32.mrb[146].mxu0  ;;  %v21004_v14 = vld [vmem:[%s27521_s12 + $0x48] sm:$0xff]  }
 0xf83   : > { %v13058_v22 = vrot.slane %v12950_v44, %v21612_v56  ;;  %13292 = vrot.lane.b32.xlu1 %v13259_v46, %s27624_s0  ;;  %13358 = vrot.lane.b32.xlu0 %v13259_v46, %s27632_s3  ;;  %v13260_v47 = vcombine.low %v13002_v38, %v13026_v1  ;;  %v20682_v31 = vpop.f32.mrb[147].mxu0  ;;  %v25900_v59 = vsub.s32 %v13501_v54, %v27669_v3 }
 0xf84   : > { %v13343_v6 = vcombine.low %v25870_v26, %v25874_v50  ;;  %v13051_v23 = vcombine.high %v25870_v26, %v25870_v26  ;;  %v25890_v60 = vcombine.low %v13111_v34, %v13170_v11  ;;  %v19627_v21 = vcombine.high %v13026_v1, %v25867_v42  ;;  %20072 = vmatprep.subr.bf16.mxu1 %v21004_v14  ;;  %v21006_v31 = vld [vmem:[%s27521_s12 + $0x50] sm:$0xff]  }
 0xf85   : > { %v13059_v28 = vcombine.high %v13058_v22, %v13058_v22  ;;  %v13066_v7 = vrot.slane %v13058_v22, %v21612_v56  ;;  %v13267_v58 = vrot.slane %v13260_v47, %v21612_v56  ;;  %v13148_v9 = vrot.slane %v13141_v30, %v21612_v56  ;;  %v21007_v30 = vld [vmem:[%s27521_s12 + $0x10] sm:$0xff]  }
 0xf86   : > { %v13350_v55 = vrot.slane %v13343_v6, %v21612_v56  ;;  %v13282_v27 = vrot.slane %v19627_v21, %v21612_v56  ;;  %v13048_v2 = vcombine.high %v13026_v1, %v13026_v1  ;;  %v13050_v12 = vcombine.high %v25867_v42, %v25867_v42 }
 0xf87   : > { %v13073_v10 = vrot.slane %v13059_v28, %v21612_v56  ;;  %v13366_v19 = vcombine.low %v13051_v23, %v13066_v7  ;;  %13315 = vrot.lane.b32.xlu1 %v25884_v49, %s27630_s29  ;;  %13290 = vrot.lane.b32.xlu0 %v13244_v16, %s27624_s0  ;;  %v13274_v32 = vrot.slane %v13267_v58, %v21612_v56  ;;  %v13197_v62 = vshll.u32 %v13148_v9, 16 }
 0xf88   : > { %v13289_v13 = vrot.slane %v13282_v27, %v21612_v56  ;;  %v13357_v36 = vrot.slane %v13350_v55, %v21612_v56  ;;  %v25930_v34 = vrot.slane %v13096_v57, %v21612_v56  ;;  %v13119_v4 = vcombine.low %v25867_v42, %v13048_v2 }
 0xf89   : > { %v25906_v15 = vrot.slane %v13366_v19, %v21612_v56  ;;  %v13395_v29 = vrot.slane %v13073_v10, %v21612_v56  ;;  %v13419_v40 = vcombine.low %v13066_v7, %v13073_v10  ;;  %v13512_v41 = vrot.slane %v13274_v32, %v25900_v59  ;;  %v21008_v10 = vld [vmem:[%s27521_s12 + $0x58] sm:$0xff]  }
 0xf8a   : > { %v13528_v17 = vrot.slane %v13289_v13, %v25900_v59  ;;  %v13544_v25 = vrot.slane %v13357_v36, %v25900_v59  ;;  %v13298_v57 = vcombine.low %v25862_v39, %v25870_v26  ;;  %v13199_v44 = vrot.slane %v13197_v62, 1  ;;  %v21005_v39 = vld [vmem:[%s27521_s12 + $0x8] sm:$0xff]   ;;  %v21009_v19 = vld [vmem:[%s27521_s12 + $0x18] sm:$0xff]   ;;  %v21014_v62 = vld [vmem:[%s27521_s12 + $0x70] sm:$0xff]  }
 0xf8b   : > { %v25911_v33 = vcombine.low %v25906_v15, %v13395_v29  ;;  %v13426_v24 = vrot.slane %v13419_v40, %v21612_v56  ;;  %13381 = vrot.lane.b32.xlu0 %v25884_v49, %s27624_s0  ;;  %13360 = vrot.lane.b32.xlu1 %v13274_v32, %s27632_s3  ;;  %v13126_v38 = vrot.slane %v13119_v4, %v21612_v56  ;;  %v13195_v11 = vshrl.u32 %v13148_v9, 16  ;;  %v21015_v4 = vld [vmem:[%s27521_s12 + $0x30] sm:$0xff]  }
 0xf8c   : > { %v19630_v20 = vcombine.low %v13512_v41, %v13528_v17  ;;  %v13185_v8 = vrot.slane %v13050_v12, %v21612_v56  ;;  %v13163_v18 = vrot.slane %v13156_v45, %v21612_v56  ;;  %v13305_v26 = vrot.slane %v13298_v57, %v21612_v56  ;;  %20073 = vmatpush3.bf16.msra.mxu1 %v21005_v39  ;;  %v21012_v41 = vld [vmem:[%s27521_s12 + $0x68] sm:$0xff]  }
 0xf8d   : > { %v13433_v37 = vrot.slane %v13426_v24, %v21612_v56  ;;  %v13200_v22 = vor.u32 %v13199_v44, %v13195_v11  ;;  %v25955_v54 = vrot.slane %v13126_v38, %v21612_v56  ;;  %20074 = vmatprep.subr.bf16.mxu1 %v21006_v31  ;;  %v13178_v28 = vrot.slane %v25890_v60, %v21612_v56  ;;  %v21010_v24 = vld [vmem:[%s27521_s12 + $0x60] sm:$0xff]   ;;  %v21013_v17 = vld [vmem:[%s27521_s12 + $0x28] sm:$0xff]   ;;  %v21017_v44 = vld [vmem:[%s27521_s12 + $0x38] sm:$0xff]  }
 0xf8e   : > { %v13620_v52 = vrot.slane %v19630_v20, %v25900_v59  ;;  %v13186_v47 = vcombine.low %v13126_v38, %v13185_v8  ;;  %v13204_v45 = vshll.u32 %v13163_v18, 16  ;;  %v13312_v16 = vrot.slane %v13305_v26, %v21612_v56 }
 0xf8f   : > { %v13560_v1 = vrot.slane %v13433_v37, %v25900_v59  ;;  %13313 = vrot.lane.b32.xlu0 %v25930_v34, %s27630_s29  ;;  %13364 = vrot.lane.b32.xlu1 %v13357_v36, %s27632_s3  ;;  %v13327_v58 = vrot.slane %v25874_v50, %v21612_v56  ;;  %v13202_v21 = vshrl.u32 %v13163_v18, 16  ;;  %v13211_v3 = vshll.u32 %v13178_v28, 16 }
 0xf90   : > { %v13206_v23 = vrot.slane %v13204_v45, 1  ;;  %v13193_v7 = vrot.slane %v13186_v47, %v21612_v56  ;;  %20075 = vmatpush3.bf16.msra.mxu1 %v21007_v30  ;;  %v13380_v50 = vrot.slane %v25906_v15, %v21612_v56  ;;  %v13403_v40 = vrot.slane %v25911_v33, %v21612_v56  ;;  %v21011_v15 = vld [vmem:[%s27521_s12 + $0x20] sm:$0xff]  }
 0xf91   : > { %v19632_v46 = vcombine.low %v13544_v25, %v13560_v1  ;;  %v13328_v60 = vcombine.low %v13305_v26, %v13327_v58  ;;  %20076 = vmatprep.subr.bf16.mxu1 %v21008_v10  ;;  %v13213_v27 = vrot.slane %v13211_v3, 1  ;;  %v13209_v2 = vshrl.u32 %v13178_v28, 16  ;;  %v21016_v1 = vld [vmem:[%s27521_s12 + $0x78] sm:$0xff]  }
 0xf92   : > { %v25982_v55 = vor.u32 %v13206_v23, %v13202_v21  ;;  %v13407_v33 = vshll.u32 %v13403_v40, 16  ;;  %v13405_v14 = vshrl.u32 %v13403_v40, 16  ;;  %v13088_v58 = vrot.slane %v25855_v53, %v21612_v56 }
 0xf93   : > { %v13634_v42 = vrot.slane %v19632_v46, %v25900_v59  ;;  %13294 = vrot.lane.b32.xlu0 %v13274_v32, %s27624_s0  ;;  %13296 = vrot.lane.b32.xlu1 %v13289_v13, %s27624_s0  ;;  %v13218_v32 = vshll.u32 %v13193_v7, 16  ;;  %v13335_v29 = vrot.slane %v13328_v60, %v21612_v56  ;;  %v13214_v36 = vor.u32 %v13213_v27, %v13209_v2 }
 0xf94   : > { %20077 = vmatpush3.bf16.msra.mxu1 %v21009_v19  ;;  %v13409_v37 = vrot.slane %v13407_v33, 1 }
 0xf95   : > { %v25963_v6 = vcombine.low %v13620_v52, %v13634_v42  ;;  %v13220_v9 = vrot.slane %v13218_v32, 1  ;;  %v13339_v35 = vshll.u32 %v13335_v29, 16  ;;  %20078 = vmatprep.subr.bf16.mxu1 %v21010_v24  ;;  %v13337_v20 = vshrl.u32 %v13335_v29, 16 }
 0xf96   : > { %v13410_v57 = vor.u32 %v13409_v37, %v13405_v14 }
 0xf97   : > { %13222 = vrot.lane.b32.xlu0 %v13200_v22, %s27632_s3  ;;  %13383 = vrot.lane.b32.xlu1 %v25955_v54, %s27624_s0  ;;  %v13341_v12 = vrot.slane %v13339_v35, 1 }
 0xf98   : > { %20079 = vmatpush3.bf16.msra.mxu1 %v21011_v15 }
 0xf99   : > { %20080 = vmatprep.subr.bf16.mxu1 %v21012_v41  ;;  %v13342_v25 = vor.u32 %v13341_v12, %v13337_v20 }
 0xf9b   : > { %13362 = vrot.lane.b32.xlu0 %v13289_v13, %s27632_s3  ;;  %13319 = vrot.lane.b32.xlu1 %v13312_v16, %s27630_s29  ;;  %v13216_v13 = vshrl.u32 %v13193_v7, 16 }
 0xf9c   : > { %20081 = vmatpush3.bf16.msra.mxu1 %v21013_v17 }
 0xf9d   : > { %v26001_v63 = vor.u32 %v13220_v9, %v13216_v13  ;;  %20082 = vmatprep.subr.bf16.mxu1 %v21014_v62 }
 0xf9f   : > { %13385 = vrot.lane.b32.xlu0 %v13312_v16, %s27624_s0  ;;  %13224 = vrot.lane.b32.xlu1 %v25982_v55, %s27632_s3 }
 0xfa0   : > { %20083 = vmatpush3.bf16.msra.mxu1 %v21015_v4 }
 0xfa1   : > { %20084 = vmatprep.subr.bf16.mxu1 %v21016_v1 }
 0xfa3   : > { %13317 = vrot.lane.b32.xlu0 %v25955_v54, %s27630_s29  ;;  %13387 = vrot.lane.b32.xlu1 %v13380_v50, %s27624_s0 }
 0xfa4   : > { %20085 = vmatpush3.bf16.msra.mxu1 %v21017_v44 }
 0xfa5   : > { %20683 = vmatprep.subr.bf16.mxu1 %v27646_v61 }
 0xfa7   : > { %13226 = vrot.lane.b32.xlu0 %v13214_v36, %s27632_s3  ;;  %13228 = vrot.lane.b32.xlu1 %v26001_v63, %s27632_s3 }
 0xfab   : > { %13411 = vrot.lane.b32.xlu0 %v13214_v36, %s27630_s29  ;;  %13413 = vrot.lane.b32.xlu1 %v26001_v63, %s27630_s29 }
 0xfaf   : > { %13415 = vrot.lane.b32.xlu0 %v13342_v25, %s27630_s29  ;;  %13417 = vrot.lane.b32.xlu1 %v13410_v57, %s27630_s29 }
 0xff5   : > { %v13293_v46 = vpop.permute.xlu1 %13292  ;;  %v13359_v38 = vpop.permute.xlu0 %13358 }
 0xff6   : > { %v13464_v50 = vsel %vm4997_vm4, %v25982_v55, %v13359_v38 }
 0xff9   : > { %v13316_v8 = vpop.permute.xlu1 %13315  ;;  %v13291_v18 = vpop.permute.xlu0 %13290 }
 0xffd   : > { %v13382_v42 = vpop.permute.xlu0 %13381  ;;  %v13361_v11 = vpop.permute.xlu1 %13360 }
 0xffe   : > { %v13467_v27 = vsel %vm4997_vm4, %v13214_v36, %v13361_v11  ;;  %v13475_v29 = vsel %vm5121_vm8, %v13464_v50, %v13382_v42 }
0x1001   : > { %v13314_v39 = vpop.permute.xlu0 %13313  ;;  %v13365_v26 = vpop.permute.xlu1 %13364 }
0x1002   : > { %v13473_v33 = vsel %vm4997_vm4, %v13342_v25, %v13365_v26 }
0x1005   : > { %v13295_v52 = vpop.permute.xlu0 %13294  ;;  %v13297_v22 = vpop.permute.xlu1 %13296 }
0x1009   : > { %v13223_v47 = vpop.permute.xlu0 %13222  ;;  %v13384_v45 = vpop.permute.xlu1 %13383 }
0x100a   : > { %v13436_v21 = vsel %vm4997_vm4, %v13088_v58, %v13223_v47 }
0x100b   : > { %v13447_v3 = vsel %vm5121_vm8, %v13436_v21, %v13291_v18 }
0x100c   : > { %v13455_v13 = vsel %vm5245_vm12, %v13447_v3, %v13314_v39 }
0x100d   : > { %v13363_v31 = vpop.permute.xlu0 %13362  ;;  %v13320_v30 = vpop.permute.xlu1 %13319 }
0x100e   : > { %v13470_v41 = vsel %vm4997_vm4, %v26001_v63, %v13363_v31 }
0x1011   : > { %v13386_v16 = vpop.permute.xlu0 %13385  ;;  %v13225_v23 = vpop.permute.xlu1 %13224 }
0x1012   : > { %v13439_v10 = vsel %vm4997_vm4, %v25930_v34, %v13225_v23  ;;  %v13477_v34 = vsel %vm5121_vm8, %v13467_v27, %v13384_v45  ;;  %v13479_v17 = vsel %vm5121_vm8, %v13470_v41, %v13386_v16 }
0x1013   : > { %v13449_v32 = vsel %vm5121_vm8, %v13439_v10, %v13293_v46 }
0x1014   : > { %v13457_v55 = vsel %vm5245_vm12, %v13449_v32, %v13316_v8 }
0x1015   : > { %v13318_v28 = vpop.permute.xlu0 %13317  ;;  %v13388_v7 = vpop.permute.xlu1 %13387 }
0x1016   : > { %v13481_v62 = vsel %vm5121_vm8, %v13473_v33, %v13388_v7 }
0x1019   : > { %v13227_v19 = vpop.permute.xlu0 %13226  ;;  %v13229_v60 = vpop.permute.xlu1 %13228 }
0x101a   : > { %v13442_v9 = vsel %vm4997_vm4, %v25884_v49, %v13227_v19  ;;  %v13445_v53 = vsel %vm4997_vm4, %v25955_v54, %v13229_v60 }
0x101b   : > { %v13451_v36 = vsel %vm5121_vm8, %v13442_v9, %v13295_v52  ;;  %v13453_v49 = vsel %vm5121_vm8, %v13445_v53, %v13297_v22  ;;  %v21018_v52 = vld [vmem:[%s27521_s12 + $0x80] sm:$0xff]   ;;  %v21019_v22 = vld [vmem:[%s27521_s12 + $0x88] sm:$0xff]  }
0x101c   : > { %v13459_v14 = vsel %vm5245_vm12, %v13451_v36, %v13318_v28  ;;  %v13461_v57 = vsel %vm5245_vm12, %v13453_v49, %v13320_v30  ;;  %v19628_v28 = vld [vmem:[%s27661_s22 + $0x4] ss:$0 sm:$0xff] }
0x101d   : > { %v13412_v40 = vpop.permute.xlu0 %13411  ;;  %v13414_v2 = vpop.permute.xlu1 %13413 }
0x101e   : > { %v13483_v24 = vsel %vm5245_vm12, %v13475_v29, %v13412_v40  ;;  %v13485_v15 = vsel %vm5245_vm12, %v13477_v34, %v13414_v2  ;;  %v21020_v29 = vld [vmem:[%s27522_s13 + $0x80] sm:$0xff]  }
0x101f   : > { %v13498_v35 = vcombine.low %v13455_v13, %v13483_v24  ;;  %v13514_v54 = vcombine.low %v13457_v55, %v13485_v15 }
0x1021   : > { %v13505_v12 = vrot.slane %v13498_v35, %v25900_v59  ;;  %v13521_v37 = vrot.slane %v13514_v54, %v25900_v59  ;;  %v13416_v4 = vpop.permute.xlu0 %13415  ;;  %v13418_v20 = vpop.permute.xlu1 %13417 }
0x1022   : > { %v13487_v1 = vsel %vm5245_vm12, %v13479_v17, %v13416_v4  ;;  %v13489_v25 = vsel %vm5245_vm12, %v13481_v62, %v13418_v20 }
0x1023   : > { %v13530_v44 = vcombine.low %v13459_v14, %v13487_v1  ;;  %v13546_v63 = vcombine.low %v13461_v57, %v13489_v25  ;;  %v19629_v46 = vcombine.low %v13505_v12, %v13521_v37 }
0x1025   : > { %v13537_v38 = vrot.slane %v13530_v44, %v25900_v59  ;;  %v13553_v8 = vrot.slane %v13546_v63, %v25900_v59  ;;  %v13613_v42 = vrot.slane %v19629_v46, %v25900_v59 }
0x1027   : > { %v19631_v18 = vcombine.low %v13537_v38, %v13553_v8 }
0x1029   : > { %v13627_v11 = vrot.slane %v19631_v18, %v25900_v59 }
0x102b   : > { %v13635_v39 = vcombine.low %v13613_v42, %v13627_v11  ;;  %v13636_v26 = vcombine.high %v13613_v42, %v13627_v11 }
0x102d   : > { %13783 = vmatprep.mubr.bf16.mxu1 %v13636_v26 }
0x102e   : > { %13784 = vmatmul.mubr.bf16.vlgmr.msra.gmra.mrb[160].mxu1 %v13635_v39 }
0x102f   : > { %20684 = vmatpush3.bf16.msra.mxu1 %v21018_v52  ;;  %20687 = vmatprep.mubr.msk.bf16.mxu1 %vm21321_vm0, %v27646_v61 }
0x1030   : > { %20685 = vmatprep.subr.bf16.mxu1 %v27646_v61 }
0x1033   : > { %20686 = vmatpush3.bf16.msra.mxu1 %v21019_v22 }
0x1036   : > { %20688 = vmatmul.mubr.msk.bf16.vlgmr.msra.gmra.mrb[164].mxu1 %vm4997_vm4, %v25963_v6 }
0x1101   : > { %v20086_v47 = vpop.f32.mrb[160].mxu1 }
0x1102   : > { %v20087_v45 = vpop.f32.mrb[161].mxu1 }
0x1103   : > { %v20088_v31 = vadd.f32 %v20087_v45, %v20086_v47  ;;  %v20089_v30 = vpop.f32.mrb[162].mxu1 }
0x1104   : > { %v20090_v16 = vpop.f32.mrb[163].mxu1 }
0x1105   : > { %v20091_v23 = vadd.f32 %v20090_v16, %v20089_v30  ;;  %v13786_v7 = vadd.f32 %v20088_v31, %v19628_v28 }
0x1107   : > { %v13789_v19 = vadd.f32 %v20091_v23, %v19628_v28 }
0x1109   : > { %v13826_v58 = vpop.f32.mrb[164].mxu1 }
0x110a   : > { %v13827_v21 = vadd.f32 %v13826_v58, %v13786_v7  ;;  %v20689_v10 = vpop.f32.mrb[165].mxu1 }
0x110b   : > { %v13829_v60 = vpop.f32.mrb[166].mxu1 }
0x110c   : > { %v13835_v3 = vmul.f32 0.2, %v13827_v21  ;;  %v13830_v32 = vadd.f32 %v13829_v60, %v13789_v19  ;;  %v20690_v50 = vpop.f32.mrb[167].mxu1  ;;  %vm13833_vm5 = vcmp.ge.f32.partialorder %v13827_v21, 0.0 }
0x110e   : > { %vm13834_vm7 = vcmp.ge.f32.partialorder %v13830_v32, 0.0  ;;  %v13836_v6 = vmul.f32 0.2, %v13830_v32  ;;  %v13837_v27 = vsel %vm13833_vm5, %v13827_v21, %v13835_v3 }
0x1110   : > { %v13838_v9 = vsel %vm13834_vm7, %v13830_v32, %v13836_v6 }
0x1111   : > { %v13839_v53 = vpack.c.bf16 %v13838_v9, %v13837_v27 }
0x1113   : > { %20692 = vmatpush3.bf16.msra.mxu0 %v13839_v53 }
0x1114   : > { %20705 = vmatprep.subr.bf16.mxu0 %v27646_v61 }
0x1116   : > { %20694 = vmatmul.mubr.msk.bf16.vlgmr.msra.gmra.mrb[148].mxu0 %vm4935_vm2, %v25818_v43  ;;  %v21021_v43 = vld [vmem:[%s27522_s13 + $0x88] sm:$0xff]  }
0x1117   : > { %20697 = vmatprep.mubr.msk.bf16.mxu0 %vm21321_vm0, %v27646_v61  ;;  %20706 = vmatpush3.bf16.msra.mxu0 %v21020_v29 }
0x1118   : > { %20707 = vmatprep.subr.bf16.mxu0 %v27646_v61 }
0x111b   : > { %20708 = vmatpush3.bf16.msra.mxu0 %v21021_v43 }
0x111c   : > { %20713 = vmatprep.subr.bf16.mxu0 %v27646_v61 }
0x111e   : > { %20698 = vmatmul.mubr.msk.bf16.gmra.mrb[152].mxu0 %vm4935_vm2, %v25829_v48 }
0x111f   : > { %20701 = vmatprep.mubr.msk.bf16.mxu0 %vm21321_vm0, %v27646_v61 }
0x1126   : > { %20702 = vmatmul.mubr.msk.bf16.gmra.mrb[156].mxu0 %vm4935_vm2, %v25838_v5 }
0x1127   : > { %20709 = vmatprep.mubr.msk.bf16.mxu0 %vm21321_vm0, %v27646_v61 }
0x11e9   : > { %v13874_v48 = vpop.f32.mrb[148].mxu0 }
0x11ea   : > { %v20695_v34 = vpop.f32.mrb[149].mxu0 }
0x11eb   : > { %v13877_v5 = vpop.f32.mrb[150].mxu0 }
0x11ec   : > { %v13896_v40 = vpack.c.bf16 %v13877_v5, %v13874_v48  ;;  %v19655_v2 = vpack.c.bf16 %v13877_v5, %v13877_v5  ;;  %v20696_v13 = vpop.f32.mrb[151].mxu0 }
0x11ee   : > { %v13909_v24 = vrot.slane %v13896_v40, %v21612_v56  ;;  %v13916_v55 = vrot.slane %v19655_v2, %v21612_v56 }
0x11f0   : > { %v13917_v15 = vcombine.high %v13909_v24, %v13909_v24  ;;  %v13918_v36 = vcombine.high %v13916_v55, %v13916_v55  ;;  %v13925_v49 = vrot.slane %v13909_v24, %v21612_v56  ;;  %v13932_v54 = vrot.slane %v13916_v55, %v21612_v56 }
0x11f1   : > { %v13882_v35 = vpop.f32.mrb[152].mxu0 }
0x11f2   : > { %v13939_v33 = vrot.slane %v13917_v15, %v21612_v56  ;;  %v13946_v41 = vrot.slane %v13918_v36, %v21612_v56  ;;  %v13947_v17 = vcombine.high %v13925_v49, %v13925_v49  ;;  %v20699_v62 = vpop.f32.mrb[153].mxu0 }
0x11f3   : > { %v13885_v12 = vpop.f32.mrb[154].mxu0 }
0x11f4   : > { %v13949_v37 = vcombine.high %v13939_v33, %v13939_v33  ;;  %v14022_v4 = vcombine.low %v13925_v49, %v13939_v33  ;;  %v19657_v20 = vcombine.high %v13932_v54, %v13946_v41  ;;  %v20700_v14 = vpop.f32.mrb[155].mxu0  ;;  %v14178_v1 = vcombine.low %v13939_v33, %v13947_v17 }
0x11f5   : > { %v14193_v57 = vcombine.low %v13932_v54, %v13946_v41  ;;  %v13897_v25 = vpack.c.bf16 %v13885_v12, %v13882_v35  ;;  %v19656_v44 = vpack.c.bf16 %v13885_v12, %v13885_v12  ;;  %v14088_v46 = vrot.slane %v13947_v17, %v21612_v56 }
0x11f6   : > { %v14037_v63 = vcombine.low %v13949_v37, %v13932_v54  ;;  %v26113_v42 = vrot.slane %v14022_v4, %v21612_v56  ;;  %v14059_v11 = vrot.slane %v19657_v20, %v21612_v56  ;;  %v14185_v39 = vrot.slane %v14178_v1, %v21612_v56 }
0x11f7   : > { %v13958_v38 = vrot.slane %v13897_v25, %v21612_v56  ;;  %v13965_v8 = vrot.slane %v19656_v44, %v21612_v56  ;;  %v14200_v18 = vrot.slane %v14193_v57, %v21612_v56  ;;  %v13950_v23 = vcombine.high %v13946_v41, %v13946_v41 }
0x11f8   : > { %v14044_v26 = vrot.slane %v14037_v63, %v21612_v56  ;;  %v14103_v28 = vrot.slane %v13946_v41, %v21612_v56  ;;  %v14089_v27 = vcombine.low %v26113_v42, %v14088_v46  ;;  %v26140_v53 = vrot.slane %v14059_v11, %v21612_v56  ;;  %v21022_v46 = vld [vmem:[%s27522_s13 + $0x40] sm:$0xff]  }
0x11f9   : > { %v13966_v52 = vcombine.high %v13958_v38, %v13958_v38  ;;  %v13967_v22 = vcombine.high %v13965_v8, %v13965_v8  ;;  %v13974_v47 = vrot.slane %v13958_v38, %v21612_v56  ;;  %v26120_v45 = vrot.slane %v13965_v8, %v21612_v56  ;;  %v13890_v31 = vpop.f32.mrb[156].mxu0  ;;  %v21023_v38 = vld [vmem:[%s27522_s13] sm:$0xff]   ;;  %20099 = vmatprep.subr.bf16.mxu1 %v21022_v46  ;;  %v21036_v46 = vld [vmem:[%s27522_s13 + $0x78] sm:$0xff]  }
0x11fa   : > { %v13898_v30 = vpack.c.bf16 %v13890_v31, %v13890_v31  ;;  %v14207_v16 = vrot.slane %v14200_v18, %v21612_v56  ;;  %v20703_v7 = vpop.f32.mrb[157].mxu0  ;;  %v14104_v50 = vcombine.low %v14044_v26, %v14103_v28  ;;  %v14192_v29 = vrot.slane %v14185_v39, %v21612_v56  ;;  %20100 = vmatpush3.bf16.msra.mxu1 %v21023_v38 }
0x11fb   : > { %v13988_v58 = vrot.slane %v13966_v52, %v21612_v56  ;;  %v26126_v21 = vrot.slane %v13967_v22, %v21612_v56  ;;  %v26130_v10 = vcombine.high %v26120_v45, %v26120_v45  ;;  %v14118_v19 = vrot.slane %v13974_v47, %v21612_v56  ;;  %v13893_v60 = vpop.f32.mrb[158].mxu0 }
0x11fc   : > { %v14006_v3 = vrot.slane %v13898_v30, %v21612_v56  ;;  %14240 = vrot.lane.b32.xlu1 %v14207_v16, %s27624_s0  ;;  %14306 = vrot.lane.b32.xlu0 %v14207_v16, %s27632_s3  ;;  %v14208_v32 = vcombine.low %v13950_v23, %v13974_v47  ;;  %v20704_v6 = vpop.f32.mrb[159].mxu0  ;;  %v14096_v49 = vrot.slane %v14089_v27, %v21612_v56  ;;  %v21025_v23 = vld [vmem:[%s27522_s13 + $0x8] sm:$0xff]  }
0x11fd   : > { %v14291_v9 = vcombine.low %v26126_v21, %v26130_v10  ;;  %v13999_v43 = vcombine.high %v26126_v21, %v26126_v21  ;;  %v26146_v5 = vcombine.low %v14059_v11, %v14118_v19  ;;  %v19658_v2 = vcombine.high %v13974_v47, %v13988_v58 }
0x11fe   : > { %v14007_v48 = vcombine.high %v14006_v3, %v14006_v3  ;;  %v14014_v34 = vrot.slane %v14006_v3, %v21612_v56  ;;  %v14215_v40 = vrot.slane %v14208_v32, %v21612_v56  ;;  %v13996_v41 = vcombine.high %v13974_v47, %v13974_v47  ;;  %v21026_v3 = vld [vmem:[%s27522_s13 + $0x50] sm:$0xff]  }
0x11ff   : > { %v14298_v55 = vrot.slane %v14291_v9, %v21612_v56  ;;  %v14230_v36 = vrot.slane %v19658_v2, %v21612_v56  ;;  %v14145_v14 = vshll.u32 %v14096_v49, 16  ;;  %v13998_v1 = vcombine.high %v13988_v58, %v13988_v58  ;;  %v21027_v32 = vld [vmem:[%s27522_s13 + $0x10] sm:$0xff]  }
0x1200   : > { %v14021_v13 = vrot.slane %v14007_v48, %v21612_v56  ;;  %v14314_v24 = vcombine.low %v13999_v43, %v14014_v34  ;;  %14263 = vrot.lane.b32.xlu1 %v26140_v53, %s27630_s29  ;;  %14238 = vrot.lane.b32.xlu0 %v14192_v29, %s27624_s0  ;;  %v14222_v15 = vrot.slane %v14215_v40, %v21612_v56  ;;  %v14143_v31 = vshrl.u32 %v14096_v49, 16  ;;  %v21028_v48 = vld [vmem:[%s27522_s13 + $0x58] sm:$0xff]  }
0x1201   : > { %v14237_v17 = vrot.slane %v14230_v36, %v21612_v56  ;;  %v14305_v37 = vrot.slane %v14298_v55, %v21612_v56  ;;  %v26174_v25 = vrot.slane %v14044_v26, %v21612_v56  ;;  %v14067_v44 = vcombine.low %v13988_v58, %v13996_v41 }
0x1202   : > { %v26158_v35 = vrot.slane %v14314_v24, %v21612_v56  ;;  %v14343_v54 = vrot.slane %v14021_v13, %v21612_v56  ;;  %v14367_v33 = vcombine.low %v14014_v34, %v14021_v13  ;;  %v14460_v4 = vrot.slane %v14222_v15, %v25900_v59  ;;  %v21029_v34 = vld [vmem:[%s27522_s13 + $0x18] sm:$0xff]  }
0x1203   : > { %v14476_v20 = vrot.slane %v14237_v17, %v25900_v59  ;;  %v14492_v18 = vrot.slane %v14305_v37, %v25900_v59  ;;  %v14246_v11 = vcombine.low %v26120_v45, %v26126_v21  ;;  %v14147_v39 = vrot.slane %v14145_v14, 1  ;;  %v21024_v45 = vld [vmem:[%s27522_s13 + $0x48] sm:$0xff]  }
0x1204   : > { %v26163_v62 = vcombine.low %v26158_v35, %v14343_v54  ;;  %v14374_v12 = vrot.slane %v14367_v33, %v21612_v56  ;;  %14329 = vrot.lane.b32.xlu0 %v26140_v53, %s27624_s0  ;;  %14308 = vrot.lane.b32.xlu1 %v14222_v15, %s27632_s3  ;;  %v14074_v52 = vrot.slane %v14067_v44, %v21612_v56  ;;  %v21030_v33 = vld [vmem:[%s27522_s13 + $0x60] sm:$0xff]  }
0x1205   : > { %v19661_v63 = vcombine.low %v14460_v4, %v14476_v20  ;;  %v14133_v22 = vrot.slane %v13998_v1, %v21612_v56  ;;  %v14111_v47 = vrot.slane %v14104_v50, %v21612_v56  ;;  %v14148_v28 = vor.u32 %v14147_v39, %v14143_v31  ;;  %20101 = vmatprep.subr.bf16.mxu1 %v21024_v45  ;;  %v21033_v4 = vld [vmem:[%s27522_s13 + $0x28] sm:$0xff]   ;;  %v21034_v20 = vld [vmem:[%s27522_s13 + $0x70] sm:$0xff]  }
0x1206   : > { %v14381_v57 = vrot.slane %v14374_v12, %v21612_v56  ;;  %v14253_v7 = vrot.slane %v14246_v11, %v21612_v56  ;;  %v26204_v58 = vrot.slane %v14074_v52, %v21612_v56  ;;  %20102 = vmatpush3.bf16.msra.mxu1 %v21025_v23  ;;  %v14126_v27 = vrot.slane %v26146_v5, %v21612_v56 }
0x1207   : > { %v14568_v16 = vrot.slane %v19661_v63, %v25900_v59  ;;  %v14134_v21 = vcombine.low %v14074_v52, %v14133_v22  ;;  %v14152_v60 = vshll.u32 %v14111_v47, 16  ;;  %20103 = vmatprep.subr.bf16.mxu1 %v21026_v3  ;;  %v14275_v29 = vrot.slane %v26130_v10, %v21612_v56 }
0x1208   : > { %v14508_v8 = vrot.slane %v14381_v57, %v25900_v59  ;;  %14261 = vrot.lane.b32.xlu0 %v26174_v25, %s27630_s29  ;;  %14312 = vrot.lane.b32.xlu1 %v14305_v37, %s27632_s3  ;;  %v14260_v50 = vrot.slane %v14253_v7, %v21612_v56  ;;  %v14150_v43 = vshrl.u32 %v14111_v47, 16  ;;  %v14159_v2 = vshll.u32 %v14126_v27, 16  ;;  %v21032_v37 = vld [vmem:[%s27522_s13 + $0x68] sm:$0xff]   ;;  %v21035_v57 = vld [vmem:[%s27522_s13 + $0x30] sm:$0xff]  }
0x1209   : > { %v14154_v6 = vrot.slane %v14152_v60, 1  ;;  %v14141_v9 = vrot.slane %v14134_v21, %v21612_v56  ;;  %v14276_v5 = vcombine.low %v14253_v7, %v14275_v29  ;;  %v14328_v10 = vrot.slane %v26158_v35, %v21612_v56  ;;  %v21031_v35 = vld [vmem:[%s27522_s13 + $0x20] sm:$0xff]  }
0x120a   : > { %v19663_v26 = vcombine.low %v14492_v18, %v14508_v8  ;;  %20104 = vmatpush3.bf16.msra.mxu1 %v21027_v32  ;;  %v14161_v24 = vrot.slane %v14159_v2, 1  ;;  %v14351_v36 = vrot.slane %v26163_v62, %v21612_v56  ;;  %v14157_v49 = vshrl.u32 %v14126_v27, 16  ;;  %v21037_v18 = vld [vmem:[%s27522_s13 + $0x38] sm:$0xff]  }
0x120b   : > { %v26232_v40 = vor.u32 %v14154_v6, %v14150_v43  ;;  %v14166_v13 = vshll.u32 %v14141_v9, 16  ;;  %20105 = vmatprep.subr.bf16.mxu1 %v21028_v48  ;;  %v14164_v54 = vshrl.u32 %v14141_v9, 16 }
0x120c   : > { %v14582_v30 = vrot.slane %v19663_v26, %v25900_v59  ;;  %14242 = vrot.lane.b32.xlu0 %v14222_v15, %s27624_s0  ;;  %14244 = vrot.lane.b32.xlu1 %v14237_v17, %s27624_s0  ;;  %v14283_v15 = vrot.slane %v14276_v5, %v21612_v56  ;;  %v14162_v41 = vor.u32 %v14161_v24, %v14157_v49  ;;  %v14355_v62 = vshll.u32 %v14351_v36, 16 }
0x120d   : > { %v14168_v55 = vrot.slane %v14166_v13, 1  ;;  %v14353_v63 = vshrl.u32 %v14351_v36, 16 }
0x120e   : > { %v14585_v19 = vcombine.low %v14568_v16, %v14582_v30  ;;  %20106 = vmatpush3.bf16.msra.mxu1 %v21029_v34  ;;  %v14287_v12 = vshll.u32 %v14283_v15, 16  ;;  %v14357_v1 = vrot.slane %v14355_v62, 1  ;;  %v14285_v44 = vshrl.u32 %v14283_v15, 16 }
0x120f   : > { %20107 = vmatprep.subr.bf16.mxu1 %v21030_v33 }
0x1210   : > { %14170 = vrot.lane.b32.xlu0 %v14148_v28, %s27632_s3  ;;  %14331 = vrot.lane.b32.xlu1 %v26204_v58, %s27624_s0  ;;  %v14289_v14 = vrot.slane %v14287_v12, 1  ;;  %v14358_v8 = vor.u32 %v14357_v1, %v14353_v63 }
0x1211   : > { %20710 = vmatmul.mubr.msk.bf16.vlgmr.msra.gmra.mrb[160].mxu0 %vm4997_vm4, %v14585_v19 }
0x1212   : > { %20715 = vmatprep.mubr.msk.bf16.mxu0 %vm21321_vm0, %v27646_v61  ;;  %20108 = vmatpush3.bf16.msra.mxu1 %v21031_v35  ;;  %v14290_v38 = vor.u32 %v14289_v14, %v14285_v44 }
0x1213   : > { %20109 = vmatprep.subr.bf16.mxu1 %v21032_v37 }
0x1214   : > { %14310 = vrot.lane.b32.xlu0 %v14237_v17, %s27632_s3  ;;  %14267 = vrot.lane.b32.xlu1 %v14260_v50, %s27630_s29  ;;  %v26251_v17 = vor.u32 %v14168_v55, %v14164_v54 }
0x1216   : > { %20110 = vmatpush3.bf16.msra.mxu1 %v21033_v4 }
0x1217   : > { %20111 = vmatprep.subr.bf16.mxu1 %v21034_v20 }
0x1218   : > { %14333 = vrot.lane.b32.xlu0 %v14260_v50, %s27624_s0  ;;  %14172 = vrot.lane.b32.xlu1 %v26232_v40, %s27632_s3  ;;  %v14036_v50 = vrot.slane %v26113_v42, %v21612_v56 }
0x121a   : > { %20112 = vmatpush3.bf16.msra.mxu1 %v21035_v57 }
0x121b   : > { %20113 = vmatprep.subr.bf16.mxu1 %v21036_v46 }
0x121c   : > { %14265 = vrot.lane.b32.xlu0 %v26204_v58, %s27630_s29  ;;  %14335 = vrot.lane.b32.xlu1 %v14328_v10, %s27624_s0 }
0x121e   : > { %20114 = vmatpush3.bf16.msra.mxu1 %v21037_v18 }
0x1220   : > { %14174 = vrot.lane.b32.xlu0 %v14162_v41, %s27632_s3  ;;  %14176 = vrot.lane.b32.xlu1 %v26251_v17, %s27632_s3 }
0x1224   : > { %14359 = vrot.lane.b32.xlu0 %v14162_v41, %s27630_s29  ;;  %14361 = vrot.lane.b32.xlu1 %v26251_v17, %s27630_s29 }
0x1228   : > { %14363 = vrot.lane.b32.xlu0 %v14290_v38, %s27630_s29  ;;  %14365 = vrot.lane.b32.xlu1 %v14358_v8, %s27630_s29 }
0x126e   : > { %v14241_v11 = vpop.permute.xlu1 %14240  ;;  %v14307_v39 = vpop.permute.xlu0 %14306 }
0x126f   : > { %v14412_v34 = vsel %vm4997_vm4, %v26232_v40, %v14307_v39 }
0x1272   : > { %v14264_v26 = vpop.permute.xlu1 %14263  ;;  %v14239_v52 = vpop.permute.xlu0 %14238 }
0x1276   : > { %v14330_v22 = vpop.permute.xlu0 %14329  ;;  %v14309_v47 = vpop.permute.xlu1 %14308 }
0x1277   : > { %v14415_v5 = vsel %vm4997_vm4, %v14162_v41, %v14309_v47  ;;  %v14423_v13 = vsel %vm5121_vm8, %v14412_v34, %v14330_v22  ;;  %v21039_v34 = vld [vmem:[%s27523_s14 + $0x8] sm:$0xff]  }
0x127a   : > { %v14262_v31 = vpop.permute.xlu0 %14261  ;;  %v14313_v30 = vpop.permute.xlu1 %14312 }
0x127b   : > { %v14421_v33 = vsel %vm4997_vm4, %v14290_v38, %v14313_v30 }
0x127e   : > { %v14243_v16 = vpop.permute.xlu0 %14242  ;;  %v14245_v45 = vpop.permute.xlu1 %14244 }
0x1282   : > { %v14171_v23 = vpop.permute.xlu0 %14170  ;;  %v14332_v28 = vpop.permute.xlu1 %14331 }
0x1283   : > { %v14384_v6 = vsel %vm4997_vm4, %v14036_v50, %v14171_v23 }
0x1284   : > { %v14395_v43 = vsel %vm5121_vm8, %v14384_v6, %v14239_v52 }
0x1285   : > { %v14403_v55 = vsel %vm5245_vm12, %v14395_v43, %v14262_v31 }
0x1286   : > { %v14311_v7 = vpop.permute.xlu0 %14310  ;;  %v14268_v21 = vpop.permute.xlu1 %14267 }
0x1287   : > { %v14418_v35 = vsel %vm4997_vm4, %v26251_v17, %v14311_v7 }
0x128a   : > { %v14334_v19 = vpop.permute.xlu0 %14333  ;;  %v14173_v60 = vpop.permute.xlu1 %14172 }
0x128b   : > { %v14387_v27 = vsel %vm4997_vm4, %v26174_v25, %v14173_v60  ;;  %v14425_v25 = vsel %vm5121_vm8, %v14415_v5, %v14332_v28  ;;  %v14427_v41 = vsel %vm5121_vm8, %v14418_v35, %v14334_v19 }
0x128c   : > { %v14397_v48 = vsel %vm5121_vm8, %v14387_v27, %v14241_v11 }
0x128d   : > { %v14405_v40 = vsel %vm5245_vm12, %v14397_v48, %v14264_v26  ;;  %v21038_v48 = vld [vmem:[%s27523_s14] sm:$0xff]  }
0x128e   : > { %v14266_v3 = vpop.permute.xlu0 %14265  ;;  %v14336_v32 = vpop.permute.xlu1 %14335 }
0x128f   : > { %v14429_v12 = vsel %vm5121_vm8, %v14421_v33, %v14336_v32  ;;  %v14781_v32 = vunpack.c.l.bf16 %v25813_v0 }
0x1292   : > { %v14175_v9 = vpop.permute.xlu0 %14174  ;;  %v14177_v29 = vpop.permute.xlu1 %14176 }
0x1293   : > { %v14390_v2 = vsel %vm4997_vm4, %v26140_v53, %v14175_v9  ;;  %v14393_v42 = vsel %vm4997_vm4, %v26204_v58, %v14177_v29  ;;  %v14782_v9 = vunpack.c.h.bf16 %v25813_v0  ;;  %v21040_v0 = vld [vmem:[%s27523_s14 + $0x10] ss:$0 sps:$4 sm:$0x33]  }
0x1294   : > { %v14399_v49 = vsel %vm5121_vm8, %v14390_v2, %v14243_v16  ;;  %v14401_v53 = vsel %vm5121_vm8, %v14393_v42, %v14245_v45  ;;  %v19659_v45 = vld [vmem:[%s27661_s22 + $0x5] ss:$0 sm:$0xff] }
0x1295   : > { %v14407_v14 = vsel %vm5245_vm12, %v14399_v49, %v14266_v3  ;;  %v14409_v57 = vsel %vm5245_vm12, %v14401_v53, %v14268_v21 }
0x1296   : > { %v14360_v10 = vpop.permute.xlu0 %14359  ;;  %v14362_v24 = vpop.permute.xlu1 %14361 }
0x1297   : > { %v14431_v15 = vsel %vm5245_vm12, %v14423_v13, %v14360_v10  ;;  %v14433_v36 = vsel %vm5245_vm12, %v14425_v25, %v14362_v24 }
0x1298   : > { %v14446_v54 = vcombine.low %v14403_v55, %v14431_v15  ;;  %v14462_v58 = vcombine.low %v14405_v40, %v14433_v36 }
0x129a   : > { %v14453_v62 = vrot.slane %v14446_v54, %v25900_v59  ;;  %v14469_v37 = vrot.slane %v14462_v58, %v25900_v59  ;;  %v14364_v4 = vpop.permute.xlu0 %14363  ;;  %v14366_v20 = vpop.permute.xlu1 %14365 }
0x129b   : > { %v14435_v1 = vsel %vm5245_vm12, %v14427_v41, %v14364_v4  ;;  %v14437_v44 = vsel %vm5245_vm12, %v14429_v12, %v14366_v20 }
0x129c   : > { %v14478_v63 = vcombine.low %v14407_v14, %v14435_v1  ;;  %v14494_v17 = vcombine.low %v14409_v57, %v14437_v44  ;;  %v19660_v46 = vcombine.low %v14453_v62, %v14469_v37 }
0x129e   : > { %v14485_v38 = vrot.slane %v14478_v63, %v25900_v59  ;;  %v14501_v8 = vrot.slane %v14494_v17, %v25900_v59  ;;  %v14561_v11 = vrot.slane %v19660_v46, %v25900_v59 }
0x12a0   : > { %v19662_v18 = vcombine.low %v14485_v38, %v14501_v8 }
0x12a2   : > { %v14575_v39 = vrot.slane %v19662_v18, %v25900_v59 }
0x12a4   : > { %v14584_v26 = vcombine.high %v14561_v11, %v14575_v39  ;;  %v14583_v52 = vcombine.low %v14561_v11, %v14575_v39 }
0x12a6   : > { %14731 = vmatprep.mubr.bf16.mxu1 %v14584_v26 }
0x12a7   : > { %14732 = vmatmul.mubr.bf16.vlgmr.msra.gmra.mrb[168].mxu1 %v14583_v52 }
0x12e4   : > { %v14774_v22 = vpop.f32.mrb[160].mxu0 }
0x12e5   : > { %v20711_v47 = vpop.f32.mrb[161].mxu0 }
0x12e6   : > { %v14777_v31 = vpop.f32.mrb[162].mxu0 }
0x12e7   : > { %v20712_v30 = vpop.f32.mrb[163].mxu0 }
0x137a   : > { %v20115_v16 = vpop.f32.mrb[168].mxu1 }
0x137b   : > { %v20116_v23 = vpop.f32.mrb[169].mxu1 }
0x137c   : > { %v20117_v28 = vadd.f32 %v20116_v23, %v20115_v16  ;;  %v20118_v7 = vpop.f32.mrb[170].mxu1 }
0x137d   : > { %v20119_v21 = vpop.f32.mrb[171].mxu1 }
0x137e   : > { %v14734_v19 = vadd.f32 %v20117_v28, %v19659_v45  ;;  %v20120_v60 = vadd.f32 %v20119_v21, %v20118_v7 }
0x1380   : > { %v14775_v3 = vadd.f32 %v14774_v22, %v14734_v19  ;;  %v14737_v50 = vadd.f32 %v20120_v60, %v19659_v45 }
0x1382   : > { %v14783_v6 = vadd.f32 %v14781_v32, %v14775_v3  ;;  %v14778_v27 = vadd.f32 %v14777_v31, %v14737_v50 }
0x1384   : > { %v14784_v29 = vadd.f32 %v14782_v9, %v14778_v27 }
0x1386   : > { %v14785_v43 = vpack.c.bf16 %v14784_v29, %v14783_v6 }
0x1388   : > { %20714 = vmatpush3.bf16.msra.mxu0 %v14785_v43 }
0x138b   : > { %20716 = vmatmul.mubr.msk.bf16.vlgmr.msra.gmra.mrb[164].mxu0 %vm4935_vm2, %v21038_v48 }
0x138c   : > { %20719 = vmatprep.mubr.msk.bf16.mxu0 %vm21321_vm0, %v27646_v61 }
0x1393   : > { %20720 = vmatmul.mubr.msk.bf16.gmra.mrb[168].mxu0 %vm4935_vm2, %v21039_v34 }
0x1394   : > { %20723 = vmatprep.mubr.msk.bf16.mxu0 %vm21321_vm0, %v27646_v61 }
0x139b   : > { %20724 = vmatmul.mubr.msk.bf16.gmra.mrb[172].mxu0 %vm4935_vm2, %v21040_v0  ;;  %vm15850_vm2 = vcmask 1043456  }
0x145e   : > { %v14847_v5 = vpop.f32.mrb[164].mxu0 }
0x145f   : > { %v20717_v2 = vpop.f32.mrb[165].mxu0 }
0x1460   : > { %v14850_v42 = vpop.f32.mrb[166].mxu0 }
0x1461   : > { %v14869_v13 = vpack.c.bf16 %v14850_v42, %v14847_v5  ;;  %v19689_v25 = vpack.c.bf16 %v14850_v42, %v14850_v42  ;;  %v20718_v10 = vpop.f32.mrb[167].mxu0 }
0x1463   : > { %v14882_v24 = vrot.slane %v14869_v13, %v21612_v56  ;;  %v14889_v55 = vrot.slane %v19689_v25, %v21612_v56 }
0x1465   : > { %v14890_v15 = vcombine.high %v14882_v24, %v14882_v24  ;;  %v14891_v40 = vcombine.high %v14889_v55, %v14889_v55  ;;  %v14898_v36 = vrot.slane %v14882_v24, %v21612_v56  ;;  %v14905_v53 = vrot.slane %v14889_v55, %v21612_v56 }
0x1466   : > { %v14855_v49 = vpop.f32.mrb[168].mxu0 }
0x1467   : > { %v14912_v54 = vrot.slane %v14890_v15, %v21612_v56  ;;  %v14919_v58 = vrot.slane %v14891_v40, %v21612_v56  ;;  %v14920_v33 = vcombine.high %v14898_v36, %v14898_v36  ;;  %v20721_v35 = vpop.f32.mrb[169].mxu0 }
0x1468   : > { %v14858_v41 = vpop.f32.mrb[170].mxu0 }
0x1469   : > { %v14922_v12 = vcombine.high %v14912_v54, %v14912_v54  ;;  %v14995_v62 = vcombine.low %v14898_v36, %v14912_v54  ;;  %v19691_v37 = vcombine.high %v14905_v53, %v14919_v58  ;;  %v15067_v4 = vcombine.low %v14912_v54, %v14920_v33  ;;  %v20722_v20 = vpop.f32.mrb[171].mxu0 }
0x146a   : > { %v15082_v14 = vcombine.low %v14905_v53, %v14919_v58  ;;  %v14870_v1 = vpack.c.bf16 %v14858_v41, %v14855_v49  ;;  %v19690_v57 = vpack.c.bf16 %v14858_v41, %v14858_v41  ;;  %v14923_v16 = vcombine.high %v14919_v58, %v14919_v58 }
0x146b   : > { %v15002_v44 = vrot.slane %v14995_v62, %v21612_v56  ;;  %v15010_v63 = vcombine.low %v14922_v12, %v14905_v53  ;;  %v15032_v17 = vrot.slane %v19691_v37, %v21612_v56  ;;  %v15074_v46 = vrot.slane %v15067_v4, %v21612_v56 }
0x146c   : > { %v14931_v38 = vrot.slane %v14870_v1, %v21612_v56  ;;  %v14938_v8 = vrot.slane %v19690_v57, %v21612_v56  ;;  %v15089_v18 = vrot.slane %v15082_v14, %v21612_v56 }
0x146d   : > { %v26350_v11 = vrot.slane %v15002_v44, %v21612_v56  ;;  %v15081_v39 = vrot.slane %v15074_v46, %v21612_v56  ;;  %v26354_v26 = vrot.slane %v15032_v17, %v21612_v56  ;;  %v15017_v7 = vrot.slane %v15010_v63, %v21612_v56 }
0x146e   : > { %v14939_v52 = vcombine.high %v14931_v38, %v14931_v38  ;;  %v14940_v22 = vcombine.high %v14938_v8, %v14938_v8  ;;  %v14947_v47 = vrot.slane %v14931_v38, %v21612_v56  ;;  %v14954_v31 = vrot.slane %v14938_v8, %v21612_v56  ;;  %v14863_v30 = vpop.f32.mrb[172].mxu0 }
0x146f   : > { %v15096_v45 = vrot.slane %v15089_v18, %v21612_v56  ;;  %15112 = vrot.lane.b32.xlu1 %v15081_v39, %s27624_s0  ;;  %v15057_v23 = vshll.u32 %v26354_v26, 16  ;;  %v20725_v28 = vpop.f32.mrb[173].mxu0  ;;  %v15055_v50 = vshrl.u32 %v26354_v26, 16  ;;  %v15043_v27 = vshll.u32 %v26350_v11, 16 }
0x1470   : > { %v14961_v21 = vrot.slane %v14939_v52, %v21612_v56  ;;  %v14968_v19 = vrot.slane %v14940_v22, %v21612_v56  ;;  %v14969_v60 = vcombine.high %v14947_v47, %v14947_v47  ;;  %v14866_v3 = vpop.f32.mrb[174].mxu0  ;;  %v15097_v32 = vcombine.low %v14923_v16, %v14947_v47  ;;  %v21043_v16 = vld [vmem:[%s27524_s15] sm:$0xff]  }
0x1471   : > { %15114 = vrot.lane.b32.xlu0 %v15096_v45, %s27624_s0  ;;  %v15059_v6 = vrot.slane %v15057_v23, 1  ;;  %v20726_v9 = vpop.f32.mrb[175].mxu0  ;;  %v14970_v29 = vcombine.high %v14954_v31, %v14954_v31  ;;  %v15041_v48 = vshrl.u32 %v26350_v11, 16  ;;  %v15045_v0 = vrot.slane %v15043_v27, 1  ;;  %v21044_v28 = vld [vmem:[%s27524_s15 + $0x80] sm:$0xff]   ;;  %v21045_v3 = vld [vmem:[%s27524_s15 + $0x48] sm:$0xff]  }
0x1472   : > { %v15195_v43 = vcombine.low %v14954_v31, %v14968_v19  ;;  %v15121_v5 = vshll.u32 %v15081_v39, 16  ;;  %v15104_v2 = vrot.slane %v15097_v32, %v21612_v56  ;;  %v15145_v42 = vcombine.low %v14961_v21, %v14969_v60  ;;  %v21041_v31 = vld [vmem:[%s27524_s15 + $0x40] sm:$0xff]   ;;  %v21046_v32 = vld [vmem:[%s27524_s15 + $0xc8] sm:$0xff]  }
0x1473   : > { %v15060_v34 = vor.u32 %v15059_v6, %v15055_v50  ;;  %v19692_v13 = vcombine.high %v14947_v47, %v14961_v21  ;;  %v14871_v10 = vpack.c.bf16 %v14863_v30, %v14863_v30  ;;  %v15046_v24 = vor.u32 %v15045_v0, %v15041_v48  ;;  %v21042_v30 = vld [vmem:[%s27524_s15 + $0xc0] sm:$0xff]   ;;  %20128 = vmatprep.subr.bf16.mxu1 %v21041_v31  ;;  %v21047_v50 = vld [vmem:[%s27524_s15 + $0x8] sm:$0xff]   ;;  %v21066_v31 = vld [vmem:[%s27524_s15 + $0xf0] sm:$0xff]  }
0x1474   : > { %v15202_v25 = vrot.slane %v15195_v43, %v21612_v56  ;;  %v15123_v55 = vrot.slane %v15121_v5, 1  ;;  %v26372_v15 = vrot.slane %v15017_v7, %v21612_v56  ;;  %v15219_v40 = vcombine.low %v14968_v19, %v14970_v29  ;;  %20150 = vmatprep.subr.bf16.mxu0 %v21042_v30  ;;  %20129 = vmatpush3.bf16.msra.mxu1 %v21043_v16  ;;  %v21048_v9 = vld [vmem:[%s27524_s15 + $0x88] sm:$0xff]   ;;  %v21067_v30 = vld [vmem:[%s27524_s15 + $0x30] sm:$0xff]  }
0x1475   : > { %15065 = vrot.lane.b32.xlu1 %v15060_v34, %s27632_s3  ;;  %v15119_v36 = vshrl.u32 %v15081_v39, 16  ;;  %v14972_v49 = vcombine.high %v14968_v19, %v14968_v19  ;;  %v14979_v53 = vrot.slane %v14871_v10, %v21612_v56  ;;  %15061 = vrot.lane.b32.xlu0 %v15046_v24, %s27632_s3  ;;  %v15111_v58 = vrot.slane %v15104_v2, %v21612_v56  ;;  %v21068_v16 = vld [vmem:[%s27524_s15 + $0xb0] sm:$0xff]  }
0x1476   : > { %v26376_v54 = vrot.slane %v15202_v25, %v21612_v56  ;;  %v15050_v33 = vshll.u32 %v26372_v15, 16  ;;  %v15128_v35 = vshll.u32 %v15096_v45, 16  ;;  %v15152_v41 = vrot.slane %v15145_v42, %v21612_v56  ;;  %20151 = vmatpush3.bf16.msra.mxu0 %v21044_v28  ;;  %20130 = vmatprep.subr.bf16.mxu1 %v21045_v3  ;;  %v21071_v28 = vld [vmem:[%s27524_s15 + $0x38] sm:$0xff]  }
0x1477   : > { %v14980_v12 = vcombine.high %v14979_v53, %v14979_v53  ;;  %v14987_v62 = vrot.slane %v14979_v53, %v21612_v56  ;;  %v15176_v37 = vrot.slane %v19692_v13, %v21612_v56  ;;  %v15124_v4 = vor.u32 %v15123_v55, %v15119_v36  ;;  %20152 = vmatprep.subr.bf16.mxu0 %v21046_v32 }
0x1478   : > { %v15052_v20 = vrot.slane %v15050_v33, 1  ;;  %v15126_v14 = vshrl.u32 %v15096_v45, 16  ;;  %v15130_v1 = vrot.slane %v15128_v35, 1  ;;  %v15226_v63 = vrot.slane %v15219_v40, %v21612_v56  ;;  %20131 = vmatpush3.bf16.msra.mxu1 %v21047_v50 }
0x1479   : > { %15116 = vrot.lane.b32.xlu1 %v15111_v58, %s27624_s0  ;;  %v14994_v57 = vrot.slane %v14980_v12, %v21612_v56  ;;  %v15245_v44 = vcombine.low %v14972_v49, %v14987_v62  ;;  %15139 = vrot.lane.b32.xlu0 %v15124_v4, %s27630_s29  ;;  %v15048_v17 = vshrl.u32 %v26372_v15, 16  ;;  %v15183_v38 = vrot.slane %v15176_v37, %v21612_v56  ;;  %v21049_v12 = vld [vmem:[%s27524_s15 + $0x50] sm:$0xff]  }
0x147a   : > { %v15131_v46 = vor.u32 %v15130_v1, %v15126_v14  ;;  %v15213_v8 = vshll.u32 %v26376_v54, 16  ;;  %v26393_v52 = vrot.slane %v15152_v41, %v21612_v56  ;;  %v15135_v47 = vshll.u32 %v15111_v58, 16  ;;  %20153 = vmatpush3.bf16.msra.mxu0 %v21048_v9  ;;  %v21051_v37 = vld [vmem:[%s27524_s15 + $0x10] sm:$0xff]   ;;  %20132 = vmatprep.subr.bf16.mxu1 %v21049_v12  ;;  %v21053_v14 = vld [vmem:[%s27524_s15 + $0x58] sm:$0xff]  }
0x147b   : > { %v15252_v18 = vrot.slane %v15245_v44, %v21612_v56  ;;  %v15269_v39 = vcombine.low %v14987_v62, %v14994_v57  ;;  %v15053_v22 = vor.u32 %v15052_v20, %v15048_v17  ;;  %v15233_v45 = vrot.slane %v15226_v63, %v21612_v56  ;;  %v21050_v62 = vld [vmem:[%s27524_s15 + $0xd0] sm:$0xff]   ;;  %v21054_v1 = vld [vmem:[%s27524_s15 + $0xd8] sm:$0xff]   ;;  %v21057_v63 = vld [vmem:[%s27524_s15 + $0x60] sm:$0xff]  }
0x147c   : > { %v15211_v23 = vshrl.u32 %v26376_v54, 16  ;;  %v15215_v19 = vrot.slane %v15213_v8, 1  ;;  %v15189_v60 = vshll.u32 %v15183_v38, 16  ;;  %v15137_v6 = vrot.slane %v15135_v47, 1  ;;  %v21052_v4 = vld [vmem:[%s27524_s15 + $0x90] sm:$0xff]   ;;  %20154 = vmatprep.subr.bf16.mxu0 %v21050_v62  ;;  %20133 = vmatpush3.bf16.msra.mxu1 %v21051_v37  ;;  %v21055_v57 = vld [vmem:[%s27524_s15 + $0x18] sm:$0xff]  }
0x147d   : > { %15141 = vrot.lane.b32.xlu1 %v15131_v46, %s27630_s29  ;;  %v26411_v7 = vrot.slane %v15252_v18, %v21612_v56  ;;  %v15276_v21 = vrot.slane %v15269_v39, %v21612_v56  ;;  %15063 = vrot.lane.b32.xlu0 %v15053_v22, %s27632_s3  ;;  %v15163_v27 = vshll.u32 %v26393_v52, 16  ;;  %v15133_v29 = vshrl.u32 %v15111_v58, 16  ;;  %v21056_v44 = vld [vmem:[%s27524_s15 + $0x98] sm:$0xff]   ;;  %v21058_v17 = vld [vmem:[%s27524_s15 + $0xe0] sm:$0xff]  }
0x147e   : > { %v15187_v43 = vshrl.u32 %v15183_v38, 16  ;;  %v15216_v48 = vor.u32 %v15215_v19, %v15211_v23  ;;  %v15191_v34 = vrot.slane %v15189_v60, 1  ;;  %v15161_v42 = vshrl.u32 %v26393_v52, 16  ;;  %20155 = vmatpush3.bf16.msra.mxu0 %v21052_v4  ;;  %20134 = vmatprep.subr.bf16.mxu1 %v21053_v14  ;;  %v21059_v46 = vld [vmem:[%s27524_s15 + $0x20] sm:$0xff]   ;;  %v21061_v8 = vld [vmem:[%s27524_s15 + $0x68] sm:$0xff]   ;;  %v21065_v47 = vld [vmem:[%s27524_s15 + $0x70] sm:$0xff]  }
0x147f   : > { %v15263_v0 = vshll.u32 %v26411_v7, 16  ;;  %v15283_v5 = vrot.slane %v15276_v21, %v21612_v56  ;;  %v15138_v2 = vor.u32 %v15137_v6, %v15133_v29  ;;  %v15165_v13 = vrot.slane %v15163_v27, 1  ;;  %20156 = vmatprep.subr.bf16.mxu0 %v21054_v1  ;;  %v21062_v18 = vld [vmem:[%s27524_s15 + $0xe8] sm:$0xff]   ;;  %v21070_v23 = vld [vmem:[%s27524_s15 + $0xf8] sm:$0xff]  }
0x1480   : > { %v15239_v25 = vshll.u32 %v15233_v45, 16  ;;  %v15192_v10 = vor.u32 %v15191_v34, %v15187_v43  ;;  %v15261_v24 = vshrl.u32 %v26411_v7, 16  ;;  %v15237_v49 = vshrl.u32 %v15233_v45, 16  ;;  %20135 = vmatpush3.bf16.msra.mxu1 %v21055_v57  ;;  %v21063_v39 = vld [vmem:[%s27524_s15 + $0x28] sm:$0xff]   ;;  %v21072_v21 = vld [vmem:[%s27524_s15 + $0xb8] sm:$0xff]  }
0x1481   : > { %15234 = vrot.lane.b32.xlu1 %v15233_v45, %s27624_s0  ;;  %15184 = vrot.lane.b32.xlu0 %v15183_v38, %s27624_s0  ;;  %v15265_v55 = vrot.slane %v15263_v0, 1  ;;  %v15289_v40 = vshll.u32 %v15283_v5, 16  ;;  %v15166_v36 = vor.u32 %v15165_v13, %v15161_v42  ;;  %v15287_v33 = vshrl.u32 %v15283_v5, 16  ;;  %v21060_v38 = vld [vmem:[%s27524_s15 + $0xa0] sm:$0xff]   ;;  %v21064_v22 = vld [vmem:[%s27524_s15 + $0xa8] sm:$0xff]  }
0x1482   : > { %v15241_v53 = vrot.slane %v15239_v25, 1  ;;  %20157 = vmatpush3.bf16.msra.mxu0 %v21056_v44  ;;  %20136 = vmatprep.subr.bf16.mxu1 %v21057_v63  ;;  %v21069_v45 = vld [vmem:[%s27524_s15 + $0x78] sm:$0xff]  }
0x1483   : > { %v15266_v58 = vor.u32 %v15265_v55, %v15261_v24  ;;  %v15291_v35 = vrot.slane %v15289_v40, 1  ;;  %20158 = vmatprep.subr.bf16.mxu0 %v21058_v17 }
0x1484   : > { %v15242_v41 = vor.u32 %v15241_v53, %v15237_v49  ;;  %20137 = vmatpush3.bf16.msra.mxu1 %v21059_v46 }
0x1485   : > { %15217 = vrot.lane.b32.xlu1 %v15216_v48, %s27632_s3  ;;  %15143 = vrot.lane.b32.xlu0 %v15138_v2, %s27630_s29  ;;  %v15292_v20 = vor.u32 %v15291_v35, %v15287_v33 }
0x1486   : > { %20159 = vmatpush3.bf16.msra.mxu0 %v21060_v38  ;;  %20138 = vmatprep.subr.bf16.mxu1 %v21061_v8 }
0x1487   : > { %20160 = vmatprep.subr.bf16.mxu0 %v21062_v18 }
0x1488   : > { %20139 = vmatpush3.bf16.msra.mxu1 %v21063_v39 }
0x1489   : > { %15193 = vrot.lane.b32.xlu1 %v15192_v10, %s27630_s29  ;;  %15167 = vrot.lane.b32.xlu0 %v15166_v36, %s27632_s3 }
0x148a   : > { %20161 = vmatpush3.bf16.msra.mxu0 %v21064_v22  ;;  %20140 = vmatprep.subr.bf16.mxu1 %v21065_v47 }
0x148b   : > { %20162 = vmatprep.subr.bf16.mxu0 %v21066_v31 }
0x148c   : > { %20141 = vmatpush3.bf16.msra.mxu1 %v21067_v30 }
0x148d   : > { %15267 = vrot.lane.b32.xlu1 %v15266_v58, %s27632_s3  ;;  %15243 = vrot.lane.b32.xlu0 %v15242_v41, %s27630_s29 }
0x148e   : > { %20163 = vmatpush3.bf16.msra.mxu0 %v21068_v16  ;;  %20142 = vmatprep.subr.bf16.mxu1 %v21069_v45 }
0x148f   : > { %20164 = vmatprep.subr.bf16.mxu0 %v21070_v23 }
0x1490   : > { %20143 = vmatpush3.bf16.msra.mxu1 %v21071_v28 }
0x1491   : > { %15293 = vrot.lane.b32.xlu1 %v15292_v20, %s27630_s29  ;;  %15284 = vrot.lane.b32.xlu0 %v15283_v5, %s27624_s0 }
0x1492   : > { %20165 = vmatpush3.bf16.msra.mxu0 %v21072_v21  ;;  %20727 = vmatprep.subr.bf16.mxu1 %v27646_v61 }
0x1493   : > { %20733 = vmatprep.subr.bf16.mxu0 %v27646_v61 }
0x14e1   : > { %v15113_v19 = vpop.permute.xlu1 %15112 }
0x14e3   : > { %v15115_v60 = vpop.permute.xlu0 %15114 }
0x14e7   : > { %v15066_v3 = vpop.permute.xlu1 %15065  ;;  %v15062_v32 = vpop.permute.xlu0 %15061 }
0x14e8   : > { %v15296_v2 = vsel %vm4997_vm4, %v26350_v11, %v15062_v32  ;;  %v15300_v13 = vsel %vm4997_vm4, %v26354_v26, %v15066_v3 }
0x14e9   : > { %v15302_v10 = vsel %vm5121_vm8, %v15296_v2, %v15113_v19 }
0x14eb   : > { %v15117_v50 = vpop.permute.xlu1 %15116  ;;  %v15140_v6 = vpop.permute.xlu0 %15139 }
0x14ec   : > { %v15306_v24 = vsel %vm5121_vm8, %v15300_v13, %v15117_v50 }
0x14ef   : > { %v15142_v27 = vpop.permute.xlu1 %15141  ;;  %v15064_v9 = vpop.permute.xlu0 %15063 }
0x14f0   : > { %v15298_v48 = vsel %vm4997_vm4, %v26372_v15, %v15064_v9  ;;  %v15308_v15 = vsel %vm5245_vm12, %v15302_v10, %v15140_v6 }
0x14f1   : > { %v15304_v0 = vsel %vm5121_vm8, %v15298_v48, %v15115_v60 }
0x14f2   : > { %v15310_v25 = vsel %vm5245_vm12, %v15304_v0, %v15142_v27 }
0x14f3   : > { %v15235_v29 = vpop.permute.xlu1 %15234  ;;  %v15185_v43 = vpop.permute.xlu0 %15184  ;;  %v15337_v49 = vcombine.low %v15308_v15, %v15310_v25 }
0x14f7   : > { %v15218_v34 = vpop.permute.xlu1 %15217  ;;  %v15144_v5 = vpop.permute.xlu0 %15143 }
0x14f8   : > { %v15320_v40 = vsel %vm4997_vm4, %v26376_v54, %v15218_v34  ;;  %v15312_v36 = vsel %vm5245_vm12, %v15306_v24, %v15144_v5  ;;  %v15345_v54 = vrot.slane %v15337_v49, %v21612_v56 }
0x14f9   : > { %v15369_v33 = vcombine.low %v15310_v25, %v15312_v36  ;;  %v15322_v35 = vsel %vm5121_vm8, %v15320_v40, %v15235_v29 }
0x14fb   : > { %v15194_v42 = vpop.permute.xlu1 %15193  ;;  %v15168_v55 = vpop.permute.xlu0 %15167 }
0x14fc   : > { %v15314_v11 = vsel %vm4997_vm4, %v26393_v52, %v15168_v55  ;;  %v15377_v52 = vrot.slane %v15369_v33, %v21612_v56 }
0x14fd   : > { %v15316_v26 = vsel %vm5121_vm8, %v15314_v11, %v15185_v43 }
0x14fe   : > { %v15318_v58 = vsel %vm5245_vm12, %v15316_v26, %v15194_v42 }
0x14ff   : > { %v15268_v53 = vpop.permute.xlu1 %15267  ;;  %v15338_v41 = vcombine.low %v15312_v36, %v15318_v58  ;;  %v15244_v12 = vpop.permute.xlu0 %15243 }
0x1500   : > { %v15324_v62 = vsel %vm5245_vm12, %v15322_v35, %v15244_v12  ;;  %v15326_v57 = vsel %vm4997_vm4, %v26411_v7, %v15268_v53  ;;  %vm15851_vm4 = vcmask 1044480  }
0x1501   : > { %v15352_v37 = vrot.slane %v15338_v41, %v21612_v56  ;;  %v15370_v4 = vcombine.low %v15318_v58, %v15324_v62  ;;  %v21323_v41 = vmov 65535  }
0x1502   : > { %v15852_v12 = vsel %vm15850_vm2, 4294967295, %v21323_v41 }
0x1503   : > { %v15294_v20 = vpop.permute.xlu1 %15293  ;;  %v15354_v14 = vcombine.high %v15345_v54, %v15352_v37  ;;  %v15384_v1 = vrot.slane %v15370_v4, %v21612_v56  ;;  %v15285_v44 = vpop.permute.xlu0 %15284  ;;  %v15353_v8 = vcombine.low %v15345_v54, %v15352_v37  ;;  %v15853_v54 = vsel %vm15851_vm4, %v15852_v12, 0 }
0x1504   : > { %v15328_v63 = vsel %vm5121_vm8, %v15326_v57, %v15285_v44 }
0x1505   : > { %v15385_v17 = vcombine.low %v15377_v52, %v15384_v1  ;;  %v15386_v46 = vcombine.high %v15377_v52, %v15384_v1  ;;  %v15330_v38 = vsel %vm5245_vm12, %v15328_v63, %v15294_v20  ;;  %v15368_v39 = vrot.slane %v15354_v14, %v21612_v56  ;;  %v15839_v20 = vld [vmem:[%s27525_s16] sm:$0x3]  ;;  %v19727_v52 = vld [vmem:[%s27661_s22 + $0x6] ss:$0 sm:$0xff] }
0x1506   : > { %v15401_v18 = vcombine.low %v15324_v62, %v15330_v38  ;;  %v15361_v23 = vrot.slane %v15353_v8, %v21612_v56  ;;  %vm15846_vm12 = vcmask 72704  }
0x1507   : > { %v15393_v22 = vrot.slane %v15385_v17, %v21612_v56  ;;  %v15400_v31 = vrot.slane %v15386_v46, %v21612_v56 }
0x1508   : > { %v15408_v47 = vrot.slane %v15401_v18, %v21612_v56  ;;  %v26575_v18 = vld [vmem:[%s27526_s17] sm:$0xff]  }
0x1509   : > { %v15429_v30 = vunpack.i.h.s16 %v15393_v22  ;;  %v19693_v16 = vpack.i.b16 %v15393_v22, %v15368_v39  ;;  %v21074_v39 = vld [vmem:[%s27527_s18 + $0x40] sm:$0xff]  }
0x150a   : > { %v15409_v7 = vcombine.low %v15352_v37, %v15408_v47  ;;  %v15410_v45 = vcombine.high %v15352_v37, %v15408_v47  ;;  %v21075_v22 = vld [vmem:[%s27527_s18] sm:$0xff]  }
0x150b   : > { %v19694_v28 = vpack.i.b16 %v15400_v31, %v15429_v30  ;;  %v15503_v60 = vcombine.low %v15361_v23, %v19693_v16  ;;  %v21076_v47 = vld [vmem:[%s27527_s18 + $0xc0] sm:$0xff]   ;;  %v21077_v31 = vld [vmem:[%s27527_s18 + $0x48] sm:$0xff]  }
0x150c   : > { %v15417_v21 = vrot.slane %v15409_v7, %v21612_v56  ;;  %v15424_v19 = vrot.slane %v15410_v45, %v21612_v56  ;;  %v21078_v30 = vld [vmem:[%s27527_s18 + $0x80] sm:$0xff]   ;;  %v21079_v7 = vld [vmem:[%s27527_s18 + $0x8] sm:$0xff]  }
0x150d   : > { %v15511_v50 = vrot.slane %v15503_v60, %v21612_v56 }
0x150e   : > { %v15433_v3 = vunpack.i.l.s16 %v15424_v19  ;;  %v15504_v32 = vcombine.low %v19694_v28, %v15417_v21  ;;  %v21080_v28 = vld [vmem:[%s27527_s18 + $0xc8] sm:$0xff]   ;;  %v21081_v21 = vld [vmem:[%s27527_s18 + $0x50] sm:$0xff]  }
0x150f   : > { %v21082_v19 = vld [vmem:[%s27527_s18 + $0x88] sm:$0xff]  }
0x1510   : > { %v15518_v6 = vrot.slane %v15504_v32, %v21612_v56  ;;  %v15525_v27 = vrot.slane %v15433_v3, %v21612_v56 }
0x1512   : > { %v15527_v9 = vcombine.high %v15511_v50, %v15518_v6  ;;  %v15528_v29 = vcombine.high %v15525_v27, %v15525_v27  ;;  %v15526_v43 = vcombine.low %v15511_v50, %v15518_v6  ;;  %v15549_v5 = vrot.slane %v15525_v27, %v21612_v56 }
0x1514   : > { %v15542_v48 = vrot.slane %v15527_v9, %v21612_v56  ;;  %v15556_v34 = vrot.slane %v15528_v29, %v21612_v56  ;;  %v15535_v0 = vrot.slane %v15526_v43, %v21612_v56 }
0x1516   : > { %v15559_v2 = vcombine.low %v15542_v48, %v15556_v34  ;;  %v15560_v42 = vcombine.high %v15542_v48, %v15556_v34  ;;  %v15557_v13 = vcombine.low %v15535_v0, %v15549_v5  ;;  %v15558_v25 = vcombine.high %v15535_v0, %v15549_v5  ;;  %v21083_v48 = vld [vmem:[%s27527_s18 + $0x10] sm:$0xff]  }
0x1518   : > { %15789 = vmatprep.mubr.bf16.mxu1 %v15559_v2  ;;  %15830 = vmatprep.mubr.bf16.mxu0 %v15560_v42  ;;  %v21084_v2 = vld [vmem:[%s27527_s18 + $0xd0] sm:$0xff]   ;;  %v21085_v42 = vld [vmem:[%s27527_s18 + $0x58] sm:$0xff]  }
0x1519   : > { %15790 = vmatmul.mubr.bf16.vlgmr.msra.gmra.mrb[172].mxu1 %v15557_v13  ;;  %15831 = vmatmul.mubr.bf16.vlgmr.msra.gmra.mrb[176].mxu0 %v15558_v25  ;;  %v21086_v13 = vld [vmem:[%s27527_s18 + $0x90] sm:$0xff]  }
0x151a   : > { %20729 = vmatprep.mubr.msk.bf16.mxu1 %vm21321_vm0, %v27646_v61  ;;  %20735 = vmatprep.mubr.msk.bf16.mxu0 %vm21321_vm0, %v27646_v61 }
0x15ec   : > { %v20144_v10 = vpop.f32.mrb[172].mxu1  ;;  %v20166_v24 = vpop.f32.mrb[176].mxu0 }
0x15ed   : > { %v20145_v55 = vpop.f32.mrb[173].mxu1  ;;  %v20167_v15 = vpop.f32.mrb[177].mxu0 }
0x15ee   : > { %v20146_v40 = vadd.f32 %v20145_v55, %v20144_v10  ;;  %v20168_v36 = vadd.f32 %v20167_v15, %v20166_v24  ;;  %v20147_v11 = vpop.f32.mrb[174].mxu1  ;;  %v20169_v49 = vpop.f32.mrb[178].mxu0 }
0x15ef   : > { %v20148_v26 = vpop.f32.mrb[175].mxu1  ;;  %v20170_v53 = vpop.f32.mrb[179].mxu0 }
0x15f0   : > { %v15833_v58 = vadd.f32 %v20168_v36, %v20146_v40  ;;  %v20149_v33 = vadd.f32 %v20148_v26, %v20147_v11  ;;  %v20171_v35 = vadd.f32 %v20170_v53, %v20169_v49 }
0x15f2   : > { %v15836_v62 = vadd.f32 %v20171_v35, %v20149_v33 }
0x15f4   : > { %v15840_v37 = vpack.c.bf16 %v15836_v62, %v15833_v58  ;;  %v21087_v62 = vld [vmem:[%s27527_s18 + $0x18] sm:$0xff]  }
0x15f6   : > { %v15855_v4 = vand.u32 %v15853_v54, %v15840_v37 }
0x15f8   : > { %20728 = vmatpush3.bf16.msra.mxu1 %v15855_v4 }
0x15f9   : > { %20176 = vmatprep.subr.bf16.mxu1 %v21074_v39 }
0x15fb   : > { %20730 = vmatmul.mubr.msk.bf16.vlgmr.msra.gmra.mrb[176].mxu1 %vm15846_vm12, %v15839_v20  ;;  %v21088_v20 = vld [vmem:[%s27527_s18 + $0xd8] sm:$0xff]  }
0x15fc   : > { %20177 = vmatpush3.bf16.msra.mxu1 %v21075_v22  ;;  %v21096_v22 = vld [vmem:[%s27527_s18 + $0xe8] sm:$0xff]  }
0x15fd   : > { %20178 = vmatprep.subr.bf16.mxu1 %v21077_v31  ;;  %v21097_v31 = vld [vmem:[%s27527_s18 + $0x70] sm:$0xff]  }
0x1600   : > { %20179 = vmatpush3.bf16.msra.mxu1 %v21079_v7  ;;  %v21099_v7 = vld [vmem:[%s27527_s18 + $0x30] sm:$0xff]  }
0x1601   : > { %20180 = vmatprep.subr.bf16.mxu1 %v21081_v21  ;;  %v21103_v21 = vld [vmem:[%s27527_s18 + $0x38] sm:$0xff]  }
0x1604   : > { %20181 = vmatpush3.bf16.msra.mxu1 %v21083_v48 }
0x1605   : > { %20182 = vmatprep.subr.bf16.mxu1 %v21085_v42 }
0x1608   : > { %20183 = vmatpush3.bf16.msra.mxu1 %v21087_v62 }
0x16ce   : > { %v15891_v14 = vpop.f32.mrb[176].mxu1 }
0x16cf   : > { %v15892_v1 = vadd.f32 %v19727_v52, %v15891_v14  ;;  %v20731_v57 = vpop.f32.mrb[177].mxu1  ;;  %v21089_v52 = vld [vmem:[%s27527_s18 + $0x60] sm:$0xff]   ;;  %v21090_v14 = vld [vmem:[%s27527_s18 + $0x98] sm:$0xff]  }
0x16d0   : > { %v15894_v44 = vpop.f32.mrb[178].mxu1  ;;  %v21091_v57 = vld [vmem:[%s27527_s18 + $0x20] sm:$0xff]   ;;  %20184 = vmatprep.subr.bf16.mxu1 %v21089_v52 }
0x16d1   : > { %vm15897_vm9 = vcmp.ge.f32.partialorder %v15892_v1, 0.0  ;;  %v15898_v63 = vmul.f32 0.2, %v15892_v1  ;;  %v20732_v17 = vpop.f32.mrb[179].mxu1  ;;  %v21092_v44 = vld [vmem:[%s27527_s18 + $0xe0] sm:$0xff]   ;;  %20185 = vmatpush3.bf16.msra.mxu1 %v21091_v57  ;;  %v21109_v57 = vld [vmem:[%s27527_s18 + $0x118] sm:$0xff]  }
0x16d2   : > { %v21093_v17 = vld [vmem:[%s27527_s18 + $0x68] sm:$0xff]  }
0x16d3   : > { %v15899_v46 = vsel %vm15897_vm9, %v15892_v1, %v15898_v63  ;;  %20186 = vmatprep.subr.bf16.mxu1 %v21093_v17 }
0x16d4   : > { %v26568_v38 = vpack.c.bf16 %v15899_v46, %v15899_v46 }
0x16d6   : > { %v15914_v8 = vsel %vm15912_vm11, %v26568_v38, 0 }
0x16d7   : > { %20734 = vmatpush3.bf16.msra.mxu0 %v15914_v8  ;;  %v21094_v8 = vld [vmem:[%s27527_s18 + $0xa0] sm:$0xff]  }
0x16d8   : > { %20198 = vmatprep.subr.bf16.mxu0 %v21076_v47  ;;  %v21095_v47 = vld [vmem:[%s27527_s18 + $0x28] sm:$0xff]  }
0x16d9   : > { %20187 = vmatpush3.bf16.msra.mxu1 %v21095_v47 }
0x16da   : > { %20736 = vmatmul.mubr.msk.bf16.vlgmr.msra.gmra.mrb[180].mxu0 %vm15908_vm13, %v26575_v18  ;;  %20188 = vmatprep.subr.bf16.mxu1 %v21097_v31 }
0x16db   : > { %20199 = vmatpush3.bf16.msra.mxu0 %v21078_v30  ;;  %v21098_v30 = vld [vmem:[%s27527_s18 + $0xa8] sm:$0xff]  }
0x16dc   : > { %20200 = vmatprep.subr.bf16.mxu0 %v21080_v28  ;;  %v21104_v28 = vld [vmem:[%s27527_s18 + $0xf8] sm:$0xff]  }
0x16dd   : > { %20189 = vmatpush3.bf16.msra.mxu1 %v21099_v7 }
0x16df   : > { %20201 = vmatpush3.bf16.msra.mxu0 %v21082_v19  ;;  %v21105_v19 = vld [vmem:[%s27527_s18 + $0xb8] sm:$0xff]  }
0x16e0   : > { %20202 = vmatprep.subr.bf16.mxu0 %v21084_v2 }
0x16e3   : > { %20203 = vmatpush3.bf16.msra.mxu0 %v21086_v13 }
0x16e4   : > { %20204 = vmatprep.subr.bf16.mxu0 %v21088_v20 }
0x16e7   : > { %20205 = vmatpush3.bf16.msra.mxu0 %v21090_v14  ;;  %v21107_v14 = vld [vmem:[%s27527_s18 + $0x108] sm:$0xff]  }
0x16e8   : > { %20206 = vmatprep.subr.bf16.mxu0 %v21092_v44 }
0x16eb   : > { %20207 = vmatpush3.bf16.msra.mxu0 %v21094_v8 }
0x16ec   : > { %20208 = vmatprep.subr.bf16.mxu0 %v21096_v22 }
0x16ef   : > { %20209 = vmatpush3.bf16.msra.mxu0 %v21098_v30 }
0x17ad   : > { %v15950_v16 = vpop.f32.mrb[180].mxu0 }
0x17ae   : > { %v20737_v45 = vpop.f32.mrb[181].mxu0 }
0x17af   : > { %v15953_v23 = vpop.f32.mrb[182].mxu0  ;;  %v21101_v45 = vld [vmem:[%s27527_s18 + $0x78] sm:$0xff]  }
0x17b0   : > { %v15957_v60 = vpack.c.bf16 %v15953_v23, %v15950_v16  ;;  %v19731_v3 = vpack.c.bf16 %v15953_v23, %v15953_v23  ;;  %v20738_v32 = vpop.f32.mrb[183].mxu0  ;;  %v21100_v16 = vld [vmem:[%s27527_s18 + $0xf0] sm:$0xff]   ;;  %20190 = vmatprep.subr.bf16.mxu1 %v21101_v45 }
0x17b1   : > { %v21102_v23 = vld [vmem:[%s27527_s18 + $0xb0] sm:$0xff]   ;;  %20210 = vmatprep.subr.bf16.mxu0 %v21100_v16  ;;  %20191 = vmatpush3.bf16.msra.mxu1 %v21103_v21 }
0x17b2   : > { %v26607_v50 = vrot.slane %v15957_v60, %v25900_v59  ;;  %v26610_v6 = vrot.slane %v19731_v3, %v25900_v59  ;;  %20211 = vmatpush3.bf16.msra.mxu0 %v21102_v23  ;;  %20739 = vmatprep.subr.bf16.mxu1 %v27646_v61 }
0x17b3   : > { %20212 = vmatprep.subr.bf16.mxu0 %v21104_v28 }
0x17b4   : > { %v26614_v27 = vcombine.high %v26607_v50, %v26607_v50  ;;  %v26618_v9 = vcombine.high %v26610_v6, %v26610_v6  ;;  %v26622_v29 = vrot.slane %v26607_v50, %v25900_v59  ;;  %v16016_v43 = vrot.slane %v26610_v6, %v25900_v59 }
0x17b6   : > { %v16039_v34 = vrot.slane %v26618_v9, %v25900_v59  ;;  %16019 = vrot.lane.b32.xlu1 %v16016_v43, %s27624_s0  ;;  %v26634_v0 = vrot.slane %v26614_v27, %v25900_v59  ;;  %v16028_v5 = vrot.slane %v16016_v43, 1  ;;  %v15993_v25 = vshll.u32 %v26622_v29, 16  ;;  %20213 = vmatpush3.bf16.msra.mxu0 %v21105_v19 }
0x17b7   : > { %v16024_v49 = vshll.u32 %v16016_v43, 16  ;;  %v15991_v35 = vshrl.u32 %v26622_v29, 16  ;;  %v16022_v63 = vshrl.u32 %v16016_v43, 16  ;;  %20751 = vmatprep.subr.bf16.mxu0 %v27646_v61  ;;  %v16008_v2 = vrot.slane %v26622_v29, 1 }
0x17b8   : > { %v16051_v10 = vrot.slane %v16039_v34, 1  ;;  %16017 = vrot.lane.b32.xlu0 %v26634_v0, %s27624_s0  ;;  %v16106_v24 = vrot.slane %v16028_v5, %v21612_v56  ;;  %v16000_v55 = vshll.u32 %v26634_v0, 16  ;;  %v16043_v15 = vshll.u32 %v16039_v34, 16 }
0x17b9   : > { %v16009_v36 = vrot.slane %v26634_v0, 1  ;;  %v15995_v11 = vrot.slane %v15993_v25, 1  ;;  %v15998_v26 = vshrl.u32 %v26634_v0, 16  ;;  %v16026_v4 = vrot.slane %v16024_v49, 1 }
0x17ba   : > { %v16145_v40 = vrot.slane %v16051_v10, %v21612_v56  ;;  %16031 = vrot.lane.b32.xlu1 %v16028_v5, %s27624_s0  ;;  %v16002_v53 = vrot.slane %v16000_v55, 1  ;;  %v16121_v58 = vrot.slane %v16106_v24, %v21612_v56  ;;  %v16045_v12 = vrot.slane %v16043_v15, 1 }
0x17bb   : > { %v15996_v37 = vor.u32 %v15995_v11, %v15991_v35  ;;  %v16041_v1 = vshrl.u32 %v16039_v34, 16  ;;  %v16027_v39 = vor.u32 %v16026_v4, %v16022_v63  ;;  %v21106_v4 = vld [vmem:[%s27527_s18 + $0x100] sm:$0xff]  }
0x17bc   : > { %v16160_v33 = vrot.slane %v16145_v40, %v21612_v56  ;;  %16029 = vrot.lane.b32.xlu0 %v16009_v36, %s27624_s0  ;;  %v26660_v41 = vor.u32 %v16002_v53, %v15998_v26 }
0x17bd   : > { %v16046_v46 = vor.u32 %v16045_v12, %v16041_v1  ;;  %v21108_v1 = vld [vmem:[%s27527_s18 + $0x110] sm:$0xff]  }
0x17be   : > { %v26665_v54 = vcombine.low %v16121_v58, %v16160_v33  ;;  %16006 = vrot.lane.b32.xlu1 %v26660_v41, %s27624_s0 }
0x17c0   : > { %16004 = vrot.lane.b32.xlu0 %v15996_v37, %s27624_s0  ;;  %v16254_v44 = vrot.slane %v26665_v54, %v21612_v56 }
0x17c2   : > { %16049 = vrot.lane.b32.xlu1 %v16046_v46, %s27624_s0  ;;  %v16269_v63 = vrot.slane %v16254_v44, %v21612_v56  ;;  %v19732_v46 = vld [vmem:[%s27661_s22 + $0x7] ss:$0 sm:$0xff] }
0x17c4   : > { %16047 = vrot.lane.b32.xlu0 %v16027_v39, %s27624_s0 }
0x1828   : > { %v16020_v60 = vpop.permute.xlu1 %16019 }
0x1829   : > { %v16063_v13 = vsel %vm5121_vm8, %v16009_v36, %v16020_v60 }
0x182a   : > { %v16018_v3 = vpop.permute.xlu0 %16017 }
0x182b   : > { %v16060_v25 = vsel %vm5121_vm8, %v16008_v2, %v16018_v3  ;;  %v21111_v2 = vld [vmem:[%s27528_s19] sm:$0xff]  }
0x182c   : > { %v16032_v32 = vpop.permute.xlu1 %16031 }
0x182d   : > { %v16069_v55 = vsel %vm5121_vm8, %v16027_v39, %v16032_v32 }
0x182e   : > { %v16030_v43 = vpop.permute.xlu0 %16029 }
0x182f   : > { %v16066_v29 = vsel %vm5121_vm8, %v26660_v41, %v16030_v43 }
0x1830   : > { %v16007_v48 = vpop.permute.xlu1 %16006 }
0x1831   : > { %v16057_v34 = vsel %vm5121_vm8, %v26614_v27, %v16007_v48 }
0x1832   : > { %v16005_v5 = vpop.permute.xlu0 %16004  ;;  %v16123_v10 = vcombine.low %v16057_v34, %v16063_v13  ;;  %v21113_v13 = vld [vmem:[%s27528_s19 + $0x48] sm:$0xff]  }
0x1833   : > { %v16054_v42 = vsel %vm5121_vm8, %v26607_v50, %v16005_v5  ;;  %v21110_v5 = vld [vmem:[%s27528_s19 + $0x40] sm:$0xff]  }
0x1834   : > { %v16050_v24 = vpop.permute.xlu1 %16049  ;;  %v16084_v15 = vcombine.low %v16054_v42, %v16060_v25  ;;  %v16131_v36 = vrot.slane %v16123_v10, %v21612_v56  ;;  %v21112_v42 = vld [vmem:[%s27528_s19 + $0xc0] sm:$0xff]   ;;  %v21115_v10 = vld [vmem:[%s27528_s19 + $0x8] sm:$0xff]  }
0x1835   : > { %v16075_v27 = vsel %vm5121_vm8, %v26618_v9, %v16050_v24 }
0x1836   : > { %v16048_v40 = vpop.permute.xlu0 %16047  ;;  %v16124_v11 = vcombine.low %v16069_v55, %v16075_v27  ;;  %v16092_v26 = vrot.slane %v16084_v15, %v21612_v56  ;;  %v21116_v15 = vld [vmem:[%s27528_s19 + $0xc8] sm:$0xff]   ;;  %v21117_v27 = vld [vmem:[%s27528_s19 + $0x50] sm:$0xff]  }
0x1837   : > { %v16072_v50 = vsel %vm5121_vm8, %v26610_v6, %v16048_v40  ;;  %v21118_v40 = vld [vmem:[%s27528_s19 + $0x88] sm:$0xff]  }
0x1838   : > { %v16085_v0 = vcombine.low %v16066_v29, %v16072_v50  ;;  %v16138_v49 = vrot.slane %v16124_v11, %v21612_v56 }
0x183a   : > { %v16099_v53 = vrot.slane %v16085_v0, %v21612_v56  ;;  %v16146_v58 = vcombine.low %v16131_v36, %v16138_v49 }
0x183c   : > { %v16107_v33 = vcombine.low %v16092_v26, %v16099_v53  ;;  %v16153_v9 = vrot.slane %v16146_v58, %v21612_v56 }
0x183e   : > { %v16114_v35 = vrot.slane %v16107_v33, %v21612_v56  ;;  %v21119_v33 = vld [vmem:[%s27528_s19 + $0x10] sm:$0xff]  }
0x1840   : > { %v19733_v41 = vcombine.low %v16114_v35, %v16153_v9 }
0x1842   : > { %v16247_v12 = vrot.slane %v19733_v41, %v21612_v56 }
0x1844   : > { %v16255_v62 = vcombine.high %v16247_v12, %v16247_v12  ;;  %v16262_v6 = vrot.slane %v16247_v12, %v21612_v56  ;;  %v21120_v12 = vld [vmem:[%s27528_s19 + $0xd0] sm:$0xff]  }
0x1846   : > { %v16276_v37 = vrot.slane %v16255_v62, %v21612_v56  ;;  %v16277_v52 = vcombine.high %v16262_v6, %v16262_v6  ;;  %v21121_v62 = vld [vmem:[%s27528_s19 + $0x58] sm:$0xff]  }
0x1848   : > { %16534 = vmatprep.mubr.bf16.mxu1 %v16276_v37  ;;  %v16278_v20 = vcombine.high %v16276_v37, %v16276_v37 }
0x1849   : > { %16535 = vmatmul.mubr.bf16.vlgmr.msra.gmra.mrb[180].mxu1 %v16262_v6  ;;  %v21122_v6 = vld [vmem:[%s27528_s19 + $0x90] sm:$0xff]  }
0x184a   : > { %20740 = vmatpush3.bf16.msra.mxu1 %v21106_v4  ;;  %16574 = vmatprep.mubr.bf16.mxu0 %v16278_v20 }
0x184b   : > { %16575 = vmatmul.mubr.bf16.vlgmr.msra.gmra.mrb[184].mxu0 %v16277_v52  ;;  %20741 = vmatprep.subr.bf16.mxu1 %v27646_v61 }
0x184c   : > { %20747 = vmatprep.mubr.msk.bf16.mxu1 %vm21321_vm0, %v27646_v61  ;;  %20753 = vmatprep.mubr.msk.bf16.mxu0 %vm21321_vm0, %v27646_v61 }
0x184e   : > { %20742 = vmatpush3.bf16.msra.mxu1 %v21107_v14 }
0x184f   : > { %20743 = vmatprep.subr.bf16.mxu1 %v27646_v61 }
0x1852   : > { %20744 = vmatpush3.bf16.msra.mxu1 %v21108_v1 }
0x1853   : > { %20745 = vmatprep.subr.bf16.mxu1 %v27646_v61 }
0x1856   : > { %20746 = vmatpush3.bf16.msra.mxu1 %v21109_v57 }
0x1857   : > { %20249 = vmatprep.subr.bf16.mxu1 %v21112_v42  ;;  %v21134_v42 = vld [vmem:[%s27528_s19 + $0xa8] sm:$0xff]  }
0x1859   : > { %20748 = vmatmul.mubr.msk.bf16.vlgmr.msra.gmra.mrb[184].mxu1 %vm5121_vm8, %v16269_v63 }
0x191c   : > { %v20192_v17 = vpop.f32.mrb[180].mxu1 }
0x191d   : > { %v20193_v8 = vpop.f32.mrb[181].mxu1 }
0x191e   : > { %v20194_v39 = vadd.f32 %v20193_v8, %v20192_v17  ;;  %v20195_v22 = vpop.f32.mrb[182].mxu1  ;;  %v20214_v47 = vpop.f32.mrb[184].mxu0 }
0x191f   : > { %v20196_v31 = vpop.f32.mrb[183].mxu1  ;;  %v20215_v30 = vpop.f32.mrb[185].mxu0 }
0x1920   : > { %v16537_v16 = vadd.f32 %v20194_v39, %v19732_v46  ;;  %v20216_v7 = vadd.f32 %v20215_v30, %v20214_v47  ;;  %v20217_v45 = vpop.f32.mrb[186].mxu0  ;;  %v21123_v31 = vld [vmem:[%s27528_s19 + $0x18] sm:$0xff]  }
0x1921   : > { %v20218_v54 = vpop.f32.mrb[187].mxu0  ;;  %v21124_v45 = vld [vmem:[%s27528_s19 + $0xd8] sm:$0xff]  }
0x1922   : > { %v16577_v23 = vadd.f32 %v20216_v7, %v16537_v16  ;;  %v21125_v54 = vld [vmem:[%s27528_s19 + $0x60] sm:$0xff]  }
0x192c   : > { %v16616_v28 = vpop.f32.mrb[184].mxu1 }
0x192d   : > { %v16617_v21 = vadd.f32 %v16616_v28, %v16577_v23  ;;  %v20749_v19 = vpop.f32.mrb[185].mxu1  ;;  %v21126_v23 = vld [vmem:[%s27528_s19 + $0x98] sm:$0xff]  }
0x192e   : > { %v16619_v60 = vpop.f32.mrb[186].mxu1  ;;  %v21128_v19 = vld [vmem:[%s27528_s19 + $0xe0] sm:$0xff]  }
0x192f   : > { %vm16622_vm15 = vcmp.ge.f32.partialorder %v16617_v21, 0.0  ;;  %v16623_v3 = vmul.f32 0.2, %v16617_v21  ;;  %v20750_v32 = vpop.f32.mrb[187].mxu1 }
0x1931   : > { %v16624_v43 = vsel %vm16622_vm15, %v16617_v21, %v16623_v3  ;;  %v21127_v21 = vld [vmem:[%s27528_s19 + $0x20] sm:$0xff]   ;;  %v21129_v3 = vld [vmem:[%s27528_s19 + $0x68] sm:$0xff]  }
0x1932   : > { %v16625_v48 = vpack.c.bf16 %v16624_v43, %v16624_v43  ;;  %v21130_v43 = vld [vmem:[%s27528_s19 + $0xa0] sm:$0xff]  }
0x1934   : > { %v16627_v34 = vsel %vm15912_vm11, %v16625_v48, 0 }
0x1935   : > { %20752 = vmatpush3.bf16.msra.mxu0 %v16627_v34  ;;  %v21132_v34 = vld [vmem:[%s27528_s19 + $0xe8] sm:$0xff]  }
0x1936   : > { %20227 = vmatprep.subr.bf16.mxu0 %v21110_v5  ;;  %v21131_v5 = vld [vmem:[%s27528_s19 + $0x28] sm:$0xff]  }
0x1938   : > { %20754 = vmatmul.mubr.msk.bf16.vlgmr.msra.gmra.mrb[188].mxu0 %vm15908_vm13, %v26575_v18  ;;  %v21114_v18 = vld [vmem:[%s27528_s19 + $0x80] sm:$0xff]  }
0x1939   : > { %20228 = vmatpush3.bf16.msra.mxu0 %v21111_v2  ;;  %20250 = vmatpush3.bf16.msra.mxu1 %v21114_v18  ;;  %v21133_v2 = vld [vmem:[%s27528_s19 + $0x70] sm:$0xff]  }
0x193a   : > { %20229 = vmatprep.subr.bf16.mxu0 %v21113_v13  ;;  %20251 = vmatprep.subr.bf16.mxu1 %v21116_v15  ;;  %v21136_v13 = vld [vmem:[%s27528_s19 + $0xf0] sm:$0xff]   ;;  %v21141_v15 = vld [vmem:[%s27528_s19 + $0xb8] sm:$0xff]  }
0x193b   : > { %v21135_v18 = vld [vmem:[%s27528_s19 + $0x30] sm:$0xff]  }
0x193d   : > { %20230 = vmatpush3.bf16.msra.mxu0 %v21115_v10  ;;  %20252 = vmatpush3.bf16.msra.mxu1 %v21118_v40  ;;  %v21138_v10 = vld [vmem:[%s27528_s19 + $0xb0] sm:$0xff]  }
0x193e   : > { %20231 = vmatprep.subr.bf16.mxu0 %v21117_v27  ;;  %20253 = vmatprep.subr.bf16.mxu1 %v21120_v12 }
0x1941   : > { %20232 = vmatpush3.bf16.msra.mxu0 %v21119_v33  ;;  %20254 = vmatpush3.bf16.msra.mxu1 %v21122_v6 }
0x1942   : > { %20233 = vmatprep.subr.bf16.mxu0 %v21121_v62  ;;  %20255 = vmatprep.subr.bf16.mxu1 %v21124_v45  ;;  %v21143_v45 = vld [vmem:[%s27528_s19 + $0x108] sm:$0xff]  }
0x1945   : > { %20234 = vmatpush3.bf16.msra.mxu0 %v21123_v31  ;;  %20256 = vmatpush3.bf16.msra.mxu1 %v21126_v23  ;;  %v21142_v31 = vld [vmem:[%s27528_s19 + $0x100] sm:$0xff]   ;;  %v21145_v23 = vld [vmem:[%s27528_s19 + $0x118] sm:$0xff]  }
0x1946   : > { %20235 = vmatprep.subr.bf16.mxu0 %v21125_v54  ;;  %20257 = vmatprep.subr.bf16.mxu1 %v21128_v19  ;;  %v21144_v54 = vld [vmem:[%s27528_s19 + $0x110] sm:$0xff]  }
0x1949   : > { %20236 = vmatpush3.bf16.msra.mxu0 %v21127_v21  ;;  %20258 = vmatpush3.bf16.msra.mxu1 %v21130_v43 }
0x194a   : > { %20237 = vmatprep.subr.bf16.mxu0 %v21129_v3  ;;  %20259 = vmatprep.subr.bf16.mxu1 %v21132_v34 }
0x194d   : > { %20238 = vmatpush3.bf16.msra.mxu0 %v21131_v5  ;;  %20260 = vmatpush3.bf16.msra.mxu1 %v21134_v42 }
0x194e   : > { %20239 = vmatprep.subr.bf16.mxu0 %v21133_v2  ;;  %20261 = vmatprep.subr.bf16.mxu1 %v21136_v13 }
0x1951   : > { %20240 = vmatpush3.bf16.msra.mxu0 %v21135_v18  ;;  %20262 = vmatpush3.bf16.msra.mxu1 %v21138_v10  ;;  %v17335_v10 = vunpack.c.l.bf16 %v26568_v38  ;;  %v21148_v38 = vld [vmem:[%s27530_s21] sm:$0xff]  }
0x1a0b   : > { %v16663_v25 = vpop.f32.mrb[188].mxu0 }
0x1a0c   : > { %v20755_v24 = vpop.f32.mrb[189].mxu0 }
0x1a0d   : > { %v16666_v55 = vpop.f32.mrb[190].mxu0  ;;  %v21140_v24 = vld [vmem:[%s27528_s19 + $0xf8] sm:$0xff]  }
0x1a0e   : > { %v16670_v29 = vpack.c.bf16 %v16666_v55, %v16663_v25  ;;  %v19773_v11 = vpack.c.bf16 %v16666_v55, %v16666_v55  ;;  %v20756_v50 = vpop.f32.mrb[191].mxu0  ;;  %v21137_v25 = vld [vmem:[%s27528_s19 + $0x78] sm:$0xff]   ;;  %20263 = vmatprep.subr.bf16.mxu1 %v21140_v24 }
0x1a0f   : > { %v21139_v55 = vld [vmem:[%s27528_s19 + $0x38] sm:$0xff]   ;;  %20241 = vmatprep.subr.bf16.mxu0 %v21137_v25  ;;  %20264 = vmatpush3.bf16.msra.mxu1 %v21141_v15 }
0x1a10   : > { %v26810_v0 = vrot.slane %v16670_v29, %v25900_v59  ;;  %v26813_v36 = vrot.slane %v19773_v11, %v25900_v59  ;;  %20242 = vmatpush3.bf16.msra.mxu0 %v21139_v55  ;;  %20769 = vmatprep.subr.bf16.mxu1 %v27646_v61 }
0x1a11   : > { %20757 = vmatprep.subr.bf16.mxu0 %v27646_v61 }
0x1a12   : > { %v26817_v49 = vcombine.high %v26810_v0, %v26810_v0  ;;  %v26821_v26 = vcombine.high %v26813_v36, %v26813_v36  ;;  %v26825_v53 = vrot.slane %v26810_v0, %v25900_v59  ;;  %v16729_v58 = vrot.slane %v26813_v36, %v25900_v59 }
0x1a14   : > { %v16752_v9 = vrot.slane %v26821_v26, %v25900_v59  ;;  %16732 = vrot.lane.b32.xlu1 %v16729_v58, %s27624_s0  ;;  %v26837_v35 = vrot.slane %v26817_v49, %v25900_v59  ;;  %v16741_v41 = vrot.slane %v16729_v58, 1  ;;  %v16706_v37 = vshll.u32 %v26825_v53, 16 }
0x1a15   : > { %v16737_v44 = vshll.u32 %v16729_v58, 16  ;;  %v16704_v39 = vshrl.u32 %v26825_v53, 16  ;;  %v16735_v60 = vshrl.u32 %v16729_v58, 16 }
0x1a16   : > { %v16764_v4 = vrot.slane %v16752_v9, 1  ;;  %16730 = vrot.lane.b32.xlu0 %v26837_v35, %s27624_s0  ;;  %v16819_v59 = vrot.slane %v16741_v41, %v21612_v56  ;;  %v16713_v20 = vshll.u32 %v26837_v35, 16  ;;  %v16756_v52 = vshll.u32 %v16752_v9, 16 }
0x1a17   : > { %v16722_v1 = vrot.slane %v26837_v35, 1  ;;  %v16708_v57 = vrot.slane %v16706_v37, 1  ;;  %v16711_v63 = vshrl.u32 %v26837_v35, 16  ;;  %v16739_v7 = vrot.slane %v16737_v44, 1 }
0x1a18   : > { %v16858_v14 = vrot.slane %v16764_v4, %v21612_v56  ;;  %16744 = vrot.lane.b32.xlu1 %v16741_v41, %s27624_s0  ;;  %v16715_v17 = vrot.slane %v16713_v20, 1  ;;  %v16834_v46 = vrot.slane %v16819_v59, %v21612_v56  ;;  %v16758_v47 = vrot.slane %v16756_v52, 1 }
0x1a19   : > { %v16709_v16 = vor.u32 %v16708_v57, %v16704_v39  ;;  %v16754_v28 = vshrl.u32 %v16752_v9, 16  ;;  %v16740_v48 = vor.u32 %v16739_v7, %v16735_v60  ;;  %v16721_v9 = vrot.slane %v26825_v53, 1  ;;  %v19774_v60 = vld [vmem:[%s27661_s22 + $0x8] ss:$0 sm:$0xff] }
0x1a1a   : > { %v16873_v8 = vrot.slane %v16858_v14, %v21612_v56  ;;  %16742 = vrot.lane.b32.xlu0 %v16722_v1, %s27624_s0  ;;  %v26863_v22 = vor.u32 %v16715_v17, %v16711_v63 }
0x1a1b   : > { %v16759_v32 = vor.u32 %v16758_v47, %v16754_v28 }
0x1a1c   : > { %v26868_v30 = vcombine.low %v16834_v46, %v16873_v8  ;;  %16719 = vrot.lane.b32.xlu1 %v26863_v22, %s27624_s0 }
0x1a1e   : > { %16717 = vrot.lane.b32.xlu0 %v16709_v16, %s27624_s0  ;;  %v16967_v28 = vrot.slane %v26868_v30, %v21612_v56 }
0x1a20   : > { %16762 = vrot.lane.b32.xlu1 %v16759_v32, %s27624_s0  ;;  %v16982_v21 = vrot.slane %v16967_v28, %v21612_v56 }
0x1a22   : > { %16760 = vrot.lane.b32.xlu0 %v16740_v48, %s27624_s0 }
0x1a86   : > { %v16733_v27 = vpop.permute.xlu1 %16732 }
0x1a87   : > { %v16776_v12 = vsel %vm5121_vm8, %v16722_v1, %v16733_v27 }
0x1a88   : > { %v16731_v40 = vpop.permute.xlu0 %16730 }
0x1a89   : > { %v16773_v62 = vsel %vm5121_vm8, %v16721_v9, %v16731_v40  ;;  %v21152_v9 = vld [vmem:[%s27530_s21 + $0x80] sm:$0xff]  }
0x1a8a   : > { %v16745_v29 = vpop.permute.xlu1 %16744 }
0x1a8b   : > { %v16782_v4 = vsel %vm5121_vm8, %v16740_v48, %v16745_v29 }
0x1a8c   : > { %v16743_v11 = vpop.permute.xlu0 %16742 }
0x1a8d   : > { %v16779_v53 = vsel %vm5121_vm8, %v26863_v22, %v16743_v11  ;;  %v21146_v11 = vld [vmem:[%s27529_s20] sm:$0xff]  }
0x1a8e   : > { %v16720_v50 = vpop.permute.xlu1 %16719 }
0x1a8f   : > { %v16770_v58 = vsel %vm5121_vm8, %v26817_v49, %v16720_v50  ;;  %v21147_v50 = vld [vmem:[%s27530_s21 + $0x40] sm:$0xff]  }
0x1a90   : > { %v16718_v33 = vpop.permute.xlu0 %16717  ;;  %v16836_v6 = vcombine.low %v16770_v58, %v16776_v12  ;;  %v21149_v58 = vld [vmem:[%s27530_s21 + $0x48] sm:$0xff]  }
0x1a91   : > { %v16767_v41 = vsel %vm5121_vm8, %v26810_v0, %v16718_v33  ;;  %v21150_v33 = vld [vmem:[%s27530_s21 + $0xc0] sm:$0xff]   ;;  %v21151_v12 = vld [vmem:[%s27530_s21 + $0x8] sm:$0xff]  }
0x1a92   : > { %v16763_v37 = vpop.permute.xlu1 %16762  ;;  %v16797_v59 = vcombine.low %v16767_v41, %v16773_v62  ;;  %v16844_v14 = vrot.slane %v16836_v6, %v21612_v56  ;;  %v21154_v41 = vld [vmem:[%s27530_s21 + $0xc8] sm:$0xff]   ;;  %v21153_v62 = vld [vmem:[%s27530_s21 + $0x50] sm:$0xff]  }
0x1a93   : > { %v16788_v49 = vsel %vm5121_vm8, %v26821_v26, %v16763_v37  ;;  %v21156_v6 = vld [vmem:[%s27530_s21 + $0x88] sm:$0xff]   ;;  %v21158_v37 = vld [vmem:[%s27530_s21 + $0xd0] sm:$0xff]  }
0x1a94   : > { %v16761_v20 = vpop.permute.xlu0 %16760  ;;  %v16837_v52 = vcombine.low %v16782_v4, %v16788_v49  ;;  %v16805_v57 = vrot.slane %v16797_v59, %v21612_v56  ;;  %v21155_v4 = vld [vmem:[%s27530_s21 + $0x10] sm:$0xff]   ;;  %v21157_v59 = vld [vmem:[%s27530_s21 + $0x58] sm:$0xff]  }
0x1a95   : > { %v16785_v0 = vsel %vm5121_vm8, %v26813_v36, %v16761_v20  ;;  %v21160_v49 = vld [vmem:[%s27530_s21 + $0x90] sm:$0xff]   ;;  %v21162_v20 = vld [vmem:[%s27530_s21 + $0xd8] sm:$0xff]  }
0x1a96   : > { %v16798_v35 = vcombine.low %v16779_v53, %v16785_v0  ;;  %v16851_v1 = vrot.slane %v16837_v52, %v21612_v56  ;;  %v21159_v53 = vld [vmem:[%s27530_s21 + $0x18] sm:$0xff]   ;;  %v21161_v52 = vld [vmem:[%s27530_s21 + $0x60] sm:$0xff]  }
0x1a97   : > { %v21164_v0 = vld [vmem:[%s27530_s21 + $0x98] sm:$0xff]  }
0x1a98   : > { %v16812_v44 = vrot.slane %v16798_v35, %v21612_v56  ;;  %v16859_v63 = vcombine.low %v16844_v14, %v16851_v1  ;;  %v21166_v35 = vld [vmem:[%s27530_s21 + $0xe0] sm:$0xff]   ;;  %v21165_v1 = vld [vmem:[%s27530_s21 + $0x68] sm:$0xff]  }
0x1a99   : > { %v21163_v14 = vld [vmem:[%s27530_s21 + $0x20] sm:$0xff]  }
0x1a9a   : > { %v16820_v17 = vcombine.low %v16805_v57, %v16812_v44  ;;  %v16866_v26 = vrot.slane %v16859_v63, %v21612_v56  ;;  %v21168_v57 = vld [vmem:[%s27530_s21 + $0xa0] sm:$0xff]   ;;  %v21170_v44 = vld [vmem:[%s27530_s21 + $0xe8] sm:$0xff]  }
0x1a9b   : > { %v21167_v63 = vld [vmem:[%s27530_s21 + $0x28] sm:$0xff]  }
0x1a9c   : > { %v16827_v46 = vrot.slane %v16820_v17, %v21612_v56  ;;  %v21169_v17 = vld [vmem:[%s27530_s21 + $0x70] sm:$0xff]  }
0x1a9e   : > { %v19775_v8 = vcombine.low %v16827_v46, %v16866_v26  ;;  %v21172_v26 = vld [vmem:[%s27530_s21 + $0xa8] sm:$0xff]   ;;  %v21174_v46 = vld [vmem:[%s27530_s21 + $0xf0] sm:$0xff]  }
0x1aa0   : > { %v16960_v39 = vrot.slane %v19775_v8, %v21612_v56  ;;  %v21171_v8 = vld [vmem:[%s27530_s21 + $0x30] sm:$0xff]  }
0x1aa2   : > { %v16968_v22 = vcombine.high %v16960_v39, %v16960_v39  ;;  %v16975_v36 = vrot.slane %v16960_v39, %v21612_v56  ;;  %v21173_v39 = vld [vmem:[%s27530_s21 + $0x78] sm:$0xff]  }
0x1aa4   : > { %v16989_v47 = vrot.slane %v16968_v22, %v21612_v56  ;;  %v16990_v7 = vcombine.high %v16975_v36, %v16975_v36  ;;  %v21175_v22 = vld [vmem:[%s27530_s21 + $0x38] sm:$0xff]  }
0x1aa6   : > { %17247 = vmatprep.mubr.bf16.mxu0 %v16989_v47  ;;  %v16991_v16 = vcombine.high %v16989_v47, %v16989_v47  ;;  %v21177_v47 = vld [vmem:[%s27530_s21 + $0xf8] sm:$0xff]  }
0x1aa7   : > { %17248 = vmatmul.mubr.bf16.vlgmr.msra.gmra.mrb[192].mxu0 %v16975_v36  ;;  %v21176_v36 = vld [vmem:[%s27530_s21 + $0xb0] sm:$0xff]  }
0x1aa8   : > { %20758 = vmatpush3.bf16.msra.mxu0 %v21142_v31  ;;  %17287 = vmatprep.mubr.bf16.mxu1 %v16991_v16  ;;  %v21178_v31 = vld [vmem:[%s27530_s21 + $0x140] sm:$0xff]   ;;  %v21179_v16 = vld [vmem:[%s27530_s21 + $0xb8] sm:$0xff]  }
0x1aa9   : > { %17288 = vmatmul.mubr.bf16.vlgmr.msra.gmra.mrb[188].mxu1 %v16990_v7  ;;  %20759 = vmatprep.subr.bf16.mxu0 %v27646_v61  ;;  %v21181_v7 = vld [vmem:[%s27530_s21 + $0x1c0] sm:$0xff]  }
0x1aaa   : > { %20765 = vmatprep.mubr.msk.bf16.mxu0 %vm21321_vm0, %v27646_v61  ;;  %20771 = vmatprep.mubr.msk.bf16.mxu1 %vm21321_vm0, %v27646_v61 }
0x1aac   : > { %20760 = vmatpush3.bf16.msra.mxu0 %v21143_v45 }
0x1aad   : > { %20761 = vmatprep.subr.bf16.mxu0 %v27646_v61 }
0x1ab0   : > { %20762 = vmatpush3.bf16.msra.mxu0 %v21144_v54 }
0x1ab1   : > { %20763 = vmatprep.subr.bf16.mxu0 %v27646_v61 }
0x1ab4   : > { %20764 = vmatpush3.bf16.msra.mxu0 %v21145_v23 }
0x1ab5   : > { %20300 = vmatprep.subr.bf16.mxu0 %v21150_v33 }
0x1ab7   : > { %20766 = vmatmul.mubr.msk.bf16.vlgmr.msra.gmra.mrb[196].mxu0 %vm5121_vm8, %v16982_v21 }
0x1ab8   : > { %20301 = vmatpush3.bf16.msra.mxu0 %v21152_v9  ;;  %v21187_v9 = vld [vmem:[%s27530_s21 + $0x110] sm:$0xff]  }
0x1ab9   : > { %20302 = vmatprep.subr.bf16.mxu0 %v21154_v41  ;;  %v21188_v41 = vld [vmem:[%s27530_s21 + $0x188] sm:$0xff]  }
0x1abc   : > { %20303 = vmatpush3.bf16.msra.mxu0 %v21156_v6  ;;  %v21190_v6 = vld [vmem:[%s27530_s21 + $0x1d0] sm:$0xff]  }
0x1abd   : > { %20304 = vmatprep.subr.bf16.mxu0 %v21158_v37 }
0x1ac0   : > { %20305 = vmatpush3.bf16.msra.mxu0 %v21160_v49  ;;  %v21192_v49 = vld [vmem:[%s27530_s21 + $0x190] sm:$0xff]  }
0x1ac1   : > { %20306 = vmatprep.subr.bf16.mxu0 %v21162_v20 }
0x1ac4   : > { %20307 = vmatpush3.bf16.msra.mxu0 %v21164_v0  ;;  %v21195_v0 = vld [vmem:[%s27530_s21 + $0x120] sm:$0xff]  }
0x1ac5   : > { %20308 = vmatprep.subr.bf16.mxu0 %v21166_v35  ;;  %v21196_v35 = vld [vmem:[%s27530_s21 + $0x198] sm:$0xff]  }
0x1ac8   : > { %20309 = vmatpush3.bf16.msra.mxu0 %v21168_v57  ;;  %v21199_v57 = vld [vmem:[%s27530_s21 + $0x128] sm:$0xff]  }
0x1ac9   : > { %20310 = vmatprep.subr.bf16.mxu0 %v21170_v44  ;;  %v21200_v44 = vld [vmem:[%s27530_s21 + $0x1a0] sm:$0xff]  }
0x1acc   : > { %20311 = vmatpush3.bf16.msra.mxu0 %v21172_v26  ;;  %v21203_v26 = vld [vmem:[%s27530_s21 + $0x130] sm:$0xff]  }
0x1acd   : > { %20312 = vmatprep.subr.bf16.mxu0 %v21174_v46  ;;  %v21204_v46 = vld [vmem:[%s27530_s21 + $0x1a8] sm:$0xff]  }
0x1ad0   : > { %20313 = vmatpush3.bf16.msra.mxu0 %v21176_v36  ;;  %v21208_v36 = vld [vmem:[%s27530_s21 + $0x1b0] sm:$0xff]  }
0x1ad1   : > { %20314 = vmatprep.subr.bf16.mxu0 %v21177_v47 }
0x1ad4   : > { %20315 = vmatpush3.bf16.msra.mxu0 %v21179_v16 }
0x1ad5   : > { %20344 = vmatprep.subr.bf16.mxu0 %v21181_v7  ;;  %v21210_v7 = vld [vmem:[%s27530_s21 + $0x1b8] sm:$0xff]  }
0x1b7a   : > { %v20243_v19 = vpop.f32.mrb[192].mxu0 }
0x1b7b   : > { %v20244_v3 = vpop.f32.mrb[193].mxu0 }
0x1b7c   : > { %v20245_v32 = vadd.f32 %v20244_v3, %v20243_v19  ;;  %v20246_v43 = vpop.f32.mrb[194].mxu0  ;;  %v20265_v48 = vpop.f32.mrb[188].mxu1 }
0x1b7d   : > { %v20247_v34 = vpop.f32.mrb[195].mxu0  ;;  %v20266_v5 = vpop.f32.mrb[189].mxu1 }
0x1b7e   : > { %v17250_v2 = vadd.f32 %v20245_v32, %v19774_v60  ;;  %v20267_v42 = vadd.f32 %v20266_v5, %v20265_v48  ;;  %v20268_v13 = vpop.f32.mrb[190].mxu1 }
0x1b7f   : > { %v20269_v30 = vpop.f32.mrb[191].mxu1 }
0x1b80   : > { %v17290_v18 = vadd.f32 %v20267_v42, %v17250_v2  ;;  %v21180_v30 = vld [vmem:[%s27530_s21 + $0x100] sm:$0xff]  }
0x1b8a   : > { %v17329_v25 = vpop.f32.mrb[196].mxu0 }
0x1b8b   : > { %v17330_v56 = vadd.f32 %v17329_v25, %v17290_v18  ;;  %v20767_v24 = vpop.f32.mrb[197].mxu0  ;;  %v21182_v25 = vld [vmem:[%s27530_s21 + $0x148] sm:$0xff]  }
0x1b8c   : > { %v17332_v55 = vpop.f32.mrb[198].mxu0 }
0x1b8d   : > { %v17336_v15 = vadd.f32 %v17335_v10, %v17330_v56  ;;  %v20768_v27 = vpop.f32.mrb[199].mxu0 }
0x1b8e   : > { %v21183_v27 = vld [vmem:[%s27530_s21 + $0x108] sm:$0xff]  }
0x1b8f   : > { %v17337_v40 = vpack.c.bf16 %v17336_v15, %v17336_v15 }
0x1b91   : > { %v17349_v29 = vsel %vm15912_vm11, %v17337_v40, 0  ;;  %v21184_v40 = vld [vmem:[%s27530_s21 + $0x180] sm:$0xff]  }
0x1b92   : > { %20770 = vmatpush3.bf16.msra.mxu1 %v17349_v29 }
0x1b93   : > { %20278 = vmatprep.subr.bf16.mxu1 %v21147_v50  ;;  %v21186_v50 = vld [vmem:[%s27530_s21 + $0x1c8] sm:$0xff]  }
0x1b95   : > { %20772 = vmatmul.mubr.msk.bf16.vlgmr.msra.gmra.mrb[192].mxu1 %vm15908_vm13, %v21146_v11  ;;  %v21185_v11 = vld [vmem:[%s27530_s21 + $0x150] sm:$0xff]  }
0x1b96   : > { %20279 = vmatpush3.bf16.msra.mxu1 %v21148_v38 }
0x1b97   : > { %20280 = vmatprep.subr.bf16.mxu1 %v21149_v58 }
0x1b9a   : > { %20281 = vmatpush3.bf16.msra.mxu1 %v21151_v12 }
0x1b9b   : > { %20282 = vmatprep.subr.bf16.mxu1 %v21153_v62  ;;  %v21189_v62 = vld [vmem:[%s27530_s21 + $0x158] sm:$0xff]  }
0x1b9e   : > { %20283 = vmatpush3.bf16.msra.mxu1 %v21155_v4 }
0x1b9f   : > { %20284 = vmatprep.subr.bf16.mxu1 %v21157_v59  ;;  %v21191_v59 = vld [vmem:[%s27530_s21 + $0x118] sm:$0xff]  }
0x1ba2   : > { %20285 = vmatpush3.bf16.msra.mxu1 %v21159_v53  ;;  %v21193_v53 = vld [vmem:[%s27530_s21 + $0x160] sm:$0xff]  }
0x1ba3   : > { %20286 = vmatprep.subr.bf16.mxu1 %v21161_v52  ;;  %v21194_v52 = vld [vmem:[%s27530_s21 + $0x1d8] sm:$0xff]  }
0x1ba6   : > { %20287 = vmatpush3.bf16.msra.mxu1 %v21163_v14  ;;  %v21197_v14 = vld [vmem:[%s27530_s21 + $0x168] sm:$0xff]  }
0x1ba7   : > { %20288 = vmatprep.subr.bf16.mxu1 %v21165_v1  ;;  %v21198_v1 = vld [vmem:[%s27530_s21 + $0x1e0] sm:$0xff]  }
0x1baa   : > { %20289 = vmatpush3.bf16.msra.mxu1 %v21167_v63  ;;  %v21201_v63 = vld [vmem:[%s27530_s21 + $0x170] sm:$0xff]  }
0x1bab   : > { %20290 = vmatprep.subr.bf16.mxu1 %v21169_v17  ;;  %v21202_v17 = vld [vmem:[%s27530_s21 + $0x1e8] sm:$0xff]  }
0x1bae   : > { %20291 = vmatpush3.bf16.msra.mxu1 %v21171_v8  ;;  %v21205_v8 = vld [vmem:[%s27530_s21 + $0x178] sm:$0xff]  }
0x1baf   : > { %20292 = vmatprep.subr.bf16.mxu1 %v21173_v39  ;;  %v21206_v39 = vld [vmem:[%s27530_s21 + $0x1f0] sm:$0xff]  }
0x1bb2   : > { %20293 = vmatpush3.bf16.msra.mxu1 %v21175_v22  ;;  %v21207_v22 = vld [vmem:[%s27530_s21 + $0x138] sm:$0xff]  }
0x1bb3   : > { %20322 = vmatprep.subr.bf16.mxu1 %v21178_v31  ;;  %v21209_v31 = vld [vmem:[%s27530_s21 + $0x1f8] sm:$0xff]  }
0x1c68   : > { %v17385_v45 = vpop.f32.mrb[192].mxu1 }
0x1c69   : > { %v20773_v54 = vpop.f32.mrb[193].mxu1 }
0x1c6a   : > { %v17388_v23 = vpop.f32.mrb[194].mxu1 }
0x1c6b   : > { %v27090_v28 = vpack.c.bf16 %v17388_v23, %v17385_v45  ;;  %v20774_v21 = vpop.f32.mrb[195].mxu1 }
0x1c6d   : > { %v17394_v19 = vshrl.u32 %v27090_v28, 16  ;;  %v17399_v42 = vrot.slane %v27090_v28, 1  ;;  %v17407_v24 = vrot.slane %v27090_v28, 3  ;;  %v17403_v55 = vrot.slane %v27090_v28, 2 }
0x1c6e   : > { %v17415_v58 = vrot.slane %v27090_v28, 5  ;;  %v17423_v37 = vrot.slane %v27090_v28, 7  ;;  %v17411_v16 = vrot.slane %v27090_v28, 4  ;;  %v17419_v23 = vrot.slane %v27090_v28, 6 }
0x1c6f   : > { %17396 = vrot.lane.b32.xlu1 %v17394_v19, %s27624_s0  ;;  %v17400_v60 = vrot.slane %v17394_v19, 1  ;;  %v17404_v3 = vrot.slane %v17394_v19, 2  ;;  %v17408_v32 = vrot.slane %v17394_v19, 3  ;;  %v17412_v43 = vrot.slane %v17394_v19, 4 }
0x1c70   : > { %v17416_v48 = vrot.slane %v17394_v19, 5  ;;  %v17420_v34 = vrot.slane %v17394_v19, 6  ;;  %v17424_v5 = vrot.slane %v17394_v19, 7 }
0x1c71   : > { %17401 = vrot.lane.b32.xlu0 %v17400_v60, %s27624_s0 }
0x1c73   : > { %17405 = vrot.lane.b32.xlu1 %v17404_v3, %s27624_s0 }
0x1c75   : > { %17409 = vrot.lane.b32.xlu0 %v17408_v32, %s27624_s0 }
0x1c77   : > { %17413 = vrot.lane.b32.xlu1 %v17412_v43, %s27624_s0  ;;  %v17586_v43 = vld [vmem:[%s27661_s22 + $0x9] sm:$0x1] }
0x1c79   : > { %17417 = vrot.lane.b32.xlu0 %v17416_v48, %s27624_s0 }
0x1c7b   : > { %17421 = vrot.lane.b32.xlu1 %v17420_v34, %s27624_s0 }
0x1c7d   : > { %17425 = vrot.lane.b32.xlu0 %v17424_v5, %s27624_s0 }
0x1ce1   : > { %v17397_v2 = vpop.permute.xlu1 %17396 }
0x1ce2   : > { %v17428_v56 = vsel %vm5121_vm8, %v27090_v28, %v17397_v2 }
0x1ce3   : > { %v17402_v13 = vpop.permute.xlu0 %17401 }
0x1ce4   : > { %v17432_v18 = vsel %vm5121_vm8, %v17399_v42, %v17402_v13 }
0x1ce5   : > { %18003 = vmatprep.mubr.bf16.mxu1 %v17432_v18  ;;  %v17406_v10 = vpop.permute.xlu1 %17405 }
0x1ce6   : > { %18004 = vmatmul.mubr.bf16.vlgmr.msra.gmra.mrb[196].mxu1 %v17428_v56  ;;  %v17436_v38 = vsel %vm5121_vm8, %v17403_v55, %v17406_v10 }
0x1ce7   : > { %20323 = vmatpush3.bf16.msra.mxu1 %v21180_v30  ;;  %v17410_v15 = vpop.permute.xlu0 %17409 }
0x1ce8   : > { %v17440_v29 = vsel %vm5121_vm8, %v17407_v24, %v17410_v15  ;;  %20324 = vmatprep.subr.bf16.mxu1 %v21182_v25 }
0x1ce9   : > { %18043 = vmatprep.mubr.bf16.mxu0 %v17440_v29  ;;  %v17414_v47 = vpop.permute.xlu1 %17413 }
0x1cea   : > { %18044 = vmatmul.mubr.bf16.vlgmr.msra.gmra.mrb[200].mxu0 %v17436_v38  ;;  %v17444_v45 = vsel %vm5121_vm8, %v17411_v16, %v17414_v47  ;;  %v21237_v47 = vld [vmem:[%s27533_s24 + $0xa8] sm:$0xff]   ;;  %v21238_v16 = vld [vmem:[%s27533_s24 + $0x78] sm:$0xff]  }
0x1ceb   : > { %20325 = vmatpush3.bf16.msra.mxu1 %v21183_v27  ;;  %20345 = vmatpush3.bf16.msra.mxu0 %v21184_v40  ;;  %v17418_v33 = vpop.permute.xlu0 %17417 }
0x1cec   : > { %20326 = vmatprep.subr.bf16.mxu1 %v21185_v11  ;;  %v17448_v12 = vsel %vm5121_vm8, %v17415_v58, %v17418_v33  ;;  %20346 = vmatprep.subr.bf16.mxu0 %v21186_v50 }
0x1ced   : > { %18083 = vmatprep.mubr.bf16.mxu1 %v17448_v12  ;;  %v17422_v54 = vpop.permute.xlu1 %17421  ;;  %v21212_v12 = vld [vmem:[%s27533_s24 + $0x40] sm:$0xff]  }
0x1cee   : > { %v17452_v21 = vsel %vm5121_vm8, %v17419_v23, %v17422_v54  ;;  %v21241_v54 = vld [vmem:[%s27533_s24 + $0xb0] sm:$0xff]   ;;  %v21242_v23 = vld [vmem:[%s27533_s24 + $0xf8] sm:$0xff]  }
0x1cef   : > { %20327 = vmatpush3.bf16.msra.mxu1 %v21187_v9  ;;  %20347 = vmatpush3.bf16.msra.mxu0 %v21188_v41  ;;  %v17426_v4 = vpop.permute.xlu0 %17425  ;;  %v27220_v41 = vld [vmem:[%s27532_s23] sm:$0x1f]  }
0x1cf0   : > { %20328 = vmatprep.subr.bf16.mxu1 %v21189_v62  ;;  %20348 = vmatprep.subr.bf16.mxu0 %v21190_v6  ;;  %v17456_v20 = vsel %vm5121_vm8, %v17423_v37, %v17426_v4  ;;  %v21213_v62 = vld [vmem:[%s27533_s24] sm:$0xff]   ;;  %v21214_v6 = vld [vmem:[%s27533_s24 + $0x48] sm:$0xff]  }
0x1cf1   : > { %18123 = vmatprep.mubr.bf16.mxu0 %v17456_v20  ;;  %v21216_v37 = vld [vmem:[%s27533_s24 + $0xc0] sm:$0xff]   ;;  %v21218_v20 = vld [vmem:[%s27533_s24 + $0x50] sm:$0xff]  }
0x1cf2   : > { %v21217_v4 = vld [vmem:[%s27533_s24 + $0x80] sm:$0xff]  }
0x1cf3   : > { %20329 = vmatpush3.bf16.msra.mxu1 %v21191_v59  ;;  %20349 = vmatpush3.bf16.msra.mxu0 %v21192_v49  ;;  %v21220_v59 = vld [vmem:[%s27533_s24 + $0xc8] sm:$0xff]  }
0x1cf4   : > { %20330 = vmatprep.subr.bf16.mxu1 %v21193_v53  ;;  %20350 = vmatprep.subr.bf16.mxu0 %v21194_v52  ;;  %v21215_v49 = vld [vmem:[%s27533_s24 + $0x8] sm:$0xff]   ;;  %v21224_v52 = vld [vmem:[%s27533_s24 + $0xd0] sm:$0xff]  }
0x1cf5   : > { %v21221_v53 = vld [vmem:[%s27533_s24 + $0x88] sm:$0xff]  }
0x1cf7   : > { %20331 = vmatpush3.bf16.msra.mxu1 %v21195_v0  ;;  %20351 = vmatpush3.bf16.msra.mxu0 %v21196_v35  ;;  %v21219_v0 = vld [vmem:[%s27533_s24 + $0x10] sm:$0xff]   ;;  %v21222_v35 = vld [vmem:[%s27533_s24 + $0x58] sm:$0xff]  }
0x1cf8   : > { %20332 = vmatprep.subr.bf16.mxu1 %v21197_v14  ;;  %20352 = vmatprep.subr.bf16.mxu0 %v21198_v1  ;;  %v21225_v14 = vld [vmem:[%s27533_s24 + $0x90] sm:$0xff]   ;;  %v21228_v1 = vld [vmem:[%s27533_s24 + $0xd8] sm:$0xff]  }
0x1cfb   : > { %20333 = vmatpush3.bf16.msra.mxu1 %v21199_v57  ;;  %20353 = vmatpush3.bf16.msra.mxu0 %v21200_v44  ;;  %v21223_v57 = vld [vmem:[%s27533_s24 + $0x18] sm:$0xff]   ;;  %v21226_v44 = vld [vmem:[%s27533_s24 + $0x60] sm:$0xff]  }
0x1cfc   : > { %20334 = vmatprep.subr.bf16.mxu1 %v21201_v63  ;;  %20354 = vmatprep.subr.bf16.mxu0 %v21202_v17  ;;  %v21229_v63 = vld [vmem:[%s27533_s24 + $0x98] sm:$0xff]   ;;  %v21232_v17 = vld [vmem:[%s27533_s24 + $0xe0] sm:$0xff]  }
0x1cff   : > { %20335 = vmatpush3.bf16.msra.mxu1 %v21203_v26  ;;  %20355 = vmatpush3.bf16.msra.mxu0 %v21204_v46  ;;  %v21227_v26 = vld [vmem:[%s27533_s24 + $0x20] sm:$0xff]   ;;  %v21230_v46 = vld [vmem:[%s27533_s24 + $0x68] sm:$0xff]  }
0x1d00   : > { %20336 = vmatprep.subr.bf16.mxu1 %v21205_v8  ;;  %20356 = vmatprep.subr.bf16.mxu0 %v21206_v39  ;;  %v21233_v8 = vld [vmem:[%s27533_s24 + $0xa0] sm:$0xff]   ;;  %v21236_v39 = vld [vmem:[%s27533_s24 + $0xe8] sm:$0xff]  }
0x1d03   : > { %20337 = vmatpush3.bf16.msra.mxu1 %v21207_v22  ;;  %20357 = vmatpush3.bf16.msra.mxu0 %v21208_v36  ;;  %v21231_v22 = vld [vmem:[%s27533_s24 + $0x28] sm:$0xff]   ;;  %v21234_v36 = vld [vmem:[%s27533_s24 + $0x70] sm:$0xff]  }
0x1d04   : > { %20358 = vmatprep.subr.bf16.mxu0 %v21209_v31  ;;  %20775 = vmatprep.subr.bf16.mxu1 %v27646_v61  ;;  %v21235_v31 = vld [vmem:[%s27533_s24 + $0x30] sm:$0xff]  }
0x1d06   : > { %18084 = vmatmul.mubr.bf16.vlgmr.msra.gmra.mrb[200].mxu1 %v17444_v45  ;;  %v21240_v45 = vld [vmem:[%s27533_s24 + $0xf0] sm:$0xff]  }
0x1d07   : > { %20359 = vmatpush3.bf16.msra.mxu0 %v21210_v7  ;;  %20777 = vmatprep.mubr.msk.bf16.mxu1 %vm21321_vm0, %v27646_v61  ;;  %v21239_v7 = vld [vmem:[%s27533_s24 + $0x38] sm:$0xff]  }
0x1d08   : > { %20368 = vmatprep.subr.bf16.mxu0 %v21212_v12 }
0x1d0a   : > { %18124 = vmatmul.mubr.bf16.vlgmr.msra.gmra.mrb[204].mxu0 %v17452_v21  ;;  %v21244_v21 = vld [vmem:[%s27533_s24 + $0xb8] sm:$0xff]  }
0x1d0b   : > { %20369 = vmatpush3.bf16.msra.mxu0 %v21213_v62  ;;  %v18297_v62 = vld [vmem:[%s27661_s22 + $0xa] sm:$0x1] }
0x1d0c   : > { %20370 = vmatprep.subr.bf16.mxu0 %v21214_v6 }
0x1d0f   : > { %20371 = vmatpush3.bf16.msra.mxu0 %v21215_v49 }
0x1d10   : > { %20372 = vmatprep.subr.bf16.mxu0 %v21218_v20 }
0x1d13   : > { %20373 = vmatpush3.bf16.msra.mxu0 %v21219_v0 }
0x1d14   : > { %20374 = vmatprep.subr.bf16.mxu0 %v21222_v35 }
0x1d17   : > { %20375 = vmatpush3.bf16.msra.mxu0 %v21223_v57 }
0x1d18   : > { %20376 = vmatprep.subr.bf16.mxu0 %v21226_v44 }
0x1d1b   : > { %20377 = vmatpush3.bf16.msra.mxu0 %v21227_v26 }
0x1d1c   : > { %20378 = vmatprep.subr.bf16.mxu0 %v21230_v46  ;;  %v21248_v46 = vld [vmem:[%s27534_s25 + $0x40] sm:$0xff]  }
0x1d1f   : > { %20379 = vmatpush3.bf16.msra.mxu0 %v21231_v22  ;;  %v21256_v22 = vld [vmem:[%s27534_s25 + $0xc8] sm:$0xff]  }
0x1d20   : > { %20380 = vmatprep.subr.bf16.mxu0 %v21234_v36  ;;  %v21251_v36 = vld [vmem:[%s27534_s25 + $0x8] sm:$0xff]  }
0x1d23   : > { %20381 = vmatpush3.bf16.msra.mxu0 %v21235_v31  ;;  %v21257_v31 = vld [vmem:[%s27534_s25 + $0x88] sm:$0xff]  }
0x1d24   : > { %20382 = vmatprep.subr.bf16.mxu0 %v21238_v16  ;;  %v21260_v16 = vld [vmem:[%s27534_s25 + $0xd0] sm:$0xff]  }
0x1d27   : > { %20383 = vmatpush3.bf16.msra.mxu0 %v21239_v7  ;;  %v21255_v7 = vld [vmem:[%s27534_s25 + $0x10] sm:$0xff]  }
0x1d28   : > { %20781 = vmatprep.subr.bf16.mxu0 %v27646_v61 }
0x1db9   : > { %v20294_v19 = vpop.f32.mrb[196].mxu1 }
0x1dba   : > { %v20295_v60 = vpop.f32.mrb[197].mxu1 }
0x1dbb   : > { %v20296_v3 = vadd.f32 %v20295_v60, %v20294_v19  ;;  %v20297_v32 = vpop.f32.mrb[198].mxu1 }
0x1dbc   : > { %v20298_v48 = vpop.f32.mrb[199].mxu1 }
0x1dbd   : > { %v20316_v34 = vpop.f32.mrb[200].mxu0  ;;  %v18006_v2 = vadd.f32 %v20296_v3, %v17586_v43 }
0x1dbe   : > { %v20317_v5 = vpop.f32.mrb[201].mxu0 }
0x1dbf   : > { %v20318_v28 = vadd.f32 %v20317_v5, %v20316_v34  ;;  %v20319_v42 = vpop.f32.mrb[202].mxu0 }
0x1dc0   : > { %v20320_v13 = vpop.f32.mrb[203].mxu0 }
0x1dc1   : > { %v18046_v30 = vadd.f32 %v20318_v28, %v18006_v2 }
0x1dd9   : > { %v20338_v18 = vpop.f32.mrb[200].mxu1 }
0x1dda   : > { %v20339_v25 = vpop.f32.mrb[201].mxu1 }
0x1ddb   : > { %v20340_v56 = vadd.f32 %v20339_v25, %v20338_v18  ;;  %v20341_v10 = vpop.f32.mrb[202].mxu1 }
0x1ddc   : > { %v20342_v24 = vpop.f32.mrb[203].mxu1 }
0x1ddd   : > { %v18086_v55 = vadd.f32 %v20340_v56, %v18046_v30  ;;  %v20360_v15 = vpop.f32.mrb[204].mxu0  ;;  %v21243_v30 = vld [vmem:[%s27533_s24 + $0x100] sm:$0xff]  }
0x1dde   : > { %v20361_v27 = vpop.f32.mrb[205].mxu0 }
0x1ddf   : > { %v20362_v40 = vadd.f32 %v20361_v27, %v20360_v15  ;;  %v20363_v29 = vpop.f32.mrb[206].mxu0  ;;  %v21245_v15 = vld [vmem:[%s27533_s24 + $0x108] sm:$0xff]  }
0x1de0   : > { %v20364_v11 = vpop.f32.mrb[207].mxu0  ;;  %v21246_v29 = vld [vmem:[%s27533_s24 + $0x110] sm:$0xff]  }
0x1de1   : > { %v18126_v50 = vadd.f32 %v20362_v40, %v18086_v55  ;;  %v21247_v11 = vld [vmem:[%s27533_s24 + $0x118] sm:$0xff]  }
0x1de3   : > { %vm18131_vm1 = vcmp.ge.f32.partialorder %v18126_v50, 0.0  ;;  %v18132_v38 = vmul.f32 0.2, %v18126_v50 }
0x1de5   : > { %v18133_v58 = vsel %vm18131_vm1, %v18126_v50, %v18132_v38 }
0x1de6   : > { %v27213_v33 = vpack.c.bf16 %v18133_v58, %v18133_v58 }
0x1de8   : > { %v18147_v9 = vand.u32 %v27213_v33, %v24016_v51 }
0x1dea   : > { %20776 = vmatpush3.bf16.msra.mxu1 %v18147_v9 }
0x1deb   : > { %20390 = vmatprep.subr.bf16.mxu1 %v21216_v37 }
0x1ded   : > { %20778 = vmatmul.mubr.msk.bf16.vlgmr.msra.gmra.mrb[204].mxu1 %vm18142_vm3, %v27220_v41 }
0x1dee   : > { %20391 = vmatpush3.bf16.msra.mxu1 %v21217_v4 }
0x1def   : > { %20392 = vmatprep.subr.bf16.mxu1 %v21220_v59 }
0x1df2   : > { %20393 = vmatpush3.bf16.msra.mxu1 %v21221_v53 }
0x1df3   : > { %20394 = vmatprep.subr.bf16.mxu1 %v21224_v52 }
0x1df6   : > { %20395 = vmatpush3.bf16.msra.mxu1 %v21225_v14 }
0x1df7   : > { %20396 = vmatprep.subr.bf16.mxu1 %v21228_v1 }
0x1dfa   : > { %20397 = vmatpush3.bf16.msra.mxu1 %v21229_v63 }
0x1dfb   : > { %20398 = vmatprep.subr.bf16.mxu1 %v21232_v17 }
0x1dfe   : > { %20399 = vmatpush3.bf16.msra.mxu1 %v21233_v8  ;;  %v21249_v8 = vld [vmem:[%s27534_s25] sm:$0xff]  }
0x1dff   : > { %20400 = vmatprep.subr.bf16.mxu1 %v21236_v39  ;;  %v21250_v39 = vld [vmem:[%s27534_s25 + $0x48] sm:$0xff]  }
0x1e02   : > { %20401 = vmatpush3.bf16.msra.mxu1 %v21237_v47  ;;  %v21254_v47 = vld [vmem:[%s27534_s25 + $0x50] sm:$0xff]  }
0x1e03   : > { %20402 = vmatprep.subr.bf16.mxu1 %v21240_v45  ;;  %v21258_v45 = vld [vmem:[%s27534_s25 + $0x58] sm:$0xff]  }
0x1e06   : > { %20403 = vmatpush3.bf16.msra.mxu1 %v21241_v54  ;;  %v21261_v54 = vld [vmem:[%s27534_s25 + $0x90] sm:$0xff]  }
0x1e07   : > { %20404 = vmatprep.subr.bf16.mxu1 %v21242_v23  ;;  %v21264_v23 = vld [vmem:[%s27534_s25 + $0xd8] sm:$0xff]  }
0x1e0a   : > { %20405 = vmatpush3.bf16.msra.mxu1 %v21244_v21  ;;  %v21259_v21 = vld [vmem:[%s27534_s25 + $0x18] sm:$0xff]  }
0x1e0b   : > { %20793 = vmatprep.subr.bf16.mxu1 %v27646_v61 }
0x1ec0   : > { %v18183_v19 = vpop.f32.mrb[204].mxu1 }
0x1ec1   : > { %v20779_v60 = vpop.f32.mrb[205].mxu1 }
0x1ec2   : > { %v18186_v3 = vpop.f32.mrb[206].mxu1  ;;  %v21265_v60 = vld [vmem:[%s27534_s25 + $0x98] sm:$0xff]  }
0x1ec3   : > { %v18190_v32 = vpack.c.bf16 %v18186_v3, %v18183_v19  ;;  %v20780_v43 = vpop.f32.mrb[207].mxu1  ;;  %v21262_v19 = vld [vmem:[%s27534_s25 + $0x60] sm:$0xff]  }
0x1ec4   : > { %v21268_v3 = vld [vmem:[%s27534_s25 + $0xe0] sm:$0xff]   ;;  %v21266_v43 = vld [vmem:[%s27534_s25 + $0x68] sm:$0xff]  }
0x1ec5   : > { %v18192_v48 = vshrl.u32 %v18190_v32, 16  ;;  %v18197_v42 = vrot.slane %v18190_v32, 1  ;;  %v18205_v10 = vrot.slane %v18190_v32, 3  ;;  %v18201_v24 = vrot.slane %v18190_v32, 2 }
0x1ec6   : > { %v18209_v50 = vrot.slane %v18190_v32, 4 }
0x1ec7   : > { %18194 = vrot.lane.b32.xlu1 %v18192_v48, %s27624_s0  ;;  %v18198_v34 = vrot.slane %v18192_v48, 1  ;;  %v18202_v5 = vrot.slane %v18192_v48, 2  ;;  %v18206_v2 = vrot.slane %v18192_v48, 3  ;;  %v21269_v48 = vld [vmem:[%s27534_s25 + $0xa0] sm:$0xff]  }
0x1ec9   : > { %18199 = vrot.lane.b32.xlu0 %v18198_v34, %s27624_s0  ;;  %v21272_v34 = vld [vmem:[%s27534_s25 + $0xe8] sm:$0xff]  }
0x1ecb   : > { %18203 = vrot.lane.b32.xlu1 %v18202_v5, %s27624_s0  ;;  %v21267_v5 = vld [vmem:[%s27534_s25 + $0x28] sm:$0xff]  }
0x1ecd   : > { %18207 = vrot.lane.b32.xlu0 %v18206_v2, %s27624_s0  ;;  %v21270_v2 = vld [vmem:[%s27534_s25 + $0x70] sm:$0xff]  }
0x1f39   : > { %v18195_v28 = vpop.permute.xlu1 %18194 }
0x1f3a   : > { %v18211_v25 = vsel %vm5121_vm8, %v18190_v32, %v18195_v28  ;;  %v21263_v32 = vld [vmem:[%s27534_s25 + $0x20] sm:$0xff]   ;;  %v21273_v28 = vld [vmem:[%s27534_s25 + $0xa8] sm:$0xff]  }
0x1f3b   : > { %v18200_v13 = vpop.permute.xlu0 %18199 }
0x1f3c   : > { %v18215_v18 = vsel %vm5121_vm8, %v18197_v42, %v18200_v13  ;;  %v21271_v42 = vld [vmem:[%s27534_s25 + $0x30] sm:$0xff]   ;;  %v21274_v13 = vld [vmem:[%s27534_s25 + $0x78] sm:$0xff]  }
0x1f3d   : > { %18549 = vmatprep.mubr.bf16.mxu0 %v18215_v18  ;;  %v18204_v56 = vpop.permute.xlu1 %18203  ;;  %v21276_v18 = vld [vmem:[%s27534_s25 + $0xf0] sm:$0xff]  }
0x1f3e   : > { %18550 = vmatmul.mubr.bf16.vlgmr.msra.gmra.mrb[208].mxu0 %v18211_v25  ;;  %v18219_v40 = vsel %vm5121_vm8, %v18201_v24, %v18204_v56  ;;  %v21277_v25 = vld [vmem:[%s27534_s25 + $0xb0] sm:$0xff]   ;;  %v21278_v56 = vld [vmem:[%s27534_s25 + $0xf8] sm:$0xff]  }
0x1f3f   : > { %20782 = vmatpush3.bf16.msra.mxu0 %v21243_v30  ;;  %v18208_v55 = vpop.permute.xlu0 %18207  ;;  %20789 = vmatprep.mubr.msk.bf16.mxu0 %vm21321_vm0, %v27646_v61  ;;  %v21275_v30 = vld [vmem:[%s27534_s25 + $0x38] sm:$0xff]  }
0x1f40   : > { %v18223_v27 = vsel %vm5121_vm8, %v18205_v10, %v18208_v55  ;;  %20783 = vmatprep.subr.bf16.mxu0 %v27646_v61  ;;  %v21280_v10 = vld [vmem:[%s27534_s25 + $0xb8] sm:$0xff]  }
0x1f41   : > { %18589 = vmatprep.mubr.bf16.mxu1 %v18223_v27 }
0x1f42   : > { %18590 = vmatmul.mubr.bf16.vlgmr.msra.gmra.mrb[208].mxu1 %v18219_v40 }
0x1f43   : > { %20784 = vmatpush3.bf16.msra.mxu0 %v21245_v15  ;;  %20795 = vmatprep.mubr.msk.bf16.mxu1 %vm21321_vm0, %v27646_v61 }
0x1f44   : > { %20785 = vmatprep.subr.bf16.mxu0 %v27646_v61 }
0x1f47   : > { %20786 = vmatpush3.bf16.msra.mxu0 %v21246_v29 }
0x1f48   : > { %20787 = vmatprep.subr.bf16.mxu0 %v27646_v61 }
0x1f4b   : > { %20788 = vmatpush3.bf16.msra.mxu0 %v21247_v11 }
0x1f4e   : > { %20790 = vmatmul.mubr.msk.bf16.vlgmr.msra.gmra.mrb[212].mxu0 %vm5121_vm8, %v18209_v50 }
0x2011   : > { %v20384_v38 = vpop.f32.mrb[208].mxu0 }
0x2012   : > { %v20385_v58 = vpop.f32.mrb[209].mxu0 }
0x2013   : > { %v20386_v9 = vadd.f32 %v20385_v58, %v20384_v38  ;;  %v20387_v12 = vpop.f32.mrb[210].mxu0 }
0x2014   : > { %v20388_v6 = vpop.f32.mrb[211].mxu0 }
0x2015   : > { %v20406_v37 = vpop.f32.mrb[208].mxu1  ;;  %v18552_v59 = vadd.f32 %v20386_v9, %v18297_v62  ;;  %v21279_v62 = vld [vmem:[%s27534_s25 + $0x100] sm:$0xff]  }
0x2016   : > { %v20407_v4 = vpop.f32.mrb[209].mxu1 }
0x2017   : > { %v20408_v49 = vadd.f32 %v20407_v4, %v20406_v37  ;;  %v20409_v20 = vpop.f32.mrb[210].mxu1 }
0x2018   : > { %v20410_v53 = vpop.f32.mrb[211].mxu1 }
0x2019   : > { %v18592_v52 = vadd.f32 %v20408_v49, %v18552_v59  ;;  %v21281_v53 = vld [vmem:[%s27534_s25 + $0x108] sm:$0xff]  }
0x2021   : > { %v18631_v0 = vpop.f32.mrb[212].mxu0 }
0x2022   : > { %v18632_v35 = vadd.f32 %v18631_v0, %v18592_v52  ;;  %v20791_v14 = vpop.f32.mrb[213].mxu0 }
0x2023   : > { %v18634_v1 = vpop.f32.mrb[214].mxu0  ;;  %v21283_v14 = vld [vmem:[%s27534_s25 + $0x118] sm:$0xff]  }
0x2024   : > { %vm18637_vm6 = vcmp.ge.f32.partialorder %v18632_v35, 0.0  ;;  %v18638_v57 = vmul.f32 0.2, %v18632_v35  ;;  %v20792_v44 = vpop.f32.mrb[215].mxu0 }
0x2025   : > { %v21285_v44 = vld [vmem:[%s27535_s26 + $0x8] sm:$0xff]  }
0x2026   : > { %v18639_v63 = vsel %vm18637_vm6, %v18632_v35, %v18638_v57  ;;  %v21282_v35 = vld [vmem:[%s27534_s25 + $0x110] sm:$0xff]   ;;  %v21284_v57 = vld [vmem:[%s27535_s26] sm:$0xff]  }
0x2027   : > { %v18640_v17 = vpack.c.bf16 %v18639_v63, %v18639_v63  ;;  %v21286_v63 = vld [vmem:[%s27535_s26 + $0x10] sm:$0xff]  }
0x2029   : > { %v18642_v26 = vand.u32 %v18640_v17, %v24016_v51  ;;  %v21252_v51 = vld [vmem:[%s27534_s25 + $0xc0] sm:$0xff]   ;;  %v21287_v17 = vld [vmem:[%s27535_s26 + $0x18] sm:$0xff]  }
0x202a   : > { %20441 = vmatprep.subr.bf16.mxu0 %v21252_v51  ;;  %v18792_v51 = vld [vmem:[%s27661_s22 + $0xb] sm:$0x1] }
0x202b   : > { %20794 = vmatpush3.bf16.msra.mxu1 %v18642_v26 }
0x202c   : > { %20419 = vmatprep.subr.bf16.mxu1 %v21248_v46 }
0x202e   : > { %20796 = vmatmul.mubr.msk.bf16.vlgmr.msra.gmra.mrb[212].mxu1 %vm18142_vm3, %v27220_v41  ;;  %v21253_v41 = vld [vmem:[%s27534_s25 + $0x80] sm:$0xff]  }
0x202f   : > { %20420 = vmatpush3.bf16.msra.mxu1 %v21249_v8  ;;  %20442 = vmatpush3.bf16.msra.mxu0 %v21253_v41 }
0x2030   : > { %20421 = vmatprep.subr.bf16.mxu1 %v21250_v39  ;;  %20443 = vmatprep.subr.bf16.mxu0 %v21256_v22 }
0x2033   : > { %20422 = vmatpush3.bf16.msra.mxu1 %v21251_v36  ;;  %20444 = vmatpush3.bf16.msra.mxu0 %v21257_v31 }
0x2034   : > { %20423 = vmatprep.subr.bf16.mxu1 %v21254_v47  ;;  %20445 = vmatprep.subr.bf16.mxu0 %v21260_v16 }
0x2037   : > { %20424 = vmatpush3.bf16.msra.mxu1 %v21255_v7  ;;  %20446 = vmatpush3.bf16.msra.mxu0 %v21261_v54 }
0x2038   : > { %20425 = vmatprep.subr.bf16.mxu1 %v21258_v45  ;;  %20447 = vmatprep.subr.bf16.mxu0 %v21264_v23  ;;  %v19132_v23 = vunpack.c.l.bf16 %v27213_v33 }
0x203b   : > { %20426 = vmatpush3.bf16.msra.mxu1 %v21259_v21  ;;  %20448 = vmatpush3.bf16.msra.mxu0 %v21265_v60 }
0x203c   : > { %20427 = vmatprep.subr.bf16.mxu1 %v21262_v19  ;;  %20449 = vmatprep.subr.bf16.mxu0 %v21268_v3 }
0x203f   : > { %20428 = vmatpush3.bf16.msra.mxu1 %v21263_v32  ;;  %20450 = vmatpush3.bf16.msra.mxu0 %v21269_v48 }
0x2040   : > { %20429 = vmatprep.subr.bf16.mxu1 %v21266_v43  ;;  %20451 = vmatprep.subr.bf16.mxu0 %v21272_v34 }
0x2043   : > { %20430 = vmatpush3.bf16.msra.mxu1 %v21267_v5  ;;  %20452 = vmatpush3.bf16.msra.mxu0 %v21273_v28 }
0x2044   : > { %20431 = vmatprep.subr.bf16.mxu1 %v21270_v2  ;;  %20453 = vmatprep.subr.bf16.mxu0 %v21276_v18 }
0x2047   : > { %20432 = vmatpush3.bf16.msra.mxu1 %v21271_v42  ;;  %20454 = vmatpush3.bf16.msra.mxu0 %v21277_v25 }
0x2048   : > { %20433 = vmatprep.subr.bf16.mxu1 %v21274_v13  ;;  %20455 = vmatprep.subr.bf16.mxu0 %v21278_v56 }
0x204b   : > { %20434 = vmatpush3.bf16.msra.mxu1 %v21275_v30  ;;  %20456 = vmatpush3.bf16.msra.mxu0 %v21280_v10 }
0x204c   : > { %20799 = vmatprep.subr.bf16.mxu1 %v27646_v61  ;;  %20811 = vmatprep.subr.bf16.mxu0 %v27646_v61 }
0x2101   : > { %v18678_v24 = vpop.f32.mrb[212].mxu1 }
0x2102   : > { %v20797_v55 = vpop.f32.mrb[213].mxu1 }
0x2103   : > { %v18681_v15 = vpop.f32.mrb[214].mxu1 }
0x2104   : > { %v18685_v27 = vpack.c.bf16 %v18681_v15, %v18678_v24  ;;  %v20798_v40 = vpop.f32.mrb[215].mxu1 }
0x2106   : > { %v18687_v29 = vshrl.u32 %v18685_v27, 16  ;;  %v18692_v9 = vrot.slane %v18685_v27, 1  ;;  %v18700_v59 = vrot.slane %v18685_v27, 3  ;;  %v18696_v49 = vrot.slane %v18685_v27, 2 }
0x2107   : > { %v18704_v1 = vrot.slane %v18685_v27, 4 }
0x2108   : > { %18689 = vrot.lane.b32.xlu1 %v18687_v29, %s27624_s0  ;;  %v18693_v11 = vrot.slane %v18687_v29, 1  ;;  %v18697_v50 = vrot.slane %v18687_v29, 2  ;;  %v18701_v38 = vrot.slane %v18687_v29, 3 }
0x210a   : > { %18694 = vrot.lane.b32.xlu0 %v18693_v11, %s27624_s0 }
0x210c   : > { %18698 = vrot.lane.b32.xlu1 %v18697_v50, %s27624_s0 }
0x210e   : > { %18702 = vrot.lane.b32.xlu0 %v18701_v38, %s27624_s0 }
0x217a   : > { %v18690_v58 = vpop.permute.xlu1 %18689 }
0x217b   : > { %v18706_v37 = vsel %vm5121_vm8, %v18685_v27, %v18690_v58 }
0x217c   : > { %v18695_v12 = vpop.permute.xlu0 %18694 }
0x217d   : > { %v18710_v6 = vsel %vm5121_vm8, %v18692_v9, %v18695_v12 }
0x217e   : > { %19044 = vmatprep.mubr.bf16.mxu1 %v18710_v6  ;;  %v18699_v4 = vpop.permute.xlu1 %18698 }
0x217f   : > { %19045 = vmatmul.mubr.bf16.vlgmr.msra.gmra.mrb[216].mxu1 %v18706_v37  ;;  %v18714_v0 = vsel %vm5121_vm8, %v18696_v49, %v18699_v4 }
0x2180   : > { %20800 = vmatpush3.bf16.msra.mxu1 %v21279_v62  ;;  %v18703_v20 = vpop.permute.xlu0 %18702  ;;  %20807 = vmatprep.mubr.msk.bf16.mxu1 %vm21321_vm0, %v27646_v61 }
0x2181   : > { %v18718_v52 = vsel %vm5121_vm8, %v18700_v59, %v18703_v20  ;;  %20801 = vmatprep.subr.bf16.mxu1 %v27646_v61 }
0x2182   : > { %19084 = vmatprep.mubr.bf16.mxu0 %v18718_v52 }
0x2183   : > { %19085 = vmatmul.mubr.bf16.vlgmr.msra.gmra.mrb[216].mxu0 %v18714_v0 }
0x2184   : > { %20802 = vmatpush3.bf16.msra.mxu1 %v21281_v53  ;;  %20819 = vmatprep.mubr.msk.bf16.mxu0 %vm21321_vm0, %v27646_v61 }
0x2185   : > { %20803 = vmatprep.subr.bf16.mxu1 %v27646_v61  ;;  %20812 = vmatpush3.bf16.msra.mxu0 %v21284_v57 }
0x2186   : > { %20813 = vmatprep.subr.bf16.mxu0 %v27646_v61 }
0x2188   : > { %20804 = vmatpush3.bf16.msra.mxu1 %v21282_v35 }
0x2189   : > { %20805 = vmatprep.subr.bf16.mxu1 %v27646_v61  ;;  %20814 = vmatpush3.bf16.msra.mxu0 %v21285_v44 }
0x218a   : > { %20815 = vmatprep.subr.bf16.mxu0 %v27646_v61 }
0x218c   : > { %20806 = vmatpush3.bf16.msra.mxu1 %v21283_v14 }
0x218d   : > { %20816 = vmatpush3.bf16.msra.mxu0 %v21286_v63 }
0x218e   : > { %20817 = vmatprep.subr.bf16.mxu0 %v27646_v61 }
0x218f   : > { %20808 = vmatmul.mubr.msk.bf16.vlgmr.msra.gmra.mrb[220].mxu1 %vm5121_vm8, %v18704_v1 }
0x2191   : > { %20818 = vmatpush3.bf16.msra.mxu0 %v21287_v17 }
0x2252   : > { %v20435_v26 = vpop.f32.mrb[216].mxu1 }
0x2253   : > { %v20436_v46 = vpop.f32.mrb[217].mxu1 }
0x2254   : > { %v20437_v8 = vadd.f32 %v20436_v46, %v20435_v26  ;;  %v20438_v39 = vpop.f32.mrb[218].mxu1 }
0x2255   : > { %v20439_v41 = vpop.f32.mrb[219].mxu1 }
0x2256   : > { %v20457_v22 = vpop.f32.mrb[216].mxu0  ;;  %v19047_v47 = vadd.f32 %v20437_v8, %v18792_v51 }
0x2257   : > { %v20458_v36 = vpop.f32.mrb[217].mxu0 }
0x2258   : > { %v20459_v31 = vadd.f32 %v20458_v36, %v20457_v22  ;;  %v20460_v16 = vpop.f32.mrb[218].mxu0 }
0x2259   : > { %v20461_v7 = vpop.f32.mrb[219].mxu0 }
0x225a   : > { %v19087_v45 = vadd.f32 %v20459_v31, %v19047_v47 }
0x2262   : > { %v19126_v54 = vpop.f32.mrb[220].mxu1 }
0x2263   : > { %v19127_v61 = vadd.f32 %v19126_v54, %v19087_v45  ;;  %v20809_v21 = vpop.f32.mrb[221].mxu1 }
0x2264   : > { %v19129_v19 = vpop.f32.mrb[222].mxu1 }
0x2265   : > { %v19133_v60 = vadd.f32 %v19132_v23, %v19127_v61  ;;  %v20810_v3 = vpop.f32.mrb[223].mxu1 }
0x2267   : > { %v19134_v32 = vpack.c.bf16 %v19133_v60, %v19133_v60 }
0x2269   : > { %20820 = vmatmul.mubr.msk.bf16.vlgmr.msra.gmra.mrb[220].mxu0 %vm5121_vm8, %v19134_v32 }
0x233c   : > { %v19204_v43 = vpop.f32.mrb[220].mxu0 }
0x233d   : > { %19210 = vst [vmem:[%s816_s1] sm:$0x1] %v19204_v43  ;;  %v20821_v48 = vpop.f32.mrb[221].mxu0 }
0x233e   : > { %v19207_v34 = vpop.f32.mrb[222].mxu0 }
0x233f   : > { %v20822_v5 = vpop.f32.mrb[223].mxu0 }
0x2340 PF: > { %s27672_s2 = sld [smem:[#allocation3_spill]] }
0x2346   : > { %s39_s7 = sadd.s32 1, %s27672_s2  }
0x2347   : > { %p36_p4 = scmp.ge.s32.totalorder %s39_s7, 4  }
0x2349   :  { %38 = sbr.rel (!%p36_p4) target bundleno = 14 (0xe), region = 158 }

</bundles_post_ra>
